<compile_context>
chip_gen: v5e
topology: v5e:2x2
jax: 0.10.0
libtpu: 0.0.40
codegen_flags: <defaults>
</compile_context>

<pallas_src>
import jax
import jax.numpy as jnp
from jax.experimental import pallas as pl
from jax.experimental.pallas import tpu as pltpu


# ---------------------------------------------------------------------------
# Fused whole-network kernel builder
# ---------------------------------------------------------------------------
def _build_kernel(layer_dims):
    """layer_dims: tuple of (Ho, Wo, Cin, Cout) per 4x4/stride-2/pad-1 conv layer."""
    n_layers = len(layer_dims)

    def kernel(*refs):
        x_ref = refs[0]                                   # (1, Hp, 2, Wp//2, C0) bf16
        w_refs = [refs[1 + 2 * l] for l in range(n_layers)]   # (16*Cin, Cout) bf16
        b_refs = [refs[2 + 2 * l] for l in range(n_layers)]   # (1, Cout) f32
        wh_ref = refs[1 + 2 * n_layers]                   # (C_last, 1) f32
        o_ref = refs[2 + 2 * n_layers]                    # (1, Ho_f, Wo_f, 1) f32
        bufs = list(refs[3 + 2 * n_layers:])              # VMEM scratch activations

        # Zero the padded scratch activations (the +1 border must stay zero).
        for buf in bufs:
            buf[...] = jnp.zeros_like(buf)

        def conv_rows(load_tap, Ho, Wo, w_ref, b_ref):
            """4x4/s2/p1 conv + bias + LeakyReLU(0.01), one output row at a time."""
            w = w_ref[...]                                # (16*Cin, Cout) bf16
            b = b_ref[...]                                # (1, Cout) f32
            rows = []
            for r in range(Ho):                           # static unroll
                taps = []
                for di in range(4):                       # kernel row offset
                    for bj in range(2):                   # column-pair offset
                        for pj in range(2):               # column phase
                            taps.append(load_tap(2 * r + di, pj, bj, Wo))
                patch = jnp.concatenate(taps, axis=-1)    # (Wo, 16*Cin) bf16 im2col row-tile
                acc = jnp.dot(patch, w, preferred_element_type=jnp.float32)
                y = acc + b                               # f32 epilogue
                rows.append(jnp.where(y >= 0, y, 0.01 * y))
                # Dropout2d(0.2): identity in eval/inference mode.
                # TODO(synk): training-mode per-channel dropout not implemented.
            return rows

        def input_tap(i, pj, bj, Wo):
            return x_ref[0, i, pj, bj:bj + Wo, :]

        def make_buf_tap(buf):
            def tap(i, pj, bj, Wo):
                return buf[i, pj, bj:bj + Wo, :]
            return tap

        load_tap = input_tap
        rows = None
        for l, (Ho, Wo, _cin, _cout) in enumerate(layer_dims):
            rows = conv_rows(load_tap, Ho, Wo, w_refs[l], b_refs[l])
            if l + 1 < n_layers:
                # Scatter this layer's output into the next layer's padded,
                # phase-split VMEM buffer (activations stay bf16 & VMEM-resident).
                dst = bufs[l]
                for r, y in enumerate(rows):
                    yb = y.astype(dst.dtype)
                    ev = jnp.concatenate([yb[k:k + 1, :] for k in range(0, Wo, 2)], axis=0)
                    od = jnp.concatenate([yb[k:k + 1, :] for k in range(1, Wo, 2)], axis=0)
                    dst[r + 1, 1, 0:Wo // 2, :] = ev          # even output columns
                    dst[r + 1, 0, 1:Wo // 2 + 1, :] = od      # odd output columns
                load_tap = make_buf_tap(dst)

        # Fused bias-free 1x1 conv head (f32), directly from the last layer's rows.
        wh = wh_ref[...]                                      # (C_last, 1) f32
        for r, y in enumerate(rows):
            o_ref[0, r, :, :] = jnp.dot(y, wh, preferred_element_type=jnp.float32)

    return kernel


# ---------------------------------------------------------------------------
# Wrapper: packs input / weights, launches the single fused pallas_call
# ---------------------------------------------------------------------------
def discriminator_forward(x_nchw, layer_params, w_head):
    N, C0, H, W = x_nchw.shape
    n_layers = len(layer_params)
    assert H % (2 ** n_layers) == 0 and W % (2 ** n_layers) == 0

    # Per-layer output dims.
    layer_dims = []
    h, w_sp, cin = H, W, C0
    for (wgt, _b) in layer_params:
        cout = wgt.shape[3]
        h, w_sp = h // 2, w_sp // 2
        layer_dims.append((h, w_sp, cin, cout))
        cin = cout
    Ho_f, Wo_f = layer_dims[-1][0], layer_dims[-1][1]

    # NCHW -> NHWC, zero-pad by 1, split W into (pair, phase) and give the phase
    # its own (leading) axis:  xw[n, i, pj, j, c] == x_padded[n, i, 2*j + pj, c].
    x = jnp.transpose(x_nchw, (0, 2, 3, 1)).astype(jnp.float32)
    xp = jnp.pad(x, ((0, 0), (1, 1), (1, 1), (0, 0)))
    Hp, Wp = H + 2, W + 2
    xw = xp.reshape(N, Hp, Wp // 2, 2, C0).transpose(0, 1, 3, 2, 4).astype(jnp.bfloat16)

    # Weights: HWIO (4,4,Cin,Cout) -> rows ordered (di, bj, pj, cin), i.e. dj = 2*bj+pj,
    # matching the in-kernel im2col concat order.  bf16 for the MXU.
    w_mats, b_vecs = [], []
    for (wgt, b) in layer_params:
        c_in, c_out = wgt.shape[2], wgt.shape[3]
        wm = wgt.reshape(4, 2, 2, c_in, c_out).reshape(16 * c_in, c_out)
        w_mats.append(wm.astype(jnp.bfloat16))
        b_vecs.append(b.reshape(1, c_out).astype(jnp.float32))
    wh = w_head.reshape(w_head.shape[2], 1).astype(jnp.float32)

    kernel = _build_kernel(tuple(layer_dims))

    in_specs = [pl.BlockSpec((1, Hp, 2, Wp // 2, C0), lambda n: (n, 0, 0, 0, 0))]
    args = [xw]
    for l in range(n_layers):
        in_specs.append(pl.BlockSpec(w_mats[l].shape, lambda n: (0, 0)))
        in_specs.append(pl.BlockSpec(b_vecs[l].shape, lambda n: (0, 0)))
        args += [w_mats[l], b_vecs[l]]
    in_specs.append(pl.BlockSpec(wh.shape, lambda n: (0, 0)))
    args.append(wh)

    # One padded, phase-split bf16 VMEM buffer per *intermediate* activation.
    scratch = []
    for l in range(n_layers - 1):
        ho, wo, _ci, co = layer_dims[l]
        scratch.append(pltpu.VMEM((ho + 2, 2, wo // 2 + 1, co), jnp.bfloat16))

    out = pl.pallas_call(
        kernel,
        out_shape=jax.ShapeDtypeStruct((N, Ho_f, Wo_f, 1), jnp.float32),
        grid_spec=pltpu.PrefetchScalarGridSpec(
            num_scalar_prefetch=0,
            grid=(N,),
            in_specs=in_specs,
            out_specs=pl.BlockSpec((1, Ho_f, Wo_f, 1), lambda n: (n, 0, 0, 0)),
            scratch_shapes=scratch,
        ),
        compiler_params=pltpu.CompilerParams(
            dimension_semantics=("parallel",)),
    )(*args)

    # (N, Ho, Wo, 1) -> (N, Ho, Wo), matching PyTorch out_src.squeeze(1).
    return out[..., 0]


# ---------------------------------------------------------------------------
# Parameter init (deterministic, synthetic) and pure-JAX references
# ---------------------------------------------------------------------------
def init_params(key, conv_dim, repeat_num):
    """Weights stored HWIO (kh, kw, Cin, Cout)."""
    layer_params = []
    curr = conv_dim
    for _ in range(1, repeat_num):
        key, kw, kb = jax.random.split(key, 3)
        w = jax.random.normal(kw, (4, 4, curr, curr * 2), jnp.float32) * 0.05
        b = jax.random.normal(kb, (curr * 2,), jnp.float32) * 0.05
        layer_params.append((w, b))
        curr *= 2
    key, kw = jax.random.split(key)
    w_head = jax.random.normal(kw, (1, 1, curr, 1), jnp.float32) * 0.05
    return layer_params, w_head


def reference_forward(x_nchw, layer_params, w_head, match_kernel_bf16):
    """lax.conv reference.  If match_kernel_bf16, round conv operands to bf16 the
    same way the kernel's MXU path does (f32 accumulate everywhere)."""
    x = jnp.transpose(x_nchw, (0, 2, 3, 1)).astype(jnp.float32)
    dn = ("NHWC", "HWIO", "NHWC")
    hp = jax.lax.Precision.HIGHEST
    for (w, b) in layer_params:
        if match_kernel_bf16:
            xc = x.astype(jnp.bfloat16).astype(jnp.float32)
            wc = w.astype(jnp.bfloat16).astype(jnp.float32)
        else:
            xc, wc = x, w
        y = jax.lax.conv_general_dilated(xc, wc, (2, 2), ((1, 1), (1, 1)),
                                         dimension_numbers=dn, precision=hp) + b
        x = jnp.where(y >= 0, y, 0.01 * y)
    y = jax.lax.conv_general_dilated(x, w_head, (1, 1), ((0, 0), (0, 0)),
                                     dimension_numbers=dn, precision=hp)
    return y[..., 0]


if __name__ == "__main__":
    # Small, module-consistent shapes: conv_dim=8, repeat_num=4,
    # input (batch=2, channels=conv_dim=8, H=W=16), NCHW like PyTorch.
    conv_dim, repeat_num = 8, 4
    key = jax.random.PRNGKey(0)
    key, kx = jax.random.split(key)
    x = jax.random.normal(kx, (2, conv_dim, 16, 16), jnp.float32)
    layer_params, w_head = init_params(key, conv_dim, repeat_num)

    fwd = jax.jit(discriminator_forward)
    out = jax.block_until_ready(fwd(x, layer_params, w_head))

    # Reference matching the kernel's bf16 MXU operands (tight check of all the
    # layout / im2col / fusion logic), plus a pure-f32 reference (loose check of
    # the bf16 quantization error).
    ref_bf = jax.block_until_ready(reference_forward(x, layer_params, w_head, True))
    ref_f32 = jax.block_until_ready(reference_forward(x, layer_params, w_head, False))

    assert out.shape == ref_f32.shape == (2, 2, 2), out.shape
    assert jnp.allclose(out, ref_bf, rtol=1e-3, atol=1e-3), "mismatch vs bf16-matched reference"
    assert jnp.allclose(out, ref_f32, rtol=5e-2, atol=5e-2), "mismatch vs f32 reference"

    print("KERNEL_OK")
</pallas_src>

<mosaic_0001>
module attributes {stable_mosaic.version = 11 : i64} {
  func.func @kernel(%arg0: i32, %arg1: memref<1x18x2x9x8xbf16, #tpu.memory_space<vmem>>, %arg2: memref<128x16xbf16, #tpu.memory_space<vmem>>, %arg3: memref<1x16xf32, #tpu.memory_space<vmem>>, %arg4: memref<256x32xbf16, #tpu.memory_space<vmem>>, %arg5: memref<1x32xf32, #tpu.memory_space<vmem>>, %arg6: memref<512x64xbf16, #tpu.memory_space<vmem>>, %arg7: memref<1x64xf32, #tpu.memory_space<vmem>>, %arg8: memref<64x1xf32, #tpu.memory_space<vmem>>, %arg9: memref<1x2x2x1xf32, #tpu.memory_space<vmem>>, %arg10: memref<10x2x5x16xbf16, #tpu.memory_space<vmem>>, %arg11: memref<6x2x3x32xbf16, #tpu.memory_space<vmem>>) attributes {dimension_semantics = [#tpu.dimension_semantics<parallel>], iteration_bounds = array<i64: 2>, scalar_prefetch = 0 : i64, scratch_operands = 2 : i64, tpu.core_type = #tpu.core_type<tc>, window_params = [{transform_indices = @transform_0, window_bounds = array<i64: 1, 18, 2, 9, 8>}, {pipeline_mode = #tpu.pipeline_mode<synchronous>, transform_indices = @transform_1, window_bounds = array<i64: 128, 16>}, {pipeline_mode = #tpu.pipeline_mode<synchronous>, transform_indices = @transform_2, window_bounds = array<i64: 1, 16>}, {pipeline_mode = #tpu.pipeline_mode<synchronous>, transform_indices = @transform_3, window_bounds = array<i64: 256, 32>}, {pipeline_mode = #tpu.pipeline_mode<synchronous>, transform_indices = @transform_4, window_bounds = array<i64: 1, 32>}, {pipeline_mode = #tpu.pipeline_mode<synchronous>, transform_indices = @transform_5, window_bounds = array<i64: 512, 64>}, {pipeline_mode = #tpu.pipeline_mode<synchronous>, transform_indices = @transform_6, window_bounds = array<i64: 1, 64>}, {pipeline_mode = #tpu.pipeline_mode<synchronous>, transform_indices = @transform_7, window_bounds = array<i64: 64, 1>}, {transform_indices = @transform_8, window_bounds = array<i64: 1, 2, 2, 1>}]} {
    %cst = arith.constant 0.000000e+00 : bf16
    %0 = vector.broadcast %cst : bf16 to vector<10x2x5x16xbf16>
    %c0 = arith.constant 0 : index
    %c0_0 = arith.constant 0 : index
    %c0_1 = arith.constant 0 : index
    %c0_2 = arith.constant 0 : index
    %1 = vector.load %arg10[%c0, %c0_0, %c0_1, %c0_2] : memref<10x2x5x16xbf16, #tpu.memory_space<vmem>>, vector<10x2x5x16xbf16>
    tpu.vector_store %arg10[%c0, %c0_0, %c0_1, %c0_2], %0 {strides = array<i32>} : memref<10x2x5x16xbf16, #tpu.memory_space<vmem>>, vector<10x2x5x16xbf16>,
    %cst_3 = arith.constant 0.000000e+00 : bf16
    %2 = vector.broadcast %cst_3 : bf16 to vector<6x2x3x32xbf16>
    %c0_4 = arith.constant 0 : index
    %c0_5 = arith.constant 0 : index
    %c0_6 = arith.constant 0 : index
    %c0_7 = arith.constant 0 : index
    %3 = vector.load %arg11[%c0_4, %c0_5, %c0_6, %c0_7] : memref<6x2x3x32xbf16, #tpu.memory_space<vmem>>, vector<6x2x3x32xbf16>
    tpu.vector_store %arg11[%c0_4, %c0_5, %c0_6, %c0_7], %2 {strides = array<i32>} : memref<6x2x3x32xbf16, #tpu.memory_space<vmem>>, vector<6x2x3x32xbf16>,
    %c0_8 = arith.constant 0 : index
    %c0_9 = arith.constant 0 : index
    %4 = vector.load %arg2[%c0_8, %c0_9] : memref<128x16xbf16, #tpu.memory_space<vmem>>, vector<128x16xbf16>
    %c0_10 = arith.constant 0 : index
    %c0_11 = arith.constant 0 : index
    %5 = vector.load %arg3[%c0_10, %c0_11] : memref<1x16xf32, #tpu.memory_space<vmem>>, vector<1x16xf32>
    %c0_12 = arith.constant 0 : index
    %c0_13 = arith.constant 0 : index
    %c0_14 = arith.constant 0 : index
    %c0_15 = arith.constant 0 : index
    %c0_16 = arith.constant 0 : index
    %6 = vector.load %arg1[%c0_12, %c0_13, %c0_14, %c0_15, %c0_16] : memref<1x18x2x9x8xbf16, #tpu.memory_space<vmem>>, vector<1x1x1x8x8xbf16>
    %7 = vector.shape_cast %6 : vector<1x1x1x8x8xbf16> to vector<8x8xbf16>
    %c0_17 = arith.constant 0 : index
    %c0_18 = arith.constant 0 : index
    %c1 = arith.constant 1 : index
    %c0_19 = arith.constant 0 : index
    %c0_20 = arith.constant 0 : index
    %8 = vector.load %arg1[%c0_17, %c0_18, %c1, %c0_19, %c0_20] : memref<1x18x2x9x8xbf16, #tpu.memory_space<vmem>>, vector<1x1x1x8x8xbf16>
    %9 = vector.shape_cast %8 : vector<1x1x1x8x8xbf16> to vector<8x8xbf16>
    %c0_21 = arith.constant 0 : index
    %c0_22 = arith.constant 0 : index
    %c0_23 = arith.constant 0 : index
    %c1_24 = arith.constant 1 : index
    %c0_25 = arith.constant 0 : index
    %10 = vector.load %arg1[%c0_21, %c0_22, %c0_23, %c1_24, %c0_25] : memref<1x18x2x9x8xbf16, #tpu.memory_space<vmem>>, vector<1x1x1x8x8xbf16>
    %11 = vector.shape_cast %10 : vector<1x1x1x8x8xbf16> to vector<8x8xbf16>
    %c0_26 = arith.constant 0 : index
    %c0_27 = arith.constant 0 : index
    %c1_28 = arith.constant 1 : index
    %c1_29 = arith.constant 1 : index
    %c0_30 = arith.constant 0 : index
    %12 = vector.load %arg1[%c0_26, %c0_27, %c1_28, %c1_29, %c0_30] : memref<1x18x2x9x8xbf16, #tpu.memory_space<vmem>>, vector<1x1x1x8x8xbf16>
    %13 = vector.shape_cast %12 : vector<1x1x1x8x8xbf16> to vector<8x8xbf16>
    %c0_31 = arith.constant 0 : index
    %c1_32 = arith.constant 1 : index
    %c0_33 = arith.constant 0 : index
    %c0_34 = arith.constant 0 : index
    %c0_35 = arith.constant 0 : index
    %14 = vector.load %arg1[%c0_31, %c1_32, %c0_33, %c0_34, %c0_35] : memref<1x18x2x9x8xbf16, #tpu.memory_space<vmem>>, vector<1x1x1x8x8xbf16>
    %15 = vector.shape_cast %14 : vector<1x1x1x8x8xbf16> to vector<8x8xbf16>
    %c0_36 = arith.constant 0 : index
    %c1_37 = arith.constant 1 : index
    %c1_38 = arith.constant 1 : index
    %c0_39 = arith.constant 0 : index
    %c0_40 = arith.constant 0 : index
    %16 = vector.load %arg1[%c0_36, %c1_37, %c1_38, %c0_39, %c0_40] : memref<1x18x2x9x8xbf16, #tpu.memory_space<vmem>>, vector<1x1x1x8x8xbf16>
    %17 = vector.shape_cast %16 : vector<1x1x1x8x8xbf16> to vector<8x8xbf16>
    %c0_41 = arith.constant 0 : index
    %c1_42 = arith.constant 1 : index
    %c0_43 = arith.constant 0 : index
    %c1_44 = arith.constant 1 : index
    %c0_45 = arith.constant 0 : index
    %18 = vector.load %arg1[%c0_41, %c1_42, %c0_43, %c1_44, %c0_45] : memref<1x18x2x9x8xbf16, #tpu.memory_space<vmem>>, vector<1x1x1x8x8xbf16>
    %19 = vector.shape_cast %18 : vector<1x1x1x8x8xbf16> to vector<8x8xbf16>
    %c0_46 = arith.constant 0 : index
    %c1_47 = arith.constant 1 : index
    %c1_48 = arith.constant 1 : index
    %c1_49 = arith.constant 1 : index
    %c0_50 = arith.constant 0 : index
    %20 = vector.load %arg1[%c0_46, %c1_47, %c1_48, %c1_49, %c0_50] : memref<1x18x2x9x8xbf16, #tpu.memory_space<vmem>>, vector<1x1x1x8x8xbf16>
    %21 = vector.shape_cast %20 : vector<1x1x1x8x8xbf16> to vector<8x8xbf16>
    %c0_51 = arith.constant 0 : index
    %c2 = arith.constant 2 : index
    %c0_52 = arith.constant 0 : index
    %c0_53 = arith.constant 0 : index
    %c0_54 = arith.constant 0 : index
    %22 = vector.load %arg1[%c0_51, %c2, %c0_52, %c0_53, %c0_54] : memref<1x18x2x9x8xbf16, #tpu.memory_space<vmem>>, vector<1x1x1x8x8xbf16>
    %23 = vector.shape_cast %22 : vector<1x1x1x8x8xbf16> to vector<8x8xbf16>
    %c0_55 = arith.constant 0 : index
    %c2_56 = arith.constant 2 : index
    %c1_57 = arith.constant 1 : index
    %c0_58 = arith.constant 0 : index
    %c0_59 = arith.constant 0 : index
    %24 = vector.load %arg1[%c0_55, %c2_56, %c1_57, %c0_58, %c0_59] : memref<1x18x2x9x8xbf16, #tpu.memory_space<vmem>>, vector<1x1x1x8x8xbf16>
    %25 = vector.shape_cast %24 : vector<1x1x1x8x8xbf16> to vector<8x8xbf16>
    %c0_60 = arith.constant 0 : index
    %c2_61 = arith.constant 2 : index
    %c0_62 = arith.constant 0 : index
    %c1_63 = arith.constant 1 : index
    %c0_64 = arith.constant 0 : index
    %26 = vector.load %arg1[%c0_60, %c2_61, %c0_62, %c1_63, %c0_64] : memref<1x18x2x9x8xbf16, #tpu.memory_space<vmem>>, vector<1x1x1x8x8xbf16>
    %27 = vector.shape_cast %26 : vector<1x1x1x8x8xbf16> to vector<8x8xbf16>
    %c0_65 = arith.constant 0 : index
    %c2_66 = arith.constant 2 : index
    %c1_67 = arith.constant 1 : index
    %c1_68 = arith.constant 1 : index
    %c0_69 = arith.constant 0 : index
    %28 = vector.load %arg1[%c0_65, %c2_66, %c1_67, %c1_68, %c0_69] : memref<1x18x2x9x8xbf16, #tpu.memory_space<vmem>>, vector<1x1x1x8x8xbf16>
    %29 = vector.shape_cast %28 : vector<1x1x1x8x8xbf16> to vector<8x8xbf16>
    %c0_70 = arith.constant 0 : index
    %c3 = arith.constant 3 : index
    %c0_71 = arith.constant 0 : index
    %c0_72 = arith.constant 0 : index
    %c0_73 = arith.constant 0 : index
    %30 = vector.load %arg1[%c0_70, %c3, %c0_71, %c0_72, %c0_73] : memref<1x18x2x9x8xbf16, #tpu.memory_space<vmem>>, vector<1x1x1x8x8xbf16>
    %31 = vector.shape_cast %30 : vector<1x1x1x8x8xbf16> to vector<8x8xbf16>
    %c0_74 = arith.constant 0 : index
    %c3_75 = arith.constant 3 : index
    %c1_76 = arith.constant 1 : index
    %c0_77 = arith.constant 0 : index
    %c0_78 = arith.constant 0 : index
    %32 = vector.load %arg1[%c0_74, %c3_75, %c1_76, %c0_77, %c0_78] : memref<1x18x2x9x8xbf16, #tpu.memory_space<vmem>>, vector<1x1x1x8x8xbf16>
    %33 = vector.shape_cast %32 : vector<1x1x1x8x8xbf16> to vector<8x8xbf16>
    %c0_79 = arith.constant 0 : index
    %c3_80 = arith.constant 3 : index
    %c0_81 = arith.constant 0 : index
    %c1_82 = arith.constant 1 : index
    %c0_83 = arith.constant 0 : index
    %34 = vector.load %arg1[%c0_79, %c3_80, %c0_81, %c1_82, %c0_83] : memref<1x18x2x9x8xbf16, #tpu.memory_space<vmem>>, vector<1x1x1x8x8xbf16>
    %35 = vector.shape_cast %34 : vector<1x1x1x8x8xbf16> to vector<8x8xbf16>
    %c0_84 = arith.constant 0 : index
    %c3_85 = arith.constant 3 : index
    %c1_86 = arith.constant 1 : index
    %c1_87 = arith.constant 1 : index
    %c0_88 = arith.constant 0 : index
    %36 = vector.load %arg1[%c0_84, %c3_85, %c1_86, %c1_87, %c0_88] : memref<1x18x2x9x8xbf16, #tpu.memory_space<vmem>>, vector<1x1x1x8x8xbf16>
    %37 = vector.shape_cast %36 : vector<1x1x1x8x8xbf16> to vector<8x8xbf16>
    %38 = tpu.concatenate %7, %9, %11, %13, %15, %17, %19, %21, %23, %25, %27, %29, %31, %33, %35, %37 in 1 : vector<8x8xbf16>, vector<8x8xbf16>, vector<8x8xbf16>, vector<8x8xbf16>, vector<8x8xbf16>, vector<8x8xbf16>, vector<8x8xbf16>, vector<8x8xbf16>, vector<8x8xbf16>, vector<8x8xbf16>, vector<8x8xbf16>, vector<8x8xbf16>, vector<8x8xbf16>, vector<8x8xbf16>, vector<8x8xbf16>, vector<8x8xbf16> -> vector<8x128xbf16>
    %cst_89 = arith.constant dense<0.000000e+00> : vector<8x16xf32>
    %39 = tpu.matmul %38, %4, %cst_89 {dimension_numbers = #tpu.dot_dimension_numbers<[1], [0], [0], [1], [0, 0, 1, 1], [], []>} : vector<8x128xbf16>, vector<128x16xbf16>, vector<8x16xf32> -> vector<8x16xf32>
    %40 = vector.broadcast %5 : vector<1x16xf32> to vector<8x16xf32>
    %41 = arith.addf %39, %40 : vector<8x16xf32>
    %cst_90 = arith.constant 0.000000e+00 : f32
    %42 = vector.broadcast %cst_90 : f32 to vector<8x16xf32>
    %43 = arith.cmpf oge, %41, %42 : vector<8x16xf32>
    %cst_91 = arith.constant 0.00999999977 : f32
    %44 = vector.broadcast %cst_91 : f32 to vector<8x16xf32>
    %45 = arith.mulf %44, %41 : vector<8x16xf32>
    %46 = arith.select %43, %41, %45 : vector<8x16xi1>, vector<8x16xf32>
    %c0_92 = arith.constant 0 : index
    %c2_93 = arith.constant 2 : index
    %c0_94 = arith.constant 0 : index
    %c0_95 = arith.constant 0 : index
    %c0_96 = arith.constant 0 : index
    %47 = vector.load %arg1[%c0_92, %c2_93, %c0_94, %c0_95, %c0_96] : memref<1x18x2x9x8xbf16, #tpu.memory_space<vmem>>, vector<1x1x1x8x8xbf16>
    %48 = vector.shape_cast %47 : vector<1x1x1x8x8xbf16> to vector<8x8xbf16>
    %c0_97 = arith.constant 0 : index
    %c2_98 = arith.constant 2 : index
    %c1_99 = arith.constant 1 : index
    %c0_100 = arith.constant 0 : index
    %c0_101 = arith.constant 0 : index
    %49 = vector.load %arg1[%c0_97, %c2_98, %c1_99, %c0_100, %c0_101] : memref<1x18x2x9x8xbf16, #tpu.memory_space<vmem>>, vector<1x1x1x8x8xbf16>
    %50 = vector.shape_cast %49 : vector<1x1x1x8x8xbf16> to vector<8x8xbf16>
    %c0_102 = arith.constant 0 : index
    %c2_103 = arith.constant 2 : index
    %c0_104 = arith.constant 0 : index
    %c1_105 = arith.constant 1 : index
    %c0_106 = arith.constant 0 : index
    %51 = vector.load %arg1[%c0_102, %c2_103, %c0_104, %c1_105, %c0_106] : memref<1x18x2x9x8xbf16, #tpu.memory_space<vmem>>, vector<1x1x1x8x8xbf16>
    %52 = vector.shape_cast %51 : vector<1x1x1x8x8xbf16> to vector<8x8xbf16>
    %c0_107 = arith.constant 0 : index
    %c2_108 = arith.constant 2 : index
    %c1_109 = arith.constant 1 : index
    %c1_110 = arith.constant 1 : index
    %c0_111 = arith.constant 0 : index
    %53 = vector.load %arg1[%c0_107, %c2_108, %c1_109, %c1_110, %c0_111] : memref<1x18x2x9x8xbf16, #tpu.memory_space<vmem>>, vector<1x1x1x8x8xbf16>
    %54 = vector.shape_cast %53 : vector<1x1x1x8x8xbf16> to vector<8x8xbf16>
    %c0_112 = arith.constant 0 : index
    %c3_113 = arith.constant 3 : index
    %c0_114 = arith.constant 0 : index
    %c0_115 = arith.constant 0 : index
    %c0_116 = arith.constant 0 : index
    %55 = vector.load %arg1[%c0_112, %c3_113, %c0_114, %c0_115, %c0_116] : memref<1x18x2x9x8xbf16, #tpu.memory_space<vmem>>, vector<1x1x1x8x8xbf16>
    %56 = vector.shape_cast %55 : vector<1x1x1x8x8xbf16> to vector<8x8xbf16>
    %c0_117 = arith.constant 0 : index
    %c3_118 = arith.constant 3 : index
    %c1_119 = arith.constant 1 : index
    %c0_120 = arith.constant 0 : index
    %c0_121 = arith.constant 0 : index
    %57 = vector.load %arg1[%c0_117, %c3_118, %c1_119, %c0_120, %c0_121] : memref<1x18x2x9x8xbf16, #tpu.memory_space<vmem>>, vector<1x1x1x8x8xbf16>
    %58 = vector.shape_cast %57 : vector<1x1x1x8x8xbf16> to vector<8x8xbf16>
    %c0_122 = arith.constant 0 : index
    %c3_123 = arith.constant 3 : index
    %c0_124 = arith.constant 0 : index
    %c1_125 = arith.constant 1 : index
    %c0_126 = arith.constant 0 : index
    %59 = vector.load %arg1[%c0_122, %c3_123, %c0_124, %c1_125, %c0_126] : memref<1x18x2x9x8xbf16, #tpu.memory_space<vmem>>, vector<1x1x1x8x8xbf16>
    %60 = vector.shape_cast %59 : vector<1x1x1x8x8xbf16> to vector<8x8xbf16>
    %c0_127 = arith.constant 0 : index
    %c3_128 = arith.constant 3 : index
    %c1_129 = arith.constant 1 : index
    %c1_130 = arith.constant 1 : index
    %c0_131 = arith.constant 0 : index
    %61 = vector.load %arg1[%c0_127, %c3_128, %c1_129, %c1_130, %c0_131] : memref<1x18x2x9x8xbf16, #tpu.memory_space<vmem>>, vector<1x1x1x8x8xbf16>
    %62 = vector.shape_cast %61 : vector<1x1x1x8x8xbf16> to vector<8x8xbf16>
    %c0_132 = arith.constant 0 : index
    %c4 = arith.constant 4 : index
    %c0_133 = arith.constant 0 : index
    %c0_134 = arith.constant 0 : index
    %c0_135 = arith.constant 0 : index
    %63 = vector.load %arg1[%c0_132, %c4, %c0_133, %c0_134, %c0_135] : memref<1x18x2x9x8xbf16, #tpu.memory_space<vmem>>, vector<1x1x1x8x8xbf16>
    %64 = vector.shape_cast %63 : vector<1x1x1x8x8xbf16> to vector<8x8xbf16>
    %c0_136 = arith.constant 0 : index
    %c4_137 = arith.constant 4 : index
    %c1_138 = arith.constant 1 : index
    %c0_139 = arith.constant 0 : index
    %c0_140 = arith.constant 0 : index
    %65 = vector.load %arg1[%c0_136, %c4_137, %c1_138, %c0_139, %c0_140] : memref<1x18x2x9x8xbf16, #tpu.memory_space<vmem>>, vector<1x1x1x8x8xbf16>
    %66 = vector.shape_cast %65 : vector<1x1x1x8x8xbf16> to vector<8x8xbf16>
    %c0_141 = arith.constant 0 : index
    %c4_142 = arith.constant 4 : index
    %c0_143 = arith.constant 0 : index
    %c1_144 = arith.constant 1 : index
    %c0_145 = arith.constant 0 : index
    %67 = vector.load %arg1[%c0_141, %c4_142, %c0_143, %c1_144, %c0_145] : memref<1x18x2x9x8xbf16, #tpu.memory_space<vmem>>, vector<1x1x1x8x8xbf16>
    %68 = vector.shape_cast %67 : vector<1x1x1x8x8xbf16> to vector<8x8xbf16>
    %c0_146 = arith.constant 0 : index
    %c4_147 = arith.constant 4 : index
    %c1_148 = arith.constant 1 : index
    %c1_149 = arith.constant 1 : index
    %c0_150 = arith.constant 0 : index
    %69 = vector.load %arg1[%c0_146, %c4_147, %c1_148, %c1_149, %c0_150] : memref<1x18x2x9x8xbf16, #tpu.memory_space<vmem>>, vector<1x1x1x8x8xbf16>
    %70 = vector.shape_cast %69 : vector<1x1x1x8x8xbf16> to vector<8x8xbf16>
    %c0_151 = arith.constant 0 : index
    %c5 = arith.constant 5 : index
    %c0_152 = arith.constant 0 : index
    %c0_153 = arith.constant 0 : index
    %c0_154 = arith.constant 0 : index
    %71 = vector.load %arg1[%c0_151, %c5, %c0_152, %c0_153, %c0_154] : memref<1x18x2x9x8xbf16, #tpu.memory_space<vmem>>, vector<1x1x1x8x8xbf16>
    %72 = vector.shape_cast %71 : vector<1x1x1x8x8xbf16> to vector<8x8xbf16>
    %c0_155 = arith.constant 0 : index
    %c5_156 = arith.constant 5 : index
    %c1_157 = arith.constant 1 : index
    %c0_158 = arith.constant 0 : index
    %c0_159 = arith.constant 0 : index
    %73 = vector.load %arg1[%c0_155, %c5_156, %c1_157, %c0_158, %c0_159] : memref<1x18x2x9x8xbf16, #tpu.memory_space<vmem>>, vector<1x1x1x8x8xbf16>
    %74 = vector.shape_cast %73 : vector<1x1x1x8x8xbf16> to vector<8x8xbf16>
    %c0_160 = arith.constant 0 : index
    %c5_161 = arith.constant 5 : index
    %c0_162 = arith.constant 0 : index
    %c1_163 = arith.constant 1 : index
    %c0_164 = arith.constant 0 : index
    %75 = vector.load %arg1[%c0_160, %c5_161, %c0_162, %c1_163, %c0_164] : memref<1x18x2x9x8xbf16, #tpu.memory_space<vmem>>, vector<1x1x1x8x8xbf16>
    %76 = vector.shape_cast %75 : vector<1x1x1x8x8xbf16> to vector<8x8xbf16>
    %c0_165 = arith.constant 0 : index
    %c5_166 = arith.constant 5 : index
    %c1_167 = arith.constant 1 : index
    %c1_168 = arith.constant 1 : index
    %c0_169 = arith.constant 0 : index
    %77 = vector.load %arg1[%c0_165, %c5_166, %c1_167, %c1_168, %c0_169] : memref<1x18x2x9x8xbf16, #tpu.memory_space<vmem>>, vector<1x1x1x8x8xbf16>
    %78 = vector.shape_cast %77 : vector<1x1x1x8x8xbf16> to vector<8x8xbf16>
    %79 = tpu.concatenate %48, %50, %52, %54, %56, %58, %60, %62, %64, %66, %68, %70, %72, %74, %76, %78 in 1 : vector<8x8xbf16>, vector<8x8xbf16>, vector<8x8xbf16>, vector<8x8xbf16>, vector<8x8xbf16>, vector<8x8xbf16>, vector<8x8xbf16>, vector<8x8xbf16>, vector<8x8xbf16>, vector<8x8xbf16>, vector<8x8xbf16>, vector<8x8xbf16>, vector<8x8xbf16>, vector<8x8xbf16>, vector<8x8xbf16>, vector<8x8xbf16> -> vector<8x128xbf16>
    %cst_170 = arith.constant dense<0.000000e+00> : vector<8x16xf32>
    %80 = tpu.matmul %79, %4, %cst_170 {dimension_numbers = #tpu.dot_dimension_numbers<[1], [0], [0], [1], [0, 0, 1, 1], [], []>} : vector<8x128xbf16>, vector<128x16xbf16>, vector<8x16xf32> -> vector<8x16xf32>
    %81 = vector.broadcast %5 : vector<1x16xf32> to vector<8x16xf32>
    %82 = arith.addf %80, %81 : vector<8x16xf32>
    %cst_171 = arith.constant 0.000000e+00 : f32
    %83 = vector.broadcast %cst_171 : f32 to vector<8x16xf32>
    %84 = arith.cmpf oge, %82, %83 : vector<8x16xf32>
    %cst_172 = arith.constant 0.00999999977 : f32
    %85 = vector.broadcast %cst_172 : f32 to vector<8x16xf32>
    %86 = arith.mulf %85, %82 : vector<8x16xf32>
    %87 = arith.select %84, %82, %86 : vector<8x16xi1>, vector<8x16xf32>
    %c0_173 = arith.constant 0 : index
    %c4_174 = arith.constant 4 : index
    %c0_175 = arith.constant 0 : index
    %c0_176 = arith.constant 0 : index
    %c0_177 = arith.constant 0 : index
    %88 = vector.load %arg1[%c0_173, %c4_174, %c0_175, %c0_176, %c0_177] : memref<1x18x2x9x8xbf16, #tpu.memory_space<vmem>>, vector<1x1x1x8x8xbf16>
    %89 = vector.shape_cast %88 : vector<1x1x1x8x8xbf16> to vector<8x8xbf16>
    %c0_178 = arith.constant 0 : index
    %c4_179 = arith.constant 4 : index
    %c1_180 = arith.constant 1 : index
    %c0_181 = arith.constant 0 : index
    %c0_182 = arith.constant 0 : index
    %90 = vector.load %arg1[%c0_178, %c4_179, %c1_180, %c0_181, %c0_182] : memref<1x18x2x9x8xbf16, #tpu.memory_space<vmem>>, vector<1x1x1x8x8xbf16>
    %91 = vector.shape_cast %90 : vector<1x1x1x8x8xbf16> to vector<8x8xbf16>
    %c0_183 = arith.constant 0 : index
    %c4_184 = arith.constant 4 : index
    %c0_185 = arith.constant 0 : index
    %c1_186 = arith.constant 1 : index
    %c0_187 = arith.constant 0 : index
    %92 = vector.load %arg1[%c0_183, %c4_184, %c0_185, %c1_186, %c0_187] : memref<1x18x2x9x8xbf16, #tpu.memory_space<vmem>>, vector<1x1x1x8x8xbf16>
    %93 = vector.shape_cast %92 : vector<1x1x1x8x8xbf16> to vector<8x8xbf16>
    %c0_188 = arith.constant 0 : index
    %c4_189 = arith.constant 4 : index
    %c1_190 = arith.constant 1 : index
    %c1_191 = arith.constant 1 : index
    %c0_192 = arith.constant 0 : index
    %94 = vector.load %arg1[%c0_188, %c4_189, %c1_190, %c1_191, %c0_192] : memref<1x18x2x9x8xbf16, #tpu.memory_space<vmem>>, vector<1x1x1x8x8xbf16>
    %95 = vector.shape_cast %94 : vector<1x1x1x8x8xbf16> to vector<8x8xbf16>
    %c0_193 = arith.constant 0 : index
    %c5_194 = arith.constant 5 : index
    %c0_195 = arith.constant 0 : index
    %c0_196 = arith.constant 0 : index
    %c0_197 = arith.constant 0 : index
    %96 = vector.load %arg1[%c0_193, %c5_194, %c0_195, %c0_196, %c0_197] : memref<1x18x2x9x8xbf16, #tpu.memory_space<vmem>>, vector<1x1x1x8x8xbf16>
    %97 = vector.shape_cast %96 : vector<1x1x1x8x8xbf16> to vector<8x8xbf16>
    %c0_198 = arith.constant 0 : index
    %c5_199 = arith.constant 5 : index
    %c1_200 = arith.constant 1 : index
    %c0_201 = arith.constant 0 : index
    %c0_202 = arith.constant 0 : index
    %98 = vector.load %arg1[%c0_198, %c5_199, %c1_200, %c0_201, %c0_202] : memref<1x18x2x9x8xbf16, #tpu.memory_space<vmem>>, vector<1x1x1x8x8xbf16>
    %99 = vector.shape_cast %98 : vector<1x1x1x8x8xbf16> to vector<8x8xbf16>
    %c0_203 = arith.constant 0 : index
    %c5_204 = arith.constant 5 : index
    %c0_205 = arith.constant 0 : index
    %c1_206 = arith.constant 1 : index
    %c0_207 = arith.constant 0 : index
    %100 = vector.load %arg1[%c0_203, %c5_204, %c0_205, %c1_206, %c0_207] : memref<1x18x2x9x8xbf16, #tpu.memory_space<vmem>>, vector<1x1x1x8x8xbf16>
    %101 = vector.shape_cast %100 : vector<1x1x1x8x8xbf16> to vector<8x8xbf16>
    %c0_208 = arith.constant 0 : index
    %c5_209 = arith.constant 5 : index
    %c1_210 = arith.constant 1 : index
    %c1_211 = arith.constant 1 : index
    %c0_212 = arith.constant 0 : index
    %102 = vector.load %arg1[%c0_208, %c5_209, %c1_210, %c1_211, %c0_212] : memref<1x18x2x9x8xbf16, #tpu.memory_space<vmem>>, vector<1x1x1x8x8xbf16>
    %103 = vector.shape_cast %102 : vector<1x1x1x8x8xbf16> to vector<8x8xbf16>
    %c0_213 = arith.constant 0 : index
    %c6 = arith.constant 6 : index
    %c0_214 = arith.constant 0 : index
    %c0_215 = arith.constant 0 : index
    %c0_216 = arith.constant 0 : index
    %104 = vector.load %arg1[%c0_213, %c6, %c0_214, %c0_215, %c0_216] : memref<1x18x2x9x8xbf16, #tpu.memory_space<vmem>>, vector<1x1x1x8x8xbf16>
    %105 = vector.shape_cast %104 : vector<1x1x1x8x8xbf16> to vector<8x8xbf16>
    %c0_217 = arith.constant 0 : index
    %c6_218 = arith.constant 6 : index
    %c1_219 = arith.constant 1 : index
    %c0_220 = arith.constant 0 : index
    %c0_221 = arith.constant 0 : index
    %106 = vector.load %arg1[%c0_217, %c6_218, %c1_219, %c0_220, %c0_221] : memref<1x18x2x9x8xbf16, #tpu.memory_space<vmem>>, vector<1x1x1x8x8xbf16>
    %107 = vector.shape_cast %106 : vector<1x1x1x8x8xbf16> to vector<8x8xbf16>
    %c0_222 = arith.constant 0 : index
    %c6_223 = arith.constant 6 : index
    %c0_224 = arith.constant 0 : index
    %c1_225 = arith.constant 1 : index
    %c0_226 = arith.constant 0 : index
    %108 = vector.load %arg1[%c0_222, %c6_223, %c0_224, %c1_225, %c0_226] : memref<1x18x2x9x8xbf16, #tpu.memory_space<vmem>>, vector<1x1x1x8x8xbf16>
    %109 = vector.shape_cast %108 : vector<1x1x1x8x8xbf16> to vector<8x8xbf16>
    %c0_227 = arith.constant 0 : index
    %c6_228 = arith.constant 6 : index
    %c1_229 = arith.constant 1 : index
    %c1_230 = arith.constant 1 : index
    %c0_231 = arith.constant 0 : index
    %110 = vector.load %arg1[%c0_227, %c6_228, %c1_229, %c1_230, %c0_231] : memref<1x18x2x9x8xbf16, #tpu.memory_space<vmem>>, vector<1x1x1x8x8xbf16>
    %111 = vector.shape_cast %110 : vector<1x1x1x8x8xbf16> to vector<8x8xbf16>
    %c0_232 = arith.constant 0 : index
    %c7 = arith.constant 7 : index
    %c0_233 = arith.constant 0 : index
    %c0_234 = arith.constant 0 : index
    %c0_235 = arith.constant 0 : index
    %112 = vector.load %arg1[%c0_232, %c7, %c0_233, %c0_234, %c0_235] : memref<1x18x2x9x8xbf16, #tpu.memory_space<vmem>>, vector<1x1x1x8x8xbf16>
    %113 = vector.shape_cast %112 : vector<1x1x1x8x8xbf16> to vector<8x8xbf16>
    %c0_236 = arith.constant 0 : index
    %c7_237 = arith.constant 7 : index
    %c1_238 = arith.constant 1 : index
    %c0_239 = arith.constant 0 : index
    %c0_240 = arith.constant 0 : index
    %114 = vector.load %arg1[%c0_236, %c7_237, %c1_238, %c0_239, %c0_240] : memref<1x18x2x9x8xbf16, #tpu.memory_space<vmem>>, vector<1x1x1x8x8xbf16>
    %115 = vector.shape_cast %114 : vector<1x1x1x8x8xbf16> to vector<8x8xbf16>
    %c0_241 = arith.constant 0 : index
    %c7_242 = arith.constant 7 : index
    %c0_243 = arith.constant 0 : index
    %c1_244 = arith.constant 1 : index
    %c0_245 = arith.constant 0 : index
    %116 = vector.load %arg1[%c0_241, %c7_242, %c0_243, %c1_244, %c0_245] : memref<1x18x2x9x8xbf16, #tpu.memory_space<vmem>>, vector<1x1x1x8x8xbf16>
    %117 = vector.shape_cast %116 : vector<1x1x1x8x8xbf16> to vector<8x8xbf16>
    %c0_246 = arith.constant 0 : index
    %c7_247 = arith.constant 7 : index
    %c1_248 = arith.constant 1 : index
    %c1_249 = arith.constant 1 : index
    %c0_250 = arith.constant 0 : index
    %118 = vector.load %arg1[%c0_246, %c7_247, %c1_248, %c1_249, %c0_250] : memref<1x18x2x9x8xbf16, #tpu.memory_space<vmem>>, vector<1x1x1x8x8xbf16>
    %119 = vector.shape_cast %118 : vector<1x1x1x8x8xbf16> to vector<8x8xbf16>
    %120 = tpu.concatenate %89, %91, %93, %95, %97, %99, %101, %103, %105, %107, %109, %111, %113, %115, %117, %119 in 1 : vector<8x8xbf16>, vector<8x8xbf16>, vector<8x8xbf16>, vector<8x8xbf16>, vector<8x8xbf16>, vector<8x8xbf16>, vector<8x8xbf16>, vector<8x8xbf16>, vector<8x8xbf16>, vector<8x8xbf16>, vector<8x8xbf16>, vector<8x8xbf16>, vector<8x8xbf16>, vector<8x8xbf16>, vector<8x8xbf16>, vector<8x8xbf16> -> vector<8x128xbf16>
    %cst_251 = arith.constant dense<0.000000e+00> : vector<8x16xf32>
    %121 = tpu.matmul %120, %4, %cst_251 {dimension_numbers = #tpu.dot_dimension_numbers<[1], [0], [0], [1], [0, 0, 1, 1], [], []>} : vector<8x128xbf16>, vector<128x16xbf16>, vector<8x16xf32> -> vector<8x16xf32>
    %122 = vector.broadcast %5 : vector<1x16xf32> to vector<8x16xf32>
    %123 = arith.addf %121, %122 : vector<8x16xf32>
    %cst_252 = arith.constant 0.000000e+00 : f32
    %124 = vector.broadcast %cst_252 : f32 to vector<8x16xf32>
    %125 = arith.cmpf oge, %123, %124 : vector<8x16xf32>
    %cst_253 = arith.constant 0.00999999977 : f32
    %126 = vector.broadcast %cst_253 : f32 to vector<8x16xf32>
    %127 = arith.mulf %126, %123 : vector<8x16xf32>
    %128 = arith.select %125, %123, %127 : vector<8x16xi1>, vector<8x16xf32>
    %c0_254 = arith.constant 0 : index
    %c6_255 = arith.constant 6 : index
    %c0_256 = arith.constant 0 : index
    %c0_257 = arith.constant 0 : index
    %c0_258 = arith.constant 0 : index
    %129 = vector.load %arg1[%c0_254, %c6_255, %c0_256, %c0_257, %c0_258] : memref<1x18x2x9x8xbf16, #tpu.memory_space<vmem>>, vector<1x1x1x8x8xbf16>
    %130 = vector.shape_cast %129 : vector<1x1x1x8x8xbf16> to vector<8x8xbf16>
    %c0_259 = arith.constant 0 : index
    %c6_260 = arith.constant 6 : index
    %c1_261 = arith.constant 1 : index
    %c0_262 = arith.constant 0 : index
    %c0_263 = arith.constant 0 : index
    %131 = vector.load %arg1[%c0_259, %c6_260, %c1_261, %c0_262, %c0_263] : memref<1x18x2x9x8xbf16, #tpu.memory_space<vmem>>, vector<1x1x1x8x8xbf16>
    %132 = vector.shape_cast %131 : vector<1x1x1x8x8xbf16> to vector<8x8xbf16>
    %c0_264 = arith.constant 0 : index
    %c6_265 = arith.constant 6 : index
    %c0_266 = arith.constant 0 : index
    %c1_267 = arith.constant 1 : index
    %c0_268 = arith.constant 0 : index
    %133 = vector.load %arg1[%c0_264, %c6_265, %c0_266, %c1_267, %c0_268] : memref<1x18x2x9x8xbf16, #tpu.memory_space<vmem>>, vector<1x1x1x8x8xbf16>
    %134 = vector.shape_cast %133 : vector<1x1x1x8x8xbf16> to vector<8x8xbf16>
    %c0_269 = arith.constant 0 : index
    %c6_270 = arith.constant 6 : index
    %c1_271 = arith.constant 1 : index
    %c1_272 = arith.constant 1 : index
    %c0_273 = arith.constant 0 : index
    %135 = vector.load %arg1[%c0_269, %c6_270, %c1_271, %c1_272, %c0_273] : memref<1x18x2x9x8xbf16, #tpu.memory_space<vmem>>, vector<1x1x1x8x8xbf16>
    %136 = vector.shape_cast %135 : vector<1x1x1x8x8xbf16> to vector<8x8xbf16>
    %c0_274 = arith.constant 0 : index
    %c7_275 = arith.constant 7 : index
    %c0_276 = arith.constant 0 : index
    %c0_277 = arith.constant 0 : index
    %c0_278 = arith.constant 0 : index
    %137 = vector.load %arg1[%c0_274, %c7_275, %c0_276, %c0_277, %c0_278] : memref<1x18x2x9x8xbf16, #tpu.memory_space<vmem>>, vector<1x1x1x8x8xbf16>
    %138 = vector.shape_cast %137 : vector<1x1x1x8x8xbf16> to vector<8x8xbf16>
    %c0_279 = arith.constant 0 : index
    %c7_280 = arith.constant 7 : index
    %c1_281 = arith.constant 1 : index
    %c0_282 = arith.constant 0 : index
    %c0_283 = arith.constant 0 : index
    %139 = vector.load %arg1[%c0_279, %c7_280, %c1_281, %c0_282, %c0_283] : memref<1x18x2x9x8xbf16, #tpu.memory_space<vmem>>, vector<1x1x1x8x8xbf16>
    %140 = vector.shape_cast %139 : vector<1x1x1x8x8xbf16> to vector<8x8xbf16>
    %c0_284 = arith.constant 0 : index
    %c7_285 = arith.constant 7 : index
    %c0_286 = arith.constant 0 : index
    %c1_287 = arith.constant 1 : index
    %c0_288 = arith.constant 0 : index
    %141 = vector.load %arg1[%c0_284, %c7_285, %c0_286, %c1_287, %c0_288] : memref<1x18x2x9x8xbf16, #tpu.memory_space<vmem>>, vector<1x1x1x8x8xbf16>
    %142 = vector.shape_cast %141 : vector<1x1x1x8x8xbf16> to vector<8x8xbf16>
    %c0_289 = arith.constant 0 : index
    %c7_290 = arith.constant 7 : index
    %c1_291 = arith.constant 1 : index
    %c1_292 = arith.constant 1 : index
    %c0_293 = arith.constant 0 : index
    %143 = vector.load %arg1[%c0_289, %c7_290, %c1_291, %c1_292, %c0_293] : memref<1x18x2x9x8xbf16, #tpu.memory_space<vmem>>, vector<1x1x1x8x8xbf16>
    %144 = vector.shape_cast %143 : vector<1x1x1x8x8xbf16> to vector<8x8xbf16>
    %c0_294 = arith.constant 0 : index
    %c8 = arith.constant 8 : index
    %c0_295 = arith.constant 0 : index
    %c0_296 = arith.constant 0 : index
    %c0_297 = arith.constant 0 : index
    %145 = vector.load %arg1[%c0_294, %c8, %c0_295, %c0_296, %c0_297] : memref<1x18x2x9x8xbf16, #tpu.memory_space<vmem>>, vector<1x1x1x8x8xbf16>
    %146 = vector.shape_cast %145 : vector<1x1x1x8x8xbf16> to vector<8x8xbf16>
    %c0_298 = arith.constant 0 : index
    %c8_299 = arith.constant 8 : index
    %c1_300 = arith.constant 1 : index
    %c0_301 = arith.constant 0 : index
    %c0_302 = arith.constant 0 : index
    %147 = vector.load %arg1[%c0_298, %c8_299, %c1_300, %c0_301, %c0_302] : memref<1x18x2x9x8xbf16, #tpu.memory_space<vmem>>, vector<1x1x1x8x8xbf16>
    %148 = vector.shape_cast %147 : vector<1x1x1x8x8xbf16> to vector<8x8xbf16>
    %c0_303 = arith.constant 0 : index
    %c8_304 = arith.constant 8 : index
    %c0_305 = arith.constant 0 : index
    %c1_306 = arith.constant 1 : index
    %c0_307 = arith.constant 0 : index
    %149 = vector.load %arg1[%c0_303, %c8_304, %c0_305, %c1_306, %c0_307] : memref<1x18x2x9x8xbf16, #tpu.memory_space<vmem>>, vector<1x1x1x8x8xbf16>
    %150 = vector.shape_cast %149 : vector<1x1x1x8x8xbf16> to vector<8x8xbf16>
    %c0_308 = arith.constant 0 : index
    %c8_309 = arith.constant 8 : index
    %c1_310 = arith.constant 1 : index
    %c1_311 = arith.constant 1 : index
    %c0_312 = arith.constant 0 : index
    %151 = vector.load %arg1[%c0_308, %c8_309, %c1_310, %c1_311, %c0_312] : memref<1x18x2x9x8xbf16, #tpu.memory_space<vmem>>, vector<1x1x1x8x8xbf16>
    %152 = vector.shape_cast %151 : vector<1x1x1x8x8xbf16> to vector<8x8xbf16>
    %c0_313 = arith.constant 0 : index
    %c9 = arith.constant 9 : index
    %c0_314 = arith.constant 0 : index
    %c0_315 = arith.constant 0 : index
    %c0_316 = arith.constant 0 : index
    %153 = vector.load %arg1[%c0_313, %c9, %c0_314, %c0_315, %c0_316] : memref<1x18x2x9x8xbf16, #tpu.memory_space<vmem>>, vector<1x1x1x8x8xbf16>
    %154 = vector.shape_cast %153 : vector<1x1x1x8x8xbf16> to vector<8x8xbf16>
    %c0_317 = arith.constant 0 : index
    %c9_318 = arith.constant 9 : index
    %c1_319 = arith.constant 1 : index
    %c0_320 = arith.constant 0 : index
    %c0_321 = arith.constant 0 : index
    %155 = vector.load %arg1[%c0_317, %c9_318, %c1_319, %c0_320, %c0_321] : memref<1x18x2x9x8xbf16, #tpu.memory_space<vmem>>, vector<1x1x1x8x8xbf16>
    %156 = vector.shape_cast %155 : vector<1x1x1x8x8xbf16> to vector<8x8xbf16>
    %c0_322 = arith.constant 0 : index
    %c9_323 = arith.constant 9 : index
    %c0_324 = arith.constant 0 : index
    %c1_325 = arith.constant 1 : index
    %c0_326 = arith.constant 0 : index
    %157 = vector.load %arg1[%c0_322, %c9_323, %c0_324, %c1_325, %c0_326] : memref<1x18x2x9x8xbf16, #tpu.memory_space<vmem>>, vector<1x1x1x8x8xbf16>
    %158 = vector.shape_cast %157 : vector<1x1x1x8x8xbf16> to vector<8x8xbf16>
    %c0_327 = arith.constant 0 : index
    %c9_328 = arith.constant 9 : index
    %c1_329 = arith.constant 1 : index
    %c1_330 = arith.constant 1 : index
    %c0_331 = arith.constant 0 : index
    %159 = vector.load %arg1[%c0_327, %c9_328, %c1_329, %c1_330, %c0_331] : memref<1x18x2x9x8xbf16, #tpu.memory_space<vmem>>, vector<1x1x1x8x8xbf16>
    %160 = vector.shape_cast %159 : vector<1x1x1x8x8xbf16> to vector<8x8xbf16>
    %161 = tpu.concatenate %130, %132, %134, %136, %138, %140, %142, %144, %146, %148, %150, %152, %154, %156, %158, %160 in 1 : vector<8x8xbf16>, vector<8x8xbf16>, vector<8x8xbf16>, vector<8x8xbf16>, vector<8x8xbf16>, vector<8x8xbf16>, vector<8x8xbf16>, vector<8x8xbf16>, vector<8x8xbf16>, vector<8x8xbf16>, vector<8x8xbf16>, vector<8x8xbf16>, vector<8x8xbf16>, vector<8x8xbf16>, vector<8x8xbf16>, vector<8x8xbf16> -> vector<8x128xbf16>
    %cst_332 = arith.constant dense<0.000000e+00> : vector<8x16xf32>
    %162 = tpu.matmul %161, %4, %cst_332 {dimension_numbers = #tpu.dot_dimension_numbers<[1], [0], [0], [1], [0, 0, 1, 1], [], []>} : vector<8x128xbf16>, vector<128x16xbf16>, vector<8x16xf32> -> vector<8x16xf32>
    %163 = vector.broadcast %5 : vector<1x16xf32> to vector<8x16xf32>
    %164 = arith.addf %162, %163 : vector<8x16xf32>
    %cst_333 = arith.constant 0.000000e+00 : f32
    %165 = vector.broadcast %cst_333 : f32 to vector<8x16xf32>
    %166 = arith.cmpf oge, %164, %165 : vector<8x16xf32>
    %cst_334 = arith.constant 0.00999999977 : f32
    %167 = vector.broadcast %cst_334 : f32 to vector<8x16xf32>
    %168 = arith.mulf %167, %164 : vector<8x16xf32>
    %169 = arith.select %166, %164, %168 : vector<8x16xi1>, vector<8x16xf32>
    %c0_335 = arith.constant 0 : index
    %c8_336 = arith.constant 8 : index
    %c0_337 = arith.constant 0 : index
    %c0_338 = arith.constant 0 : index
    %c0_339 = arith.constant 0 : index
    %170 = vector.load %arg1[%c0_335, %c8_336, %c0_337, %c0_338, %c0_339] : memref<1x18x2x9x8xbf16, #tpu.memory_space<vmem>>, vector<1x1x1x8x8xbf16>
    %171 = vector.shape_cast %170 : vector<1x1x1x8x8xbf16> to vector<8x8xbf16>
    %c0_340 = arith.constant 0 : index
    %c8_341 = arith.constant 8 : index
    %c1_342 = arith.constant 1 : index
    %c0_343 = arith.constant 0 : index
    %c0_344 = arith.constant 0 : index
    %172 = vector.load %arg1[%c0_340, %c8_341, %c1_342, %c0_343, %c0_344] : memref<1x18x2x9x8xbf16, #tpu.memory_space<vmem>>, vector<1x1x1x8x8xbf16>
    %173 = vector.shape_cast %172 : vector<1x1x1x8x8xbf16> to vector<8x8xbf16>
    %c0_345 = arith.constant 0 : index
    %c8_346 = arith.constant 8 : index
    %c0_347 = arith.constant 0 : index
    %c1_348 = arith.constant 1 : index
    %c0_349 = arith.constant 0 : index
    %174 = vector.load %arg1[%c0_345, %c8_346, %c0_347, %c1_348, %c0_349] : memref<1x18x2x9x8xbf16, #tpu.memory_space<vmem>>, vector<1x1x1x8x8xbf16>
    %175 = vector.shape_cast %174 : vector<1x1x1x8x8xbf16> to vector<8x8xbf16>
    %c0_350 = arith.constant 0 : index
    %c8_351 = arith.constant 8 : index
    %c1_352 = arith.constant 1 : index
    %c1_353 = arith.constant 1 : index
    %c0_354 = arith.constant 0 : index
    %176 = vector.load %arg1[%c0_350, %c8_351, %c1_352, %c1_353, %c0_354] : memref<1x18x2x9x8xbf16, #tpu.memory_space<vmem>>, vector<1x1x1x8x8xbf16>
    %177 = vector.shape_cast %176 : vector<1x1x1x8x8xbf16> to vector<8x8xbf16>
    %c0_355 = arith.constant 0 : index
    %c9_356 = arith.constant 9 : index
    %c0_357 = arith.constant 0 : index
    %c0_358 = arith.constant 0 : index
    %c0_359 = arith.constant 0 : index
    %178 = vector.load %arg1[%c0_355, %c9_356, %c0_357, %c0_358, %c0_359] : memref<1x18x2x9x8xbf16, #tpu.memory_space<vmem>>, vector<1x1x1x8x8xbf16>
    %179 = vector.shape_cast %178 : vector<1x1x1x8x8xbf16> to vector<8x8xbf16>
    %c0_360 = arith.constant 0 : index
    %c9_361 = arith.constant 9 : index
    %c1_362 = arith.constant 1 : index
    %c0_363 = arith.constant 0 : index
    %c0_364 = arith.constant 0 : index
    %180 = vector.load %arg1[%c0_360, %c9_361, %c1_362, %c0_363, %c0_364] : memref<1x18x2x9x8xbf16, #tpu.memory_space<vmem>>, vector<1x1x1x8x8xbf16>
    %181 = vector.shape_cast %180 : vector<1x1x1x8x8xbf16> to vector<8x8xbf16>
    %c0_365 = arith.constant 0 : index
    %c9_366 = arith.constant 9 : index
    %c0_367 = arith.constant 0 : index
    %c1_368 = arith.constant 1 : index
    %c0_369 = arith.constant 0 : index
    %182 = vector.load %arg1[%c0_365, %c9_366, %c0_367, %c1_368, %c0_369] : memref<1x18x2x9x8xbf16, #tpu.memory_space<vmem>>, vector<1x1x1x8x8xbf16>
    %183 = vector.shape_cast %182 : vector<1x1x1x8x8xbf16> to vector<8x8xbf16>
    %c0_370 = arith.constant 0 : index
    %c9_371 = arith.constant 9 : index
    %c1_372 = arith.constant 1 : index
    %c1_373 = arith.constant 1 : index
    %c0_374 = arith.constant 0 : index
    %184 = vector.load %arg1[%c0_370, %c9_371, %c1_372, %c1_373, %c0_374] : memref<1x18x2x9x8xbf16, #tpu.memory_space<vmem>>, vector<1x1x1x8x8xbf16>
    %185 = vector.shape_cast %184 : vector<1x1x1x8x8xbf16> to vector<8x8xbf16>
    %c0_375 = arith.constant 0 : index
    %c10 = arith.constant 10 : index
    %c0_376 = arith.constant 0 : index
    %c0_377 = arith.constant 0 : index
    %c0_378 = arith.constant 0 : index
    %186 = vector.load %arg1[%c0_375, %c10, %c0_376, %c0_377, %c0_378] : memref<1x18x2x9x8xbf16, #tpu.memory_space<vmem>>, vector<1x1x1x8x8xbf16>
    %187 = vector.shape_cast %186 : vector<1x1x1x8x8xbf16> to vector<8x8xbf16>
    %c0_379 = arith.constant 0 : index
    %c10_380 = arith.constant 10 : index
    %c1_381 = arith.constant 1 : index
    %c0_382 = arith.constant 0 : index
    %c0_383 = arith.constant 0 : index
    %188 = vector.load %arg1[%c0_379, %c10_380, %c1_381, %c0_382, %c0_383] : memref<1x18x2x9x8xbf16, #tpu.memory_space<vmem>>, vector<1x1x1x8x8xbf16>
    %189 = vector.shape_cast %188 : vector<1x1x1x8x8xbf16> to vector<8x8xbf16>
    %c0_384 = arith.constant 0 : index
    %c10_385 = arith.constant 10 : index
    %c0_386 = arith.constant 0 : index
    %c1_387 = arith.constant 1 : index
    %c0_388 = arith.constant 0 : index
    %190 = vector.load %arg1[%c0_384, %c10_385, %c0_386, %c1_387, %c0_388] : memref<1x18x2x9x8xbf16, #tpu.memory_space<vmem>>, vector<1x1x1x8x8xbf16>
    %191 = vector.shape_cast %190 : vector<1x1x1x8x8xbf16> to vector<8x8xbf16>
    %c0_389 = arith.constant 0 : index
    %c10_390 = arith.constant 10 : index
    %c1_391 = arith.constant 1 : index
    %c1_392 = arith.constant 1 : index
    %c0_393 = arith.constant 0 : index
    %192 = vector.load %arg1[%c0_389, %c10_390, %c1_391, %c1_392, %c0_393] : memref<1x18x2x9x8xbf16, #tpu.memory_space<vmem>>, vector<1x1x1x8x8xbf16>
    %193 = vector.shape_cast %192 : vector<1x1x1x8x8xbf16> to vector<8x8xbf16>
    %c0_394 = arith.constant 0 : index
    %c11 = arith.constant 11 : index
    %c0_395 = arith.constant 0 : index
    %c0_396 = arith.constant 0 : index
    %c0_397 = arith.constant 0 : index
    %194 = vector.load %arg1[%c0_394, %c11, %c0_395, %c0_396, %c0_397] : memref<1x18x2x9x8xbf16, #tpu.memory_space<vmem>>, vector<1x1x1x8x8xbf16>
    %195 = vector.shape_cast %194 : vector<1x1x1x8x8xbf16> to vector<8x8xbf16>
    %c0_398 = arith.constant 0 : index
    %c11_399 = arith.constant 11 : index
    %c1_400 = arith.constant 1 : index
    %c0_401 = arith.constant 0 : index
    %c0_402 = arith.constant 0 : index
    %196 = vector.load %arg1[%c0_398, %c11_399, %c1_400, %c0_401, %c0_402] : memref<1x18x2x9x8xbf16, #tpu.memory_space<vmem>>, vector<1x1x1x8x8xbf16>
    %197 = vector.shape_cast %196 : vector<1x1x1x8x8xbf16> to vector<8x8xbf16>
    %c0_403 = arith.constant 0 : index
    %c11_404 = arith.constant 11 : index
    %c0_405 = arith.constant 0 : index
    %c1_406 = arith.constant 1 : index
    %c0_407 = arith.constant 0 : index
    %198 = vector.load %arg1[%c0_403, %c11_404, %c0_405, %c1_406, %c0_407] : memref<1x18x2x9x8xbf16, #tpu.memory_space<vmem>>, vector<1x1x1x8x8xbf16>
    %199 = vector.shape_cast %198 : vector<1x1x1x8x8xbf16> to vector<8x8xbf16>
    %c0_408 = arith.constant 0 : index
    %c11_409 = arith.constant 11 : index
    %c1_410 = arith.constant 1 : index
    %c1_411 = arith.constant 1 : index
    %c0_412 = arith.constant 0 : index
    %200 = vector.load %arg1[%c0_408, %c11_409, %c1_410, %c1_411, %c0_412] : memref<1x18x2x9x8xbf16, #tpu.memory_space<vmem>>, vector<1x1x1x8x8xbf16>
    %201 = vector.shape_cast %200 : vector<1x1x1x8x8xbf16> to vector<8x8xbf16>
    %202 = tpu.concatenate %171, %173, %175, %177, %179, %181, %183, %185, %187, %189, %191, %193, %195, %197, %199, %201 in 1 : vector<8x8xbf16>, vector<8x8xbf16>, vector<8x8xbf16>, vector<8x8xbf16>, vector<8x8xbf16>, vector<8x8xbf16>, vector<8x8xbf16>, vector<8x8xbf16>, vector<8x8xbf16>, vector<8x8xbf16>, vector<8x8xbf16>, vector<8x8xbf16>, vector<8x8xbf16>, vector<8x8xbf16>, vector<8x8xbf16>, vector<8x8xbf16> -> vector<8x128xbf16>
    %cst_413 = arith.constant dense<0.000000e+00> : vector<8x16xf32>
    %203 = tpu.matmul %202, %4, %cst_413 {dimension_numbers = #tpu.dot_dimension_numbers<[1], [0], [0], [1], [0, 0, 1, 1], [], []>} : vector<8x128xbf16>, vector<128x16xbf16>, vector<8x16xf32> -> vector<8x16xf32>
    %204 = vector.broadcast %5 : vector<1x16xf32> to vector<8x16xf32>
    %205 = arith.addf %203, %204 : vector<8x16xf32>
    %cst_414 = arith.constant 0.000000e+00 : f32
    %206 = vector.broadcast %cst_414 : f32 to vector<8x16xf32>
    %207 = arith.cmpf oge, %205, %206 : vector<8x16xf32>
    %cst_415 = arith.constant 0.00999999977 : f32
    %208 = vector.broadcast %cst_415 : f32 to vector<8x16xf32>
    %209 = arith.mulf %208, %205 : vector<8x16xf32>
    %210 = arith.select %207, %205, %209 : vector<8x16xi1>, vector<8x16xf32>
    %c0_416 = arith.constant 0 : index
    %c10_417 = arith.constant 10 : index
    %c0_418 = arith.constant 0 : index
    %c0_419 = arith.constant 0 : index
    %c0_420 = arith.constant 0 : index
    %211 = vector.load %arg1[%c0_416, %c10_417, %c0_418, %c0_419, %c0_420] : memref<1x18x2x9x8xbf16, #tpu.memory_space<vmem>>, vector<1x1x1x8x8xbf16>
    %212 = vector.shape_cast %211 : vector<1x1x1x8x8xbf16> to vector<8x8xbf16>
    %c0_421 = arith.constant 0 : index
    %c10_422 = arith.constant 10 : index
    %c1_423 = arith.constant 1 : index
    %c0_424 = arith.constant 0 : index
    %c0_425 = arith.constant 0 : index
    %213 = vector.load %arg1[%c0_421, %c10_422, %c1_423, %c0_424, %c0_425] : memref<1x18x2x9x8xbf16, #tpu.memory_space<vmem>>, vector<1x1x1x8x8xbf16>
    %214 = vector.shape_cast %213 : vector<1x1x1x8x8xbf16> to vector<8x8xbf16>
    %c0_426 = arith.constant 0 : index
    %c10_427 = arith.constant 10 : index
    %c0_428 = arith.constant 0 : index
    %c1_429 = arith.constant 1 : index
    %c0_430 = arith.constant 0 : index
    %215 = vector.load %arg1[%c0_426, %c10_427, %c0_428, %c1_429, %c0_430] : memref<1x18x2x9x8xbf16, #tpu.memory_space<vmem>>, vector<1x1x1x8x8xbf16>
    %216 = vector.shape_cast %215 : vector<1x1x1x8x8xbf16> to vector<8x8xbf16>
    %c0_431 = arith.constant 0 : index
    %c10_432 = arith.constant 10 : index
    %c1_433 = arith.constant 1 : index
    %c1_434 = arith.constant 1 : index
    %c0_435 = arith.constant 0 : index
    %217 = vector.load %arg1[%c0_431, %c10_432, %c1_433, %c1_434, %c0_435] : memref<1x18x2x9x8xbf16, #tpu.memory_space<vmem>>, vector<1x1x1x8x8xbf16>
    %218 = vector.shape_cast %217 : vector<1x1x1x8x8xbf16> to vector<8x8xbf16>
    %c0_436 = arith.constant 0 : index
    %c11_437 = arith.constant 11 : index
    %c0_438 = arith.constant 0 : index
    %c0_439 = arith.constant 0 : index
    %c0_440 = arith.constant 0 : index
    %219 = vector.load %arg1[%c0_436, %c11_437, %c0_438, %c0_439, %c0_440] : memref<1x18x2x9x8xbf16, #tpu.memory_space<vmem>>, vector<1x1x1x8x8xbf16>
    %220 = vector.shape_cast %219 : vector<1x1x1x8x8xbf16> to vector<8x8xbf16>
    %c0_441 = arith.constant 0 : index
    %c11_442 = arith.constant 11 : index
    %c1_443 = arith.constant 1 : index
    %c0_444 = arith.constant 0 : index
    %c0_445 = arith.constant 0 : index
    %221 = vector.load %arg1[%c0_441, %c11_442, %c1_443, %c0_444, %c0_445] : memref<1x18x2x9x8xbf16, #tpu.memory_space<vmem>>, vector<1x1x1x8x8xbf16>
    %222 = vector.shape_cast %221 : vector<1x1x1x8x8xbf16> to vector<8x8xbf16>
    %c0_446 = arith.constant 0 : index
    %c11_447 = arith.constant 11 : index
    %c0_448 = arith.constant 0 : index
    %c1_449 = arith.constant 1 : index
    %c0_450 = arith.constant 0 : index
    %223 = vector.load %arg1[%c0_446, %c11_447, %c0_448, %c1_449, %c0_450] : memref<1x18x2x9x8xbf16, #tpu.memory_space<vmem>>, vector<1x1x1x8x8xbf16>
    %224 = vector.shape_cast %223 : vector<1x1x1x8x8xbf16> to vector<8x8xbf16>
    %c0_451 = arith.constant 0 : index
    %c11_452 = arith.constant 11 : index
    %c1_453 = arith.constant 1 : index
    %c1_454 = arith.constant 1 : index
    %c0_455 = arith.constant 0 : index
    %225 = vector.load %arg1[%c0_451, %c11_452, %c1_453, %c1_454, %c0_455] : memref<1x18x2x9x8xbf16, #tpu.memory_space<vmem>>, vector<1x1x1x8x8xbf16>
    %226 = vector.shape_cast %225 : vector<1x1x1x8x8xbf16> to vector<8x8xbf16>
    %c0_456 = arith.constant 0 : index
    %c12 = arith.constant 12 : index
    %c0_457 = arith.constant 0 : index
    %c0_458 = arith.constant 0 : index
    %c0_459 = arith.constant 0 : index
    %227 = vector.load %arg1[%c0_456, %c12, %c0_457, %c0_458, %c0_459] : memref<1x18x2x9x8xbf16, #tpu.memory_space<vmem>>, vector<1x1x1x8x8xbf16>
    %228 = vector.shape_cast %227 : vector<1x1x1x8x8xbf16> to vector<8x8xbf16>
    %c0_460 = arith.constant 0 : index
    %c12_461 = arith.constant 12 : index
    %c1_462 = arith.constant 1 : index
    %c0_463 = arith.constant 0 : index
    %c0_464 = arith.constant 0 : index
    %229 = vector.load %arg1[%c0_460, %c12_461, %c1_462, %c0_463, %c0_464] : memref<1x18x2x9x8xbf16, #tpu.memory_space<vmem>>, vector<1x1x1x8x8xbf16>
    %230 = vector.shape_cast %229 : vector<1x1x1x8x8xbf16> to vector<8x8xbf16>
    %c0_465 = arith.constant 0 : index
    %c12_466 = arith.constant 12 : index
    %c0_467 = arith.constant 0 : index
    %c1_468 = arith.constant 1 : index
    %c0_469 = arith.constant 0 : index
    %231 = vector.load %arg1[%c0_465, %c12_466, %c0_467, %c1_468, %c0_469] : memref<1x18x2x9x8xbf16, #tpu.memory_space<vmem>>, vector<1x1x1x8x8xbf16>
    %232 = vector.shape_cast %231 : vector<1x1x1x8x8xbf16> to vector<8x8xbf16>
    %c0_470 = arith.constant 0 : index
    %c12_471 = arith.constant 12 : index
    %c1_472 = arith.constant 1 : index
    %c1_473 = arith.constant 1 : index
    %c0_474 = arith.constant 0 : index
    %233 = vector.load %arg1[%c0_470, %c12_471, %c1_472, %c1_473, %c0_474] : memref<1x18x2x9x8xbf16, #tpu.memory_space<vmem>>, vector<1x1x1x8x8xbf16>
    %234 = vector.shape_cast %233 : vector<1x1x1x8x8xbf16> to vector<8x8xbf16>
    %c0_475 = arith.constant 0 : index
    %c13 = arith.constant 13 : index
    %c0_476 = arith.constant 0 : index
    %c0_477 = arith.constant 0 : index
    %c0_478 = arith.constant 0 : index
    %235 = vector.load %arg1[%c0_475, %c13, %c0_476, %c0_477, %c0_478] : memref<1x18x2x9x8xbf16, #tpu.memory_space<vmem>>, vector<1x1x1x8x8xbf16>
    %236 = vector.shape_cast %235 : vector<1x1x1x8x8xbf16> to vector<8x8xbf16>
    %c0_479 = arith.constant 0 : index
    %c13_480 = arith.constant 13 : index
    %c1_481 = arith.constant 1 : index
    %c0_482 = arith.constant 0 : index
    %c0_483 = arith.constant 0 : index
    %237 = vector.load %arg1[%c0_479, %c13_480, %c1_481, %c0_482, %c0_483] : memref<1x18x2x9x8xbf16, #tpu.memory_space<vmem>>, vector<1x1x1x8x8xbf16>
    %238 = vector.shape_cast %237 : vector<1x1x1x8x8xbf16> to vector<8x8xbf16>
    %c0_484 = arith.constant 0 : index
    %c13_485 = arith.constant 13 : index
    %c0_486 = arith.constant 0 : index
    %c1_487 = arith.constant 1 : index
    %c0_488 = arith.constant 0 : index
    %239 = vector.load %arg1[%c0_484, %c13_485, %c0_486, %c1_487, %c0_488] : memref<1x18x2x9x8xbf16, #tpu.memory_space<vmem>>, vector<1x1x1x8x8xbf16>
    %240 = vector.shape_cast %239 : vector<1x1x1x8x8xbf16> to vector<8x8xbf16>
    %c0_489 = arith.constant 0 : index
    %c13_490 = arith.constant 13 : index
    %c1_491 = arith.constant 1 : index
    %c1_492 = arith.constant 1 : index
    %c0_493 = arith.constant 0 : index
    %241 = vector.load %arg1[%c0_489, %c13_490, %c1_491, %c1_492, %c0_493] : memref<1x18x2x9x8xbf16, #tpu.memory_space<vmem>>, vector<1x1x1x8x8xbf16>
    %242 = vector.shape_cast %241 : vector<1x1x1x8x8xbf16> to vector<8x8xbf16>
    %243 = tpu.concatenate %212, %214, %216, %218, %220, %222, %224, %226, %228, %230, %232, %234, %236, %238, %240, %242 in 1 : vector<8x8xbf16>, vector<8x8xbf16>, vector<8x8xbf16>, vector<8x8xbf16>, vector<8x8xbf16>, vector<8x8xbf16>, vector<8x8xbf16>, vector<8x8xbf16>, vector<8x8xbf16>, vector<8x8xbf16>, vector<8x8xbf16>, vector<8x8xbf16>, vector<8x8xbf16>, vector<8x8xbf16>, vector<8x8xbf16>, vector<8x8xbf16> -> vector<8x128xbf16>
    %cst_494 = arith.constant dense<0.000000e+00> : vector<8x16xf32>
    %244 = tpu.matmul %243, %4, %cst_494 {dimension_numbers = #tpu.dot_dimension_numbers<[1], [0], [0], [1], [0, 0, 1, 1], [], []>} : vector<8x128xbf16>, vector<128x16xbf16>, vector<8x16xf32> -> vector<8x16xf32>
    %245 = vector.broadcast %5 : vector<1x16xf32> to vector<8x16xf32>
    %246 = arith.addf %244, %245 : vector<8x16xf32>
    %cst_495 = arith.constant 0.000000e+00 : f32
    %247 = vector.broadcast %cst_495 : f32 to vector<8x16xf32>
    %248 = arith.cmpf oge, %246, %247 : vector<8x16xf32>
    %cst_496 = arith.constant 0.00999999977 : f32
    %249 = vector.broadcast %cst_496 : f32 to vector<8x16xf32>
    %250 = arith.mulf %249, %246 : vector<8x16xf32>
    %251 = arith.select %248, %246, %250 : vector<8x16xi1>, vector<8x16xf32>
    %c0_497 = arith.constant 0 : index
    %c12_498 = arith.constant 12 : index
    %c0_499 = arith.constant 0 : index
    %c0_500 = arith.constant 0 : index
    %c0_501 = arith.constant 0 : index
    %252 = vector.load %arg1[%c0_497, %c12_498, %c0_499, %c0_500, %c0_501] : memref<1x18x2x9x8xbf16, #tpu.memory_space<vmem>>, vector<1x1x1x8x8xbf16>
    %253 = vector.shape_cast %252 : vector<1x1x1x8x8xbf16> to vector<8x8xbf16>
    %c0_502 = arith.constant 0 : index
    %c12_503 = arith.constant 12 : index
    %c1_504 = arith.constant 1 : index
    %c0_505 = arith.constant 0 : index
    %c0_506 = arith.constant 0 : index
    %254 = vector.load %arg1[%c0_502, %c12_503, %c1_504, %c0_505, %c0_506] : memref<1x18x2x9x8xbf16, #tpu.memory_space<vmem>>, vector<1x1x1x8x8xbf16>
    %255 = vector.shape_cast %254 : vector<1x1x1x8x8xbf16> to vector<8x8xbf16>
    %c0_507 = arith.constant 0 : index
    %c12_508 = arith.constant 12 : index
    %c0_509 = arith.constant 0 : index
    %c1_510 = arith.constant 1 : index
    %c0_511 = arith.constant 0 : index
    %256 = vector.load %arg1[%c0_507, %c12_508, %c0_509, %c1_510, %c0_511] : memref<1x18x2x9x8xbf16, #tpu.memory_space<vmem>>, vector<1x1x1x8x8xbf16>
    %257 = vector.shape_cast %256 : vector<1x1x1x8x8xbf16> to vector<8x8xbf16>
    %c0_512 = arith.constant 0 : index
    %c12_513 = arith.constant 12 : index
    %c1_514 = arith.constant 1 : index
    %c1_515 = arith.constant 1 : index
    %c0_516 = arith.constant 0 : index
    %258 = vector.load %arg1[%c0_512, %c12_513, %c1_514, %c1_515, %c0_516] : memref<1x18x2x9x8xbf16, #tpu.memory_space<vmem>>, vector<1x1x1x8x8xbf16>
    %259 = vector.shape_cast %258 : vector<1x1x1x8x8xbf16> to vector<8x8xbf16>
    %c0_517 = arith.constant 0 : index
    %c13_518 = arith.constant 13 : index
    %c0_519 = arith.constant 0 : index
    %c0_520 = arith.constant 0 : index
    %c0_521 = arith.constant 0 : index
    %260 = vector.load %arg1[%c0_517, %c13_518, %c0_519, %c0_520, %c0_521] : memref<1x18x2x9x8xbf16, #tpu.memory_space<vmem>>, vector<1x1x1x8x8xbf16>
    %261 = vector.shape_cast %260 : vector<1x1x1x8x8xbf16> to vector<8x8xbf16>
    %c0_522 = arith.constant 0 : index
    %c13_523 = arith.constant 13 : index
    %c1_524 = arith.constant 1 : index
    %c0_525 = arith.constant 0 : index
    %c0_526 = arith.constant 0 : index
    %262 = vector.load %arg1[%c0_522, %c13_523, %c1_524, %c0_525, %c0_526] : memref<1x18x2x9x8xbf16, #tpu.memory_space<vmem>>, vector<1x1x1x8x8xbf16>
    %263 = vector.shape_cast %262 : vector<1x1x1x8x8xbf16> to vector<8x8xbf16>
    %c0_527 = arith.constant 0 : index
    %c13_528 = arith.constant 13 : index
    %c0_529 = arith.constant 0 : index
    %c1_530 = arith.constant 1 : index
    %c0_531 = arith.constant 0 : index
    %264 = vector.load %arg1[%c0_527, %c13_528, %c0_529, %c1_530, %c0_531] : memref<1x18x2x9x8xbf16, #tpu.memory_space<vmem>>, vector<1x1x1x8x8xbf16>
    %265 = vector.shape_cast %264 : vector<1x1x1x8x8xbf16> to vector<8x8xbf16>
    %c0_532 = arith.constant 0 : index
    %c13_533 = arith.constant 13 : index
    %c1_534 = arith.constant 1 : index
    %c1_535 = arith.constant 1 : index
    %c0_536 = arith.constant 0 : index
    %266 = vector.load %arg1[%c0_532, %c13_533, %c1_534, %c1_535, %c0_536] : memref<1x18x2x9x8xbf16, #tpu.memory_space<vmem>>, vector<1x1x1x8x8xbf16>
    %267 = vector.shape_cast %266 : vector<1x1x1x8x8xbf16> to vector<8x8xbf16>
    %c0_537 = arith.constant 0 : index
    %c14 = arith.constant 14 : index
    %c0_538 = arith.constant 0 : index
    %c0_539 = arith.constant 0 : index
    %c0_540 = arith.constant 0 : index
    %268 = vector.load %arg1[%c0_537, %c14, %c0_538, %c0_539, %c0_540] : memref<1x18x2x9x8xbf16, #tpu.memory_space<vmem>>, vector<1x1x1x8x8xbf16>
    %269 = vector.shape_cast %268 : vector<1x1x1x8x8xbf16> to vector<8x8xbf16>
    %c0_541 = arith.constant 0 : index
    %c14_542 = arith.constant 14 : index
    %c1_543 = arith.constant 1 : index
    %c0_544 = arith.constant 0 : index
    %c0_545 = arith.constant 0 : index
    %270 = vector.load %arg1[%c0_541, %c14_542, %c1_543, %c0_544, %c0_545] : memref<1x18x2x9x8xbf16, #tpu.memory_space<vmem>>, vector<1x1x1x8x8xbf16>
    %271 = vector.shape_cast %270 : vector<1x1x1x8x8xbf16> to vector<8x8xbf16>
    %c0_546 = arith.constant 0 : index
    %c14_547 = arith.constant 14 : index
    %c0_548 = arith.constant 0 : index
    %c1_549 = arith.constant 1 : index
    %c0_550 = arith.constant 0 : index
    %272 = vector.load %arg1[%c0_546, %c14_547, %c0_548, %c1_549, %c0_550] : memref<1x18x2x9x8xbf16, #tpu.memory_space<vmem>>, vector<1x1x1x8x8xbf16>
    %273 = vector.shape_cast %272 : vector<1x1x1x8x8xbf16> to vector<8x8xbf16>
    %c0_551 = arith.constant 0 : index
    %c14_552 = arith.constant 14 : index
    %c1_553 = arith.constant 1 : index
    %c1_554 = arith.constant 1 : index
    %c0_555 = arith.constant 0 : index
    %274 = vector.load %arg1[%c0_551, %c14_552, %c1_553, %c1_554, %c0_555] : memref<1x18x2x9x8xbf16, #tpu.memory_space<vmem>>, vector<1x1x1x8x8xbf16>
    %275 = vector.shape_cast %274 : vector<1x1x1x8x8xbf16> to vector<8x8xbf16>
    %c0_556 = arith.constant 0 : index
    %c15 = arith.constant 15 : index
    %c0_557 = arith.constant 0 : index
    %c0_558 = arith.constant 0 : index
    %c0_559 = arith.constant 0 : index
    %276 = vector.load %arg1[%c0_556, %c15, %c0_557, %c0_558, %c0_559] : memref<1x18x2x9x8xbf16, #tpu.memory_space<vmem>>, vector<1x1x1x8x8xbf16>
    %277 = vector.shape_cast %276 : vector<1x1x1x8x8xbf16> to vector<8x8xbf16>
    %c0_560 = arith.constant 0 : index
    %c15_561 = arith.constant 15 : index
    %c1_562 = arith.constant 1 : index
    %c0_563 = arith.constant 0 : index
    %c0_564 = arith.constant 0 : index
    %278 = vector.load %arg1[%c0_560, %c15_561, %c1_562, %c0_563, %c0_564] : memref<1x18x2x9x8xbf16, #tpu.memory_space<vmem>>, vector<1x1x1x8x8xbf16>
    %279 = vector.shape_cast %278 : vector<1x1x1x8x8xbf16> to vector<8x8xbf16>
    %c0_565 = arith.constant 0 : index
    %c15_566 = arith.constant 15 : index
    %c0_567 = arith.constant 0 : index
    %c1_568 = arith.constant 1 : index
    %c0_569 = arith.constant 0 : index
    %280 = vector.load %arg1[%c0_565, %c15_566, %c0_567, %c1_568, %c0_569] : memref<1x18x2x9x8xbf16, #tpu.memory_space<vmem>>, vector<1x1x1x8x8xbf16>
    %281 = vector.shape_cast %280 : vector<1x1x1x8x8xbf16> to vector<8x8xbf16>
    %c0_570 = arith.constant 0 : index
    %c15_571 = arith.constant 15 : index
    %c1_572 = arith.constant 1 : index
    %c1_573 = arith.constant 1 : index
    %c0_574 = arith.constant 0 : index
    %282 = vector.load %arg1[%c0_570, %c15_571, %c1_572, %c1_573, %c0_574] : memref<1x18x2x9x8xbf16, #tpu.memory_space<vmem>>, vector<1x1x1x8x8xbf16>
    %283 = vector.shape_cast %282 : vector<1x1x1x8x8xbf16> to vector<8x8xbf16>
    %284 = tpu.concatenate %253, %255, %257, %259, %261, %263, %265, %267, %269, %271, %273, %275, %277, %279, %281, %283 in 1 : vector<8x8xbf16>, vector<8x8xbf16>, vector<8x8xbf16>, vector<8x8xbf16>, vector<8x8xbf16>, vector<8x8xbf16>, vector<8x8xbf16>, vector<8x8xbf16>, vector<8x8xbf16>, vector<8x8xbf16>, vector<8x8xbf16>, vector<8x8xbf16>, vector<8x8xbf16>, vector<8x8xbf16>, vector<8x8xbf16>, vector<8x8xbf16> -> vector<8x128xbf16>
    %cst_575 = arith.constant dense<0.000000e+00> : vector<8x16xf32>
    %285 = tpu.matmul %284, %4, %cst_575 {dimension_numbers = #tpu.dot_dimension_numbers<[1], [0], [0], [1], [0, 0, 1, 1], [], []>} : vector<8x128xbf16>, vector<128x16xbf16>, vector<8x16xf32> -> vector<8x16xf32>
    %286 = vector.broadcast %5 : vector<1x16xf32> to vector<8x16xf32>
    %287 = arith.addf %285, %286 : vector<8x16xf32>
    %cst_576 = arith.constant 0.000000e+00 : f32
    %288 = vector.broadcast %cst_576 : f32 to vector<8x16xf32>
    %289 = arith.cmpf oge, %287, %288 : vector<8x16xf32>
    %cst_577 = arith.constant 0.00999999977 : f32
    %290 = vector.broadcast %cst_577 : f32 to vector<8x16xf32>
    %291 = arith.mulf %290, %287 : vector<8x16xf32>
    %292 = arith.select %289, %287, %291 : vector<8x16xi1>, vector<8x16xf32>
    %c0_578 = arith.constant 0 : index
    %c14_579 = arith.constant 14 : index
    %c0_580 = arith.constant 0 : index
    %c0_581 = arith.constant 0 : index
    %c0_582 = arith.constant 0 : index
    %293 = vector.load %arg1[%c0_578, %c14_579, %c0_580, %c0_581, %c0_582] : memref<1x18x2x9x8xbf16, #tpu.memory_space<vmem>>, vector<1x1x1x8x8xbf16>
    %294 = vector.shape_cast %293 : vector<1x1x1x8x8xbf16> to vector<8x8xbf16>
    %c0_583 = arith.constant 0 : index
    %c14_584 = arith.constant 14 : index
    %c1_585 = arith.constant 1 : index
    %c0_586 = arith.constant 0 : index
    %c0_587 = arith.constant 0 : index
    %295 = vector.load %arg1[%c0_583, %c14_584, %c1_585, %c0_586, %c0_587] : memref<1x18x2x9x8xbf16, #tpu.memory_space<vmem>>, vector<1x1x1x8x8xbf16>
    %296 = vector.shape_cast %295 : vector<1x1x1x8x8xbf16> to vector<8x8xbf16>
    %c0_588 = arith.constant 0 : index
    %c14_589 = arith.constant 14 : index
    %c0_590 = arith.constant 0 : index
    %c1_591 = arith.constant 1 : index
    %c0_592 = arith.constant 0 : index
    %297 = vector.load %arg1[%c0_588, %c14_589, %c0_590, %c1_591, %c0_592] : memref<1x18x2x9x8xbf16, #tpu.memory_space<vmem>>, vector<1x1x1x8x8xbf16>
    %298 = vector.shape_cast %297 : vector<1x1x1x8x8xbf16> to vector<8x8xbf16>
    %c0_593 = arith.constant 0 : index
    %c14_594 = arith.constant 14 : index
    %c1_595 = arith.constant 1 : index
    %c1_596 = arith.constant 1 : index
    %c0_597 = arith.constant 0 : index
    %299 = vector.load %arg1[%c0_593, %c14_594, %c1_595, %c1_596, %c0_597] : memref<1x18x2x9x8xbf16, #tpu.memory_space<vmem>>, vector<1x1x1x8x8xbf16>
    %300 = vector.shape_cast %299 : vector<1x1x1x8x8xbf16> to vector<8x8xbf16>
    %c0_598 = arith.constant 0 : index
    %c15_599 = arith.constant 15 : index
    %c0_600 = arith.constant 0 : index
    %c0_601 = arith.constant 0 : index
    %c0_602 = arith.constant 0 : index
    %301 = vector.load %arg1[%c0_598, %c15_599, %c0_600, %c0_601, %c0_602] : memref<1x18x2x9x8xbf16, #tpu.memory_space<vmem>>, vector<1x1x1x8x8xbf16>
    %302 = vector.shape_cast %301 : vector<1x1x1x8x8xbf16> to vector<8x8xbf16>
    %c0_603 = arith.constant 0 : index
    %c15_604 = arith.constant 15 : index
    %c1_605 = arith.constant 1 : index
    %c0_606 = arith.constant 0 : index
    %c0_607 = arith.constant 0 : index
    %303 = vector.load %arg1[%c0_603, %c15_604, %c1_605, %c0_606, %c0_607] : memref<1x18x2x9x8xbf16, #tpu.memory_space<vmem>>, vector<1x1x1x8x8xbf16>
    %304 = vector.shape_cast %303 : vector<1x1x1x8x8xbf16> to vector<8x8xbf16>
    %c0_608 = arith.constant 0 : index
    %c15_609 = arith.constant 15 : index
    %c0_610 = arith.constant 0 : index
    %c1_611 = arith.constant 1 : index
    %c0_612 = arith.constant 0 : index
    %305 = vector.load %arg1[%c0_608, %c15_609, %c0_610, %c1_611, %c0_612] : memref<1x18x2x9x8xbf16, #tpu.memory_space<vmem>>, vector<1x1x1x8x8xbf16>
    %306 = vector.shape_cast %305 : vector<1x1x1x8x8xbf16> to vector<8x8xbf16>
    %c0_613 = arith.constant 0 : index
    %c15_614 = arith.constant 15 : index
    %c1_615 = arith.constant 1 : index
    %c1_616 = arith.constant 1 : index
    %c0_617 = arith.constant 0 : index
    %307 = vector.load %arg1[%c0_613, %c15_614, %c1_615, %c1_616, %c0_617] : memref<1x18x2x9x8xbf16, #tpu.memory_space<vmem>>, vector<1x1x1x8x8xbf16>
    %308 = vector.shape_cast %307 : vector<1x1x1x8x8xbf16> to vector<8x8xbf16>
    %c0_618 = arith.constant 0 : index
    %c16 = arith.constant 16 : index
    %c0_619 = arith.constant 0 : index
    %c0_620 = arith.constant 0 : index
    %c0_621 = arith.constant 0 : index
    %309 = vector.load %arg1[%c0_618, %c16, %c0_619, %c0_620, %c0_621] : memref<1x18x2x9x8xbf16, #tpu.memory_space<vmem>>, vector<1x1x1x8x8xbf16>
    %310 = vector.shape_cast %309 : vector<1x1x1x8x8xbf16> to vector<8x8xbf16>
    %c0_622 = arith.constant 0 : index
    %c16_623 = arith.constant 16 : index
    %c1_624 = arith.constant 1 : index
    %c0_625 = arith.constant 0 : index
    %c0_626 = arith.constant 0 : index
    %311 = vector.load %arg1[%c0_622, %c16_623, %c1_624, %c0_625, %c0_626] : memref<1x18x2x9x8xbf16, #tpu.memory_space<vmem>>, vector<1x1x1x8x8xbf16>
    %312 = vector.shape_cast %311 : vector<1x1x1x8x8xbf16> to vector<8x8xbf16>
    %c0_627 = arith.constant 0 : index
    %c16_628 = arith.constant 16 : index
    %c0_629 = arith.constant 0 : index
    %c1_630 = arith.constant 1 : index
    %c0_631 = arith.constant 0 : index
    %313 = vector.load %arg1[%c0_627, %c16_628, %c0_629, %c1_630, %c0_631] : memref<1x18x2x9x8xbf16, #tpu.memory_space<vmem>>, vector<1x1x1x8x8xbf16>
    %314 = vector.shape_cast %313 : vector<1x1x1x8x8xbf16> to vector<8x8xbf16>
    %c0_632 = arith.constant 0 : index
    %c16_633 = arith.constant 16 : index
    %c1_634 = arith.constant 1 : index
    %c1_635 = arith.constant 1 : index
    %c0_636 = arith.constant 0 : index
    %315 = vector.load %arg1[%c0_632, %c16_633, %c1_634, %c1_635, %c0_636] : memref<1x18x2x9x8xbf16, #tpu.memory_space<vmem>>, vector<1x1x1x8x8xbf16>
    %316 = vector.shape_cast %315 : vector<1x1x1x8x8xbf16> to vector<8x8xbf16>
    %c0_637 = arith.constant 0 : index
    %c17 = arith.constant 17 : index
    %c0_638 = arith.constant 0 : index
    %c0_639 = arith.constant 0 : index
    %c0_640 = arith.constant 0 : index
    %317 = vector.load %arg1[%c0_637, %c17, %c0_638, %c0_639, %c0_640] : memref<1x18x2x9x8xbf16, #tpu.memory_space<vmem>>, vector<1x1x1x8x8xbf16>
    %318 = vector.shape_cast %317 : vector<1x1x1x8x8xbf16> to vector<8x8xbf16>
    %c0_641 = arith.constant 0 : index
    %c17_642 = arith.constant 17 : index
    %c1_643 = arith.constant 1 : index
    %c0_644 = arith.constant 0 : index
    %c0_645 = arith.constant 0 : index
    %319 = vector.load %arg1[%c0_641, %c17_642, %c1_643, %c0_644, %c0_645] : memref<1x18x2x9x8xbf16, #tpu.memory_space<vmem>>, vector<1x1x1x8x8xbf16>
    %320 = vector.shape_cast %319 : vector<1x1x1x8x8xbf16> to vector<8x8xbf16>
    %c0_646 = arith.constant 0 : index
    %c17_647 = arith.constant 17 : index
    %c0_648 = arith.constant 0 : index
    %c1_649 = arith.constant 1 : index
    %c0_650 = arith.constant 0 : index
    %321 = vector.load %arg1[%c0_646, %c17_647, %c0_648, %c1_649, %c0_650] : memref<1x18x2x9x8xbf16, #tpu.memory_space<vmem>>, vector<1x1x1x8x8xbf16>
    %322 = vector.shape_cast %321 : vector<1x1x1x8x8xbf16> to vector<8x8xbf16>
    %c0_651 = arith.constant 0 : index
    %c17_652 = arith.constant 17 : index
    %c1_653 = arith.constant 1 : index
    %c1_654 = arith.constant 1 : index
    %c0_655 = arith.constant 0 : index
    %323 = vector.load %arg1[%c0_651, %c17_652, %c1_653, %c1_654, %c0_655] : memref<1x18x2x9x8xbf16, #tpu.memory_space<vmem>>, vector<1x1x1x8x8xbf16>
    %324 = vector.shape_cast %323 : vector<1x1x1x8x8xbf16> to vector<8x8xbf16>
    %325 = tpu.concatenate %294, %296, %298, %300, %302, %304, %306, %308, %310, %312, %314, %316, %318, %320, %322, %324 in 1 : vector<8x8xbf16>, vector<8x8xbf16>, vector<8x8xbf16>, vector<8x8xbf16>, vector<8x8xbf16>, vector<8x8xbf16>, vector<8x8xbf16>, vector<8x8xbf16>, vector<8x8xbf16>, vector<8x8xbf16>, vector<8x8xbf16>, vector<8x8xbf16>, vector<8x8xbf16>, vector<8x8xbf16>, vector<8x8xbf16>, vector<8x8xbf16> -> vector<8x128xbf16>
    %cst_656 = arith.constant dense<0.000000e+00> : vector<8x16xf32>
    %326 = tpu.matmul %325, %4, %cst_656 {dimension_numbers = #tpu.dot_dimension_numbers<[1], [0], [0], [1], [0, 0, 1, 1], [], []>} : vector<8x128xbf16>, vector<128x16xbf16>, vector<8x16xf32> -> vector<8x16xf32>
    %327 = vector.broadcast %5 : vector<1x16xf32> to vector<8x16xf32>
    %328 = arith.addf %326, %327 : vector<8x16xf32>
    %cst_657 = arith.constant 0.000000e+00 : f32
    %329 = vector.broadcast %cst_657 : f32 to vector<8x16xf32>
    %330 = arith.cmpf oge, %328, %329 : vector<8x16xf32>
    %cst_658 = arith.constant 0.00999999977 : f32
    %331 = vector.broadcast %cst_658 : f32 to vector<8x16xf32>
    %332 = arith.mulf %331, %328 : vector<8x16xf32>
    %333 = arith.select %330, %328, %332 : vector<8x16xi1>, vector<8x16xf32>
    %334 = arith.truncf %46 : vector<8x16xf32> to vector<8x16xbf16>
    %335 = vector.extract_strided_slice %334 {offsets = [0, 0], sizes = [1, 16], strides = [1, 1]} : vector<8x16xbf16> to vector<1x16xbf16>
    %336 = vector.extract_strided_slice %334 {offsets = [2, 0], sizes = [1, 16], strides = [1, 1]} : vector<8x16xbf16> to vector<1x16xbf16>
    %337 = vector.extract_strided_slice %334 {offsets = [4, 0], sizes = [1, 16], strides = [1, 1]} : vector<8x16xbf16> to vector<1x16xbf16>
    %338 = vector.extract_strided_slice %334 {offsets = [6, 0], sizes = [1, 16], strides = [1, 1]} : vector<8x16xbf16> to vector<1x16xbf16>
    %339 = tpu.concatenate %335, %336, %337, %338 in 0 : vector<1x16xbf16>, vector<1x16xbf16>, vector<1x16xbf16>, vector<1x16xbf16> -> vector<4x16xbf16>
    %340 = vector.extract_strided_slice %334 {offsets = [1, 0], sizes = [1, 16], strides = [1, 1]} : vector<8x16xbf16> to vector<1x16xbf16>
    %341 = vector.extract_strided_slice %334 {offsets = [3, 0], sizes = [1, 16], strides = [1, 1]} : vector<8x16xbf16> to vector<1x16xbf16>
    %342 = vector.extract_strided_slice %334 {offsets = [5, 0], sizes = [1, 16], strides = [1, 1]} : vector<8x16xbf16> to vector<1x16xbf16>
    %343 = vector.extract_strided_slice %334 {offsets = [7, 0], sizes = [1, 16], strides = [1, 1]} : vector<8x16xbf16> to vector<1x16xbf16>
    %344 = tpu.concatenate %340, %341, %342, %343 in 0 : vector<1x16xbf16>, vector<1x16xbf16>, vector<1x16xbf16>, vector<1x16xbf16> -> vector<4x16xbf16>
    %c1_659 = arith.constant 1 : index
    %c1_660 = arith.constant 1 : index
    %c0_661 = arith.constant 0 : index
    %c0_662 = arith.constant 0 : index
    %345 = vector.load %arg10[%c1_659, %c1_660, %c0_661, %c0_662] : memref<10x2x5x16xbf16, #tpu.memory_space<vmem>>, vector<1x1x4x16xbf16>
    %346 = vector.shape_cast %345 : vector<1x1x4x16xbf16> to vector<4x16xbf16>
    %347 = vector.shape_cast %339 : vector<4x16xbf16> to vector<1x1x4x16xbf16>
    tpu.vector_store %arg10[%c1_659, %c1_660, %c0_661, %c0_662], %347 {strides = array<i32>} : memref<10x2x5x16xbf16, #tpu.memory_space<vmem>>, vector<1x1x4x16xbf16>,
    %c1_663 = arith.constant 1 : index
    %c0_664 = arith.constant 0 : index
    %c1_665 = arith.constant 1 : index
    %c0_666 = arith.constant 0 : index
    %348 = vector.load %arg10[%c1_663, %c0_664, %c1_665, %c0_666] : memref<10x2x5x16xbf16, #tpu.memory_space<vmem>>, vector<1x1x4x16xbf16>
    %349 = vector.shape_cast %348 : vector<1x1x4x16xbf16> to vector<4x16xbf16>
    %350 = vector.shape_cast %344 : vector<4x16xbf16> to vector<1x1x4x16xbf16>
    tpu.vector_store %arg10[%c1_663, %c0_664, %c1_665, %c0_666], %350 {strides = array<i32>} : memref<10x2x5x16xbf16, #tpu.memory_space<vmem>>, vector<1x1x4x16xbf16>,
    %351 = arith.truncf %87 : vector<8x16xf32> to vector<8x16xbf16>
    %352 = vector.extract_strided_slice %351 {offsets = [0, 0], sizes = [1, 16], strides = [1, 1]} : vector<8x16xbf16> to vector<1x16xbf16>
    %353 = vector.extract_strided_slice %351 {offsets = [2, 0], sizes = [1, 16], strides = [1, 1]} : vector<8x16xbf16> to vector<1x16xbf16>
    %354 = vector.extract_strided_slice %351 {offsets = [4, 0], sizes = [1, 16], strides = [1, 1]} : vector<8x16xbf16> to vector<1x16xbf16>
    %355 = vector.extract_strided_slice %351 {offsets = [6, 0], sizes = [1, 16], strides = [1, 1]} : vector<8x16xbf16> to vector<1x16xbf16>
    %356 = tpu.concatenate %352, %353, %354, %355 in 0 : vector<1x16xbf16>, vector<1x16xbf16>, vector<1x16xbf16>, vector<1x16xbf16> -> vector<4x16xbf16>
    %357 = vector.extract_strided_slice %351 {offsets = [1, 0], sizes = [1, 16], strides = [1, 1]} : vector<8x16xbf16> to vector<1x16xbf16>
    %358 = vector.extract_strided_slice %351 {offsets = [3, 0], sizes = [1, 16], strides = [1, 1]} : vector<8x16xbf16> to vector<1x16xbf16>
    %359 = vector.extract_strided_slice %351 {offsets = [5, 0], sizes = [1, 16], strides = [1, 1]} : vector<8x16xbf16> to vector<1x16xbf16>
    %360 = vector.extract_strided_slice %351 {offsets = [7, 0], sizes = [1, 16], strides = [1, 1]} : vector<8x16xbf16> to vector<1x16xbf16>
    %361 = tpu.concatenate %357, %358, %359, %360 in 0 : vector<1x16xbf16>, vector<1x16xbf16>, vector<1x16xbf16>, vector<1x16xbf16> -> vector<4x16xbf16>
    %c2_667 = arith.constant 2 : index
    %c1_668 = arith.constant 1 : index
    %c0_669 = arith.constant 0 : index
    %c0_670 = arith.constant 0 : index
    %362 = vector.load %arg10[%c2_667, %c1_668, %c0_669, %c0_670] : memref<10x2x5x16xbf16, #tpu.memory_space<vmem>>, vector<1x1x4x16xbf16>
    %363 = vector.shape_cast %362 : vector<1x1x4x16xbf16> to vector<4x16xbf16>
    %364 = vector.shape_cast %356 : vector<4x16xbf16> to vector<1x1x4x16xbf16>
    tpu.vector_store %arg10[%c2_667, %c1_668, %c0_669, %c0_670], %364 {strides = array<i32>} : memref<10x2x5x16xbf16, #tpu.memory_space<vmem>>, vector<1x1x4x16xbf16>,
    %c2_671 = arith.constant 2 : index
    %c0_672 = arith.constant 0 : index
    %c1_673 = arith.constant 1 : index
    %c0_674 = arith.constant 0 : index
    %365 = vector.load %arg10[%c2_671, %c0_672, %c1_673, %c0_674] : memref<10x2x5x16xbf16, #tpu.memory_space<vmem>>, vector<1x1x4x16xbf16>
    %366 = vector.shape_cast %365 : vector<1x1x4x16xbf16> to vector<4x16xbf16>
    %367 = vector.shape_cast %361 : vector<4x16xbf16> to vector<1x1x4x16xbf16>
    tpu.vector_store %arg10[%c2_671, %c0_672, %c1_673, %c0_674], %367 {strides = array<i32>} : memref<10x2x5x16xbf16, #tpu.memory_space<vmem>>, vector<1x1x4x16xbf16>,
    %368 = arith.truncf %128 : vector<8x16xf32> to vector<8x16xbf16>
    %369 = vector.extract_strided_slice %368 {offsets = [0, 0], sizes = [1, 16], strides = [1, 1]} : vector<8x16xbf16> to vector<1x16xbf16>
    %370 = vector.extract_strided_slice %368 {offsets = [2, 0], sizes = [1, 16], strides = [1, 1]} : vector<8x16xbf16> to vector<1x16xbf16>
    %371 = vector.extract_strided_slice %368 {offsets = [4, 0], sizes = [1, 16], strides = [1, 1]} : vector<8x16xbf16> to vector<1x16xbf16>
    %372 = vector.extract_strided_slice %368 {offsets = [6, 0], sizes = [1, 16], strides = [1, 1]} : vector<8x16xbf16> to vector<1x16xbf16>
    %373 = tpu.concatenate %369, %370, %371, %372 in 0 : vector<1x16xbf16>, vector<1x16xbf16>, vector<1x16xbf16>, vector<1x16xbf16> -> vector<4x16xbf16>
    %374 = vector.extract_strided_slice %368 {offsets = [1, 0], sizes = [1, 16], strides = [1, 1]} : vector<8x16xbf16> to vector<1x16xbf16>
    %375 = vector.extract_strided_slice %368 {offsets = [3, 0], sizes = [1, 16], strides = [1, 1]} : vector<8x16xbf16> to vector<1x16xbf16>
    %376 = vector.extract_strided_slice %368 {offsets = [5, 0], sizes = [1, 16], strides = [1, 1]} : vector<8x16xbf16> to vector<1x16xbf16>
    %377 = vector.extract_strided_slice %368 {offsets = [7, 0], sizes = [1, 16], strides = [1, 1]} : vector<8x16xbf16> to vector<1x16xbf16>
    %378 = tpu.concatenate %374, %375, %376, %377 in 0 : vector<1x16xbf16>, vector<1x16xbf16>, vector<1x16xbf16>, vector<1x16xbf16> -> vector<4x16xbf16>
    %c3_675 = arith.constant 3 : index
    %c1_676 = arith.constant 1 : index
    %c0_677 = arith.constant 0 : index
    %c0_678 = arith.constant 0 : index
    %379 = vector.load %arg10[%c3_675, %c1_676, %c0_677, %c0_678] : memref<10x2x5x16xbf16, #tpu.memory_space<vmem>>, vector<1x1x4x16xbf16>
    %380 = vector.shape_cast %379 : vector<1x1x4x16xbf16> to vector<4x16xbf16>
    %381 = vector.shape_cast %373 : vector<4x16xbf16> to vector<1x1x4x16xbf16>
    tpu.vector_store %arg10[%c3_675, %c1_676, %c0_677, %c0_678], %381 {strides = array<i32>} : memref<10x2x5x16xbf16, #tpu.memory_space<vmem>>, vector<1x1x4x16xbf16>,
    %c3_679 = arith.constant 3 : index
    %c0_680 = arith.constant 0 : index
    %c1_681 = arith.constant 1 : index
    %c0_682 = arith.constant 0 : index
    %382 = vector.load %arg10[%c3_679, %c0_680, %c1_681, %c0_682] : memref<10x2x5x16xbf16, #tpu.memory_space<vmem>>, vector<1x1x4x16xbf16>
    %383 = vector.shape_cast %382 : vector<1x1x4x16xbf16> to vector<4x16xbf16>
    %384 = vector.shape_cast %378 : vector<4x16xbf16> to vector<1x1x4x16xbf16>
    tpu.vector_store %arg10[%c3_679, %c0_680, %c1_681, %c0_682], %384 {strides = array<i32>} : memref<10x2x5x16xbf16, #tpu.memory_space<vmem>>, vector<1x1x4x16xbf16>,
    %385 = arith.truncf %169 : vector<8x16xf32> to vector<8x16xbf16>
    %386 = vector.extract_strided_slice %385 {offsets = [0, 0], sizes = [1, 16], strides = [1, 1]} : vector<8x16xbf16> to vector<1x16xbf16>
    %387 = vector.extract_strided_slice %385 {offsets = [2, 0], sizes = [1, 16], strides = [1, 1]} : vector<8x16xbf16> to vector<1x16xbf16>
    %388 = vector.extract_strided_slice %385 {offsets = [4, 0], sizes = [1, 16], strides = [1, 1]} : vector<8x16xbf16> to vector<1x16xbf16>
    %389 = vector.extract_strided_slice %385 {offsets = [6, 0], sizes = [1, 16], strides = [1, 1]} : vector<8x16xbf16> to vector<1x16xbf16>
    %390 = tpu.concatenate %386, %387, %388, %389 in 0 : vector<1x16xbf16>, vector<1x16xbf16>, vector<1x16xbf16>, vector<1x16xbf16> -> vector<4x16xbf16>
    %391 = vector.extract_strided_slice %385 {offsets = [1, 0], sizes = [1, 16], strides = [1, 1]} : vector<8x16xbf16> to vector<1x16xbf16>
    %392 = vector.extract_strided_slice %385 {offsets = [3, 0], sizes = [1, 16], strides = [1, 1]} : vector<8x16xbf16> to vector<1x16xbf16>
    %393 = vector.extract_strided_slice %385 {offsets = [5, 0], sizes = [1, 16], strides = [1, 1]} : vector<8x16xbf16> to vector<1x16xbf16>
    %394 = vector.extract_strided_slice %385 {offsets = [7, 0], sizes = [1, 16], strides = [1, 1]} : vector<8x16xbf16> to vector<1x16xbf16>
    %395 = tpu.concatenate %391, %392, %393, %394 in 0 : vector<1x16xbf16>, vector<1x16xbf16>, vector<1x16xbf16>, vector<1x16xbf16> -> vector<4x16xbf16>
    %c4_683 = arith.constant 4 : index
    %c1_684 = arith.constant 1 : index
    %c0_685 = arith.constant 0 : index
    %c0_686 = arith.constant 0 : index
    %396 = vector.load %arg10[%c4_683, %c1_684, %c0_685, %c0_686] : memref<10x2x5x16xbf16, #tpu.memory_space<vmem>>, vector<1x1x4x16xbf16>
    %397 = vector.shape_cast %396 : vector<1x1x4x16xbf16> to vector<4x16xbf16>
    %398 = vector.shape_cast %390 : vector<4x16xbf16> to vector<1x1x4x16xbf16>
    tpu.vector_store %arg10[%c4_683, %c1_684, %c0_685, %c0_686], %398 {strides = array<i32>} : memref<10x2x5x16xbf16, #tpu.memory_space<vmem>>, vector<1x1x4x16xbf16>,
    %c4_687 = arith.constant 4 : index
    %c0_688 = arith.constant 0 : index
    %c1_689 = arith.constant 1 : index
    %c0_690 = arith.constant 0 : index
    %399 = vector.load %arg10[%c4_687, %c0_688, %c1_689, %c0_690] : memref<10x2x5x16xbf16, #tpu.memory_space<vmem>>, vector<1x1x4x16xbf16>
    %400 = vector.shape_cast %399 : vector<1x1x4x16xbf16> to vector<4x16xbf16>
    %401 = vector.shape_cast %395 : vector<4x16xbf16> to vector<1x1x4x16xbf16>
    tpu.vector_store %arg10[%c4_687, %c0_688, %c1_689, %c0_690], %401 {strides = array<i32>} : memref<10x2x5x16xbf16, #tpu.memory_space<vmem>>, vector<1x1x4x16xbf16>,
    %402 = arith.truncf %210 : vector<8x16xf32> to vector<8x16xbf16>
    %403 = vector.extract_strided_slice %402 {offsets = [0, 0], sizes = [1, 16], strides = [1, 1]} : vector<8x16xbf16> to vector<1x16xbf16>
    %404 = vector.extract_strided_slice %402 {offsets = [2, 0], sizes = [1, 16], strides = [1, 1]} : vector<8x16xbf16> to vector<1x16xbf16>
    %405 = vector.extract_strided_slice %402 {offsets = [4, 0], sizes = [1, 16], strides = [1, 1]} : vector<8x16xbf16> to vector<1x16xbf16>
    %406 = vector.extract_strided_slice %402 {offsets = [6, 0], sizes = [1, 16], strides = [1, 1]} : vector<8x16xbf16> to vector<1x16xbf16>
    %407 = tpu.concatenate %403, %404, %405, %406 in 0 : vector<1x16xbf16>, vector<1x16xbf16>, vector<1x16xbf16>, vector<1x16xbf16> -> vector<4x16xbf16>
    %408 = vector.extract_strided_slice %402 {offsets = [1, 0], sizes = [1, 16], strides = [1, 1]} : vector<8x16xbf16> to vector<1x16xbf16>
    %409 = vector.extract_strided_slice %402 {offsets = [3, 0], sizes = [1, 16], strides = [1, 1]} : vector<8x16xbf16> to vector<1x16xbf16>
    %410 = vector.extract_strided_slice %402 {offsets = [5, 0], sizes = [1, 16], strides = [1, 1]} : vector<8x16xbf16> to vector<1x16xbf16>
    %411 = vector.extract_strided_slice %402 {offsets = [7, 0], sizes = [1, 16], strides = [1, 1]} : vector<8x16xbf16> to vector<1x16xbf16>
    %412 = tpu.concatenate %408, %409, %410, %411 in 0 : vector<1x16xbf16>, vector<1x16xbf16>, vector<1x16xbf16>, vector<1x16xbf16> -> vector<4x16xbf16>
    %c5_691 = arith.constant 5 : index
    %c1_692 = arith.constant 1 : index
    %c0_693 = arith.constant 0 : index
    %c0_694 = arith.constant 0 : index
    %413 = vector.load %arg10[%c5_691, %c1_692, %c0_693, %c0_694] : memref<10x2x5x16xbf16, #tpu.memory_space<vmem>>, vector<1x1x4x16xbf16>
    %414 = vector.shape_cast %413 : vector<1x1x4x16xbf16> to vector<4x16xbf16>
    %415 = vector.shape_cast %407 : vector<4x16xbf16> to vector<1x1x4x16xbf16>
    tpu.vector_store %arg10[%c5_691, %c1_692, %c0_693, %c0_694], %415 {strides = array<i32>} : memref<10x2x5x16xbf16, #tpu.memory_space<vmem>>, vector<1x1x4x16xbf16>,
    %c5_695 = arith.constant 5 : index
    %c0_696 = arith.constant 0 : index
    %c1_697 = arith.constant 1 : index
    %c0_698 = arith.constant 0 : index
    %416 = vector.load %arg10[%c5_695, %c0_696, %c1_697, %c0_698] : memref<10x2x5x16xbf16, #tpu.memory_space<vmem>>, vector<1x1x4x16xbf16>
    %417 = vector.shape_cast %416 : vector<1x1x4x16xbf16> to vector<4x16xbf16>
    %418 = vector.shape_cast %412 : vector<4x16xbf16> to vector<1x1x4x16xbf16>
    tpu.vector_store %arg10[%c5_695, %c0_696, %c1_697, %c0_698], %418 {strides = array<i32>} : memref<10x2x5x16xbf16, #tpu.memory_space<vmem>>, vector<1x1x4x16xbf16>,
    %419 = arith.truncf %251 : vector<8x16xf32> to vector<8x16xbf16>
    %420 = vector.extract_strided_slice %419 {offsets = [0, 0], sizes = [1, 16], strides = [1, 1]} : vector<8x16xbf16> to vector<1x16xbf16>
    %421 = vector.extract_strided_slice %419 {offsets = [2, 0], sizes = [1, 16], strides = [1, 1]} : vector<8x16xbf16> to vector<1x16xbf16>
    %422 = vector.extract_strided_slice %419 {offsets = [4, 0], sizes = [1, 16], strides = [1, 1]} : vector<8x16xbf16> to vector<1x16xbf16>
    %423 = vector.extract_strided_slice %419 {offsets = [6, 0], sizes = [1, 16], strides = [1, 1]} : vector<8x16xbf16> to vector<1x16xbf16>
    %424 = tpu.concatenate %420, %421, %422, %423 in 0 : vector<1x16xbf16>, vector<1x16xbf16>, vector<1x16xbf16>, vector<1x16xbf16> -> vector<4x16xbf16>
    %425 = vector.extract_strided_slice %419 {offsets = [1, 0], sizes = [1, 16], strides = [1, 1]} : vector<8x16xbf16> to vector<1x16xbf16>
    %426 = vector.extract_strided_slice %419 {offsets = [3, 0], sizes = [1, 16], strides = [1, 1]} : vector<8x16xbf16> to vector<1x16xbf16>
    %427 = vector.extract_strided_slice %419 {offsets = [5, 0], sizes = [1, 16], strides = [1, 1]} : vector<8x16xbf16> to vector<1x16xbf16>
    %428 = vector.extract_strided_slice %419 {offsets = [7, 0], sizes = [1, 16], strides = [1, 1]} : vector<8x16xbf16> to vector<1x16xbf16>
    %429 = tpu.concatenate %425, %426, %427, %428 in 0 : vector<1x16xbf16>, vector<1x16xbf16>, vector<1x16xbf16>, vector<1x16xbf16> -> vector<4x16xbf16>
    %c6_699 = arith.constant 6 : index
    %c1_700 = arith.constant 1 : index
    %c0_701 = arith.constant 0 : index
    %c0_702 = arith.constant 0 : index
    %430 = vector.load %arg10[%c6_699, %c1_700, %c0_701, %c0_702] : memref<10x2x5x16xbf16, #tpu.memory_space<vmem>>, vector<1x1x4x16xbf16>
    %431 = vector.shape_cast %430 : vector<1x1x4x16xbf16> to vector<4x16xbf16>
    %432 = vector.shape_cast %424 : vector<4x16xbf16> to vector<1x1x4x16xbf16>
    tpu.vector_store %arg10[%c6_699, %c1_700, %c0_701, %c0_702], %432 {strides = array<i32>} : memref<10x2x5x16xbf16, #tpu.memory_space<vmem>>, vector<1x1x4x16xbf16>,
    %c6_703 = arith.constant 6 : index
    %c0_704 = arith.constant 0 : index
    %c1_705 = arith.constant 1 : index
    %c0_706 = arith.constant 0 : index
    %433 = vector.load %arg10[%c6_703, %c0_704, %c1_705, %c0_706] : memref<10x2x5x16xbf16, #tpu.memory_space<vmem>>, vector<1x1x4x16xbf16>
    %434 = vector.shape_cast %433 : vector<1x1x4x16xbf16> to vector<4x16xbf16>
    %435 = vector.shape_cast %429 : vector<4x16xbf16> to vector<1x1x4x16xbf16>
    tpu.vector_store %arg10[%c6_703, %c0_704, %c1_705, %c0_706], %435 {strides = array<i32>} : memref<10x2x5x16xbf16, #tpu.memory_space<vmem>>, vector<1x1x4x16xbf16>,
    %436 = arith.truncf %292 : vector<8x16xf32> to vector<8x16xbf16>
    %437 = vector.extract_strided_slice %436 {offsets = [0, 0], sizes = [1, 16], strides = [1, 1]} : vector<8x16xbf16> to vector<1x16xbf16>
    %438 = vector.extract_strided_slice %436 {offsets = [2, 0], sizes = [1, 16], strides = [1, 1]} : vector<8x16xbf16> to vector<1x16xbf16>
    %439 = vector.extract_strided_slice %436 {offsets = [4, 0], sizes = [1, 16], strides = [1, 1]} : vector<8x16xbf16> to vector<1x16xbf16>
    %440 = vector.extract_strided_slice %436 {offsets = [6, 0], sizes = [1, 16], strides = [1, 1]} : vector<8x16xbf16> to vector<1x16xbf16>
    %441 = tpu.concatenate %437, %438, %439, %440 in 0 : vector<1x16xbf16>, vector<1x16xbf16>, vector<1x16xbf16>, vector<1x16xbf16> -> vector<4x16xbf16>
    %442 = vector.extract_strided_slice %436 {offsets = [1, 0], sizes = [1, 16], strides = [1, 1]} : vector<8x16xbf16> to vector<1x16xbf16>
    %443 = vector.extract_strided_slice %436 {offsets = [3, 0], sizes = [1, 16], strides = [1, 1]} : vector<8x16xbf16> to vector<1x16xbf16>
    %444 = vector.extract_strided_slice %436 {offsets = [5, 0], sizes = [1, 16], strides = [1, 1]} : vector<8x16xbf16> to vector<1x16xbf16>
    %445 = vector.extract_strided_slice %436 {offsets = [7, 0], sizes = [1, 16], strides = [1, 1]} : vector<8x16xbf16> to vector<1x16xbf16>
    %446 = tpu.concatenate %442, %443, %444, %445 in 0 : vector<1x16xbf16>, vector<1x16xbf16>, vector<1x16xbf16>, vector<1x16xbf16> -> vector<4x16xbf16>
    %c7_707 = arith.constant 7 : index
    %c1_708 = arith.constant 1 : index
    %c0_709 = arith.constant 0 : index
    %c0_710 = arith.constant 0 : index
    %447 = vector.load %arg10[%c7_707, %c1_708, %c0_709, %c0_710] : memref<10x2x5x16xbf16, #tpu.memory_space<vmem>>, vector<1x1x4x16xbf16>
    %448 = vector.shape_cast %447 : vector<1x1x4x16xbf16> to vector<4x16xbf16>
    %449 = vector.shape_cast %441 : vector<4x16xbf16> to vector<1x1x4x16xbf16>
    tpu.vector_store %arg10[%c7_707, %c1_708, %c0_709, %c0_710], %449 {strides = array<i32>} : memref<10x2x5x16xbf16, #tpu.memory_space<vmem>>, vector<1x1x4x16xbf16>,
    %c7_711 = arith.constant 7 : index
    %c0_712 = arith.constant 0 : index
    %c1_713 = arith.constant 1 : index
    %c0_714 = arith.constant 0 : index
    %450 = vector.load %arg10[%c7_711, %c0_712, %c1_713, %c0_714] : memref<10x2x5x16xbf16, #tpu.memory_space<vmem>>, vector<1x1x4x16xbf16>
    %451 = vector.shape_cast %450 : vector<1x1x4x16xbf16> to vector<4x16xbf16>
    %452 = vector.shape_cast %446 : vector<4x16xbf16> to vector<1x1x4x16xbf16>
    tpu.vector_store %arg10[%c7_711, %c0_712, %c1_713, %c0_714], %452 {strides = array<i32>} : memref<10x2x5x16xbf16, #tpu.memory_space<vmem>>, vector<1x1x4x16xbf16>,
    %453 = arith.truncf %333 : vector<8x16xf32> to vector<8x16xbf16>
    %454 = vector.extract_strided_slice %453 {offsets = [0, 0], sizes = [1, 16], strides = [1, 1]} : vector<8x16xbf16> to vector<1x16xbf16>
    %455 = vector.extract_strided_slice %453 {offsets = [2, 0], sizes = [1, 16], strides = [1, 1]} : vector<8x16xbf16> to vector<1x16xbf16>
    %456 = vector.extract_strided_slice %453 {offsets = [4, 0], sizes = [1, 16], strides = [1, 1]} : vector<8x16xbf16> to vector<1x16xbf16>
    %457 = vector.extract_strided_slice %453 {offsets = [6, 0], sizes = [1, 16], strides = [1, 1]} : vector<8x16xbf16> to vector<1x16xbf16>
    %458 = tpu.concatenate %454, %455, %456, %457 in 0 : vector<1x16xbf16>, vector<1x16xbf16>, vector<1x16xbf16>, vector<1x16xbf16> -> vector<4x16xbf16>
    %459 = vector.extract_strided_slice %453 {offsets = [1, 0], sizes = [1, 16], strides = [1, 1]} : vector<8x16xbf16> to vector<1x16xbf16>
    %460 = vector.extract_strided_slice %453 {offsets = [3, 0], sizes = [1, 16], strides = [1, 1]} : vector<8x16xbf16> to vector<1x16xbf16>
    %461 = vector.extract_strided_slice %453 {offsets = [5, 0], sizes = [1, 16], strides = [1, 1]} : vector<8x16xbf16> to vector<1x16xbf16>
    %462 = vector.extract_strided_slice %453 {offsets = [7, 0], sizes = [1, 16], strides = [1, 1]} : vector<8x16xbf16> to vector<1x16xbf16>
    %463 = tpu.concatenate %459, %460, %461, %462 in 0 : vector<1x16xbf16>, vector<1x16xbf16>, vector<1x16xbf16>, vector<1x16xbf16> -> vector<4x16xbf16>
    %c8_715 = arith.constant 8 : index
    %c1_716 = arith.constant 1 : index
    %c0_717 = arith.constant 0 : index
    %c0_718 = arith.constant 0 : index
    %464 = vector.load %arg10[%c8_715, %c1_716, %c0_717, %c0_718] : memref<10x2x5x16xbf16, #tpu.memory_space<vmem>>, vector<1x1x4x16xbf16>
    %465 = vector.shape_cast %464 : vector<1x1x4x16xbf16> to vector<4x16xbf16>
    %466 = vector.shape_cast %458 : vector<4x16xbf16> to vector<1x1x4x16xbf16>
    tpu.vector_store %arg10[%c8_715, %c1_716, %c0_717, %c0_718], %466 {strides = array<i32>} : memref<10x2x5x16xbf16, #tpu.memory_space<vmem>>, vector<1x1x4x16xbf16>,
    %c8_719 = arith.constant 8 : index
    %c0_720 = arith.constant 0 : index
    %c1_721 = arith.constant 1 : index
    %c0_722 = arith.constant 0 : index
    %467 = vector.load %arg10[%c8_719, %c0_720, %c1_721, %c0_722] : memref<10x2x5x16xbf16, #tpu.memory_space<vmem>>, vector<1x1x4x16xbf16>
    %468 = vector.shape_cast %467 : vector<1x1x4x16xbf16> to vector<4x16xbf16>
    %469 = vector.shape_cast %463 : vector<4x16xbf16> to vector<1x1x4x16xbf16>
    tpu.vector_store %arg10[%c8_719, %c0_720, %c1_721, %c0_722], %469 {strides = array<i32>} : memref<10x2x5x16xbf16, #tpu.memory_space<vmem>>, vector<1x1x4x16xbf16>,
    %c0_723 = arith.constant 0 : index
    %c0_724 = arith.constant 0 : index
    %470 = vector.load %arg4[%c0_723, %c0_724] : memref<256x32xbf16, #tpu.memory_space<vmem>>, vector<256x32xbf16>
    %c0_725 = arith.constant 0 : index
    %c0_726 = arith.constant 0 : index
    %471 = vector.load %arg5[%c0_725, %c0_726] : memref<1x32xf32, #tpu.memory_space<vmem>>, vector<1x32xf32>
    %c0_727 = arith.constant 0 : index
    %c0_728 = arith.constant 0 : index
    %c0_729 = arith.constant 0 : index
    %c0_730 = arith.constant 0 : index
    %472 = vector.load %arg10[%c0_727, %c0_728, %c0_729, %c0_730] : memref<10x2x5x16xbf16, #tpu.memory_space<vmem>>, vector<1x1x4x16xbf16>
    %473 = vector.shape_cast %472 : vector<1x1x4x16xbf16> to vector<4x16xbf16>
    %c0_731 = arith.constant 0 : index
    %c1_732 = arith.constant 1 : index
    %c0_733 = arith.constant 0 : index
    %c0_734 = arith.constant 0 : index
    %474 = vector.load %arg10[%c0_731, %c1_732, %c0_733, %c0_734] : memref<10x2x5x16xbf16, #tpu.memory_space<vmem>>, vector<1x1x4x16xbf16>
    %475 = vector.shape_cast %474 : vector<1x1x4x16xbf16> to vector<4x16xbf16>
    %c0_735 = arith.constant 0 : index
    %c0_736 = arith.constant 0 : index
    %c1_737 = arith.constant 1 : index
    %c0_738 = arith.constant 0 : index
    %476 = vector.load %arg10[%c0_735, %c0_736, %c1_737, %c0_738] : memref<10x2x5x16xbf16, #tpu.memory_space<vmem>>, vector<1x1x4x16xbf16>
    %477 = vector.shape_cast %476 : vector<1x1x4x16xbf16> to vector<4x16xbf16>
    %c0_739 = arith.constant 0 : index
    %c1_740 = arith.constant 1 : index
    %c1_741 = arith.constant 1 : index
    %c0_742 = arith.constant 0 : index
    %478 = vector.load %arg10[%c0_739, %c1_740, %c1_741, %c0_742] : memref<10x2x5x16xbf16, #tpu.memory_space<vmem>>, vector<1x1x4x16xbf16>
    %479 = vector.shape_cast %478 : vector<1x1x4x16xbf16> to vector<4x16xbf16>
    %c1_743 = arith.constant 1 : index
    %c0_744 = arith.constant 0 : index
    %c0_745 = arith.constant 0 : index
    %c0_746 = arith.constant 0 : index
    %480 = vector.load %arg10[%c1_743, %c0_744, %c0_745, %c0_746] : memref<10x2x5x16xbf16, #tpu.memory_space<vmem>>, vector<1x1x4x16xbf16>
    %481 = vector.shape_cast %480 : vector<1x1x4x16xbf16> to vector<4x16xbf16>
    %c1_747 = arith.constant 1 : index
    %c1_748 = arith.constant 1 : index
    %c0_749 = arith.constant 0 : index
    %c0_750 = arith.constant 0 : index
    %482 = vector.load %arg10[%c1_747, %c1_748, %c0_749, %c0_750] : memref<10x2x5x16xbf16, #tpu.memory_space<vmem>>, vector<1x1x4x16xbf16>
    %483 = vector.shape_cast %482 : vector<1x1x4x16xbf16> to vector<4x16xbf16>
    %c1_751 = arith.constant 1 : index
    %c0_752 = arith.constant 0 : index
    %c1_753 = arith.constant 1 : index
    %c0_754 = arith.constant 0 : index
    %484 = vector.load %arg10[%c1_751, %c0_752, %c1_753, %c0_754] : memref<10x2x5x16xbf16, #tpu.memory_space<vmem>>, vector<1x1x4x16xbf16>
    %485 = vector.shape_cast %484 : vector<1x1x4x16xbf16> to vector<4x16xbf16>
    %c1_755 = arith.constant 1 : index
    %c1_756 = arith.constant 1 : index
    %c1_757 = arith.constant 1 : index
    %c0_758 = arith.constant 0 : index
    %486 = vector.load %arg10[%c1_755, %c1_756, %c1_757, %c0_758] : memref<10x2x5x16xbf16, #tpu.memory_space<vmem>>, vector<1x1x4x16xbf16>
    %487 = vector.shape_cast %486 : vector<1x1x4x16xbf16> to vector<4x16xbf16>
    %c2_759 = arith.constant 2 : index
    %c0_760 = arith.constant 0 : index
    %c0_761 = arith.constant 0 : index
    %c0_762 = arith.constant 0 : index
    %488 = vector.load %arg10[%c2_759, %c0_760, %c0_761, %c0_762] : memref<10x2x5x16xbf16, #tpu.memory_space<vmem>>, vector<1x1x4x16xbf16>
    %489 = vector.shape_cast %488 : vector<1x1x4x16xbf16> to vector<4x16xbf16>
    %c2_763 = arith.constant 2 : index
    %c1_764 = arith.constant 1 : index
    %c0_765 = arith.constant 0 : index
    %c0_766 = arith.constant 0 : index
    %490 = vector.load %arg10[%c2_763, %c1_764, %c0_765, %c0_766] : memref<10x2x5x16xbf16, #tpu.memory_space<vmem>>, vector<1x1x4x16xbf16>
    %491 = vector.shape_cast %490 : vector<1x1x4x16xbf16> to vector<4x16xbf16>
    %c2_767 = arith.constant 2 : index
    %c0_768 = arith.constant 0 : index
    %c1_769 = arith.constant 1 : index
    %c0_770 = arith.constant 0 : index
    %492 = vector.load %arg10[%c2_767, %c0_768, %c1_769, %c0_770] : memref<10x2x5x16xbf16, #tpu.memory_space<vmem>>, vector<1x1x4x16xbf16>
    %493 = vector.shape_cast %492 : vector<1x1x4x16xbf16> to vector<4x16xbf16>
    %c2_771 = arith.constant 2 : index
    %c1_772 = arith.constant 1 : index
    %c1_773 = arith.constant 1 : index
    %c0_774 = arith.constant 0 : index
    %494 = vector.load %arg10[%c2_771, %c1_772, %c1_773, %c0_774] : memref<10x2x5x16xbf16, #tpu.memory_space<vmem>>, vector<1x1x4x16xbf16>
    %495 = vector.shape_cast %494 : vector<1x1x4x16xbf16> to vector<4x16xbf16>
    %c3_775 = arith.constant 3 : index
    %c0_776 = arith.constant 0 : index
    %c0_777 = arith.constant 0 : index
    %c0_778 = arith.constant 0 : index
    %496 = vector.load %arg10[%c3_775, %c0_776, %c0_777, %c0_778] : memref<10x2x5x16xbf16, #tpu.memory_space<vmem>>, vector<1x1x4x16xbf16>
    %497 = vector.shape_cast %496 : vector<1x1x4x16xbf16> to vector<4x16xbf16>
    %c3_779 = arith.constant 3 : index
    %c1_780 = arith.constant 1 : index
    %c0_781 = arith.constant 0 : index
    %c0_782 = arith.constant 0 : index
    %498 = vector.load %arg10[%c3_779, %c1_780, %c0_781, %c0_782] : memref<10x2x5x16xbf16, #tpu.memory_space<vmem>>, vector<1x1x4x16xbf16>
    %499 = vector.shape_cast %498 : vector<1x1x4x16xbf16> to vector<4x16xbf16>
    %c3_783 = arith.constant 3 : index
    %c0_784 = arith.constant 0 : index
    %c1_785 = arith.constant 1 : index
    %c0_786 = arith.constant 0 : index
    %500 = vector.load %arg10[%c3_783, %c0_784, %c1_785, %c0_786] : memref<10x2x5x16xbf16, #tpu.memory_space<vmem>>, vector<1x1x4x16xbf16>
    %501 = vector.shape_cast %500 : vector<1x1x4x16xbf16> to vector<4x16xbf16>
    %c3_787 = arith.constant 3 : index
    %c1_788 = arith.constant 1 : index
    %c1_789 = arith.constant 1 : index
    %c0_790 = arith.constant 0 : index
    %502 = vector.load %arg10[%c3_787, %c1_788, %c1_789, %c0_790] : memref<10x2x5x16xbf16, #tpu.memory_space<vmem>>, vector<1x1x4x16xbf16>
    %503 = vector.shape_cast %502 : vector<1x1x4x16xbf16> to vector<4x16xbf16>
    %504 = tpu.concatenate %473, %475, %477, %479, %481, %483, %485, %487, %489, %491, %493, %495, %497, %499, %501, %503 in 1 : vector<4x16xbf16>, vector<4x16xbf16>, vector<4x16xbf16>, vector<4x16xbf16>, vector<4x16xbf16>, vector<4x16xbf16>, vector<4x16xbf16>, vector<4x16xbf16>, vector<4x16xbf16>, vector<4x16xbf16>, vector<4x16xbf16>, vector<4x16xbf16>, vector<4x16xbf16>, vector<4x16xbf16>, vector<4x16xbf16>, vector<4x16xbf16> -> vector<4x256xbf16>
    %cst_791 = arith.constant dense<0.000000e+00> : vector<4x32xf32>
    %505 = tpu.matmul %504, %470, %cst_791 {dimension_numbers = #tpu.dot_dimension_numbers<[1], [0], [0], [1], [0, 0, 1, 1], [], []>} : vector<4x256xbf16>, vector<256x32xbf16>, vector<4x32xf32> -> vector<4x32xf32>
    %506 = vector.broadcast %471 : vector<1x32xf32> to vector<4x32xf32>
    %507 = arith.addf %505, %506 : vector<4x32xf32>
    %cst_792 = arith.constant 0.000000e+00 : f32
    %508 = vector.broadcast %cst_792 : f32 to vector<4x32xf32>
    %509 = arith.cmpf oge, %507, %508 : vector<4x32xf32>
    %cst_793 = arith.constant 0.00999999977 : f32
    %510 = vector.broadcast %cst_793 : f32 to vector<4x32xf32>
    %511 = arith.mulf %510, %507 : vector<4x32xf32>
    %512 = arith.select %509, %507, %511 : vector<4x32xi1>, vector<4x32xf32>
    %c2_794 = arith.constant 2 : index
    %c0_795 = arith.constant 0 : index
    %c0_796 = arith.constant 0 : index
    %c0_797 = arith.constant 0 : index
    %513 = vector.load %arg10[%c2_794, %c0_795, %c0_796, %c0_797] : memref<10x2x5x16xbf16, #tpu.memory_space<vmem>>, vector<1x1x4x16xbf16>
    %514 = vector.shape_cast %513 : vector<1x1x4x16xbf16> to vector<4x16xbf16>
    %c2_798 = arith.constant 2 : index
    %c1_799 = arith.constant 1 : index
    %c0_800 = arith.constant 0 : index
    %c0_801 = arith.constant 0 : index
    %515 = vector.load %arg10[%c2_798, %c1_799, %c0_800, %c0_801] : memref<10x2x5x16xbf16, #tpu.memory_space<vmem>>, vector<1x1x4x16xbf16>
    %516 = vector.shape_cast %515 : vector<1x1x4x16xbf16> to vector<4x16xbf16>
    %c2_802 = arith.constant 2 : index
    %c0_803 = arith.constant 0 : index
    %c1_804 = arith.constant 1 : index
    %c0_805 = arith.constant 0 : index
    %517 = vector.load %arg10[%c2_802, %c0_803, %c1_804, %c0_805] : memref<10x2x5x16xbf16, #tpu.memory_space<vmem>>, vector<1x1x4x16xbf16>
    %518 = vector.shape_cast %517 : vector<1x1x4x16xbf16> to vector<4x16xbf16>
    %c2_806 = arith.constant 2 : index
    %c1_807 = arith.constant 1 : index
    %c1_808 = arith.constant 1 : index
    %c0_809 = arith.constant 0 : index
    %519 = vector.load %arg10[%c2_806, %c1_807, %c1_808, %c0_809] : memref<10x2x5x16xbf16, #tpu.memory_space<vmem>>, vector<1x1x4x16xbf16>
    %520 = vector.shape_cast %519 : vector<1x1x4x16xbf16> to vector<4x16xbf16>
    %c3_810 = arith.constant 3 : index
    %c0_811 = arith.constant 0 : index
    %c0_812 = arith.constant 0 : index
    %c0_813 = arith.constant 0 : index
    %521 = vector.load %arg10[%c3_810, %c0_811, %c0_812, %c0_813] : memref<10x2x5x16xbf16, #tpu.memory_space<vmem>>, vector<1x1x4x16xbf16>
    %522 = vector.shape_cast %521 : vector<1x1x4x16xbf16> to vector<4x16xbf16>
    %c3_814 = arith.constant 3 : index
    %c1_815 = arith.constant 1 : index
    %c0_816 = arith.constant 0 : index
    %c0_817 = arith.constant 0 : index
    %523 = vector.load %arg10[%c3_814, %c1_815, %c0_816, %c0_817] : memref<10x2x5x16xbf16, #tpu.memory_space<vmem>>, vector<1x1x4x16xbf16>
    %524 = vector.shape_cast %523 : vector<1x1x4x16xbf16> to vector<4x16xbf16>
    %c3_818 = arith.constant 3 : index
    %c0_819 = arith.constant 0 : index
    %c1_820 = arith.constant 1 : index
    %c0_821 = arith.constant 0 : index
    %525 = vector.load %arg10[%c3_818, %c0_819, %c1_820, %c0_821] : memref<10x2x5x16xbf16, #tpu.memory_space<vmem>>, vector<1x1x4x16xbf16>
    %526 = vector.shape_cast %525 : vector<1x1x4x16xbf16> to vector<4x16xbf16>
    %c3_822 = arith.constant 3 : index
    %c1_823 = arith.constant 1 : index
    %c1_824 = arith.constant 1 : index
    %c0_825 = arith.constant 0 : index
    %527 = vector.load %arg10[%c3_822, %c1_823, %c1_824, %c0_825] : memref<10x2x5x16xbf16, #tpu.memory_space<vmem>>, vector<1x1x4x16xbf16>
    %528 = vector.shape_cast %527 : vector<1x1x4x16xbf16> to vector<4x16xbf16>
    %c4_826 = arith.constant 4 : index
    %c0_827 = arith.constant 0 : index
    %c0_828 = arith.constant 0 : index
    %c0_829 = arith.constant 0 : index
    %529 = vector.load %arg10[%c4_826, %c0_827, %c0_828, %c0_829] : memref<10x2x5x16xbf16, #tpu.memory_space<vmem>>, vector<1x1x4x16xbf16>
    %530 = vector.shape_cast %529 : vector<1x1x4x16xbf16> to vector<4x16xbf16>
    %c4_830 = arith.constant 4 : index
    %c1_831 = arith.constant 1 : index
    %c0_832 = arith.constant 0 : index
    %c0_833 = arith.constant 0 : index
    %531 = vector.load %arg10[%c4_830, %c1_831, %c0_832, %c0_833] : memref<10x2x5x16xbf16, #tpu.memory_space<vmem>>, vector<1x1x4x16xbf16>
    %532 = vector.shape_cast %531 : vector<1x1x4x16xbf16> to vector<4x16xbf16>
    %c4_834 = arith.constant 4 : index
    %c0_835 = arith.constant 0 : index
    %c1_836 = arith.constant 1 : index
    %c0_837 = arith.constant 0 : index
    %533 = vector.load %arg10[%c4_834, %c0_835, %c1_836, %c0_837] : memref<10x2x5x16xbf16, #tpu.memory_space<vmem>>, vector<1x1x4x16xbf16>
    %534 = vector.shape_cast %533 : vector<1x1x4x16xbf16> to vector<4x16xbf16>
    %c4_838 = arith.constant 4 : index
    %c1_839 = arith.constant 1 : index
    %c1_840 = arith.constant 1 : index
    %c0_841 = arith.constant 0 : index
    %535 = vector.load %arg10[%c4_838, %c1_839, %c1_840, %c0_841] : memref<10x2x5x16xbf16, #tpu.memory_space<vmem>>, vector<1x1x4x16xbf16>
    %536 = vector.shape_cast %535 : vector<1x1x4x16xbf16> to vector<4x16xbf16>
    %c5_842 = arith.constant 5 : index
    %c0_843 = arith.constant 0 : index
    %c0_844 = arith.constant 0 : index
    %c0_845 = arith.constant 0 : index
    %537 = vector.load %arg10[%c5_842, %c0_843, %c0_844, %c0_845] : memref<10x2x5x16xbf16, #tpu.memory_space<vmem>>, vector<1x1x4x16xbf16>
    %538 = vector.shape_cast %537 : vector<1x1x4x16xbf16> to vector<4x16xbf16>
    %c5_846 = arith.constant 5 : index
    %c1_847 = arith.constant 1 : index
    %c0_848 = arith.constant 0 : index
    %c0_849 = arith.constant 0 : index
    %539 = vector.load %arg10[%c5_846, %c1_847, %c0_848, %c0_849] : memref<10x2x5x16xbf16, #tpu.memory_space<vmem>>, vector<1x1x4x16xbf16>
    %540 = vector.shape_cast %539 : vector<1x1x4x16xbf16> to vector<4x16xbf16>
    %c5_850 = arith.constant 5 : index
    %c0_851 = arith.constant 0 : index
    %c1_852 = arith.constant 1 : index
    %c0_853 = arith.constant 0 : index
    %541 = vector.load %arg10[%c5_850, %c0_851, %c1_852, %c0_853] : memref<10x2x5x16xbf16, #tpu.memory_space<vmem>>, vector<1x1x4x16xbf16>
    %542 = vector.shape_cast %541 : vector<1x1x4x16xbf16> to vector<4x16xbf16>
    %c5_854 = arith.constant 5 : index
    %c1_855 = arith.constant 1 : index
    %c1_856 = arith.constant 1 : index
    %c0_857 = arith.constant 0 : index
    %543 = vector.load %arg10[%c5_854, %c1_855, %c1_856, %c0_857] : memref<10x2x5x16xbf16, #tpu.memory_space<vmem>>, vector<1x1x4x16xbf16>
    %544 = vector.shape_cast %543 : vector<1x1x4x16xbf16> to vector<4x16xbf16>
    %545 = tpu.concatenate %514, %516, %518, %520, %522, %524, %526, %528, %530, %532, %534, %536, %538, %540, %542, %544 in 1 : vector<4x16xbf16>, vector<4x16xbf16>, vector<4x16xbf16>, vector<4x16xbf16>, vector<4x16xbf16>, vector<4x16xbf16>, vector<4x16xbf16>, vector<4x16xbf16>, vector<4x16xbf16>, vector<4x16xbf16>, vector<4x16xbf16>, vector<4x16xbf16>, vector<4x16xbf16>, vector<4x16xbf16>, vector<4x16xbf16>, vector<4x16xbf16> -> vector<4x256xbf16>
    %cst_858 = arith.constant dense<0.000000e+00> : vector<4x32xf32>
    %546 = tpu.matmul %545, %470, %cst_858 {dimension_numbers = #tpu.dot_dimension_numbers<[1], [0], [0], [1], [0, 0, 1, 1], [], []>} : vector<4x256xbf16>, vector<256x32xbf16>, vector<4x32xf32> -> vector<4x32xf32>
    %547 = vector.broadcast %471 : vector<1x32xf32> to vector<4x32xf32>
    %548 = arith.addf %546, %547 : vector<4x32xf32>
    %cst_859 = arith.constant 0.000000e+00 : f32
    %549 = vector.broadcast %cst_859 : f32 to vector<4x32xf32>
    %550 = arith.cmpf oge, %548, %549 : vector<4x32xf32>
    %cst_860 = arith.constant 0.00999999977 : f32
    %551 = vector.broadcast %cst_860 : f32 to vector<4x32xf32>
    %552 = arith.mulf %551, %548 : vector<4x32xf32>
    %553 = arith.select %550, %548, %552 : vector<4x32xi1>, vector<4x32xf32>
    %c4_861 = arith.constant 4 : index
    %c0_862 = arith.constant 0 : index
    %c0_863 = arith.constant 0 : index
    %c0_864 = arith.constant 0 : index
    %554 = vector.load %arg10[%c4_861, %c0_862, %c0_863, %c0_864] : memref<10x2x5x16xbf16, #tpu.memory_space<vmem>>, vector<1x1x4x16xbf16>
    %555 = vector.shape_cast %554 : vector<1x1x4x16xbf16> to vector<4x16xbf16>
    %c4_865 = arith.constant 4 : index
    %c1_866 = arith.constant 1 : index
    %c0_867 = arith.constant 0 : index
    %c0_868 = arith.constant 0 : index
    %556 = vector.load %arg10[%c4_865, %c1_866, %c0_867, %c0_868] : memref<10x2x5x16xbf16, #tpu.memory_space<vmem>>, vector<1x1x4x16xbf16>
    %557 = vector.shape_cast %556 : vector<1x1x4x16xbf16> to vector<4x16xbf16>
    %c4_869 = arith.constant 4 : index
    %c0_870 = arith.constant 0 : index
    %c1_871 = arith.constant 1 : index
    %c0_872 = arith.constant 0 : index
    %558 = vector.load %arg10[%c4_869, %c0_870, %c1_871, %c0_872] : memref<10x2x5x16xbf16, #tpu.memory_space<vmem>>, vector<1x1x4x16xbf16>
    %559 = vector.shape_cast %558 : vector<1x1x4x16xbf16> to vector<4x16xbf16>
    %c4_873 = arith.constant 4 : index
    %c1_874 = arith.constant 1 : index
    %c1_875 = arith.constant 1 : index
    %c0_876 = arith.constant 0 : index
    %560 = vector.load %arg10[%c4_873, %c1_874, %c1_875, %c0_876] : memref<10x2x5x16xbf16, #tpu.memory_space<vmem>>, vector<1x1x4x16xbf16>
    %561 = vector.shape_cast %560 : vector<1x1x4x16xbf16> to vector<4x16xbf16>
    %c5_877 = arith.constant 5 : index
    %c0_878 = arith.constant 0 : index
    %c0_879 = arith.constant 0 : index
    %c0_880 = arith.constant 0 : index
    %562 = vector.load %arg10[%c5_877, %c0_878, %c0_879, %c0_880] : memref<10x2x5x16xbf16, #tpu.memory_space<vmem>>, vector<1x1x4x16xbf16>
    %563 = vector.shape_cast %562 : vector<1x1x4x16xbf16> to vector<4x16xbf16>
    %c5_881 = arith.constant 5 : index
    %c1_882 = arith.constant 1 : index
    %c0_883 = arith.constant 0 : index
    %c0_884 = arith.constant 0 : index
    %564 = vector.load %arg10[%c5_881, %c1_882, %c0_883, %c0_884] : memref<10x2x5x16xbf16, #tpu.memory_space<vmem>>, vector<1x1x4x16xbf16>
    %565 = vector.shape_cast %564 : vector<1x1x4x16xbf16> to vector<4x16xbf16>
    %c5_885 = arith.constant 5 : index
    %c0_886 = arith.constant 0 : index
    %c1_887 = arith.constant 1 : index
    %c0_888 = arith.constant 0 : index
    %566 = vector.load %arg10[%c5_885, %c0_886, %c1_887, %c0_888] : memref<10x2x5x16xbf16, #tpu.memory_space<vmem>>, vector<1x1x4x16xbf16>
    %567 = vector.shape_cast %566 : vector<1x1x4x16xbf16> to vector<4x16xbf16>
    %c5_889 = arith.constant 5 : index
    %c1_890 = arith.constant 1 : index
    %c1_891 = arith.constant 1 : index
    %c0_892 = arith.constant 0 : index
    %568 = vector.load %arg10[%c5_889, %c1_890, %c1_891, %c0_892] : memref<10x2x5x16xbf16, #tpu.memory_space<vmem>>, vector<1x1x4x16xbf16>
    %569 = vector.shape_cast %568 : vector<1x1x4x16xbf16> to vector<4x16xbf16>
    %c6_893 = arith.constant 6 : index
    %c0_894 = arith.constant 0 : index
    %c0_895 = arith.constant 0 : index
    %c0_896 = arith.constant 0 : index
    %570 = vector.load %arg10[%c6_893, %c0_894, %c0_895, %c0_896] : memref<10x2x5x16xbf16, #tpu.memory_space<vmem>>, vector<1x1x4x16xbf16>
    %571 = vector.shape_cast %570 : vector<1x1x4x16xbf16> to vector<4x16xbf16>
    %c6_897 = arith.constant 6 : index
    %c1_898 = arith.constant 1 : index
    %c0_899 = arith.constant 0 : index
    %c0_900 = arith.constant 0 : index
    %572 = vector.load %arg10[%c6_897, %c1_898, %c0_899, %c0_900] : memref<10x2x5x16xbf16, #tpu.memory_space<vmem>>, vector<1x1x4x16xbf16>
    %573 = vector.shape_cast %572 : vector<1x1x4x16xbf16> to vector<4x16xbf16>
    %c6_901 = arith.constant 6 : index
    %c0_902 = arith.constant 0 : index
    %c1_903 = arith.constant 1 : index
    %c0_904 = arith.constant 0 : index
    %574 = vector.load %arg10[%c6_901, %c0_902, %c1_903, %c0_904] : memref<10x2x5x16xbf16, #tpu.memory_space<vmem>>, vector<1x1x4x16xbf16>
    %575 = vector.shape_cast %574 : vector<1x1x4x16xbf16> to vector<4x16xbf16>
    %c6_905 = arith.constant 6 : index
    %c1_906 = arith.constant 1 : index
    %c1_907 = arith.constant 1 : index
    %c0_908 = arith.constant 0 : index
    %576 = vector.load %arg10[%c6_905, %c1_906, %c1_907, %c0_908] : memref<10x2x5x16xbf16, #tpu.memory_space<vmem>>, vector<1x1x4x16xbf16>
    %577 = vector.shape_cast %576 : vector<1x1x4x16xbf16> to vector<4x16xbf16>
    %c7_909 = arith.constant 7 : index
    %c0_910 = arith.constant 0 : index
    %c0_911 = arith.constant 0 : index
    %c0_912 = arith.constant 0 : index
    %578 = vector.load %arg10[%c7_909, %c0_910, %c0_911, %c0_912] : memref<10x2x5x16xbf16, #tpu.memory_space<vmem>>, vector<1x1x4x16xbf16>
    %579 = vector.shape_cast %578 : vector<1x1x4x16xbf16> to vector<4x16xbf16>
    %c7_913 = arith.constant 7 : index
    %c1_914 = arith.constant 1 : index
    %c0_915 = arith.constant 0 : index
    %c0_916 = arith.constant 0 : index
    %580 = vector.load %arg10[%c7_913, %c1_914, %c0_915, %c0_916] : memref<10x2x5x16xbf16, #tpu.memory_space<vmem>>, vector<1x1x4x16xbf16>
    %581 = vector.shape_cast %580 : vector<1x1x4x16xbf16> to vector<4x16xbf16>
    %c7_917 = arith.constant 7 : index
    %c0_918 = arith.constant 0 : index
    %c1_919 = arith.constant 1 : index
    %c0_920 = arith.constant 0 : index
    %582 = vector.load %arg10[%c7_917, %c0_918, %c1_919, %c0_920] : memref<10x2x5x16xbf16, #tpu.memory_space<vmem>>, vector<1x1x4x16xbf16>
    %583 = vector.shape_cast %582 : vector<1x1x4x16xbf16> to vector<4x16xbf16>
    %c7_921 = arith.constant 7 : index
    %c1_922 = arith.constant 1 : index
    %c1_923 = arith.constant 1 : index
    %c0_924 = arith.constant 0 : index
    %584 = vector.load %arg10[%c7_921, %c1_922, %c1_923, %c0_924] : memref<10x2x5x16xbf16, #tpu.memory_space<vmem>>, vector<1x1x4x16xbf16>
    %585 = vector.shape_cast %584 : vector<1x1x4x16xbf16> to vector<4x16xbf16>
    %586 = tpu.concatenate %555, %557, %559, %561, %563, %565, %567, %569, %571, %573, %575, %577, %579, %581, %583, %585 in 1 : vector<4x16xbf16>, vector<4x16xbf16>, vector<4x16xbf16>, vector<4x16xbf16>, vector<4x16xbf16>, vector<4x16xbf16>, vector<4x16xbf16>, vector<4x16xbf16>, vector<4x16xbf16>, vector<4x16xbf16>, vector<4x16xbf16>, vector<4x16xbf16>, vector<4x16xbf16>, vector<4x16xbf16>, vector<4x16xbf16>, vector<4x16xbf16> -> vector<4x256xbf16>
    %cst_925 = arith.constant dense<0.000000e+00> : vector<4x32xf32>
    %587 = tpu.matmul %586, %470, %cst_925 {dimension_numbers = #tpu.dot_dimension_numbers<[1], [0], [0], [1], [0, 0, 1, 1], [], []>} : vector<4x256xbf16>, vector<256x32xbf16>, vector<4x32xf32> -> vector<4x32xf32>
    %588 = vector.broadcast %471 : vector<1x32xf32> to vector<4x32xf32>
    %589 = arith.addf %587, %588 : vector<4x32xf32>
    %cst_926 = arith.constant 0.000000e+00 : f32
    %590 = vector.broadcast %cst_926 : f32 to vector<4x32xf32>
    %591 = arith.cmpf oge, %589, %590 : vector<4x32xf32>
    %cst_927 = arith.constant 0.00999999977 : f32
    %592 = vector.broadcast %cst_927 : f32 to vector<4x32xf32>
    %593 = arith.mulf %592, %589 : vector<4x32xf32>
    %594 = arith.select %591, %589, %593 : vector<4x32xi1>, vector<4x32xf32>
    %c6_928 = arith.constant 6 : index
    %c0_929 = arith.constant 0 : index
    %c0_930 = arith.constant 0 : index
    %c0_931 = arith.constant 0 : index
    %595 = vector.load %arg10[%c6_928, %c0_929, %c0_930, %c0_931] : memref<10x2x5x16xbf16, #tpu.memory_space<vmem>>, vector<1x1x4x16xbf16>
    %596 = vector.shape_cast %595 : vector<1x1x4x16xbf16> to vector<4x16xbf16>
    %c6_932 = arith.constant 6 : index
    %c1_933 = arith.constant 1 : index
    %c0_934 = arith.constant 0 : index
    %c0_935 = arith.constant 0 : index
    %597 = vector.load %arg10[%c6_932, %c1_933, %c0_934, %c0_935] : memref<10x2x5x16xbf16, #tpu.memory_space<vmem>>, vector<1x1x4x16xbf16>
    %598 = vector.shape_cast %597 : vector<1x1x4x16xbf16> to vector<4x16xbf16>
    %c6_936 = arith.constant 6 : index
    %c0_937 = arith.constant 0 : index
    %c1_938 = arith.constant 1 : index
    %c0_939 = arith.constant 0 : index
    %599 = vector.load %arg10[%c6_936, %c0_937, %c1_938, %c0_939] : memref<10x2x5x16xbf16, #tpu.memory_space<vmem>>, vector<1x1x4x16xbf16>
    %600 = vector.shape_cast %599 : vector<1x1x4x16xbf16> to vector<4x16xbf16>
    %c6_940 = arith.constant 6 : index
    %c1_941 = arith.constant 1 : index
    %c1_942 = arith.constant 1 : index
    %c0_943 = arith.constant 0 : index
    %601 = vector.load %arg10[%c6_940, %c1_941, %c1_942, %c0_943] : memref<10x2x5x16xbf16, #tpu.memory_space<vmem>>, vector<1x1x4x16xbf16>
    %602 = vector.shape_cast %601 : vector<1x1x4x16xbf16> to vector<4x16xbf16>
    %c7_944 = arith.constant 7 : index
    %c0_945 = arith.constant 0 : index
    %c0_946 = arith.constant 0 : index
    %c0_947 = arith.constant 0 : index
    %603 = vector.load %arg10[%c7_944, %c0_945, %c0_946, %c0_947] : memref<10x2x5x16xbf16, #tpu.memory_space<vmem>>, vector<1x1x4x16xbf16>
    %604 = vector.shape_cast %603 : vector<1x1x4x16xbf16> to vector<4x16xbf16>
    %c7_948 = arith.constant 7 : index
    %c1_949 = arith.constant 1 : index
    %c0_950 = arith.constant 0 : index
    %c0_951 = arith.constant 0 : index
    %605 = vector.load %arg10[%c7_948, %c1_949, %c0_950, %c0_951] : memref<10x2x5x16xbf16, #tpu.memory_space<vmem>>, vector<1x1x4x16xbf16>
    %606 = vector.shape_cast %605 : vector<1x1x4x16xbf16> to vector<4x16xbf16>
    %c7_952 = arith.constant 7 : index
    %c0_953 = arith.constant 0 : index
    %c1_954 = arith.constant 1 : index
    %c0_955 = arith.constant 0 : index
    %607 = vector.load %arg10[%c7_952, %c0_953, %c1_954, %c0_955] : memref<10x2x5x16xbf16, #tpu.memory_space<vmem>>, vector<1x1x4x16xbf16>
    %608 = vector.shape_cast %607 : vector<1x1x4x16xbf16> to vector<4x16xbf16>
    %c7_956 = arith.constant 7 : index
    %c1_957 = arith.constant 1 : index
    %c1_958 = arith.constant 1 : index
    %c0_959 = arith.constant 0 : index
    %609 = vector.load %arg10[%c7_956, %c1_957, %c1_958, %c0_959] : memref<10x2x5x16xbf16, #tpu.memory_space<vmem>>, vector<1x1x4x16xbf16>
    %610 = vector.shape_cast %609 : vector<1x1x4x16xbf16> to vector<4x16xbf16>
    %c8_960 = arith.constant 8 : index
    %c0_961 = arith.constant 0 : index
    %c0_962 = arith.constant 0 : index
    %c0_963 = arith.constant 0 : index
    %611 = vector.load %arg10[%c8_960, %c0_961, %c0_962, %c0_963] : memref<10x2x5x16xbf16, #tpu.memory_space<vmem>>, vector<1x1x4x16xbf16>
    %612 = vector.shape_cast %611 : vector<1x1x4x16xbf16> to vector<4x16xbf16>
    %c8_964 = arith.constant 8 : index
    %c1_965 = arith.constant 1 : index
    %c0_966 = arith.constant 0 : index
    %c0_967 = arith.constant 0 : index
    %613 = vector.load %arg10[%c8_964, %c1_965, %c0_966, %c0_967] : memref<10x2x5x16xbf16, #tpu.memory_space<vmem>>, vector<1x1x4x16xbf16>
    %614 = vector.shape_cast %613 : vector<1x1x4x16xbf16> to vector<4x16xbf16>
    %c8_968 = arith.constant 8 : index
    %c0_969 = arith.constant 0 : index
    %c1_970 = arith.constant 1 : index
    %c0_971 = arith.constant 0 : index
    %615 = vector.load %arg10[%c8_968, %c0_969, %c1_970, %c0_971] : memref<10x2x5x16xbf16, #tpu.memory_space<vmem>>, vector<1x1x4x16xbf16>
    %616 = vector.shape_cast %615 : vector<1x1x4x16xbf16> to vector<4x16xbf16>
    %c8_972 = arith.constant 8 : index
    %c1_973 = arith.constant 1 : index
    %c1_974 = arith.constant 1 : index
    %c0_975 = arith.constant 0 : index
    %617 = vector.load %arg10[%c8_972, %c1_973, %c1_974, %c0_975] : memref<10x2x5x16xbf16, #tpu.memory_space<vmem>>, vector<1x1x4x16xbf16>
    %618 = vector.shape_cast %617 : vector<1x1x4x16xbf16> to vector<4x16xbf16>
    %c9_976 = arith.constant 9 : index
    %c0_977 = arith.constant 0 : index
    %c0_978 = arith.constant 0 : index
    %c0_979 = arith.constant 0 : index
    %619 = vector.load %arg10[%c9_976, %c0_977, %c0_978, %c0_979] : memref<10x2x5x16xbf16, #tpu.memory_space<vmem>>, vector<1x1x4x16xbf16>
    %620 = vector.shape_cast %619 : vector<1x1x4x16xbf16> to vector<4x16xbf16>
    %c9_980 = arith.constant 9 : index
    %c1_981 = arith.constant 1 : index
    %c0_982 = arith.constant 0 : index
    %c0_983 = arith.constant 0 : index
    %621 = vector.load %arg10[%c9_980, %c1_981, %c0_982, %c0_983] : memref<10x2x5x16xbf16, #tpu.memory_space<vmem>>, vector<1x1x4x16xbf16>
    %622 = vector.shape_cast %621 : vector<1x1x4x16xbf16> to vector<4x16xbf16>
    %c9_984 = arith.constant 9 : index
    %c0_985 = arith.constant 0 : index
    %c1_986 = arith.constant 1 : index
    %c0_987 = arith.constant 0 : index
    %623 = vector.load %arg10[%c9_984, %c0_985, %c1_986, %c0_987] : memref<10x2x5x16xbf16, #tpu.memory_space<vmem>>, vector<1x1x4x16xbf16>
    %624 = vector.shape_cast %623 : vector<1x1x4x16xbf16> to vector<4x16xbf16>
    %c9_988 = arith.constant 9 : index
    %c1_989 = arith.constant 1 : index
    %c1_990 = arith.constant 1 : index
    %c0_991 = arith.constant 0 : index
    %625 = vector.load %arg10[%c9_988, %c1_989, %c1_990, %c0_991] : memref<10x2x5x16xbf16, #tpu.memory_space<vmem>>, vector<1x1x4x16xbf16>
    %626 = vector.shape_cast %625 : vector<1x1x4x16xbf16> to vector<4x16xbf16>
    %627 = tpu.concatenate %596, %598, %600, %602, %604, %606, %608, %610, %612, %614, %616, %618, %620, %622, %624, %626 in 1 : vector<4x16xbf16>, vector<4x16xbf16>, vector<4x16xbf16>, vector<4x16xbf16>, vector<4x16xbf16>, vector<4x16xbf16>, vector<4x16xbf16>, vector<4x16xbf16>, vector<4x16xbf16>, vector<4x16xbf16>, vector<4x16xbf16>, vector<4x16xbf16>, vector<4x16xbf16>, vector<4x16xbf16>, vector<4x16xbf16>, vector<4x16xbf16> -> vector<4x256xbf16>
    %cst_992 = arith.constant dense<0.000000e+00> : vector<4x32xf32>
    %628 = tpu.matmul %627, %470, %cst_992 {dimension_numbers = #tpu.dot_dimension_numbers<[1], [0], [0], [1], [0, 0, 1, 1], [], []>} : vector<4x256xbf16>, vector<256x32xbf16>, vector<4x32xf32> -> vector<4x32xf32>
    %629 = vector.broadcast %471 : vector<1x32xf32> to vector<4x32xf32>
    %630 = arith.addf %628, %629 : vector<4x32xf32>
    %cst_993 = arith.constant 0.000000e+00 : f32
    %631 = vector.broadcast %cst_993 : f32 to vector<4x32xf32>
    %632 = arith.cmpf oge, %630, %631 : vector<4x32xf32>
    %cst_994 = arith.constant 0.00999999977 : f32
    %633 = vector.broadcast %cst_994 : f32 to vector<4x32xf32>
    %634 = arith.mulf %633, %630 : vector<4x32xf32>
    %635 = arith.select %632, %630, %634 : vector<4x32xi1>, vector<4x32xf32>
    %636 = arith.truncf %512 : vector<4x32xf32> to vector<4x32xbf16>
    %637 = vector.extract_strided_slice %636 {offsets = [0, 0], sizes = [1, 32], strides = [1, 1]} : vector<4x32xbf16> to vector<1x32xbf16>
    %638 = vector.extract_strided_slice %636 {offsets = [2, 0], sizes = [1, 32], strides = [1, 1]} : vector<4x32xbf16> to vector<1x32xbf16>
    %639 = tpu.concatenate %637, %638 in 0 : vector<1x32xbf16>, vector<1x32xbf16> -> vector<2x32xbf16>
    %640 = vector.extract_strided_slice %636 {offsets = [1, 0], sizes = [1, 32], strides = [1, 1]} : vector<4x32xbf16> to vector<1x32xbf16>
    %641 = vector.extract_strided_slice %636 {offsets = [3, 0], sizes = [1, 32], strides = [1, 1]} : vector<4x32xbf16> to vector<1x32xbf16>
    %642 = tpu.concatenate %640, %641 in 0 : vector<1x32xbf16>, vector<1x32xbf16> -> vector<2x32xbf16>
    %c1_995 = arith.constant 1 : index
    %c1_996 = arith.constant 1 : index
    %c0_997 = arith.constant 0 : index
    %c0_998 = arith.constant 0 : index
    %643 = vector.load %arg11[%c1_995, %c1_996, %c0_997, %c0_998] : memref<6x2x3x32xbf16, #tpu.memory_space<vmem>>, vector<1x1x2x32xbf16>
    %644 = vector.shape_cast %643 : vector<1x1x2x32xbf16> to vector<2x32xbf16>
    %645 = vector.shape_cast %639 : vector<2x32xbf16> to vector<1x1x2x32xbf16>
    tpu.vector_store %arg11[%c1_995, %c1_996, %c0_997, %c0_998], %645 {strides = array<i32>} : memref<6x2x3x32xbf16, #tpu.memory_space<vmem>>, vector<1x1x2x32xbf16>,
    %c1_999 = arith.constant 1 : index
    %c0_1000 = arith.constant 0 : index
    %c1_1001 = arith.constant 1 : index
    %c0_1002 = arith.constant 0 : index
    %646 = vector.load %arg11[%c1_999, %c0_1000, %c1_1001, %c0_1002] : memref<6x2x3x32xbf16, #tpu.memory_space<vmem>>, vector<1x1x2x32xbf16>
    %647 = vector.shape_cast %646 : vector<1x1x2x32xbf16> to vector<2x32xbf16>
    %648 = vector.shape_cast %642 : vector<2x32xbf16> to vector<1x1x2x32xbf16>
    tpu.vector_store %arg11[%c1_999, %c0_1000, %c1_1001, %c0_1002], %648 {strides = array<i32>} : memref<6x2x3x32xbf16, #tpu.memory_space<vmem>>, vector<1x1x2x32xbf16>,
    %649 = arith.truncf %553 : vector<4x32xf32> to vector<4x32xbf16>
    %650 = vector.extract_strided_slice %649 {offsets = [0, 0], sizes = [1, 32], strides = [1, 1]} : vector<4x32xbf16> to vector<1x32xbf16>
    %651 = vector.extract_strided_slice %649 {offsets = [2, 0], sizes = [1, 32], strides = [1, 1]} : vector<4x32xbf16> to vector<1x32xbf16>
    %652 = tpu.concatenate %650, %651 in 0 : vector<1x32xbf16>, vector<1x32xbf16> -> vector<2x32xbf16>
    %653 = vector.extract_strided_slice %649 {offsets = [1, 0], sizes = [1, 32], strides = [1, 1]} : vector<4x32xbf16> to vector<1x32xbf16>
    %654 = vector.extract_strided_slice %649 {offsets = [3, 0], sizes = [1, 32], strides = [1, 1]} : vector<4x32xbf16> to vector<1x32xbf16>
    %655 = tpu.concatenate %653, %654 in 0 : vector<1x32xbf16>, vector<1x32xbf16> -> vector<2x32xbf16>
    %c2_1003 = arith.constant 2 : index
    %c1_1004 = arith.constant 1 : index
    %c0_1005 = arith.constant 0 : index
    %c0_1006 = arith.constant 0 : index
    %656 = vector.load %arg11[%c2_1003, %c1_1004, %c0_1005, %c0_1006] : memref<6x2x3x32xbf16, #tpu.memory_space<vmem>>, vector<1x1x2x32xbf16>
    %657 = vector.shape_cast %656 : vector<1x1x2x32xbf16> to vector<2x32xbf16>
    %658 = vector.shape_cast %652 : vector<2x32xbf16> to vector<1x1x2x32xbf16>
    tpu.vector_store %arg11[%c2_1003, %c1_1004, %c0_1005, %c0_1006], %658 {strides = array<i32>} : memref<6x2x3x32xbf16, #tpu.memory_space<vmem>>, vector<1x1x2x32xbf16>,
    %c2_1007 = arith.constant 2 : index
    %c0_1008 = arith.constant 0 : index
    %c1_1009 = arith.constant 1 : index
    %c0_1010 = arith.constant 0 : index
    %659 = vector.load %arg11[%c2_1007, %c0_1008, %c1_1009, %c0_1010] : memref<6x2x3x32xbf16, #tpu.memory_space<vmem>>, vector<1x1x2x32xbf16>
    %660 = vector.shape_cast %659 : vector<1x1x2x32xbf16> to vector<2x32xbf16>
    %661 = vector.shape_cast %655 : vector<2x32xbf16> to vector<1x1x2x32xbf16>
    tpu.vector_store %arg11[%c2_1007, %c0_1008, %c1_1009, %c0_1010], %661 {strides = array<i32>} : memref<6x2x3x32xbf16, #tpu.memory_space<vmem>>, vector<1x1x2x32xbf16>,
    %662 = arith.truncf %594 : vector<4x32xf32> to vector<4x32xbf16>
    %663 = vector.extract_strided_slice %662 {offsets = [0, 0], sizes = [1, 32], strides = [1, 1]} : vector<4x32xbf16> to vector<1x32xbf16>
    %664 = vector.extract_strided_slice %662 {offsets = [2, 0], sizes = [1, 32], strides = [1, 1]} : vector<4x32xbf16> to vector<1x32xbf16>
    %665 = tpu.concatenate %663, %664 in 0 : vector<1x32xbf16>, vector<1x32xbf16> -> vector<2x32xbf16>
    %666 = vector.extract_strided_slice %662 {offsets = [1, 0], sizes = [1, 32], strides = [1, 1]} : vector<4x32xbf16> to vector<1x32xbf16>
    %667 = vector.extract_strided_slice %662 {offsets = [3, 0], sizes = [1, 32], strides = [1, 1]} : vector<4x32xbf16> to vector<1x32xbf16>
    %668 = tpu.concatenate %666, %667 in 0 : vector<1x32xbf16>, vector<1x32xbf16> -> vector<2x32xbf16>
    %c3_1011 = arith.constant 3 : index
    %c1_1012 = arith.constant 1 : index
    %c0_1013 = arith.constant 0 : index
    %c0_1014 = arith.constant 0 : index
    %669 = vector.load %arg11[%c3_1011, %c1_1012, %c0_1013, %c0_1014] : memref<6x2x3x32xbf16, #tpu.memory_space<vmem>>, vector<1x1x2x32xbf16>
    %670 = vector.shape_cast %669 : vector<1x1x2x32xbf16> to vector<2x32xbf16>
    %671 = vector.shape_cast %665 : vector<2x32xbf16> to vector<1x1x2x32xbf16>
    tpu.vector_store %arg11[%c3_1011, %c1_1012, %c0_1013, %c0_1014], %671 {strides = array<i32>} : memref<6x2x3x32xbf16, #tpu.memory_space<vmem>>, vector<1x1x2x32xbf16>,
    %c3_1015 = arith.constant 3 : index
    %c0_1016 = arith.constant 0 : index
    %c1_1017 = arith.constant 1 : index
    %c0_1018 = arith.constant 0 : index
    %672 = vector.load %arg11[%c3_1015, %c0_1016, %c1_1017, %c0_1018] : memref<6x2x3x32xbf16, #tpu.memory_space<vmem>>, vector<1x1x2x32xbf16>
    %673 = vector.shape_cast %672 : vector<1x1x2x32xbf16> to vector<2x32xbf16>
    %674 = vector.shape_cast %668 : vector<2x32xbf16> to vector<1x1x2x32xbf16>
    tpu.vector_store %arg11[%c3_1015, %c0_1016, %c1_1017, %c0_1018], %674 {strides = array<i32>} : memref<6x2x3x32xbf16, #tpu.memory_space<vmem>>, vector<1x1x2x32xbf16>,
    %675 = arith.truncf %635 : vector<4x32xf32> to vector<4x32xbf16>
    %676 = vector.extract_strided_slice %675 {offsets = [0, 0], sizes = [1, 32], strides = [1, 1]} : vector<4x32xbf16> to vector<1x32xbf16>
    %677 = vector.extract_strided_slice %675 {offsets = [2, 0], sizes = [1, 32], strides = [1, 1]} : vector<4x32xbf16> to vector<1x32xbf16>
    %678 = tpu.concatenate %676, %677 in 0 : vector<1x32xbf16>, vector<1x32xbf16> -> vector<2x32xbf16>
    %679 = vector.extract_strided_slice %675 {offsets = [1, 0], sizes = [1, 32], strides = [1, 1]} : vector<4x32xbf16> to vector<1x32xbf16>
    %680 = vector.extract_strided_slice %675 {offsets = [3, 0], sizes = [1, 32], strides = [1, 1]} : vector<4x32xbf16> to vector<1x32xbf16>
    %681 = tpu.concatenate %679, %680 in 0 : vector<1x32xbf16>, vector<1x32xbf16> -> vector<2x32xbf16>
    %c4_1019 = arith.constant 4 : index
    %c1_1020 = arith.constant 1 : index
    %c0_1021 = arith.constant 0 : index
    %c0_1022 = arith.constant 0 : index
    %682 = vector.load %arg11[%c4_1019, %c1_1020, %c0_1021, %c0_1022] : memref<6x2x3x32xbf16, #tpu.memory_space<vmem>>, vector<1x1x2x32xbf16>
    %683 = vector.shape_cast %682 : vector<1x1x2x32xbf16> to vector<2x32xbf16>
    %684 = vector.shape_cast %678 : vector<2x32xbf16> to vector<1x1x2x32xbf16>
    tpu.vector_store %arg11[%c4_1019, %c1_1020, %c0_1021, %c0_1022], %684 {strides = array<i32>} : memref<6x2x3x32xbf16, #tpu.memory_space<vmem>>, vector<1x1x2x32xbf16>,
    %c4_1023 = arith.constant 4 : index
    %c0_1024 = arith.constant 0 : index
    %c1_1025 = arith.constant 1 : index
    %c0_1026 = arith.constant 0 : index
    %685 = vector.load %arg11[%c4_1023, %c0_1024, %c1_1025, %c0_1026] : memref<6x2x3x32xbf16, #tpu.memory_space<vmem>>, vector<1x1x2x32xbf16>
    %686 = vector.shape_cast %685 : vector<1x1x2x32xbf16> to vector<2x32xbf16>
    %687 = vector.shape_cast %681 : vector<2x32xbf16> to vector<1x1x2x32xbf16>
    tpu.vector_store %arg11[%c4_1023, %c0_1024, %c1_1025, %c0_1026], %687 {strides = array<i32>} : memref<6x2x3x32xbf16, #tpu.memory_space<vmem>>, vector<1x1x2x32xbf16>,
    %c0_1027 = arith.constant 0 : index
    %c0_1028 = arith.constant 0 : index
    %688 = vector.load %arg6[%c0_1027, %c0_1028] : memref<512x64xbf16, #tpu.memory_space<vmem>>, vector<512x64xbf16>
    %c0_1029 = arith.constant 0 : index
    %c0_1030 = arith.constant 0 : index
    %689 = vector.load %arg7[%c0_1029, %c0_1030] : memref<1x64xf32, #tpu.memory_space<vmem>>, vector<1x64xf32>
    %c0_1031 = arith.constant 0 : index
    %c0_1032 = arith.constant 0 : index
    %c0_1033 = arith.constant 0 : index
    %c0_1034 = arith.constant 0 : index
    %690 = vector.load %arg11[%c0_1031, %c0_1032, %c0_1033, %c0_1034] : memref<6x2x3x32xbf16, #tpu.memory_space<vmem>>, vector<1x1x2x32xbf16>
    %691 = vector.shape_cast %690 : vector<1x1x2x32xbf16> to vector<2x32xbf16>
    %c0_1035 = arith.constant 0 : index
    %c1_1036 = arith.constant 1 : index
    %c0_1037 = arith.constant 0 : index
    %c0_1038 = arith.constant 0 : index
    %692 = vector.load %arg11[%c0_1035, %c1_1036, %c0_1037, %c0_1038] : memref<6x2x3x32xbf16, #tpu.memory_space<vmem>>, vector<1x1x2x32xbf16>
    %693 = vector.shape_cast %692 : vector<1x1x2x32xbf16> to vector<2x32xbf16>
    %c0_1039 = arith.constant 0 : index
    %c0_1040 = arith.constant 0 : index
    %c1_1041 = arith.constant 1 : index
    %c0_1042 = arith.constant 0 : index
    %694 = vector.load %arg11[%c0_1039, %c0_1040, %c1_1041, %c0_1042] : memref<6x2x3x32xbf16, #tpu.memory_space<vmem>>, vector<1x1x2x32xbf16>
    %695 = vector.shape_cast %694 : vector<1x1x2x32xbf16> to vector<2x32xbf16>
    %c0_1043 = arith.constant 0 : index
    %c1_1044 = arith.constant 1 : index
    %c1_1045 = arith.constant 1 : index
    %c0_1046 = arith.constant 0 : index
    %696 = vector.load %arg11[%c0_1043, %c1_1044, %c1_1045, %c0_1046] : memref<6x2x3x32xbf16, #tpu.memory_space<vmem>>, vector<1x1x2x32xbf16>
    %697 = vector.shape_cast %696 : vector<1x1x2x32xbf16> to vector<2x32xbf16>
    %c1_1047 = arith.constant 1 : index
    %c0_1048 = arith.constant 0 : index
    %c0_1049 = arith.constant 0 : index
    %c0_1050 = arith.constant 0 : index
    %698 = vector.load %arg11[%c1_1047, %c0_1048, %c0_1049, %c0_1050] : memref<6x2x3x32xbf16, #tpu.memory_space<vmem>>, vector<1x1x2x32xbf16>
    %699 = vector.shape_cast %698 : vector<1x1x2x32xbf16> to vector<2x32xbf16>
    %c1_1051 = arith.constant 1 : index
    %c1_1052 = arith.constant 1 : index
    %c0_1053 = arith.constant 0 : index
    %c0_1054 = arith.constant 0 : index
    %700 = vector.load %arg11[%c1_1051, %c1_1052, %c0_1053, %c0_1054] : memref<6x2x3x32xbf16, #tpu.memory_space<vmem>>, vector<1x1x2x32xbf16>
    %701 = vector.shape_cast %700 : vector<1x1x2x32xbf16> to vector<2x32xbf16>
    %c1_1055 = arith.constant 1 : index
    %c0_1056 = arith.constant 0 : index
    %c1_1057 = arith.constant 1 : index
    %c0_1058 = arith.constant 0 : index
    %702 = vector.load %arg11[%c1_1055, %c0_1056, %c1_1057, %c0_1058] : memref<6x2x3x32xbf16, #tpu.memory_space<vmem>>, vector<1x1x2x32xbf16>
    %703 = vector.shape_cast %702 : vector<1x1x2x32xbf16> to vector<2x32xbf16>
    %c1_1059 = arith.constant 1 : index
    %c1_1060 = arith.constant 1 : index
    %c1_1061 = arith.constant 1 : index
    %c0_1062 = arith.constant 0 : index
    %704 = vector.load %arg11[%c1_1059, %c1_1060, %c1_1061, %c0_1062] : memref<6x2x3x32xbf16, #tpu.memory_space<vmem>>, vector<1x1x2x32xbf16>
    %705 = vector.shape_cast %704 : vector<1x1x2x32xbf16> to vector<2x32xbf16>
    %c2_1063 = arith.constant 2 : index
    %c0_1064 = arith.constant 0 : index
    %c0_1065 = arith.constant 0 : index
    %c0_1066 = arith.constant 0 : index
    %706 = vector.load %arg11[%c2_1063, %c0_1064, %c0_1065, %c0_1066] : memref<6x2x3x32xbf16, #tpu.memory_space<vmem>>, vector<1x1x2x32xbf16>
    %707 = vector.shape_cast %706 : vector<1x1x2x32xbf16> to vector<2x32xbf16>
    %c2_1067 = arith.constant 2 : index
    %c1_1068 = arith.constant 1 : index
    %c0_1069 = arith.constant 0 : index
    %c0_1070 = arith.constant 0 : index
    %708 = vector.load %arg11[%c2_1067, %c1_1068, %c0_1069, %c0_1070] : memref<6x2x3x32xbf16, #tpu.memory_space<vmem>>, vector<1x1x2x32xbf16>
    %709 = vector.shape_cast %708 : vector<1x1x2x32xbf16> to vector<2x32xbf16>
    %c2_1071 = arith.constant 2 : index
    %c0_1072 = arith.constant 0 : index
    %c1_1073 = arith.constant 1 : index
    %c0_1074 = arith.constant 0 : index
    %710 = vector.load %arg11[%c2_1071, %c0_1072, %c1_1073, %c0_1074] : memref<6x2x3x32xbf16, #tpu.memory_space<vmem>>, vector<1x1x2x32xbf16>
    %711 = vector.shape_cast %710 : vector<1x1x2x32xbf16> to vector<2x32xbf16>
    %c2_1075 = arith.constant 2 : index
    %c1_1076 = arith.constant 1 : index
    %c1_1077 = arith.constant 1 : index
    %c0_1078 = arith.constant 0 : index
    %712 = vector.load %arg11[%c2_1075, %c1_1076, %c1_1077, %c0_1078] : memref<6x2x3x32xbf16, #tpu.memory_space<vmem>>, vector<1x1x2x32xbf16>
    %713 = vector.shape_cast %712 : vector<1x1x2x32xbf16> to vector<2x32xbf16>
    %c3_1079 = arith.constant 3 : index
    %c0_1080 = arith.constant 0 : index
    %c0_1081 = arith.constant 0 : index
    %c0_1082 = arith.constant 0 : index
    %714 = vector.load %arg11[%c3_1079, %c0_1080, %c0_1081, %c0_1082] : memref<6x2x3x32xbf16, #tpu.memory_space<vmem>>, vector<1x1x2x32xbf16>
    %715 = vector.shape_cast %714 : vector<1x1x2x32xbf16> to vector<2x32xbf16>
    %c3_1083 = arith.constant 3 : index
    %c1_1084 = arith.constant 1 : index
    %c0_1085 = arith.constant 0 : index
    %c0_1086 = arith.constant 0 : index
    %716 = vector.load %arg11[%c3_1083, %c1_1084, %c0_1085, %c0_1086] : memref<6x2x3x32xbf16, #tpu.memory_space<vmem>>, vector<1x1x2x32xbf16>
    %717 = vector.shape_cast %716 : vector<1x1x2x32xbf16> to vector<2x32xbf16>
    %c3_1087 = arith.constant 3 : index
    %c0_1088 = arith.constant 0 : index
    %c1_1089 = arith.constant 1 : index
    %c0_1090 = arith.constant 0 : index
    %718 = vector.load %arg11[%c3_1087, %c0_1088, %c1_1089, %c0_1090] : memref<6x2x3x32xbf16, #tpu.memory_space<vmem>>, vector<1x1x2x32xbf16>
    %719 = vector.shape_cast %718 : vector<1x1x2x32xbf16> to vector<2x32xbf16>
    %c3_1091 = arith.constant 3 : index
    %c1_1092 = arith.constant 1 : index
    %c1_1093 = arith.constant 1 : index
    %c0_1094 = arith.constant 0 : index
    %720 = vector.load %arg11[%c3_1091, %c1_1092, %c1_1093, %c0_1094] : memref<6x2x3x32xbf16, #tpu.memory_space<vmem>>, vector<1x1x2x32xbf16>
    %721 = vector.shape_cast %720 : vector<1x1x2x32xbf16> to vector<2x32xbf16>
    %722 = tpu.concatenate %691, %693, %695, %697, %699, %701, %703, %705, %707, %709, %711, %713, %715, %717, %719, %721 in 1 : vector<2x32xbf16>, vector<2x32xbf16>, vector<2x32xbf16>, vector<2x32xbf16>, vector<2x32xbf16>, vector<2x32xbf16>, vector<2x32xbf16>, vector<2x32xbf16>, vector<2x32xbf16>, vector<2x32xbf16>, vector<2x32xbf16>, vector<2x32xbf16>, vector<2x32xbf16>, vector<2x32xbf16>, vector<2x32xbf16>, vector<2x32xbf16> -> vector<2x512xbf16>
    %cst_1095 = arith.constant dense<0.000000e+00> : vector<2x64xf32>
    %723 = tpu.matmul %722, %688, %cst_1095 {dimension_numbers = #tpu.dot_dimension_numbers<[1], [0], [0], [1], [0, 0, 1, 1], [], []>} : vector<2x512xbf16>, vector<512x64xbf16>, vector<2x64xf32> -> vector<2x64xf32>
    %724 = vector.broadcast %689 : vector<1x64xf32> to vector<2x64xf32>
    %725 = arith.addf %723, %724 : vector<2x64xf32>
    %cst_1096 = arith.constant 0.000000e+00 : f32
    %726 = vector.broadcast %cst_1096 : f32 to vector<2x64xf32>
    %727 = arith.cmpf oge, %725, %726 : vector<2x64xf32>
    %cst_1097 = arith.constant 0.00999999977 : f32
    %728 = vector.broadcast %cst_1097 : f32 to vector<2x64xf32>
    %729 = arith.mulf %728, %725 : vector<2x64xf32>
    %730 = arith.select %727, %725, %729 : vector<2x64xi1>, vector<2x64xf32>
    %c2_1098 = arith.constant 2 : index
    %c0_1099 = arith.constant 0 : index
    %c0_1100 = arith.constant 0 : index
    %c0_1101 = arith.constant 0 : index
    %731 = vector.load %arg11[%c2_1098, %c0_1099, %c0_1100, %c0_1101] : memref<6x2x3x32xbf16, #tpu.memory_space<vmem>>, vector<1x1x2x32xbf16>
    %732 = vector.shape_cast %731 : vector<1x1x2x32xbf16> to vector<2x32xbf16>
    %c2_1102 = arith.constant 2 : index
    %c1_1103 = arith.constant 1 : index
    %c0_1104 = arith.constant 0 : index
    %c0_1105 = arith.constant 0 : index
    %733 = vector.load %arg11[%c2_1102, %c1_1103, %c0_1104, %c0_1105] : memref<6x2x3x32xbf16, #tpu.memory_space<vmem>>, vector<1x1x2x32xbf16>
    %734 = vector.shape_cast %733 : vector<1x1x2x32xbf16> to vector<2x32xbf16>
    %c2_1106 = arith.constant 2 : index
    %c0_1107 = arith.constant 0 : index
    %c1_1108 = arith.constant 1 : index
    %c0_1109 = arith.constant 0 : index
    %735 = vector.load %arg11[%c2_1106, %c0_1107, %c1_1108, %c0_1109] : memref<6x2x3x32xbf16, #tpu.memory_space<vmem>>, vector<1x1x2x32xbf16>
    %736 = vector.shape_cast %735 : vector<1x1x2x32xbf16> to vector<2x32xbf16>
    %c2_1110 = arith.constant 2 : index
    %c1_1111 = arith.constant 1 : index
    %c1_1112 = arith.constant 1 : index
    %c0_1113 = arith.constant 0 : index
    %737 = vector.load %arg11[%c2_1110, %c1_1111, %c1_1112, %c0_1113] : memref<6x2x3x32xbf16, #tpu.memory_space<vmem>>, vector<1x1x2x32xbf16>
    %738 = vector.shape_cast %737 : vector<1x1x2x32xbf16> to vector<2x32xbf16>
    %c3_1114 = arith.constant 3 : index
    %c0_1115 = arith.constant 0 : index
    %c0_1116 = arith.constant 0 : index
    %c0_1117 = arith.constant 0 : index
    %739 = vector.load %arg11[%c3_1114, %c0_1115, %c0_1116, %c0_1117] : memref<6x2x3x32xbf16, #tpu.memory_space<vmem>>, vector<1x1x2x32xbf16>
    %740 = vector.shape_cast %739 : vector<1x1x2x32xbf16> to vector<2x32xbf16>
    %c3_1118 = arith.constant 3 : index
    %c1_1119 = arith.constant 1 : index
    %c0_1120 = arith.constant 0 : index
    %c0_1121 = arith.constant 0 : index
    %741 = vector.load %arg11[%c3_1118, %c1_1119, %c0_1120, %c0_1121] : memref<6x2x3x32xbf16, #tpu.memory_space<vmem>>, vector<1x1x2x32xbf16>
    %742 = vector.shape_cast %741 : vector<1x1x2x32xbf16> to vector<2x32xbf16>
    %c3_1122 = arith.constant 3 : index
    %c0_1123 = arith.constant 0 : index
    %c1_1124 = arith.constant 1 : index
    %c0_1125 = arith.constant 0 : index
    %743 = vector.load %arg11[%c3_1122, %c0_1123, %c1_1124, %c0_1125] : memref<6x2x3x32xbf16, #tpu.memory_space<vmem>>, vector<1x1x2x32xbf16>
    %744 = vector.shape_cast %743 : vector<1x1x2x32xbf16> to vector<2x32xbf16>
    %c3_1126 = arith.constant 3 : index
    %c1_1127 = arith.constant 1 : index
    %c1_1128 = arith.constant 1 : index
    %c0_1129 = arith.constant 0 : index
    %745 = vector.load %arg11[%c3_1126, %c1_1127, %c1_1128, %c0_1129] : memref<6x2x3x32xbf16, #tpu.memory_space<vmem>>, vector<1x1x2x32xbf16>
    %746 = vector.shape_cast %745 : vector<1x1x2x32xbf16> to vector<2x32xbf16>
    %c4_1130 = arith.constant 4 : index
    %c0_1131 = arith.constant 0 : index
    %c0_1132 = arith.constant 0 : index
    %c0_1133 = arith.constant 0 : index
    %747 = vector.load %arg11[%c4_1130, %c0_1131, %c0_1132, %c0_1133] : memref<6x2x3x32xbf16, #tpu.memory_space<vmem>>, vector<1x1x2x32xbf16>
    %748 = vector.shape_cast %747 : vector<1x1x2x32xbf16> to vector<2x32xbf16>
    %c4_1134 = arith.constant 4 : index
    %c1_1135 = arith.constant 1 : index
    %c0_1136 = arith.constant 0 : index
    %c0_1137 = arith.constant 0 : index
    %749 = vector.load %arg11[%c4_1134, %c1_1135, %c0_1136, %c0_1137] : memref<6x2x3x32xbf16, #tpu.memory_space<vmem>>, vector<1x1x2x32xbf16>
    %750 = vector.shape_cast %749 : vector<1x1x2x32xbf16> to vector<2x32xbf16>
    %c4_1138 = arith.constant 4 : index
    %c0_1139 = arith.constant 0 : index
    %c1_1140 = arith.constant 1 : index
    %c0_1141 = arith.constant 0 : index
    %751 = vector.load %arg11[%c4_1138, %c0_1139, %c1_1140, %c0_1141] : memref<6x2x3x32xbf16, #tpu.memory_space<vmem>>, vector<1x1x2x32xbf16>
    %752 = vector.shape_cast %751 : vector<1x1x2x32xbf16> to vector<2x32xbf16>
    %c4_1142 = arith.constant 4 : index
    %c1_1143 = arith.constant 1 : index
    %c1_1144 = arith.constant 1 : index
    %c0_1145 = arith.constant 0 : index
    %753 = vector.load %arg11[%c4_1142, %c1_1143, %c1_1144, %c0_1145] : memref<6x2x3x32xbf16, #tpu.memory_space<vmem>>, vector<1x1x2x32xbf16>
    %754 = vector.shape_cast %753 : vector<1x1x2x32xbf16> to vector<2x32xbf16>
    %c5_1146 = arith.constant 5 : index
    %c0_1147 = arith.constant 0 : index
    %c0_1148 = arith.constant 0 : index
    %c0_1149 = arith.constant 0 : index
    %755 = vector.load %arg11[%c5_1146, %c0_1147, %c0_1148, %c0_1149] : memref<6x2x3x32xbf16, #tpu.memory_space<vmem>>, vector<1x1x2x32xbf16>
    %756 = vector.shape_cast %755 : vector<1x1x2x32xbf16> to vector<2x32xbf16>
    %c5_1150 = arith.constant 5 : index
    %c1_1151 = arith.constant 1 : index
    %c0_1152 = arith.constant 0 : index
    %c0_1153 = arith.constant 0 : index
    %757 = vector.load %arg11[%c5_1150, %c1_1151, %c0_1152, %c0_1153] : memref<6x2x3x32xbf16, #tpu.memory_space<vmem>>, vector<1x1x2x32xbf16>
    %758 = vector.shape_cast %757 : vector<1x1x2x32xbf16> to vector<2x32xbf16>
    %c5_1154 = arith.constant 5 : index
    %c0_1155 = arith.constant 0 : index
    %c1_1156 = arith.constant 1 : index
    %c0_1157 = arith.constant 0 : index
    %759 = vector.load %arg11[%c5_1154, %c0_1155, %c1_1156, %c0_1157] : memref<6x2x3x32xbf16, #tpu.memory_space<vmem>>, vector<1x1x2x32xbf16>
    %760 = vector.shape_cast %759 : vector<1x1x2x32xbf16> to vector<2x32xbf16>
    %c5_1158 = arith.constant 5 : index
    %c1_1159 = arith.constant 1 : index
    %c1_1160 = arith.constant 1 : index
    %c0_1161 = arith.constant 0 : index
    %761 = vector.load %arg11[%c5_1158, %c1_1159, %c1_1160, %c0_1161] : memref<6x2x3x32xbf16, #tpu.memory_space<vmem>>, vector<1x1x2x32xbf16>
    %762 = vector.shape_cast %761 : vector<1x1x2x32xbf16> to vector<2x32xbf16>
    %763 = tpu.concatenate %732, %734, %736, %738, %740, %742, %744, %746, %748, %750, %752, %754, %756, %758, %760, %762 in 1 : vector<2x32xbf16>, vector<2x32xbf16>, vector<2x32xbf16>, vector<2x32xbf16>, vector<2x32xbf16>, vector<2x32xbf16>, vector<2x32xbf16>, vector<2x32xbf16>, vector<2x32xbf16>, vector<2x32xbf16>, vector<2x32xbf16>, vector<2x32xbf16>, vector<2x32xbf16>, vector<2x32xbf16>, vector<2x32xbf16>, vector<2x32xbf16> -> vector<2x512xbf16>
    %cst_1162 = arith.constant dense<0.000000e+00> : vector<2x64xf32>
    %764 = tpu.matmul %763, %688, %cst_1162 {dimension_numbers = #tpu.dot_dimension_numbers<[1], [0], [0], [1], [0, 0, 1, 1], [], []>} : vector<2x512xbf16>, vector<512x64xbf16>, vector<2x64xf32> -> vector<2x64xf32>
    %765 = vector.broadcast %689 : vector<1x64xf32> to vector<2x64xf32>
    %766 = arith.addf %764, %765 : vector<2x64xf32>
    %cst_1163 = arith.constant 0.000000e+00 : f32
    %767 = vector.broadcast %cst_1163 : f32 to vector<2x64xf32>
    %768 = arith.cmpf oge, %766, %767 : vector<2x64xf32>
    %cst_1164 = arith.constant 0.00999999977 : f32
    %769 = vector.broadcast %cst_1164 : f32 to vector<2x64xf32>
    %770 = arith.mulf %769, %766 : vector<2x64xf32>
    %771 = arith.select %768, %766, %770 : vector<2x64xi1>, vector<2x64xf32>
    %c0_1165 = arith.constant 0 : index
    %c0_1166 = arith.constant 0 : index
    %772 = vector.load %arg8[%c0_1165, %c0_1166] : memref<64x1xf32, #tpu.memory_space<vmem>>, vector<64x1xf32>
    %cst_1167 = arith.constant dense<0.000000e+00> : vector<2x1xf32>
    %773 = tpu.matmul %730, %772, %cst_1167 {dimension_numbers = #tpu.dot_dimension_numbers<[1], [0], [0], [1], [0, 0, 1, 1], [], []>} : vector<2x64xf32>, vector<64x1xf32>, vector<2x1xf32> -> vector<2x1xf32>
    %c0_1168 = arith.constant 0 : index
    %c0_1169 = arith.constant 0 : index
    %c0_1170 = arith.constant 0 : index
    %c0_1171 = arith.constant 0 : index
    %774 = vector.load %arg9[%c0_1168, %c0_1169, %c0_1170, %c0_1171] : memref<1x2x2x1xf32, #tpu.memory_space<vmem>>, vector<1x1x2x1xf32>
    %775 = vector.shape_cast %774 : vector<1x1x2x1xf32> to vector<2x1xf32>
    %776 = vector.shape_cast %773 : vector<2x1xf32> to vector<1x1x2x1xf32>
    tpu.vector_store %arg9[%c0_1168, %c0_1169, %c0_1170, %c0_1171], %776 {strides = array<i32>} : memref<1x2x2x1xf32, #tpu.memory_space<vmem>>, vector<1x1x2x1xf32>,
    %cst_1172 = arith.constant dense<0.000000e+00> : vector<2x1xf32>
    %777 = tpu.matmul %771, %772, %cst_1172 {dimension_numbers = #tpu.dot_dimension_numbers<[1], [0], [0], [1], [0, 0, 1, 1], [], []>} : vector<2x64xf32>, vector<64x1xf32>, vector<2x1xf32> -> vector<2x1xf32>
    %c0_1173 = arith.constant 0 : index
    %c1_1174 = arith.constant 1 : index
    %c0_1175 = arith.constant 0 : index
    %c0_1176 = arith.constant 0 : index
    %778 = vector.load %arg9[%c0_1173, %c1_1174, %c0_1175, %c0_1176] : memref<1x2x2x1xf32, #tpu.memory_space<vmem>>, vector<1x1x2x1xf32>
    %779 = vector.shape_cast %778 : vector<1x1x2x1xf32> to vector<2x1xf32>
    %780 = vector.shape_cast %777 : vector<2x1xf32> to vector<1x1x2x1xf32>
    tpu.vector_store %arg9[%c0_1173, %c1_1174, %c0_1175, %c0_1176], %780 {strides = array<i32>} : memref<1x2x2x1xf32, #tpu.memory_space<vmem>>, vector<1x1x2x1xf32>,
    return
  }
  func.func @transform_0(%arg0: i32) -> (i32, i32, i32, i32, i32) {
    %c0_i32 = arith.constant 0 : i32
    %c0_i32_0 = arith.constant 0 : i32
    %c0_i32_1 = arith.constant 0 : i32
    %c0_i32_2 = arith.constant 0 : i32
    %c0_i32_3 = arith.constant 0 : i32
    return %arg0, %c0_i32, %c0_i32_0, %c0_i32_1, %c0_i32_2 : i32, i32, i32, i32, i32
  }
  func.func @transform_1(%arg0: i32) -> (i32, i32) {
    %c0_i32 = arith.constant 0 : i32
    %c0_i32_0 = arith.constant 0 : i32
    %c0_i32_1 = arith.constant 0 : i32
    return %c0_i32, %c0_i32_0 : i32, i32
  }
  func.func @transform_2(%arg0: i32) -> (i32, i32) {
    %c0_i32 = arith.constant 0 : i32
    %c0_i32_0 = arith.constant 0 : i32
    %c0_i32_1 = arith.constant 0 : i32
    return %c0_i32, %c0_i32_0 : i32, i32
  }
  func.func @transform_3(%arg0: i32) -> (i32, i32) {
    %c0_i32 = arith.constant 0 : i32
    %c0_i32_0 = arith.constant 0 : i32
    %c0_i32_1 = arith.constant 0 : i32
    return %c0_i32, %c0_i32_0 : i32, i32
  }
  func.func @transform_4(%arg0: i32) -> (i32, i32) {
    %c0_i32 = arith.constant 0 : i32
    %c0_i32_0 = arith.constant 0 : i32
    %c0_i32_1 = arith.constant 0 : i32
    return %c0_i32, %c0_i32_0 : i32, i32
  }
  func.func @transform_5(%arg0: i32) -> (i32, i32) {
    %c0_i32 = arith.constant 0 : i32
    %c0_i32_0 = arith.constant 0 : i32
    %c0_i32_1 = arith.constant 0 : i32
    return %c0_i32, %c0_i32_0 : i32, i32
  }
  func.func @transform_6(%arg0: i32) -> (i32, i32) {
    %c0_i32 = arith.constant 0 : i32
    %c0_i32_0 = arith.constant 0 : i32
    %c0_i32_1 = arith.constant 0 : i32
    return %c0_i32, %c0_i32_0 : i32, i32
  }
  func.func @transform_7(%arg0: i32) -> (i32, i32) {
    %c0_i32 = arith.constant 0 : i32
    %c0_i32_0 = arith.constant 0 : i32
    %c0_i32_1 = arith.constant 0 : i32
    return %c0_i32, %c0_i32_0 : i32, i32
  }
  func.func @transform_8(%arg0: i32) -> (i32, i32, i32, i32) {
    %c0_i32 = arith.constant 0 : i32
    %c0_i32_0 = arith.constant 0 : i32
    %c0_i32_1 = arith.constant 0 : i32
    %c0_i32_2 = arith.constant 0 : i32
    return %arg0, %c0_i32, %c0_i32_0, %c0_i32_1 : i32, i32, i32, i32
  }
}

</mosaic_0001>

<bundles_post_ra>
// kernel: discriminator_forward.1
= control target key start
LH: loop header
LB: loop body
LE: loop exit
PB: predicated region body
PF: predicated region fallthrough
CT: control target
= control target key end

     0   :  { %s4148_s27 = smov 0   ;;  %s5633_s0 = inlined_call_operand.vmem [shape: bf16[2,18,2,9,8], index: 0, kind: input, shape index: {}]   ;;  %s5634_s1 = inlined_call_operand.vmem [shape: bf16[128,16], index: 1, kind: input, shape index: {}]   ;;  %s5635_s2 = inlined_call_operand.vmem [shape: f32[1,16], index: 2, kind: input, shape index: {}]   ;;  %s5636_s3 = inlined_call_operand.vmem [shape: bf16[256,32], index: 3, kind: input, shape index: {}]   ;;  %s5637_s4 = inlined_call_operand.vmem [shape: f32[1,32], index: 4, kind: input, shape index: {}]   ;;  %s5638_s5 = inlined_call_operand.vmem [shape: bf16[512,64], index: 5, kind: input, shape index: {}]   ;;  %s5639_s6 = inlined_call_operand.vmem [shape: f32[1,64], index: 6, kind: input, shape index: {}]   ;;  %s5640_s7 = inlined_call_operand.vmem [shape: f32[64,1], index: 7, kind: input, shape index: {}]   ;;  %s5641_s8 = inlined_call_operand.vmem [shape: f32[2,2,2,1], index: 8, kind: output, shape index: {}]  }
   0x1 LB: > { %s3682_s28 = sadd.s32 4294967295, %s4086_s27   ;;  %p3686_p0 = scmp.ge.s32.totalorder %s4086_s27, 1  ;;  %s4086_s27 = sphi %s4148_s27, %s18_s27  }
   0x2   : > { %p262_p1 = scmp.lt.s32.totalorder %s4086_s27, 3 }
   0x4   : > { %p263_p2 = pnand %p3686_p0, %p262_p1 }
   0x5   : > { %p296_p3 = scmp.lt.s32.totalorder (!%p263_p2), %s3682_s28, 1  ;;  %s4088_s11 = smov (!%p263_p2), 32  }
   0x6   : > { %266 = sbr.rel (%p263_p2) target bundleno = 1349 (0x545), region = 52  ;;  %s4089_s12 = smov (!%p263_p2), 8  }
   0x7   : > { %s4090_s13 = smov (!%p263_p2), 40   ;;  %s4091_s14 = smov (!%p263_p2), 24  }
   0x8   : > { %s4092_s15 = smov (!%p263_p2), 16   ;;  %s4093_s16 = smov (!%p263_p2), 48  }
   0x9   : > { %s4094_s17 = smov (!%p263_p2), 56   ;;  %s4095_s18 = smov (!%p263_p2), 64  }
   0xa   : > { %s4096_s19 = smov (!%p263_p2), 72   ;;  %s4097_s20 = smov (!%p263_p2), 80  }
   0xb   : > { %s5737_s28 = smov (!%p296_p3, %s3682_s28), 1  ;;  %s4098_s21 = smov 88   ;;  %vm582_vm0 = vcmask 64512   ;;  %vm586_vm1 = vcmask 130048   ;;  %vm589_vm2 = vcmask 195584   ;;  %vm592_vm3 = vcmask 261120  }
   0xc   : > { %s4051_s29 = smul.u32 288, %s5737_s28  ;;  %s4099_s22 = smov 96   ;;  %vm5651_vm4 = vcmask 326656   ;;  %vm5652_vm5 = vcmask 392192   ;;  %vm601_vm6 = vcmask 457728   ;;  %vm5650_vm7 = vcmask 523264  }
   0xd   : > { %s4100_s23 = smov 104   ;;  %s4101_s24 = smov 112   ;;  %vm5648_vm8 = vcmask 588800   ;;  %vm5644_vm9 = vcmask 654336   ;;  %vm5647_vm10 = vcmask 719872   ;;  %vm5646_vm11 = vcmask 785408  }
   0xe   : > { %s4162_s10 = scalar_lea.vmem %s5633_s0, %s4051_s29  ;;  %s4102_s25 = smov 120   ;;  %vm5642_vm12 = vcmask 850944   ;;  %vm5643_vm13 = vcmask 916480   ;;  %vm5645_vm14 = vcmask 982016   ;;  %vm307_vm15 = vcmask 124928  }
   0xf   : > { %v3744_v0 = vld [vmem:[%s4162_s10 + $0x50] sm:$0xf]  ;;  %v3741_v1 = vld [vmem:[%s4162_s10 + $0x48] sm:$0xf]  ;;  %v3743_v3 = vld [vmem:[%s4162_s10 + $0x4c] sm:$0x1] }
  0x10   : > { %v757_v2 = vunpack.c.l.b16 %v3744_v0  ;;  %v728_v4 = vunpack.c.l.b16 %v3741_v1  ;;  %v3697_v5 = vld [vmem:[%s4162_s10 + $0x28] sm:$0xf]  ;;  %v3699_v6 = vld [vmem:[%s4162_s10 + $0x2c] sm:$0x1]  ;;  %v745_v7 = vunpack.c.l.b16 %v3743_v3  ;;  %v3745_v10 = vld [vmem:[%s4162_s10 + $0x58] sm:$0xf] }
  0x11   : > { %v520_v8 = vunpack.c.l.b16 %v3697_v5  ;;  %v537_v9 = vunpack.c.l.b16 %v3699_v6  ;;  %v3690_v11 = vld [vmem:[%s4162_s10 + $0x8] sm:$0xf]  ;;  %v4172_v12 = vld [vmem:[%s4162_s10 + $0x20] sm:$0xf]  ;;  %v3698_v15 = vld [vmem:[%s4162_s10 + $0x24] sm:$0x1]  ;;  %v762_v19 = vunpack.c.l.b16 %v3745_v10 }
  0x12   : > { %v4174_v13 = vpack.c.b16 %v757_v2, %v757_v2  ;;  %v4176_v14 = vpack.c.b16 %v728_v4, %v728_v4  ;;  %v4180_v16 = vld [vmem:[%s4162_s10 + $0x40] sm:$0xf]  ;;  %v746_v17 = vpack.c.b16 %v745_v7, %v728_v4  ;;  %v3742_v20 = vld [vmem:[%s4162_s10 + $0x44] sm:$0x1]  ;;  %v3746_v21 = vld [vmem:[%s4162_s10 + $0x54] sm:$0x1]  ;;  %v450_v22 = vunpack.c.l.b16 %v3690_v11 }
  0x13   : > { %v4182_v18 = vpack.c.b16 %v520_v8, %v520_v8  ;;  %v4191_v23 = vunpack.c.l.b16 %v4172_v12  ;;  %v525_v24 = vunpack.c.l.b16 %v3698_v15  ;;  %v4194_v25 = vunpack.c.l.b16 %v4180_v16  ;;  %v3706_v37 = vld [vmem:[%s4162_s10] sm:$0xf]  ;;  %v4002_v38 = vld [vmem:[%s4162_s10] sm:$0x10]  ;;  %v3747_v50 = vld [vmem:[%s4162_s10 + $0x5c] sm:$0x1] }
  0x14   : > { %856 = vrot.lane.b32.xlu2 %v4174_v13, %s4088_s11  ;;  %850 = vrot.lane.b32.xlu0 %v4176_v14, %s4089_s12  ;;  %v538_v26 = vpack.c.b16 %v537_v9, %v520_v8  ;;  %v748_v27 = vshrl.u32 %v746_v17, 16  ;;  %v750_v28 = vshll.u32 %v746_v17, 16  ;;  %v733_v30 = vunpack.c.l.b16 %v3742_v20  ;;  %v3691_v51 = vld [vmem:[%s4162_s10 + $0xc] sm:$0x1]  ;;  %v3700_v59 = vld [vmem:[%s4162_s10 + $0x30] sm:$0xf] }
  0x15   : > { %708 = vrot.lane.b32.xlu1 %v4182_v18, %s4089_s12  ;;  %v526_v29 = vpack.c.b16 %v525_v24, %v4191_v23  ;;  %v767_v31 = vunpack.c.l.b16 %v3746_v21  ;;  %v4199_v33 = vpack.c.b16 %v762_v19, %v762_v19  ;;  %v451_v34 = vpack.c.b16 %v450_v22, %v450_v22  ;;  %v3702_v3 = vld [vmem:[%s4162_s10 + $0x34] sm:$0x1]  ;;  %v3701_v10 = vld [vmem:[%s4162_s10 + $0x38] sm:$0xf] }
  0x16   : > { %v752_v32 = vrot.slane %v750_v28, 1  ;;  %v734_v36 = vpack.c.b16 %v733_v30, %v4194_v25  ;;  %v542_v40 = vshll.u32 %v538_v26, 16  ;;  %v3707_v43 = vor.u32 %v4002_v38, %v3706_v37  ;;  %v3692_v30 = vld [vmem:[%s4162_s10 + $0x10] sm:$0xf] }
  0x17   : > { %v530_v35 = vshll.u32 %v526_v29, 16  ;;  %v768_v42 = vpack.c.b16 %v767_v31, %v757_v2  ;;  %v528_v44 = vshrl.u32 %v526_v29, 16  ;;  %v540_v48 = vshrl.u32 %v538_v26, 16  ;;  %v4243_v29 = vld [vmem:[%s4162_s10 + $0x60] sm:$0xf] }
  0x18   : > { %v4204_v39 = vor.u32 %v752_v32, %v748_v27  ;;  %v738_v41 = vshll.u32 %v734_v36, 16  ;;  %v736_v46 = vshrl.u32 %v734_v36, 16  ;;  %v544_v49 = vrot.slane %v542_v40, 1  ;;  %v3694_v40 = vld [vmem:[%s4162_s10 + $0x14] sm:$0x1] }
  0x19   : > { %v532_v45 = vrot.slane %v530_v35, 1  ;;  %v772_v52 = vshll.u32 %v768_v42, 16  ;;  %v462_v53 = vshll.u32 %v3707_v43, 16  ;;  %v779_v56 = vunpack.c.l.b16 %v3747_v50  ;;  %v3750_v35 = vld [vmem:[%s4162_s10 + $0x64] sm:$0x1] }
  0x1a   : > { %v740_v47 = vrot.slane %v738_v41, 1  ;;  %v469_v57 = vunpack.c.l.b16 %v3691_v51  ;;  %v4217_v58 = vor.u32 %v544_v49, %v540_v48  ;;  %v770_v60 = vshrl.u32 %v768_v42, 16  ;;  %v3693_v48 = vld [vmem:[%s4162_s10 + $0x18] sm:$0xf] }
  0x1b   : > { %v4213_v54 = vor.u32 %v532_v45, %v528_v44  ;;  %v774_v61 = vrot.slane %v772_v52, 1  ;;  %v460_v62 = vshrl.u32 %v3707_v43, 16  ;;  %v464_v63 = vrot.slane %v462_v53, 1  ;;  %v3749_v44 = vld [vmem:[%s4162_s10 + $0x68] sm:$0xf] }
  0x1c   : > { %858 = vrot.lane.b32.xlu2 %v4199_v33, %s4090_s13  ;;  %452 = vrot.lane.b32.xlu0 %v451_v34, %s4089_s12  ;;  %v4215_v55 = vor.u32 %v740_v47, %v736_v46  ;;  %v780_v0 = vpack.c.b16 %v779_v56, %v762_v19  ;;  %v470_v1 = vpack.c.b16 %v469_v57, %v450_v22  ;;  %v549_v2 = vunpack.c.l.b16 %v3700_v59  ;;  %v3703_v22 = vld [vmem:[%s4162_s10 + $0x3c] sm:$0x1]  ;;  %v3751_v57 = vld [vmem:[%s4162_s10 + $0x6c] sm:$0x1] }
  0x1d   : > { %854 = vrot.lane.b32.xlu1 %v4204_v39, %s4091_s14  ;;  %v4227_v4 = vor.u32 %v774_v61, %v770_v60  ;;  %v465_v5 = vor.u32 %v464_v63, %v460_v62  ;;  %v559_v9 = vunpack.c.l.b16 %v3702_v3  ;;  %v554_v20 = vunpack.c.l.b16 %v3701_v10  ;;  %v3695_v59 = vld [vmem:[%s4162_s10 + $0x1c] sm:$0x1] }
  0x1e   : > { %v784_v6 = vshll.u32 %v780_v0, 16  ;;  %v474_v7 = vshll.u32 %v470_v1, 16  ;;  %v4229_v8 = vpack.c.b16 %v549_v2, %v549_v2  ;;  %v782_v11 = vshrl.u32 %v780_v0, 16 }
  0x1f   : > { %v472_v17 = vshrl.u32 %v470_v1, 16  ;;  %v560_v21 = vpack.c.b16 %v559_v9, %v549_v2  ;;  %v4240_v27 = vpack.c.b16 %v554_v20, %v554_v20  ;;  %v571_v31 = vunpack.c.l.b16 %v3703_v22 }
  0x20   : > { %v786_v15 = vrot.slane %v784_v6, 1  ;;  %v476_v19 = vrot.slane %v474_v7, 1  ;;  %v865_v32 = vunpack.c.l.b16 %v4243_v29  ;;  %v481_v34 = vunpack.c.l.b16 %v3692_v30 }
  0x21   : > { %v564_v28 = vshll.u32 %v560_v21, 16  ;;  %v562_v36 = vshrl.u32 %v560_v21, 16  ;;  %v572_v38 = vpack.c.b16 %v571_v31, %v554_v20  ;;  %v875_v41 = vunpack.c.l.b16 %v3750_v35 }
  0x22   : > { %v4238_v24 = vor.u32 %v786_v15, %v782_v11  ;;  %v477_v26 = vor.u32 %v476_v19, %v472_v17  ;;  %v866_v42 = vpack.c.b16 %v865_v32, %v865_v32  ;;  %v482_v43 = vpack.c.b16 %v481_v34, %v481_v34 }
  0x23   : > { %v566_v37 = vrot.slane %v564_v28, 1  ;;  %v491_v45 = vunpack.c.l.b16 %v3694_v40  ;;  %v576_v47 = vshll.u32 %v572_v38, 16  ;;  %v870_v49 = vunpack.c.l.b16 %v3749_v44 }
  0x24   : > { %710 = vrot.lane.b32.xlu2 %v4213_v54, %s4092_s15  ;;  %852 = vrot.lane.b32.xlu0 %v4215_v55, %s4092_s15  ;;  %v876_v50 = vpack.c.b16 %v875_v41, %v865_v32  ;;  %v486_v51 = vunpack.c.l.b16 %v3693_v48  ;;  %v574_v53 = vshrl.u32 %v572_v38, 16  ;;  %v887_v0 = vunpack.c.l.b16 %v3751_v57  ;;  %v3752_v32 = vld [vmem:[%s4162_s10 + $0x70] sm:$0xf]  ;;  %v3753_v38 = vld [vmem:[%s4162_s10 + $0x78] sm:$0xf] }
  0x25   : > { %712 = vrot.lane.b32.xlu1 %v4217_v58, %s4091_s14  ;;  %v4255_v46 = vor.u32 %v566_v37, %v562_v36  ;;  %v492_v52 = vpack.c.b16 %v491_v45, %v481_v34  ;;  %v578_v56 = vrot.slane %v576_v47, 1  ;;  %v4264_v60 = vpack.c.b16 %v870_v49, %v870_v49  ;;  %v3754_v34 = vld [vmem:[%s4162_s10 + $0x74] sm:$0x1] }
  0x26   : > { %v880_v61 = vshll.u32 %v876_v50, 16  ;;  %v487_v62 = vpack.c.b16 %v486_v51, %v486_v51  ;;  %v503_v1 = vunpack.c.l.b16 %v3695_v59  ;;  %v878_v3 = vshrl.u32 %v876_v50, 16  ;;  %v4349_v59 = vld [vmem:[%s5634_s1 + $0x38] sm:$0xff] }
  0x27   : > { %v496_v63 = vshll.u32 %v492_v52, 16  ;;  %v4266_v2 = vor.u32 %v578_v56, %v574_v53  ;;  %v494_v6 = vshrl.u32 %v492_v52, 16  ;;  %v888_v9 = vpack.c.b16 %v887_v0, %v870_v49  ;;  %v3757_v52 = vld [vmem:[%s4162_s10 + $0x88] sm:$0xf]  ;;  %v4344_v56 = vld [vmem:[%s4162_s10 + $0x80] sm:$0xf]  ;;  %964 = vmatpush.bf16.msra.mxu2 %v4349_v59  ;;  %822 = vmatpush.bf16.msra.mxu1 %v4349_v59 }
  0x28   : > { %v504_v10 = vpack.c.b16 %v503_v1, %v486_v51  ;;  %v724_v20 = vpack.c.b16 %v4194_v25, %v4194_v25  ;;  %v899_v25 = vunpack.c.l.b16 %v3752_v32  ;;  %v516_v36 = vpack.c.b16 %v4191_v23, %v4191_v23  ;;  %680 = vmatpush.bf16.msra.mxu0 %v4349_v59  ;;  %1106 = vmatpush.bf16.msra.mxu3 %v4349_v59  ;;  %v4407_v32 = vld [vmem:[%s5634_s1 + $0x18] sm:$0xff] }
  0x29   : > { %v498_v7 = vrot.slane %v496_v63, 1  ;;  %v892_v17 = vshll.u32 %v888_v9, 16  ;;  %v890_v21 = vshrl.u32 %v888_v9, 16  ;;  %v909_v37 = vunpack.c.l.b16 %v3754_v34  ;;  %v4362_v63 = vld [vmem:[%s5634_s1 + $0x30] sm:$0xff] }
  0x2a   : > { %v508_v19 = vshll.u32 %v504_v10, 16  ;;  %v900_v35 = vpack.c.b16 %v899_v25, %v899_v25  ;;  %v904_v40 = vunpack.c.l.b16 %v3753_v38  ;;  %v3761_v38 = vld [vmem:[%s4162_s10 + $0x98] sm:$0xf] }
  0x2b   : > { %v499_v15 = vor.u32 %v498_v7, %v494_v6  ;;  %v894_v22 = vrot.slane %v892_v17, 1  ;;  %v910_v41 = vpack.c.b16 %v909_v37, %v899_v25  ;;  %965 = vmatpush.bf16.msra.mxu2 %v4362_v63  ;;  %823 = vmatpush.bf16.msra.mxu1 %v4362_v63  ;;  %v4378_v7 = vld [vmem:[%s5634_s1 + $0x28] sm:$0xff]  ;;  %v4389_v17 = vld [vmem:[%s5634_s1 + $0x20] sm:$0xff] }
  0x2c   : > { %860 = vrot.lane.b32.xlu2 %v4227_v4, %s4093_s16  ;;  %466 = vrot.lane.b32.xlu0 %v465_v5, %s4092_s15  ;;  %v882_v5 = vrot.slane %v880_v61, 1  ;;  %v510_v28 = vrot.slane %v508_v19, 1 }
  0x2d   : > { %714 = vrot.lane.b32.xlu1 %v4229_v8, %s4088_s11  ;;  %v895_v30 = vor.u32 %v894_v22, %v890_v21  ;;  %v912_v23 = vshrl.u32 %v910_v41, 16  ;;  %681 = vmatpush.bf16.msra.mxu0 %v4362_v63 }
  0x2e   : > { %v883_v11 = vor.u32 %v882_v5, %v878_v3  ;;  %1107 = vmatpush.bf16.msra.mxu3 %v4362_v63 }
  0x2f   : > { %966 = vmatpush.bf16.msra.mxu2 %v4378_v7  ;;  %824 = vmatpush.bf16.msra.mxu1 %v4378_v7 }
  0x31   : > { %682 = vmatpush.bf16.msra.mxu0 %v4378_v7 }
  0x32   : > { %1108 = vmatpush.bf16.msra.mxu3 %v4378_v7 }
  0x33   : > { %967 = vmatpush.bf16.msra.mxu2 %v4389_v17  ;;  %825 = vmatpush.bf16.msra.mxu1 %v4389_v17 }
  0x34   : > { %862 = vrot.lane.b32.xlu2 %v4238_v24, %s4094_s17  ;;  %478 = vrot.lane.b32.xlu0 %v477_v26, %s4091_s14  ;;  %v506_v26 = vshrl.u32 %v504_v10, 16 }
  0x35   : > { %716 = vrot.lane.b32.xlu1 %v4240_v27, %s4090_s13  ;;  %683 = vmatpush.bf16.msra.mxu0 %v4389_v17 }
  0x36   : > { %v511_v31 = vor.u32 %v510_v28, %v506_v26  ;;  %v3762_v26 = vld [vmem:[%s4162_s10 + $0x94] sm:$0x1]  ;;  %1109 = vmatpush.bf16.msra.mxu3 %v4389_v17 }
  0x37   : > { %v1051_v34 = vunpack.c.l.b16 %v3762_v26  ;;  %968 = vmatpush.bf16.msra.mxu2 %v4407_v32  ;;  %826 = vmatpush.bf16.msra.mxu1 %v4407_v32 }
  0x39   : > { %684 = vmatpush.bf16.msra.mxu0 %v4407_v32 }
  0x3a   : > { %1110 = vmatpush.bf16.msra.mxu3 %v4407_v32 }
  0x3c   : > { %867 = vrot.lane.b32.xlu2 %v866_v42, %s4095_s18  ;;  %483 = vrot.lane.b32.xlu0 %v482_v43, %s4088_s11  ;;  %v3755_v42 = vld [vmem:[%s4162_s10 + $0x7c] sm:$0x1]  ;;  %v905_v43 = vpack.c.b16 %v904_v40, %v904_v40 }
  0x3d   : > { %718 = vrot.lane.b32.xlu1 %v4255_v46, %s4093_s16  ;;  %v921_v44 = vunpack.c.l.b16 %v3755_v42 }
  0x3f   : > { %v922_v47 = vpack.c.b16 %v921_v44, %v904_v40  ;;  %v3763_v40 = vld [vmem:[%s4162_s10 + $0x9c] sm:$0x1]  ;;  %v1046_v44 = vunpack.c.l.b16 %v3761_v38 }
  0x41   : > { %v926_v49 = vshll.u32 %v922_v47, 16 }
  0x43   : > { %v928_v50 = vrot.slane %v926_v49, 1 }
  0x44   : > { %872 = vrot.lane.b32.xlu2 %v4264_v60, %s4096_s19  ;;  %488 = vrot.lane.b32.xlu0 %v487_v62, %s4090_s13 }
  0x45   : > { %720 = vrot.lane.b32.xlu1 %v4266_v2, %s4094_s17 }
  0x4c   : > { %884 = vrot.lane.b32.xlu2 %v883_v11, %s4097_s20  ;;  %500 = vrot.lane.b32.xlu0 %v499_v15, %s4093_s16 }
  0x4d   : > { %725 = vrot.lane.b32.xlu1 %v724_v20, %s4095_s18 }
  0x54   : > { %896 = vrot.lane.b32.xlu2 %v895_v30, %s4098_s21  ;;  %512 = vrot.lane.b32.xlu0 %v511_v31, %s4094_s17  ;;  %v3760_v31 = vld [vmem:[%s4162_s10 + $0x90] sm:$0xf] }
  0x55   : > { %730 = vrot.lane.b32.xlu1 %v4176_v14, %s4096_s19  ;;  %v914_v14 = vshll.u32 %v910_v41, 16 }
  0x57   : > { %v916_v45 = vrot.slane %v914_v14, 1 }
  0x59   : > { %v917_v48 = vor.u32 %v916_v45, %v912_v23  ;;  %v1063_v23 = vunpack.c.l.b16 %v3763_v40  ;;  %v4436_v45 = vld [vmem:[%s5634_s1 + $0x8] sm:$0xff] }
  0x5b   : > { %v1064_v49 = vpack.c.b16 %v1063_v23, %v1046_v44 }
  0x5c   : > { %901 = vrot.lane.b32.xlu2 %v900_v35, %s4099_s22  ;;  %517 = vrot.lane.b32.xlu0 %v516_v36, %s4095_s18  ;;  %v4418_v36 = vld [vmem:[%s5634_s1 + $0x10] sm:$0xff] }
  0x5d   : > { %742 = vrot.lane.b32.xlu1 %v4215_v55, %s4097_s20  ;;  %v924_v55 = vshrl.u32 %v922_v47, 16  ;;  %969 = vmatpush.bf16.msra.mxu2 %v4418_v36 }
  0x5e   : > { %827 = vmatpush.bf16.msra.mxu1 %v4418_v36  ;;  %685 = vmatpush.bf16.msra.mxu0 %v4418_v36 }
  0x5f   : > { %v929_v51 = vor.u32 %v928_v50, %v924_v55  ;;  %1111 = vmatpush.bf16.msra.mxu3 %v4418_v36  ;;  %v4450_v55 = vld [vmem:[%s5634_s1] sm:$0xff] }
  0x61   : > { %970 = vmatpush.bf16.msra.mxu2 %v4436_v45 }
  0x62   : > { %828 = vmatpush.bf16.msra.mxu1 %v4436_v45  ;;  %686 = vmatpush.bf16.msra.mxu0 %v4436_v45 }
  0x63   : > { %1112 = vmatpush.bf16.msra.mxu3 %v4436_v45 }
  0x64   : > { %906 = vrot.lane.b32.xlu2 %v905_v43, %s4100_s23  ;;  %522 = vrot.lane.b32.xlu0 %v4182_v18, %s4096_s19 }
  0x65   : > { %754 = vrot.lane.b32.xlu1 %v4204_v39, %s4098_s21  ;;  %971 = vmatpush.bf16.msra.mxu2 %v4450_v55 }
  0x66   : > { %829 = vmatpush.bf16.msra.mxu1 %v4450_v55  ;;  %687 = vmatpush.bf16.msra.mxu0 %v4450_v55 }
  0x67   : > { %1113 = vmatpush.bf16.msra.mxu3 %v4450_v55 }
  0x69   : > { %1532 = vmatpush.bf16.msrb.mxu2 %v4349_v59 }
  0x6a   : > { %1248 = vmatpush.bf16.msrb.mxu0 %v4349_v59  ;;  %1390 = vmatpush.bf16.msrb.mxu1 %v4349_v59 }
  0x6b   : > { %1674 = vmatpush.bf16.msrb.mxu3 %v4349_v59  ;;  %v3766_v59 = vld [vmem:[%s4162_s10 + $0xa4] sm:$0x1] }
  0x6c   : > { %918 = vrot.lane.b32.xlu2 %v917_v48, %s4101_s24  ;;  %534 = vrot.lane.b32.xlu0 %v4213_v54, %s4097_s20 }
  0x6d   : > { %759 = vrot.lane.b32.xlu1 %v4174_v13, %s4099_s22  ;;  %1533 = vmatpush.bf16.msrb.mxu2 %v4362_v63 }
  0x6e   : > { %v4302_v18 = vpop.permute.xlu2 %856  ;;  %1249 = vmatpush.bf16.msrb.mxu0 %v4362_v63  ;;  %1391 = vmatpush.bf16.msrb.mxu1 %v4362_v63 }
  0x6f   : > { %1675 = vmatpush.bf16.msrb.mxu3 %v4362_v63 }
  0x71   : > { %1534 = vmatpush.bf16.msrb.mxu2 %v4378_v7 }
  0x72   : > { %1250 = vmatpush.bf16.msrb.mxu0 %v4378_v7  ;;  %1392 = vmatpush.bf16.msrb.mxu1 %v4378_v7 }
  0x73   : > { %1676 = vmatpush.bf16.msrb.mxu3 %v4378_v7  ;;  %v3768_v7 = vld [vmem:[%s4162_s10 + $0xb0] sm:$0xf] }
  0x74   : > { %930 = vrot.lane.b32.xlu2 %v929_v51, %s4102_s25  ;;  %546 = vrot.lane.b32.xlu0 %v4217_v58, %s4098_s21 }
  0x75   : > { %764 = vrot.lane.b32.xlu1 %v4199_v33, %s4100_s23  ;;  %1535 = vmatpush.bf16.msrb.mxu2 %v4389_v17 }
  0x76   : > { %v4309_v39 = vpop.permute.xlu2 %858  ;;  %1251 = vmatpush.bf16.msrb.mxu0 %v4389_v17  ;;  %1393 = vmatpush.bf16.msrb.mxu1 %v4389_v17 }
  0x77   : > { %1677 = vmatpush.bf16.msrb.mxu3 %v4389_v17 }
  0x79   : > { %1536 = vmatpush.bf16.msrb.mxu2 %v4407_v32 }
  0x7a   : > { %1252 = vmatpush.bf16.msrb.mxu0 %v4407_v32  ;;  %1394 = vmatpush.bf16.msrb.mxu1 %v4407_v32 }
  0x7b   : > { %1678 = vmatpush.bf16.msrb.mxu3 %v4407_v32 }
  0x7c   : > { %992 = vrot.lane.b32.xlu0 %v4264_v60, %s4089_s12  ;;  %776 = vrot.lane.b32.xlu2 %v4227_v4, %s4101_s24  ;;  %v3758_v4 = vld [vmem:[%s4162_s10 + $0x84] sm:$0x1]  ;;  %v1012_v60 = vunpack.c.l.b16 %v3757_v52 }
  0x7d   : > { %551 = vrot.lane.b32.xlu1 %v4229_v8, %s4099_s22  ;;  %v1017_v57 = vunpack.c.l.b16 %v3758_v4  ;;  %1537 = vmatpush.bf16.msrb.mxu2 %v4418_v36 }
  0x7e   : > { %v4317_v13 = vpop.permute.xlu2 %710  ;;  %v1013_v6 = vpack.c.b16 %v1012_v60, %v1012_v60  ;;  %1253 = vmatpush.bf16.msrb.mxu0 %v4418_v36  ;;  %1395 = vmatpush.bf16.msrb.mxu1 %v4418_v36 }
  0x7f   : > { %1679 = vmatpush.bf16.msrb.mxu3 %v4418_v36 }
  0x81   : > { %1538 = vmatpush.bf16.msrb.mxu2 %v4436_v45 }
  0x82   : > { %1254 = vmatpush.bf16.msrb.mxu0 %v4436_v45  ;;  %1396 = vmatpush.bf16.msrb.mxu1 %v4436_v45 }
  0x83   : > { %1680 = vmatpush.bf16.msrb.mxu3 %v4436_v45 }
  0x84   : > { %994 = vrot.lane.b32.xlu0 %v883_v11, %s4092_s15  ;;  %788 = vrot.lane.b32.xlu2 %v4238_v24, %s4102_s25 }
  0x85   : > { %556 = vrot.lane.b32.xlu1 %v4240_v27, %s4100_s23  ;;  %v3759_v27 = vld [vmem:[%s4162_s10 + $0x8c] sm:$0x1]  ;;  %1539 = vmatpush.bf16.msrb.mxu2 %v4450_v55 }
  0x86   : > { %v4324_v33 = vpop.permute.xlu0 %850  ;;  %v4326_v54 = vpop.permute.xlu2 %860  ;;  %v1029_v61 = vunpack.c.l.b16 %v3759_v27  ;;  %1255 = vmatpush.bf16.msrb.mxu0 %v4450_v55  ;;  %1397 = vmatpush.bf16.msrb.mxu1 %v4450_v55 }
  0x87   : > { %v4328_v58 = vpop.permute.xlu1 %708  ;;  %1681 = vmatpush.bf16.msrb.mxu3 %v4450_v55 }
  0x88   : > { %v1030_v0 = vpack.c.b16 %v1029_v61, %v1012_v60  ;;  %v934_v61 = vsel %vm582_vm0, %v4180_v16, %v4324_v33 }
  0x8a   : > { %v1034_v10 = vshll.u32 %v1030_v0, 16  ;;  %v1032_v19 = vshrl.u32 %v1030_v0, 16 }
  0x8c   : > { %996 = vrot.lane.b32.xlu0 %v895_v30, %s4091_s14  ;;  %998 = vrot.lane.b32.xlu2 %v900_v35, %s4088_s11  ;;  %v1036_v20 = vrot.slane %v1034_v10, 1  ;;  %v1041_v35 = vunpack.c.l.b16 %v3760_v31  ;;  %v3764_v10 = vld [vmem:[%s4162_s10 + $0xa0] sm:$0xf] }
  0x8d   : > { %568 = vrot.lane.b32.xlu1 %v4255_v46, %s4101_s24  ;;  %v1007_v46 = vunpack.c.l.b16 %v4344_v56  ;;  %v1149_v26 = vunpack.c.l.b16 %v3764_v10 }
  0x8e   : > { %v4335_v8 = vpop.permute.xlu2 %862  ;;  %v4337_v24 = vpop.permute.xlu0 %452  ;;  %v1037_v25 = vor.u32 %v1036_v20, %v1032_v19  ;;  %v1052_v37 = vpack.c.b16 %v1051_v34, %v1041_v35  ;;  %v1042_v14 = vpack.c.b16 %v1041_v35, %v1041_v35  ;;  %v3770_v34 = vld [vmem:[%s4162_s10 + $0xb4] sm:$0x1] }
  0x8f   : > { %v4341_v53 = vpop.permute.xlu1 %854  ;;  %v1018_v62 = vpack.c.b16 %v1017_v57, %v1007_v46  ;;  %v1008_v9 = vpack.c.b16 %v1007_v46, %v1007_v46  ;;  %v1068_v57 = vshll.u32 %v1064_v49, 16  ;;  %v1150_v40 = vpack.c.b16 %v1149_v26, %v1149_v26 }
  0x90   : > { %v1056_v47 = vshll.u32 %v1052_v37, 16  ;;  %v1054_v50 = vshrl.u32 %v1052_v37, 16  ;;  %v1193_v23 = vunpack.c.l.b16 %v3770_v34 }
  0x91   : > { %v1022_v5 = vshll.u32 %v1018_v62, 16  ;;  %v1020_v11 = vshrl.u32 %v1018_v62, 16  ;;  %v1066_v62 = vshrl.u32 %v1064_v49, 16  ;;  %v1070_v0 = vrot.slane %v1068_v57, 1 }
  0x93   : > { %v1024_v15 = vrot.slane %v1022_v5, 1 }
  0x94   : > { %580 = vrot.lane.b32.xlu0 %v4266_v2, %s4102_s25  ;;  %1002 = vrot.lane.b32.xlu2 %v917_v48, %s4093_s16  ;;  %v4438_v48 = vpack.c.b16 %v1046_v44, %v1046_v44  ;;  %v1183_v44 = vunpack.c.l.b16 %v3768_v7 }
  0x95   : > { %1000 = vrot.lane.b32.xlu1 %v905_v43, %s4090_s13  ;;  %v1025_v30 = vor.u32 %v1024_v15, %v1020_v11  ;;  %v1071_v11 = vor.u32 %v1070_v0, %v1066_v62  ;;  %v1159_v15 = vunpack.c.l.b16 %v3766_v59  ;;  %v4537_v62 = vld [vmem:[%s4162_s10 + $0xc0] sm:$0xf]  ;;  %v3774_v0 = vld [vmem:[%s4162_s10 + $0xc4] sm:$0x1] }
  0x96   : > { %v4365_v1 = vpop.permute.xlu2 %867  ;;  %v4367_v3 = vpop.permute.xlu0 %852 }
  0x97   : > { %v4371_v2 = vpop.permute.xlu1 %712  ;;  %v936_v46 = vsel %vm586_vm1, %v934_v61, %v4367_v3  ;;  %v3765_v3 = vld [vmem:[%s4162_s10 + $0xa8] sm:$0xf]  ;;  %v1194_v61 = vpack.c.b16 %v1193_v23, %v1183_v44 }
  0x98   : > { %v938_v16 = vsel %vm589_vm2, %v936_v46, %v4341_v53  ;;  %v1154_v19 = vunpack.c.l.b16 %v3765_v3 }
  0x99   : > { %v940_v53 = vsel %vm592_vm3, %v938_v16, %v4302_v18  ;;  %v1160_v18 = vpack.c.b16 %v1159_v15, %v1149_v26  ;;  %v1198_v15 = vshll.u32 %v1194_v61, 16  ;;  %v1196_v45 = vshrl.u32 %v1194_v61, 16 }
  0x9a   : > { %v942_v63 = vsel %vm5651_vm4, %v940_v53, %v4309_v39  ;;  %v4517_v38 = vpack.c.b16 %v1154_v19, %v1154_v19  ;;  %v4554_v53 = vunpack.c.l.b16 %v4537_v62  ;;  %v792_v61 = vsel %vm582_vm0, %v4172_v12, %v4328_v58 }
  0x9b   : > { %v944_v39 = vsel %vm5652_vm5, %v942_v63, %v4326_v54  ;;  %v1164_v37 = vshll.u32 %v1160_v18, 16  ;;  %v3771_v54 = vld [vmem:[%s4162_s10 + $0xbc] sm:$0x1]  ;;  %v1162_v17 = vshrl.u32 %v1160_v18, 16  ;;  %v3775_v18 = vld [vmem:[%s4162_s10 + $0xcc] sm:$0x1] }
  0x9c   : > { %1004 = vrot.lane.b32.xlu0 %v929_v51, %s4094_s17  ;;  %1014 = vrot.lane.b32.xlu2 %v1013_v6, %s4096_s19  ;;  %v1058_v51 = vrot.slane %v1056_v47, 1  ;;  %v3769_v47 = vld [vmem:[%s4162_s10 + $0xb8] sm:$0xf] }
  0x9d   : > { %1009 = vrot.lane.b32.xlu1 %v1008_v9, %s4095_s18  ;;  %v1166_v49 = vrot.slane %v1164_v37, 1  ;;  %v3773_v37 = vld [vmem:[%s4162_s10 + $0xc8] sm:$0xf] }
  0x9e   : > { %v4392_v21 = vpop.permute.xlu2 %872  ;;  %v4394_v22 = vpop.permute.xlu0 %466  ;;  %v1059_v60 = vor.u32 %v1058_v51, %v1054_v50  ;;  %v1188_v50 = vunpack.c.l.b16 %v3769_v47  ;;  %v1205_v51 = vunpack.c.l.b16 %v3771_v54 }
  0x9f   : > { %v4399_v28 = vpop.permute.xlu1 %714  ;;  %v4547_v3 = vor.u32 %v1166_v49, %v1162_v17 }
  0xa0   : > { %v1206_v59 = vpack.c.b16 %v1205_v51, %v1188_v50 }
  0xa2   : > { %v1210_v10 = vshll.u32 %v1206_v59, 16 }
  0xa4   : > { %1026 = vrot.lane.b32.xlu0 %v1025_v30, %s4097_s20  ;;  %1134 = vrot.lane.b32.xlu2 %v1013_v6, %s4089_s12  ;;  %v3767_v6 = vld [vmem:[%s4162_s10 + $0xac] sm:$0x1]  ;;  %v1212_v26 = vrot.slane %v1210_v10, 1  ;;  %v3778_v10 = vld [vmem:[%s4162_s10 + $0xd4] sm:$0x1] }
  0xa5   : > { %1038 = vrot.lane.b32.xlu1 %v1037_v25, %s4098_s21  ;;  %v1171_v20 = vunpack.c.l.b16 %v3767_v6  ;;  %v4549_v6 = vpack.c.b16 %v1183_v44, %v1183_v44 }
  0xa6   : > { %v4423_v41 = vpop.permute.xlu2 %884  ;;  %v4425_v42 = vpop.permute.xlu0 %478 }
  0xa7   : > { %v4429_v43 = vpop.permute.xlu1 %716 }
  0xac   : > { %1043 = vrot.lane.b32.xlu0 %v1042_v14, %s4099_s22  ;;  %1048 = vrot.lane.b32.xlu2 %v4438_v48, %s4100_s23 }
  0xad   : > { %1136 = vrot.lane.b32.xlu1 %v1025_v30, %s4092_s15  ;;  %v1172_v30 = vpack.c.b16 %v1171_v20, %v1154_v19  ;;  %v1301_v19 = vunpack.c.l.b16 %v3774_v0 }
  0xae   : > { %v4453_v4 = vpop.permute.xlu2 %896  ;;  %v4455_v52 = vpop.permute.xlu0 %483 }
  0xaf   : > { %v4459_v27 = vpop.permute.xlu1 %718  ;;  %v1174_v57 = vshrl.u32 %v1172_v30, 16 }
  0xb4   : > { %1138 = vrot.lane.b32.xlu0 %v1037_v25, %s4091_s14  ;;  %1140 = vrot.lane.b32.xlu2 %v1042_v14, %s4088_s11  ;;  %v1176_v14 = vshll.u32 %v1172_v30, 16 }
  0xb5   : > { %1060 = vrot.lane.b32.xlu1 %v1059_v60, %s4101_s24 }
  0xb6   : > { %v4479_v33 = vpop.permute.xlu2 %901  ;;  %v4481_v5 = vpop.permute.xlu0 %488 }
  0xb7   : > { %v4487_v9 = vpop.permute.xlu1 %720 }
  0xbc   : > { %1072 = vrot.lane.b32.xlu0 %v1071_v11, %s4102_s25  ;;  %1144 = vrot.lane.b32.xlu2 %v1059_v60, %s4093_s16  ;;  %v1178_v60 = vrot.slane %v1176_v14, 1  ;;  %v1313_v14 = vunpack.c.l.b16 %v3775_v18 }
  0xbd   : > { %1142 = vrot.lane.b32.xlu1 %v4438_v48, %s4090_s13  ;;  %v946_v48 = vsel %vm601_vm6, %v944_v39, %v4335_v8 }
  0xbe   : > { %v4504_v31 = vpop.permute.xlu2 %906  ;;  %v4506_v25 = vpop.permute.xlu0 %500  ;;  %v948_v8 = vsel %vm5650_vm7, %v946_v48, %v4365_v1  ;;  %v1296_v48 = vunpack.c.l.b16 %v3773_v37 }
  0xbf   : > { %v4514_v35 = vpop.permute.xlu1 %725  ;;  %v950_v16 = vsel %vm5648_vm8, %v948_v8, %v4392_v21 }
  0xc0   : > { %v952_v36 = vsel %vm5644_vm9, %v950_v16, %v4423_v41  ;;  %v1208_v41 = vshrl.u32 %v1206_v59, 16  ;;  %v1314_v54 = vpack.c.b16 %v1313_v14, %v1296_v48  ;;  %v4599_v8 = vpack.c.b16 %v1296_v48, %v1296_v48 }
  0xc1   : > { %v954_v21 = vsel %vm5647_vm10, %v952_v36, %v4453_v4  ;;  %v1200_v4 = vrot.slane %v1198_v15, 1  ;;  %v794_v16 = vsel %vm586_vm1, %v792_v61, %v4317_v13 }
  0xc2   : > { %v956_v20 = vsel %vm5646_vm11, %v954_v21, %v4479_v33  ;;  %v1302_v33 = vpack.c.b16 %v1301_v19, %v4554_v53  ;;  %v4587_v44 = vor.u32 %v1212_v26, %v1208_v41  ;;  %v1316_v0 = vshrl.u32 %v1314_v54, 16 }
  0xc3   : > { %v958_v63 = vsel %vm5642_vm12, %v956_v20, %v4504_v31  ;;  %v4589_v23 = vor.u32 %v1200_v4, %v1196_v45  ;;  %v796_v12 = vsel %vm589_vm2, %v794_v16, %v4371_v2  ;;  %v1335_v20 = vunpack.c.l.b16 %v3778_v10  ;;  %v3777_v2 = vld [vmem:[%s4162_s10 + $0xd8] sm:$0xf]  ;;  %v426_v10 = vld [vmem:[%s4162_s10] sm:$0xf] }
  0xc4   : > { %1146 = vrot.lane.b32.xlu0 %v1071_v11, %s4094_s17  ;;  %1156 = vrot.lane.b32.xlu2 %v4517_v38, %s4096_s19  ;;  %v4551_v11 = vor.u32 %v1178_v60, %v1174_v57  ;;  %v1306_v47 = vshll.u32 %v1302_v33, 16  ;;  %v1304_v55 = vshrl.u32 %v1302_v33, 16  ;;  %v1318_v57 = vshll.u32 %v1314_v54, 16 }
  0xc5   : > { %1151 = vrot.lane.b32.xlu1 %v1150_v40, %s4095_s18  ;;  %v4585_v40 = vpack.c.b16 %v1188_v50, %v1188_v50  ;;  %v798_v36 = vsel %vm592_vm3, %v796_v12, %v4399_v28  ;;  %v3779_v28 = vld [vmem:[%s4162_s10 + $0xdc] sm:$0x1] }
  0xc6   : > { %v919_v32 = vpop.permute.xlu2 %918  ;;  %v4534_v46 = vpop.permute.xlu0 %512  ;;  %v1308_v17 = vrot.slane %v1306_v47, 1  ;;  %v1320_v59 = vrot.slane %v1318_v57, 1 }
  0xc7   : > { %v4542_v1 = vpop.permute.xlu1 %730  ;;  %v960_v30 = vsel %vm5643_vm13, %v958_v63, %v919_v32  ;;  %v3776_v32 = vld [vmem:[%s4162_s10 + $0xd0] sm:$0xf] }
  0xc8   : > { %v4601_v60 = vor.u32 %v1308_v17, %v1304_v55  ;;  %v1325_v19 = vunpack.c.l.b16 %v3776_v32  ;;  %v4624_v13 = vor.u32 %v1320_v59, %v1316_v0  ;;  %v4671_v0 = vld [vmem:[%s4162_s10 + $0xe0] sm:$0xf] }
  0xc9   : > { %v1433_v59 = vunpack.c.l.b16 %v4671_v0 }
  0xca   : > { %v4626_v41 = vpack.c.b16 %v1325_v19, %v1325_v19  ;;  %v1336_v33 = vpack.c.b16 %v1335_v20, %v1325_v19 }
  0xcc   : > { %1168 = vrot.lane.b32.xlu0 %v4547_v3, %s4097_s20  ;;  %1185 = vrot.lane.b32.xlu2 %v4549_v6, %s4099_s22  ;;  %v1340_v14 = vshll.u32 %v1336_v33, 16  ;;  %v1338_v54 = vshrl.u32 %v1336_v33, 16 }
  0xcd   : > { %1180 = vrot.lane.b32.xlu1 %v4551_v11, %s4098_s21 }
  0xce   : > { %v931_v7 = vpop.permute.xlu2 %930  ;;  %v4578_v34 = vpop.permute.xlu0 %517  ;;  %v1342_v55 = vrot.slane %v1340_v14, 1 }
  0xcf   : > { %v743_v31 = vpop.permute.xlu1 %742  ;;  %v962_v39 = vsel %vm5645_vm14, %v960_v30, %v931_v7 }
  0xd0   : > { %972 = vmatmul.bf16.vlgmr.msra.gmra.mxu2 %v962_v39  ;;  %v4666_v32 = vor.u32 %v1342_v55, %v1338_v54  ;;  %v3784_v54 = vld [vmem:[%s4162_s10 + $0xf0] sm:$0xf] }
  0xd4   : > { %1190 = vrot.lane.b32.xlu0 %v4585_v40, %s4100_s23  ;;  %1214 = vrot.lane.b32.xlu2 %v4587_v44, %s4102_s25 }
  0xd5   : > { %1202 = vrot.lane.b32.xlu1 %v4589_v23, %s4101_s24 }
  0xd6   : > { %v4597_v49 = vpop.permute.xlu0 %522  ;;  %v777_v50 = vpop.permute.xlu2 %776 }
  0xd7   : > { %v755_v51 = vpop.permute.xlu1 %754 }
  0xdc   : > { %1418 = vrot.lane.b32.xlu0 %v4599_v8, %s4089_s12  ;;  %1276 = vrot.lane.b32.xlu2 %v4517_v38, %s4089_s12  ;;  %v800_v38 = vsel %vm5651_vm4, %v798_v36, %v4429_v43  ;;  %v1330_v43 = vunpack.c.l.b16 %v3777_v2  ;;  %v1434_v2 = vpack.c.b16 %v1433_v59, %v1433_v59 }
  0xdd   : > { %1420 = vrot.lane.b32.xlu1 %v4601_v60, %s4092_s15  ;;  %v802_v26 = vsel %vm5652_vm5, %v800_v38, %v4459_v27  ;;  %v1347_v27 = vunpack.c.l.b16 %v3779_v28  ;;  %v3781_v38 = vld [vmem:[%s4162_s10 + $0xe8] sm:$0xf] }
  0xde   : > { %v4618_v58 = vpop.permute.xlu0 %534  ;;  %v789_v15 = vpop.permute.xlu2 %788  ;;  %v804_v63 = vsel %vm601_vm6, %v802_v26, %v4487_v9  ;;  %v585_v26 = vsel %vm582_vm0, %v426_v10, %v4337_v24  ;;  %v1438_v28 = vunpack.c.l.b16 %v3781_v38 }
  0xdf   : > { %v760_v21 = vpop.permute.xlu1 %759  ;;  %v806_v45 = vsel %vm5650_vm7, %v804_v63, %v4514_v35 }
  0xe0   : > { %v808_v4 = vsel %vm5648_vm8, %v806_v45, %v4542_v1  ;;  %v1348_v1 = vpack.c.b16 %v1347_v27, %v1330_v43  ;;  %v588_v45 = vsel %vm586_vm1, %v585_v26, %v4394_v22 }
  0xe1   : > { %v810_v18 = vsel %vm5644_vm9, %v808_v4, %v743_v31  ;;  %v4653_v31 = vpack.c.b16 %v1330_v43, %v1330_v43 }
  0xe2   : > { %v812_v9 = vsel %vm5647_vm10, %v810_v18, %v755_v51  ;;  %v1352_v47 = vshll.u32 %v1348_v1, 16  ;;  %v1350_v17 = vshrl.u32 %v1348_v1, 16 }
  0xe3   : > { %v814_v7 = vsel %vm5646_vm11, %v812_v9, %v760_v21  ;;  %v4711_v9 = vpack.c.b16 %v1438_v28, %v1438_v28 }
  0xe4   : > { %1422 = vrot.lane.b32.xlu0 %v4624_v13, %s4091_s14  ;;  %1424 = vrot.lane.b32.xlu2 %v4626_v41, %s4088_s11  ;;  %v1354_v51 = vrot.slane %v1352_v47, 1 }
  0xe5   : > { %1278 = vrot.lane.b32.xlu1 %v4547_v3, %s4092_s15 }
  0xe6   : > { %v4646_v35 = vpop.permute.xlu0 %546  ;;  %v4648_v30 = vpop.permute.xlu2 %998 }
  0xe7   : > { %v765_v39 = vpop.permute.xlu1 %764 }
  0xe8   : > { %v816_v37 = vsel %vm5642_vm12, %v814_v7, %v765_v39 }
  0xe9   : > { %v818_v48 = vsel %vm5643_vm13, %v816_v37, %v777_v50 }
  0xea   : > { %v820_v3 = vsel %vm5645_vm14, %v818_v48, %v789_v15  ;;  %v3783_v15 = vld [vmem:[%s4162_s10 + $0xec] sm:$0x1] }
  0xeb   : > { %830 = vmatmul.bf16.vlgmr.msra.gmra.mxu1 %v820_v3  ;;  %v1455_v63 = vunpack.c.l.b16 %v3783_v15 }
  0xec   : > { %1280 = vrot.lane.b32.xlu0 %v4551_v11, %s4091_s14  ;;  %1282 = vrot.lane.b32.xlu2 %v4549_v6, %s4088_s11  ;;  %v4668_v11 = vor.u32 %v1354_v51, %v1350_v17  ;;  %v3782_v6 = vld [vmem:[%s4162_s10 + $0xe4] sm:$0x1]  ;;  %v1467_v51 = vunpack.c.l.b16 %v3784_v54 }
  0xed   : > { %1426 = vrot.lane.b32.xlu1 %v4653_v31, %s4090_s13  ;;  %v1443_v16 = vunpack.c.l.b16 %v3782_v6  ;;  %v1456_v22 = vpack.c.b16 %v1455_v63, %v1438_v28 }
  0xee   : > { %v4662_v50 = vpop.permute.xlu0 %992  ;;  %v4664_v57 = vpop.permute.xlu2 %1002 }
  0xef   : > { %v552_v61 = vpop.permute.xlu1 %551  ;;  %v1444_v36 = vpack.c.b16 %v1443_v16, %v1433_v59  ;;  %v1460_v7 = vshll.u32 %v1456_v22, 16  ;;  %v3787_v59 = vld [vmem:[%s4162_s10 + $0xfc] sm:$0x1] }
  0xf0   : > { %v1489_v38 = vunpack.c.l.b16 %v3787_v59 }
  0xf1   : > { %v1448_v20 = vshll.u32 %v1444_v36, 16  ;;  %v1446_v43 = vshrl.u32 %v1444_v36, 16  ;;  %v1462_v37 = vrot.slane %v1460_v7, 1 }
  0xf3   : > { %v1450_v24 = vrot.slane %v1448_v20, 1 }
  0xf4   : > { %1428 = vrot.lane.b32.xlu0 %v4666_v32, %s4093_s16  ;;  %1430 = vrot.lane.b32.xlu2 %v4668_v11, %s4094_s17 }
  0xf5   : > { %1284 = vrot.lane.b32.xlu1 %v4585_v40, %s4090_s13  ;;  %v591_v40 = vsel %vm589_vm2, %v588_v45, %v4425_v42 }
  0xf6   : > { %v4682_v12 = vpop.permute.xlu0 %994  ;;  %v4685_v19 = vpop.permute.xlu2 %1014  ;;  %v594_v4 = vsel %vm592_vm3, %v591_v40, %v4455_v52 }
  0xf7   : > { %v557_v21 = vpop.permute.xlu1 %556  ;;  %v597_v33 = vsel %vm5651_vm4, %v594_v4, %v4481_v5  ;;  %v4713_v5 = vor.u32 %v1450_v24, %v1446_v43 }
  0xf8   : > { %v600_v42 = vsel %vm5652_vm5, %v597_v33, %v4506_v25  ;;  %v1292_v25 = vpack.c.b16 %v4554_v53, %v4554_v53  ;;  %v1458_v53 = vshrl.u32 %v1456_v22, 16 }
  0xf9   : > { %v603_v52 = vsel %vm601_vm6, %v600_v42, %v4534_v46 }
  0xfa   : > { %v1463_v55 = vor.u32 %v1462_v37, %v1458_v53  ;;  %v3791_v53 = vld [vmem:[%s4162_s10 + $0x10c] sm:$0x1] }
  0xfc   : > { %1286 = vrot.lane.b32.xlu0 %v4589_v23, %s4093_s16  ;;  %1288 = vrot.lane.b32.xlu2 %v4587_v44, %s4094_s17  ;;  %v606_v44 = vsel %vm5650_vm7, %v603_v52, %v4578_v34 }
  0xfd   : > { %1435 = vrot.lane.b32.xlu1 %v1434_v2, %s4095_s18  ;;  %v609_v1 = vsel %vm5648_vm8, %v606_v44, %v4597_v49 }
  0xfe   : > { %v997_v27 = vpop.permute.xlu0 %996  ;;  %v4705_v18 = vpop.permute.xlu2 %1134  ;;  %v612_v39 = vsel %vm5644_vm9, %v609_v1, %v4618_v58 }
  0xff   : > { %v569_v23 = vpop.permute.xlu1 %568  ;;  %v615_v46 = vsel %vm5647_vm10, %v612_v39, %v4646_v35  ;;  %v3786_v35 = vld [vmem:[%s4162_s10 + $0xf4] sm:$0x1] }
 0x100   : > { %v618_v34 = vsel %vm5646_vm11, %v615_v46, %v552_v61  ;;  %v1477_v17 = vunpack.c.l.b16 %v3786_v35  ;;  %v3785_v61 = vld [vmem:[%s4162_s10 + $0xf8] sm:$0xf]  ;;  %v3789_v46 = vld [vmem:[%s4162_s10 + $0x108] sm:$0xf]  ;;  %v328_v35 = vld [vmem:[#allocation2 + $0x18] sm:$0x7] }
 0x101   : > { %v621_v49 = vsel %vm5642_vm12, %v618_v34, %v557_v21  ;;  %v1472_v10 = vunpack.c.l.b16 %v3785_v61  ;;  %v4745_v21 = vpack.c.b16 %v1467_v51, %v1467_v51 }
 0x102   : > { %v624_v58 = vsel %vm5643_vm13, %v621_v49, %v569_v23  ;;  %v1478_v6 = vpack.c.b16 %v1477_v17, %v1467_v51 }
 0x103   : > { %v4747_v20 = vpack.c.b16 %v1472_v10, %v1472_v10 }
 0x104   : > { %1440 = vrot.lane.b32.xlu0 %v4711_v9, %s4096_s19  ;;  %1452 = vrot.lane.b32.xlu2 %v4713_v5, %s4097_s20  ;;  %v1482_v26 = vshll.u32 %v1478_v6, 16  ;;  %v1480_v2 = vshrl.u32 %v1478_v6, 16 }
 0x105   : > { %1293 = vrot.lane.b32.xlu1 %v1292_v25, %s4095_s18 }
 0x106   : > { %v581_v14 = vpop.permute.xlu0 %580  ;;  %v4732_v47 = vpop.permute.xlu2 %1048  ;;  %v1484_v63 = vrot.slane %v1482_v26, 1 }
 0x107   : > { %v1001_v48 = vpop.permute.xlu1 %1000  ;;  %v627_v3 = vsel %vm5645_vm14, %v624_v58, %v581_v14 }
 0x108   : > { %688 = vmatmul.bf16.vlgmr.msra.gmra.mxu0 %v627_v3  ;;  %v1485_v33 = vor.u32 %v1484_v63, %v1480_v2  ;;  %v1580_v3 = vunpack.c.l.b16 %v3789_v46 }
 0x10a   : > { %v1581_v2 = vpack.c.b16 %v1580_v3, %v1580_v3 }
 0x10c   : > { %1298 = vrot.lane.b32.xlu0 %v4599_v8, %s4096_s19  ;;  %1310 = vrot.lane.b32.xlu2 %v4601_v60, %s4097_s20  ;;  %v1490_v8 = vpack.c.b16 %v1489_v38, %v1472_v10  ;;  %v1076_v60 = vsel %vm582_vm0, %v4243_v29, %v4662_v50  ;;  %v3794_v38 = vld [vmem:[%s4162_s10 + $0x114] sm:$0x1] }
 0x10d   : > { %1464 = vrot.lane.b32.xlu1 %v1463_v55, %s4098_s21  ;;  %v1078_v45 = vsel %vm586_vm1, %v1076_v60, %v4682_v12 }
 0x10e   : > { %v1005_v16 = vpop.permute.xlu0 %1004  ;;  %v4743_v15 = vpop.permute.xlu2 %1140  ;;  %v1080_v4 = vsel %vm589_vm2, %v1078_v45, %v997_v27  ;;  %v1494_v24 = vshll.u32 %v1490_v8, 16 }
 0x10f   : > { %v1010_v36 = vpop.permute.xlu1 %1009  ;;  %v1082_v22 = vsel %vm592_vm3, %v1080_v4, %v4648_v30  ;;  %v1619_v4 = vunpack.c.l.b16 %v3794_v38 }
 0x110   : > { %v1084_v29 = vsel %vm5651_vm4, %v1082_v22, %v1001_v48  ;;  %v1496_v50 = vrot.slane %v1494_v24, 1 }
 0x111   : > { %v1086_v12 = vsel %vm5652_vm5, %v1084_v29, %v4664_v57 }
 0x112   : > { %v1088_v30 = vsel %vm601_vm6, %v1086_v12, %v1005_v16 }
 0x114   : > { %1469 = vrot.lane.b32.xlu0 %v4745_v21, %s4099_s22  ;;  %1474 = vrot.lane.b32.xlu2 %v4747_v20, %s4100_s23 }
 0x115   : > { %1322 = vrot.lane.b32.xlu1 %v4624_v13, %s4098_s21  ;;  %v1492_v13 = vshrl.u32 %v1490_v8, 16 }
 0x116   : > { %v1027_v40 = vpop.permute.xlu0 %1026  ;;  %v4760_v28 = vpop.permute.xlu2 %1144 }
 0x117   : > { %v1039_v43 = vpop.permute.xlu1 %1038  ;;  %v4776_v23 = vor.u32 %v1496_v50, %v1492_v13  ;;  %v3795_v13 = vld [vmem:[%s4162_s10 + $0x11c] sm:$0x1] }
 0x11c   : > { %1327 = vrot.lane.b32.xlu0 %v4626_v41, %s4099_s22  ;;  %1332 = vrot.lane.b32.xlu2 %v4653_v31, %s4100_s23  ;;  %v1090_v41 = vsel %vm5650_vm7, %v1088_v30, %v1010_v36  ;;  %v3792_v36 = vld [vmem:[%s4162_s10 + $0x110] sm:$0xf]  ;;  %v1631_v30 = vunpack.c.l.b16 %v3795_v13 }
 0x11d   : > { %1486 = vrot.lane.b32.xlu1 %v1485_v33, %s4101_s24  ;;  %v1092_v31 = vsel %vm5648_vm8, %v1090_v41, %v4685_v19  ;;  %v3790_v19 = vld [vmem:[%s4162_s10 + $0x104] sm:$0x1] }
 0x11e   : > { %v1044_v42 = vpop.permute.xlu0 %1043  ;;  %v4773_v27 = vpop.permute.xlu2 %1156  ;;  %v1094_v57 = vsel %vm5644_vm9, %v1092_v31, %v1027_v40  ;;  %v1585_v48 = vunpack.c.l.b16 %v3790_v19  ;;  %v1609_v40 = vunpack.c.l.b16 %v3792_v36 }
 0x11f   : > { %v1137_v52 = vpop.permute.xlu1 %1136  ;;  %v1096_v7 = vsel %vm5647_vm10, %v1094_v57, %v1039_v43 }
 0x120   : > { %v1098_v39 = vsel %vm5646_vm11, %v1096_v7, %v1044_v42  ;;  %v1620_v29 = vpack.c.b16 %v1619_v4, %v1609_v40  ;;  %v1610_v57 = vpack.c.b16 %v1609_v40, %v1609_v40 }
 0x122   : > { %v1624_v7 = vshll.u32 %v1620_v29, 16 }
 0x124   : > { %1498 = vrot.lane.b32.xlu0 %v4776_v23, %s4102_s25  ;;  %1356 = vrot.lane.b32.xlu2 %v4668_v11, %s4102_s25  ;;  %v1100_v11 = vsel %vm5642_vm12, %v1098_v39, %v4732_v47  ;;  %vm308_vm12 = vsmask.f32 2304  ;;  %v1626_v46 = vrot.slane %v1624_v7, 1  ;;  %v316_v7 = vld [vmem:[#allocation2 + $0x8] sm:$0x7] }
 0x125   : > { %1344 = vrot.lane.b32.xlu1 %v4666_v32, %s4101_s24  ;;  %v3788_v32 = vld [vmem:[%s4162_s10 + $0x100] sm:$0xf] }
 0x126   : > { %v1139_v44 = vpop.permute.xlu0 %1138  ;;  %v4788_v1 = vpop.permute.xlu2 %1185  ;;  %v1575_v47 = vunpack.c.l.b16 %v3788_v32 }
 0x127   : > { %v1061_v25 = vpop.permute.xlu1 %1060 }
 0x128   : > { %v1102_v34 = vsel %vm5643_vm13, %v1100_v11, %v1061_v25  ;;  %vm4812_vm13 = vmand %vm307_vm15, %vm308_vm12  ;;  %v1586_v6 = vpack.c.b16 %v1585_v48, %v1575_v47  ;;  %vm5655_vm12 = vcmask 850944  }
 0x129   : > { %v329_v17 = vsel %vm4812_vm13, 0, %v328_v35 }
 0x12a   : > { %330 = vst [vmem:[#allocation2 + $0x18] sm:$0x7] %v329_v17  ;;  %v1590_v60 = vshll.u32 %v1586_v6, 16  ;;  %v1588_v24 = vshrl.u32 %v1586_v6, 16 }
 0x12c   : > { %1560 = vrot.lane.b32.xlu0 %v4711_v9, %s4089_s12  ;;  %1564 = vrot.lane.b32.xlu2 %v1463_v55, %s4091_s14  ;;  %v1218_v9 = vsel %vm582_vm0, %v4344_v56, %v4705_v18  ;;  %v331_v55 = vld [vmem:[#allocation2 + $0x1c] sm:$0x7]  ;;  %v1597_v18 = vunpack.c.l.b16 %v3791_v53 }
 0x12d   : > { %1562 = vrot.lane.b32.xlu1 %v4713_v5, %s4092_s15  ;;  %v1220_v5 = vsel %vm586_vm1, %v1218_v9, %v1137_v52  ;;  %v332_v51 = vsel %vm4812_vm13, 0, %v331_v55  ;;  %v4870_v55 = vld [vmem:[%s5635_s2] ss:$0 sm:$0xff] }
 0x12e   : > { %v1073_v49 = vpop.permute.xlu0 %1072  ;;  %v4804_v37 = vpop.permute.xlu2 %1214  ;;  %v1222_v56 = vsel %vm589_vm2, %v1220_v5, %v1139_v44  ;;  %333 = vst [vmem:[#allocation2 + $0x1c] sm:$0x7] %v332_v51  ;;  %v1598_v16 = vpack.c.b16 %v1597_v18, %v1580_v3  ;;  %v325_v18 = vld [vmem:[#allocation2 + $0x14] sm:$0x7] }
 0x12f   : > { %v1143_v58 = vpop.permute.xlu1 %1142  ;;  %v1104_v14 = vsel %vm5645_vm14, %v1102_v34, %v1073_v49  ;;  %v1224_v61 = vsel %vm592_vm3, %v1222_v56, %v4743_v15  ;;  %v322_v56 = vld [vmem:[#allocation2 + $0x10] sm:$0x7]  ;;  %v326_v17 = vsel %vm4812_vm13, 0, %v325_v18 }
 0x130   : > { %1114 = vmatmul.bf16.vlgmr.msra.gmra.mxu3 %v1104_v14  ;;  %v1226_v59 = vsel %vm5651_vm4, %v1224_v61, %v1143_v58  ;;  %v1602_v45 = vshll.u32 %v1598_v16, 16  ;;  %v313_v61 = vld [vmem:[#allocation2 + $0x4] sm:$0x7]  ;;  %327 = vst [vmem:[#allocation2 + $0x14] sm:$0x7] %v326_v17 }
 0x131   : > { %v1228_v15 = vsel %vm5652_vm5, %v1226_v59, %v4760_v28  ;;  %v1600_v28 = vshrl.u32 %v1598_v16, 16  ;;  %v314_v59 = vsel %vm4812_vm13, 0, %v313_v61  ;;  %v1840_v17 = vld [vmem:[#allocation2 + $0x18] sm:$0x7] }
 0x132   : > { %v1604_v22 = vrot.slane %v1602_v45, 1  ;;  %315 = vst [vmem:[#allocation2 + $0x4] sm:$0x7] %v314_v59 }
 0x134   : > { %1566 = vrot.lane.b32.xlu0 %v4745_v21, %s4088_s11  ;;  %1570 = vrot.lane.b32.xlu2 %v1485_v33, %s4093_s16  ;;  %v1576_v21 = vpack.c.b16 %v1575_v47, %v1575_v47  ;;  %v1592_v33 = vrot.slane %v1590_v60, 1  ;;  %v1605_v25 = vor.u32 %v1604_v22, %v1600_v28 }
 0x135   : > { %1568 = vrot.lane.b32.xlu1 %v4747_v20, %s4090_s13  ;;  %v3793_v20 = vld [vmem:[%s4162_s10 + $0x118] sm:$0xf] }
 0x136   : > { %v1147_v10 = vpop.permute.xlu0 %1146  ;;  %v4831_v26 = vpop.permute.xlu2 %1276  ;;  %v1614_v12 = vunpack.c.l.b16 %v3793_v20  ;;  %v1593_v31 = vor.u32 %v1592_v33, %v1588_v24 }
 0x137   : > { %v1152_v8 = vpop.permute.xlu1 %1151  ;;  %v1230_v63 = vsel %vm601_vm6, %v1228_v15, %v1147_v10 }
 0x138   : > { %v1232_v43 = vsel %vm5650_vm7, %v1230_v63, %v1152_v8  ;;  %v1632_v44 = vpack.c.b16 %v1631_v30, %v1614_v12  ;;  %v1615_v14 = vpack.c.b16 %v1614_v12, %v1614_v12 }
 0x139   : > { %v1234_v52 = vsel %vm5648_vm8, %v1232_v43, %v4773_v27  ;;  %v1622_v27 = vshrl.u32 %v1620_v29, 16  ;;  %vm1711_vm8 = vcmask 1041408  }
 0x13a   : > { %v1636_v39 = vshll.u32 %v1632_v44, 16  ;;  %v1634_v32 = vshrl.u32 %v1632_v44, 16 }
 0x13b   : > { %v1627_v48 = vor.u32 %v1626_v46, %v1622_v27  ;;  %v317_v27 = vsel %vm4812_vm13, 0, %v316_v7 }
 0x13c   : > { %1572 = vrot.lane.b32.xlu0 %v4776_v23, %s4094_s17  ;;  %1582 = vrot.lane.b32.xlu2 %v1581_v2, %s4096_s19  ;;  %v1638_v19 = vrot.slane %v1636_v39, 1  ;;  %v2118_v2 = vld [vmem:[#allocation2 + $0x4] sm:$0x3]  ;;  %v319_v39 = vld [vmem:[#allocation2 + $0xc] sm:$0x7] }
 0x13d   : > { %1577 = vrot.lane.b32.xlu1 %v1576_v21, %s4095_s18  ;;  %v2134_v45 = vunpack.c.l.b16 %v2118_v2  ;;  %v320_v46 = vsel %vm4812_vm13, 0, %v319_v39  ;;  %318 = vst [vmem:[#allocation2 + $0x8] sm:$0x7] %v317_v27 }
 0x13e   : > { %v1169_v50 = vpop.permute.xlu0 %1168  ;;  %v4843_v42 = vpop.permute.xlu2 %1424  ;;  %v1639_v5 = vor.u32 %v1638_v19, %v1634_v32  ;;  %321 = vst [vmem:[#allocation2 + $0xc] sm:$0x7] %v320_v46 }
 0x13f   : > { %v1181_v41 = vpop.permute.xlu1 %1180  ;;  %v1236_v23 = vsel %vm5644_vm9, %v1234_v52, %v1169_v50  ;;  %vm5656_vm9 = vcmask 916480   ;;  %v2135_v43 = vpack.c.b16 %v2134_v45, %v2134_v45 }
 0x140   : > { %v1238_v11 = vsel %vm5647_vm10, %v1236_v23, %v1181_v41 }
 0x141   : > { %v1240_v34 = vsel %vm5646_vm11, %v1238_v11, %v4788_v1  ;;  %vm5649_vm11 = vsmask.f32 1280  ;;  %v2120_v11 = vld [vmem:[#allocation2 + $0x4] sm:$0x7] }
 0x144   : > { %1594 = vrot.lane.b32.xlu0 %v1593_v31, %s4097_s20  ;;  %1611 = vrot.lane.b32.xlu2 %v1610_v57, %s4099_s22 }
 0x145   : > { %1606 = vrot.lane.b32.xlu1 %v1605_v25, %s4098_s21  ;;  %s3993_s21 = sshll.u32 %s5737_s28, 2 }
 0x146   : > { %v1191_v49 = vpop.permute.xlu0 %1190  ;;  %v4856_v35 = vpop.permute.xlu2 %1282 }
 0x147   : > { %v1203_v53 = vpop.permute.xlu1 %1202  ;;  %v1242_v9 = vsel %vm5655_vm12, %v1240_v34, %v1191_v49  ;;  %vm1702_vm12 = vcmask 1040384   ;;  %v2151_v34 = vunpack.c.l.b16 %v2120_v11 }
 0x148   : > { %v1244_v58 = vsel %vm5656_vm9, %v1242_v9, %v1203_v53 }
 0x149   : > { %v1246_v47 = vsel %vm5645_vm14, %v1244_v58, %v4804_v37  ;;  %v323_v37 = vsel %vm4812_vm13, 0, %v322_v56  ;;  %vm1703_vm14 = vsmask.f32 256  ;;  %v2152_v58 = vpack.c.b16 %v2151_v34, %v2151_v34 }
 0x14a   : > { %1256 = vmatmul.bf16.vlgmr.msrb.gmra.mxu0 %v1246_v47  ;;  %324 = vst [vmem:[#allocation2 + $0x10] sm:$0x7] %v323_v37  ;;  %vm4888_vm10 = vmand %vm1702_vm12, %vm1703_vm14  ;;  %vm1728_vm14 = vcmask 123904  }
 0x14b   : > { %v2156_v47 = vshll.u32 %v2152_v58, 16  ;;  %v2154_v61 = vshrl.u32 %v2152_v58, 16 }
 0x14c   : > { %1616 = vrot.lane.b32.xlu0 %v1615_v14, %s4100_s23  ;;  %1640 = vrot.lane.b32.xlu2 %v1639_v5, %s4102_s25 }
 0x14d   : > { %1628 = vrot.lane.b32.xlu1 %v1627_v48, %s4101_s24 }
 0x14e   : > { %v4863_v1 = vpop.permute.xlu0 %1418  ;;  %v4876_v51 = vpop.permute.xlu2 %1430 }
 0x14f   : > { %v4865_v3 = vpop.permute.xlu1 %1420 }
 0x153   : > { %v973_v6 = vpop.f32.mrf.mxu2 }
 0x154   : > { %v974_v16 = vadd.f32 %v4870_v55, %v973_v6  ;;  %2136 = vrot.lane.b32.xlu0 %v2135_v43, %s4092_s15  ;;  %v2158_v6 = vrot.slane %v2156_v47, 1 }
 0x156   : > { %vm977_vm9 = vcmp.ge.f32.partialorder %v974_v16, 0.0  ;;  %v978_v10 = vmul.f32 0.01, %v974_v16  ;;  %v4881_v36 = vpop.permute.xlu0 %1422  ;;  %v4885_v63 = vpop.permute.xlu2 %1288 }
 0x157   : > { %v4883_v38 = vpop.permute.xlu1 %1278 }
 0x158   : > { %v979_v8 = vsel %vm977_vm9, %v974_v16, %v978_v10  ;;  %vm4898_vm9 = vmand %vm1711_vm8, %vm5649_vm11  ;;  %vm1742_vm8 = vsmask.f32 2306 }
 0x159   : > { %v1795_v15 = vpack.c.bf16 %v979_v8, %v979_v8  ;;  %vm4925_vm7 = vmand %vm307_vm15, %vm1742_vm8  ;;  %vm5663_vm15 = vcmask 523264   ;;  %vm5664_vm8 = vcmask 588800  }
 0x15b   : > { %v1797_v21 = vunpack.c.l.b16 %v1795_v15  ;;  %v975_v60 = vpop.f32.mrf.mxu2 }
 0x15d   : > { %v1798_v40 = vpack.c.b16 %v1797_v21, %v1797_v21 }
 0x15e   : > { %v4892_v20 = vpop.permute.xlu0 %1280  ;;  %v4915_v19 = vpop.permute.xlu2 %1452 }
 0x15f   : > { %v1800_v24 = vshll.u32 %v1798_v40, 16  ;;  %v1804_v33 = vrot.slane %v1798_v40, 1  ;;  %v1813_v28 = vshrl.u32 %v1798_v40, 16  ;;  %v4894_v22 = vpop.permute.xlu1 %1426  ;;  %v1818_v30 = vrot.slane %v1798_v40, 2 }
 0x161   : > { %v1802_v13 = vrot.slane %v1800_v24, 1  ;;  %v1817_v50 = vrot.slane %v1813_v28, 1  ;;  %v1820_v12 = vsel %vm4888_vm10, %v1813_v28, %v1804_v33  ;;  %v1805_v52 = vrot.slane %v1800_v24, 2 }
 0x163   : > { %v1807_v41 = vsel %vm4888_vm10, %v1795_v15, %v1802_v13  ;;  %v1823_v23 = vsel %vm1702_vm12, %v1820_v12, %v1817_v50  ;;  %v2159_v15 = vor.u32 %v2158_v6, %v2154_v61  ;;  %v310_v13 = vld [vmem:[#allocation2] sm:$0x7]  ;;  %v1792_v61 = vld [vmem:[#allocation2 + $0x10] sm:$0x7]  ;;  %v4078_v6 = vld [vmem:[%s4162_s10 + $0xa0] sm:$0xf] }
 0x164   : > { %v1810_v31 = vsel %vm1702_vm12, %v1807_v41, %v1804_v33  ;;  %v1825_v57 = vsel %vm4898_vm9, %v1823_v23, %v1818_v30  ;;  %v311_v50 = vsel %vm4812_vm13, 0, %v310_v13 }
 0x165   : > { %v1812_v44 = vsel %vm4898_vm9, %v1810_v31, %v1805_v52  ;;  %v1829_v25 = vunpack.c.l.b16 %v1825_v57  ;;  %2160 = vrot.lane.b32.xlu2 %v2159_v15, %s4093_s16  ;;  %312 = vst [vmem:[#allocation2] sm:$0x7] %v311_v50 }
 0x166   : > { %1827 = vst.msk [vmem:[#allocation2 + $0x1c] sm:$0x3] %vm1728_vm14, %v1812_v44  ;;  %v4913_v32 = vpop.permute.xlu0 %1428  ;;  %v4935_v40 = vpop.permute.xlu2 %1310 }
 0x167   : > { %v1830_v49 = vpack.c.b16 %v1829_v25, %v1829_v25  ;;  %v4921_v53 = vpop.permute.xlu1 %1284 }
 0x168   : > { %v831_v9 = vpop.f32.mrf.mxu1 }
 0x169   : > { %v1832_v14 = vshrl.u32 %v1830_v49, 16  ;;  %v832_v5 = vadd.f32 %v4870_v55, %v831_v9  ;;  %v1835_v56 = vshll.u32 %v1830_v49, 16  ;;  %v1502_v9 = vsel %vm582_vm0, %v4537_v62, %v4863_v1 }
 0x16b   : > { %v1834_v48 = vrot.slane %v1832_v14, 7  ;;  %vm835_vm11 = vcmp.ge.f32.partialorder %v832_v5, 0.0  ;;  %v836_v18 = vmul.f32 0.01, %v832_v5 }
 0x16c   : > { %v2119_v49 = vld [vmem:[#allocation2] sm:$0x7] }
 0x16d   : > { %v1837_v59 = vor.u32 %v1835_v56, %v1834_v48  ;;  %v837_v16 = vsel %vm835_vm11, %v832_v5, %v836_v18  ;;  %v2139_v5 = vunpack.c.l.b16 %v2119_v49 }
 0x16e   : > { %v1747_v10 = vpack.c.bf16 %v837_v16, %v837_v16  ;;  %v4929_v8 = vpop.permute.xlu0 %1286  ;;  %v4950_v46 = vpop.permute.xlu2 %1474 }
 0x16f   : > { %v1841_v21 = vsel %vm4925_vm7, %v1837_v59, %v1840_v17  ;;  %v4933_v60 = vpop.permute.xlu1 %1435  ;;  %v2140_v18 = vpack.c.b16 %v2139_v5, %v2139_v5  ;;  %v1504_v17 = vsel %vm586_vm1, %v1502_v9, %v4865_v3  ;;  %v1360_v59 = vsel %vm582_vm0, %v4078_v6, %v4831_v26 }
 0x170   : > { %1842 = vst [vmem:[#allocation2 + $0x18] sm:$0x7] %v1841_v21  ;;  %v1749_v2 = vunpack.c.l.b16 %v1747_v10  ;;  %v833_v45 = vpop.f32.mrf.mxu1  ;;  %v1506_v16 = vsel %vm589_vm2, %v1504_v17, %v4881_v36  ;;  %v1362_v15 = vsel %vm586_vm1, %v1360_v59, %v4883_v38 }
 0x171   : > { %v2144_v1 = vshll.u32 %v2140_v18, 16  ;;  %v1508_v36 = vsel %vm592_vm3, %v1506_v16, %v4843_v42 }
 0x172   : > { %v1750_v43 = vpack.c.b16 %v1749_v2, %v1749_v2  ;;  %v1364_v2 = vsel %vm589_vm2, %v1362_v15, %v4892_v20  ;;  %v1510_v38 = vsel %vm5651_vm4, %v1508_v36, %v4894_v22 }
 0x173   : > { %v2146_v26 = vrot.slane %v2144_v1, 1  ;;  %v1366_v50 = vsel %vm592_vm3, %v1364_v2, %v4856_v35 }
 0x174   : > { %v1752_v24 = vshll.u32 %v1750_v43, 16  ;;  %v1756_v33 = vrot.slane %v1750_v43, 1  ;;  %v1765_v28 = vshrl.u32 %v1750_v43, 16  ;;  %v1770_v23 = vrot.slane %v1750_v43, 2 }
 0x175   : > { %v2142_v43 = vshrl.u32 %v2140_v18, 16  ;;  %v1368_v42 = vsel %vm5651_vm4, %v1366_v50, %v4921_v53  ;;  %vm5665_vm4 = vmmov %vm5663_vm15 }
 0x176   : > { %v1754_v12 = vrot.slane %v1752_v24, 1  ;;  %v1769_v30 = vrot.slane %v1765_v28, 1  ;;  %v1772_v52 = vsel %vm4888_vm10, %v1765_v28, %v1756_v33  ;;  %v1441_v41 = vpop.permute.xlu0 %1440  ;;  %v1757_v57 = vrot.slane %v1752_v24, 2  ;;  %v4969_v45 = vpop.permute.xlu2 %1332 }
 0x177   : > { %v1294_v31 = vpop.permute.xlu1 %1293  ;;  %v2147_v20 = vor.u32 %v2146_v26, %v2142_v43  ;;  %v1370_v22 = vsel %vm5652_vm5, %v1368_v42, %v4929_v8 }
 0x178   : > { %v1759_v44 = vsel %vm4888_vm10, %v1747_v10, %v1754_v12  ;;  %v1775_v25 = vsel %vm1702_vm12, %v1772_v52, %v1769_v30  ;;  %v1512_v12 = vsel %vm5652_vm5, %v1510_v38, %v4913_v32  ;;  %vm5666_vm5 = vmmov %vm5664_vm8 }
 0x179   : > { %v1762_v7 = vsel %vm1702_vm12, %v1759_v44, %v1756_v33  ;;  %v1777_v39 = vsel %vm4898_vm9, %v1775_v25, %v1770_v23  ;;  %2148 = vrot.lane.b32.xlu1 %v2147_v20, %s4088_s11  ;;  %v1514_v23 = vsel %vm601_vm6, %v1512_v12, %v4876_v51  ;;  %v1372_v44 = vsel %vm601_vm6, %v1370_v22, %v4885_v63 }
 0x17a   : > { %v1764_v11 = vsel %vm4898_vm9, %v1762_v7, %v1757_v57  ;;  %v1781_v27 = vunpack.c.l.b16 %v1777_v39  ;;  %v1516_v32 = vsel %vm5663_vm15, %v1514_v23, %v4933_v60  ;;  %v1374_v7 = vsel %vm5665_vm4, %v1372_v44, %v1294_v31 }
 0x17b   : > { %1779 = vst.msk [vmem:[#allocation2 + $0x14] sm:$0x3] %vm1728_vm14, %v1764_v11  ;;  %v1518_v53 = vsel %vm5664_vm8, %v1516_v32, %v1441_v41  ;;  %vm5668_vm15 = vcmask 719872  }
 0x17c   : > { %v1782_v34 = vpack.c.b16 %v1781_v27, %v1781_v27  ;;  %vm5670_vm4 = vmmov %vm5668_vm15 }
 0x17e   : > { %v1784_v58 = vshrl.u32 %v1782_v34, 16  ;;  %v1299_v14 = vpop.permute.xlu0 %1298  ;;  %v1787_v56 = vshll.u32 %v1782_v34, 16  ;;  %v1357_v51 = vpop.permute.xlu2 %1356 }
 0x17f   : > { %v1465_v47 = vpop.permute.xlu1 %1464  ;;  %v1376_v8 = vsel %vm5666_vm5, %v1374_v7, %v1299_v14  ;;  %vm5671_vm5 = vcmask 785408  }
 0x180   : > { %v1786_v48 = vrot.slane %v1784_v58, 7 }
 0x182   : > { %v1789_v10 = vor.u32 %v1787_v56, %v1786_v48  ;;  %v2126_v62 = vld [vmem:[#allocation2 + $0x14] sm:$0x3]  ;;  %v334_v56 = vld [vmem:[#allocation2 + $0x20] sm:$0x7] }
 0x183   : > { %v2197_v21 = vunpack.c.l.b16 %v2126_v62 }
 0x184   : > { %v1793_v3 = vsel %vm4925_vm7, %v1789_v10, %v1792_v61  ;;  %v337_v61 = vld [vmem:[#allocation2 + $0x24] sm:$0x7] }
 0x185   : > { %1794 = vst [vmem:[#allocation2 + $0x10] sm:$0x7] %v1793_v3  ;;  %v689_v24 = vpop.f32.mrf.mxu0  ;;  %v2198_v33 = vpack.c.b16 %v2197_v21, %v2197_v21  ;;  %v338_v1 = vsel %vm4812_vm13, 0, %v337_v61 }
 0x186   : > { %v690_v28 = vadd.f32 %v4870_v55, %v689_v24  ;;  %v1470_v13 = vpop.permute.xlu0 %1469  ;;  %339 = vst [vmem:[#allocation2 + $0x24] sm:$0x7] %v338_v1  ;;  %v1565_v12 = vpop.permute.xlu2 %1564 }
 0x187   : > { %v1323_v30 = vpop.permute.xlu1 %1322  ;;  %2199 = vrot.lane.b32.xlu0 %v2198_v33, %s4092_s15 }
 0x188   : > { %vm693_vm11 = vcmp.ge.f32.partialorder %v690_v28, 0.0  ;;  %v694_v52 = vmul.f32 0.01, %v690_v28 }
 0x18a   : > { %v695_v35 = vsel %vm693_vm11, %v690_v28, %v694_v52  ;;  %vm5667_vm11 = vcmask 654336  }
 0x18b   : > { %v1690_v57 = vpack.c.bf16 %v695_v35, %v695_v35  ;;  %v1520_v49 = vsel %vm5667_vm11, %v1518_v53, %v4915_v19  ;;  %vm5669_vm8 = vmmov %vm5667_vm11  ;;  %v335_v19 = vsel %vm4812_vm13, 0, %v334_v56  ;;  %v1744_v35 = vld [vmem:[#allocation2 + $0x8] sm:$0x7] }
 0x18c   : > { %v2127_v25 = vld [vmem:[#allocation2 + $0x10] sm:$0x7]  ;;  %v1522_v63 = vsel %vm5668_vm15, %v1520_v49, %v1465_v47  ;;  %v1378_v41 = vsel %vm5669_vm8, %v1376_v8, %v4935_v40  ;;  %vm5672_vm11 = vmmov %vm5671_vm5  ;;  %336 = vst [vmem:[#allocation2 + $0x20] sm:$0x7] %v335_v19  ;;  %vm5673_vm15 = vcmask 850944   ;;  %vm5674_vm8 = vcmask 916480  }
 0x18d   : > { %v1692_v39 = vunpack.c.l.b16 %v1690_v57  ;;  %v691_v11 = vpop.f32.mrf.mxu0  ;;  %v2202_v27 = vunpack.c.l.b16 %v2127_v25  ;;  %v1380_v18 = vsel %vm5670_vm4, %v1378_v41, %v1323_v30  ;;  %v1524_v14 = vsel %vm5671_vm5, %v1522_v63, %v1470_v13  ;;  %vm5675_vm4 = vmmov %vm5673_vm15  ;;  %v2131_v25 = vld [vmem:[#allocation2 + $0x18] sm:$0x7] }
 0x18e   : > { %v1328_v34 = vpop.permute.xlu0 %1327  ;;  %v1526_v3 = vsel %vm5673_vm15, %v1524_v14, %v4950_v46  ;;  %vm5676_vm5 = vcmask 982016   ;;  %v2129_v49 = vld [vmem:[#allocation2 + $0x18] sm:$0x3] }
 0x18f   : > { %v1693_v60 = vpack.c.b16 %v1692_v39, %v1692_v39  ;;  %v1487_v9 = vpop.permute.xlu1 %1486  ;;  %v2203_v58 = vpack.c.b16 %v2202_v27, %v2202_v27  ;;  %v1382_v40 = vsel %vm5672_vm11, %v1380_v18, %v1328_v34  ;;  %vm5677_vm11 = vmmov %vm5674_vm8  ;;  %v2128_v39 = vld [vmem:[#allocation2 + $0x14] sm:$0x7]  ;;  %v1571_v34 = vpop.permute.xlu2 %1570 }
 0x190   : > { %v1528_v36 = vsel %vm5674_vm8, %v1526_v3, %v1487_v9  ;;  %v1384_v13 = vsel %vm5675_vm4, %v1382_v40, %v4969_v45  ;;  %vm5678_vm15 = vmmov %vm5676_vm5  ;;  %vm5681_vm8 = vcmask 523264  }
 0x191   : > { %v1695_v5 = vshll.u32 %v1693_v60, 16  ;;  %v1699_v31 = vrot.slane %v1693_v60, 1  ;;  %v1714_v48 = vshrl.u32 %v1693_v60, 16  ;;  %v2207_v17 = vshll.u32 %v2203_v58, 16 }
 0x192   : > { %v1719_v16 = vrot.slane %v1693_v60, 2  ;;  %v2205_v10 = vshrl.u32 %v2203_v58, 16  ;;  %v2214_v60 = vunpack.c.l.b16 %v2128_v39  ;;  %v2226_v58 = vunpack.c.l.b16 %v2129_v49 }
 0x193   : > { %v1697_v6 = vrot.slane %v1695_v5, 1  ;;  %v1718_v59 = vrot.slane %v1714_v48, 1  ;;  %v1721_v47 = vsel %vm4888_vm10, %v1714_v48, %v1699_v31  ;;  %v2209_v62 = vrot.slane %v2207_v17, 1 }
 0x194   : > { %v1700_v15 = vrot.slane %v1695_v5, 2  ;;  %v2227_v17 = vpack.c.b16 %v2226_v58, %v2226_v58 }
 0x195   : > { %v1705_v21 = vsel %vm4888_vm10, %v1690_v57, %v1697_v6  ;;  %v1724_v2 = vsel %vm1702_vm12, %v1721_v47, %v1718_v59  ;;  %v2210_v24 = vor.u32 %v2209_v62, %v2205_v10 }
 0x196   : > { %v1709_v43 = vsel %vm1702_vm12, %v1705_v21, %v1699_v31  ;;  %v1726_v26 = vsel %vm4898_vm9, %v1724_v2, %v1719_v16  ;;  %v1499_v33 = vpop.permute.xlu0 %1498  ;;  %v2215_v31 = vpack.c.b16 %v2214_v60, %v2214_v60 }
 0x197   : > { %v1713_v38 = vsel %vm4898_vm9, %v1709_v43, %v1700_v15  ;;  %v1731_v28 = vunpack.c.l.b16 %v1726_v26  ;;  %v1345_v20 = vpop.permute.xlu1 %1344  ;;  %v1530_v46 = vsel %vm5676_vm5, %v1528_v36, %v1499_v33  ;;  %2211 = vrot.lane.b32.xlu2 %v2210_v24, %s4088_s11  ;;  %v1583_v16 = vpop.permute.xlu2 %1582  ;;  %v2132_v36 = vld [vmem:[#allocation2 + $0x1c] sm:$0x7]  ;;  %vm5683_vm5 = vcmask 654336  }
 0x198   : > { %1729 = vst.msk [vmem:[#allocation2 + $0xc] sm:$0x3] %vm1728_vm14, %v1713_v38  ;;  %v1386_v50 = vsel %vm5677_vm11, %v1384_v13, %v1345_v20  ;;  %1540 = vmatmul.bf16.vlgmr.msrb.gmra.mxu2 %v1530_v46  ;;  %v2219_v59 = vshll.u32 %v2215_v31, 16  ;;  %v343_v13 = vld [vmem:[#allocation2 + $0x2c] sm:$0x7]  ;;  %vm5684_vm11 = vcmask 719872  }
 0x199   : > { %v1732_v30 = vpack.c.b16 %v1731_v28, %v1731_v28  ;;  %v1388_v42 = vsel %vm5678_vm15, %v1386_v50, %v1357_v51  ;;  %v2236_v51 = vunpack.c.l.b16 %v2131_v25  ;;  %v340_v28 = vld [vmem:[#allocation2 + $0x28] sm:$0x7]  ;;  %v344_v50 = vsel %vm4812_vm13, 0, %v343_v13 }
 0x19a   : > { %1398 = vmatmul.bf16.vlgmr.msrb.gmra.mxu1 %v1388_v42  ;;  %v2221_v26 = vrot.slane %v2219_v59, 1  ;;  %v341_v46 = vsel %vm4812_vm13, 0, %v340_v28  ;;  %v2217_v42 = vshrl.u32 %v2215_v31, 16  ;;  %345 = vst [vmem:[#allocation2 + $0x2c] sm:$0x7] %v344_v50  ;;  %vm5685_vm15 = vcmask 785408  }
 0x19b   : > { %v1734_v52 = vshrl.u32 %v1732_v30, 16  ;;  %v1737_v23 = vshll.u32 %v1732_v30, 16  ;;  %v2237_v63 = vpack.c.b16 %v2236_v51, %v2236_v51  ;;  %342 = vst [vmem:[#allocation2 + $0x28] sm:$0x7] %v341_v46 }
 0x19d   : > { %v1736_v22 = vrot.slane %v1734_v52, 7  ;;  %v2241_v6 = vshll.u32 %v2237_v63, 16  ;;  %v2239_v43 = vshrl.u32 %v2237_v63, 16 }
 0x19e   : > { %v1561_v45 = vpop.permute.xlu0 %1560 }
 0x19f   : > { %v1739_v32 = vor.u32 %v1737_v23, %v1736_v22  ;;  %v1644_v57 = vsel %vm582_vm0, %v4671_v0, %v1561_v45  ;;  %v1563_v44 = vpop.permute.xlu1 %1562  ;;  %v2122_v53 = vld [vmem:[#allocation2 + $0xc] sm:$0x3]  ;;  %vm5679_vm0 = vcmask 326656   ;;  %v2243_v21 = vrot.slane %v2241_v6, 1  ;;  %v2130_v22 = vld [vmem:[#allocation2 + $0x1c] sm:$0x3]  ;;  %v1612_v25 = vpop.permute.xlu2 %1611 }
 0x1a0   : > { %v2168_v7 = vunpack.c.l.b16 %v2122_v53  ;;  %v1646_v27 = vsel %vm586_vm1, %v1644_v57, %v1563_v44  ;;  %v2124_v14 = vld [vmem:[#allocation2 + $0xc] sm:$0x7]  ;;  %v2248_v23 = vunpack.c.l.b16 %v2132_v36 }
 0x1a1   : > { %v1745_v11 = vsel %vm4925_vm7, %v1739_v32, %v1744_v35  ;;  %v1648_v9 = vsel %vm589_vm2, %v1646_v27, %v1565_v12  ;;  %vm5680_vm2 = vcmask 392192   ;;  %v2185_v62 = vunpack.c.l.b16 %v2124_v14 }
 0x1a2   : > { %1746 = vst [vmem:[#allocation2 + $0x8] sm:$0x7] %v1745_v11  ;;  %v2169_v8 = vpack.c.b16 %v2168_v7, %v2168_v7  ;;  %v2244_v30 = vor.u32 %v2243_v21, %v2239_v43  ;;  %v2222_v32 = vor.u32 %v2221_v26, %v2217_v42  ;;  %v2231_v7 = vunpack.c.l.b16 %v2130_v22 }
 0x1a3   : > { %v2186_v38 = vpack.c.b16 %v2185_v62, %v2185_v62 }
 0x1a4   : > { %2170 = vrot.lane.b32.xlu0 %v2169_v8, %s4097_s20  ;;  %v2232_v60 = vpack.c.b16 %v2231_v7, %v2231_v7 }
 0x1a5   : > { %v2190_v57 = vshll.u32 %v2186_v38, 16 }
 0x1a6   : > { %v1567_v0 = vpop.permute.xlu0 %1566 }
 0x1a7   : > { %v1650_v41 = vsel %vm592_vm3, %v1648_v9, %v1567_v0  ;;  %v1569_v5 = vpop.permute.xlu1 %1568  ;;  %v2192_v8 = vrot.slane %v2190_v57, 1  ;;  %v2188_v9 = vshrl.u32 %v2186_v38, 16 }
 0x1a8   : > { %v1652_v48 = vsel %vm5679_vm0, %v1650_v41, %v1569_v5  ;;  %vm5686_vm0 = vcmask 850944  }
 0x1a9   : > { %v2121_v56 = vld [vmem:[#allocation2 + $0x8] sm:$0x3]  ;;  %v1654_v47 = vsel %vm5680_vm2, %v1652_v48, %v1571_v34  ;;  %v2249_v34 = vpack.c.b16 %v2248_v23, %v2248_v23  ;;  %v2193_v63 = vor.u32 %v2192_v8, %v2188_v9  ;;  %vm5687_vm2 = vcmask 916480  }
 0x1aa   : > { %v2123_v18 = vld [vmem:[#allocation2 + $0x8] sm:$0x7]  ;;  %v2163_v19 = vunpack.c.l.b16 %v2121_v56 }
 0x1ab   : > { %v2173_v61 = vunpack.c.l.b16 %v2123_v18  ;;  %v2253_v41 = vshll.u32 %v2249_v34, 16  ;;  %v2251_v62 = vshrl.u32 %v2249_v34, 16 }
 0x1ac   : > { %2228 = vrot.lane.b32.xlu0 %v2227_v17, %s4095_s18  ;;  %v2164_v40 = vpack.c.b16 %v2163_v19, %v2163_v19 }
 0x1ad   : > { %v2174_v10 = vpack.c.b16 %v2173_v61, %v2173_v61  ;;  %v1641_v61 = vpop.permute.xlu2 %1640  ;;  %v2255_v6 = vrot.slane %v2253_v41, 1 }
 0x1ae   : > { %v1573_v1 = vpop.permute.xlu0 %1572  ;;  %2165 = vrot.lane.b32.xlu1 %v2164_v40, %s4095_s18 }
 0x1af   : > { %v2178_v15 = vshll.u32 %v2174_v10, 16  ;;  %v1656_v2 = vsel %vm601_vm6, %v1654_v47, %v1573_v1  ;;  %v1578_v3 = vpop.permute.xlu1 %1577  ;;  %v2176_v24 = vshrl.u32 %v2174_v10, 16  ;;  %vm5682_vm6 = vcmask 588800  }
 0x1b0   : > { %v1658_v20 = vsel %vm5681_vm8, %v1656_v2, %v1578_v3  ;;  %vm5688_vm8 = vcmask 982016   ;;  %v2256_v26 = vor.u32 %v2255_v6, %v2251_v62  ;;  %v1936_v62 = vld [vmem:[#allocation2 + $0x28] sm:$0x7] }
 0x1b1   : > { %v2180_v33 = vrot.slane %v2178_v15, 1  ;;  %v1660_v35 = vsel %vm5682_vm6, %v1658_v20, %v1583_v16 }
 0x1b3   : > { %v2181_v12 = vor.u32 %v2180_v33, %v2176_v24  ;;  %v1115_v52 = vpop.f32.mrf.mxu3 }
 0x1b4   : > { %v1116_v45 = vadd.f32 %v4870_v55, %v1115_v52  ;;  %2245 = vrot.lane.b32.xlu0 %v2244_v30, %s4099_s22 }
 0x1b5   : > { %2182 = vrot.lane.b32.xlu2 %v2181_v12, %s4099_s22  ;;  %v1888_v12 = vld [vmem:[#allocation2 + $0x20] sm:$0x7] }
 0x1b6   : > { %vm1119_vm4 = vcmp.ge.f32.partialorder %v1116_v45, 0.0  ;;  %v1120_v44 = vmul.f32 0.01, %v1116_v45  ;;  %v1595_v53 = vpop.permute.xlu0 %1594  ;;  %2223 = vrot.lane.b32.xlu1 %v2222_v32, %s4093_s16 }
 0x1b7   : > { %v1662_v39 = vsel %vm5683_vm5, %v1660_v35, %v1595_v53  ;;  %v1607_v11 = vpop.permute.xlu1 %1606 }
 0x1b8   : > { %v1121_v27 = vsel %vm1119_vm4, %v1116_v45, %v1120_v44  ;;  %v1664_v49 = vsel %vm5684_vm11, %v1662_v39, %v1607_v11  ;;  %vm5689_vm11 = vcmask 392192  }
 0x1b9   : > { %v1843_v51 = vpack.c.bf16 %v1121_v27, %v1121_v27  ;;  %v1666_v31 = vsel %vm5685_vm15, %v1664_v49, %v1612_v25  ;;  %vm5690_vm15 = vcmask 523264  }
 0x1bb   : > { %v1845_v0 = vunpack.c.l.b16 %v1843_v51  ;;  %v1117_v58 = vpop.f32.mrf.mxu3 }
 0x1bd   : > { %2233 = vrot.lane.b32.xlu2 %v2232_v60, %s4097_s20  ;;  %v1846_v5 = vpack.c.b16 %v1845_v0, %v1845_v0 }
 0x1be   : > { %v1617_v48 = vpop.permute.xlu0 %1616  ;;  %2194 = vrot.lane.b32.xlu1 %v2193_v63, %s4101_s24 }
 0x1bf   : > { %v1848_v56 = vshll.u32 %v1846_v5, 16  ;;  %v1852_v18 = vrot.slane %v1846_v5, 1  ;;  %v1861_v14 = vshrl.u32 %v1846_v5, 16  ;;  %v1629_v17 = vpop.permute.xlu1 %1628  ;;  %v1668_v19 = vsel %vm5686_vm0, %v1666_v31, %v1617_v48 }
 0x1c0   : > { %v1866_v16 = vrot.slane %v1846_v5, 2  ;;  %v1670_v10 = vsel %vm5687_vm2, %v1668_v19, %v1629_v17  ;;  %vm5691_vm0 = vcmask 654336   ;;  %vm5692_vm2 = vmmov %vm5689_vm11 }
 0x1c1   : > { %v1850_v59 = vrot.slane %v1848_v56, 1  ;;  %v1865_v47 = vrot.slane %v1861_v14, 1  ;;  %v1868_v40 = vsel %vm4888_vm10, %v1861_v14, %v1852_v18  ;;  %v1853_v1 = vrot.slane %v1848_v56, 2 }
 0x1c2   : > { %v1672_v2 = vsel %vm5688_vm8, %v1670_v10, %v1641_v61  ;;  %vm5693_vm8 = vcmask 785408  }
 0x1c3   : > { %v1855_v15 = vsel %vm4888_vm10, %v1843_v51, %v1850_v59  ;;  %v1871_v21 = vsel %vm1702_vm12, %v1868_v40, %v1865_v47  ;;  %1682 = vmatmul.bf16.vlgmr.msrb.gmra.mxu3 %v1672_v2 }
 0x1c4   : > { %v1858_v3 = vsel %vm1702_vm12, %v1855_v15, %v1852_v18  ;;  %v1873_v43 = vsel %vm4898_vm9, %v1871_v21, %v1866_v16 }
 0x1c5   : > { %v1860_v36 = vsel %vm4898_vm9, %v1858_v3, %v1853_v1  ;;  %v1877_v24 = vunpack.c.l.b16 %v1873_v43 }
 0x1c6   : > { %1875 = vst.msk [vmem:[#allocation2 + $0x24] sm:$0x3] %vm1728_vm14, %v1860_v36  ;;  %2257 = vrot.lane.b32.xlu1 %v2256_v26, %s4101_s24 }
 0x1c7   : > { %v1878_v33 = vpack.c.b16 %v1877_v24, %v1877_v24  ;;  %v1257_v38 = vpop.f32.mrf.mxu0 }
 0x1c8   : > { %v1258_v28 = vadd.f32 %v4870_v55, %v1257_v38 }
 0x1c9   : > { %v1880_v13 = vshrl.u32 %v1878_v33, 16  ;;  %v1883_v50 = vshll.u32 %v1878_v33, 16 }
 0x1ca   : > { %vm1261_vm6 = vcmp.ge.f32.partialorder %v1258_v28, 0.0  ;;  %v1262_v20 = vmul.f32 0.01, %v1258_v28 }
 0x1cb   : > { %v1882_v46 = vrot.slane %v1880_v13, 7 }
 0x1cc   : > { %v1263_v30 = vsel %vm1261_vm6, %v1258_v28, %v1262_v20  ;;  %vm5694_vm6 = vcmask 916480  }
 0x1cd   : > { %v1885_v42 = vor.u32 %v1883_v50, %v1882_v46  ;;  %v1891_v52 = vpack.c.bf16 %v1263_v30, %v1263_v30  ;;  %v2420_v22 = vld [vmem:[#allocation2 + $0x24] sm:$0x3]  ;;  %v346_v30 = vld [vmem:[#allocation2 + $0x30] sm:$0x7] }
 0x1ce   : > { %v2422_v23 = vld [vmem:[#allocation2 + $0x24] sm:$0x7]  ;;  %v2428_v35 = vunpack.c.l.b16 %v2420_v22 }
 0x1cf   : > { %v2445_v45 = vunpack.c.l.b16 %v2422_v23  ;;  %v1889_v32 = vsel %vm4925_vm7, %v1885_v42, %v1888_v12  ;;  %v1893_v57 = vunpack.c.l.b16 %v1891_v52  ;;  %v1259_v44 = vpop.f32.mrf.mxu0  ;;  %v5093_v12 = vld [vmem:[%s5636_s3 + $0x38] sm:$0xff] }
 0x1d0   : > { %1890 = vst [vmem:[#allocation2 + $0x20] sm:$0x7] %v1889_v32  ;;  %v2429_v53 = vpack.c.b16 %v2428_v35, %v2428_v35  ;;  %v349_v42 = vld [vmem:[#allocation2 + $0x34] sm:$0x7]  ;;  %2390 = vmatpush.bf16.msra.mxu0 %v5093_v12  ;;  %2506 = vmatpush.bf16.msra.mxu2 %v5093_v12 }
 0x1d1   : > { %v2446_v25 = vpack.c.b16 %v2445_v45, %v2445_v45  ;;  %v1894_v7 = vpack.c.b16 %v1893_v57, %v1893_v57  ;;  %v350_v22 = vsel %vm4812_vm13, 0, %v349_v42 }
 0x1d2   : > { %2430 = vrot.lane.b32.xlu2 %v2429_v53, %s4092_s15  ;;  %351 = vst [vmem:[#allocation2 + $0x34] sm:$0x7] %v350_v22 }
 0x1d3   : > { %v2450_v39 = vshll.u32 %v2446_v25, 16  ;;  %v1896_v11 = vshll.u32 %v1894_v7, 16  ;;  %v1900_v27 = vrot.slane %v1894_v7, 1  ;;  %v1909_v8 = vshrl.u32 %v1894_v7, 16 }
 0x1d4   : > { %v2448_v34 = vshrl.u32 %v2446_v25, 16  ;;  %v1914_v0 = vrot.slane %v1894_v7, 2  ;;  %v4009_v25 = vld [vmem:[%s5636_s3 + $0x30] sm:$0xff]  ;;  %v4008_v7 = vld [vmem:[%s5636_s3 + $0x28] sm:$0xff] }
 0x1d5   : > { %v2452_v51 = vrot.slane %v2450_v39, 1  ;;  %v1898_v49 = vrot.slane %v1896_v11, 1  ;;  %v1913_v60 = vrot.slane %v1909_v8, 1  ;;  %v1916_v9 = vsel %vm4888_vm10, %v1909_v8, %v1900_v27  ;;  %2391 = vmatpush.bf16.msra.mxu0 %v4009_v25  ;;  %2507 = vmatpush.bf16.msra.mxu2 %v4009_v25  ;;  %v5113_v39 = vld [vmem:[%s5636_s3 + $0x78] sm:$0xff] }
 0x1d6   : > { %v1901_v63 = vrot.slane %v1896_v11, 2  ;;  %2403 = vmatpush.bf16.msra.mxu1 %v5113_v39  ;;  %2519 = vmatpush.bf16.msra.mxu3 %v5113_v39  ;;  %v5120_v11 = vld [vmem:[%s5636_s3 + $0x20] sm:$0xff]  ;;  %v5134_v8 = vld [vmem:[%s5636_s3 + $0x18] sm:$0xff] }
 0x1d7   : > { %v2453_v58 = vor.u32 %v2452_v51, %v2448_v34  ;;  %v1903_v41 = vsel %vm4888_vm10, %v1891_v52, %v1898_v49  ;;  %v1919_v5 = vsel %vm1702_vm12, %v1916_v9, %v1913_v60  ;;  %v2421_v31 = vld [vmem:[#allocation2 + $0x20] sm:$0x7]  ;;  %v347_v52 = vsel %vm4812_vm13, 0, %v346_v30  ;;  %v5148_v51 = vld [vmem:[%s5636_s3 + $0x10] sm:$0xff]  ;;  %v5153_v49 = vld [vmem:[%s5636_s3 + $0x60] sm:$0xff] }
 0x1d8   : > { %v1906_v48 = vsel %vm1702_vm12, %v1903_v41, %v1900_v27  ;;  %v1921_v56 = vsel %vm4898_vm9, %v1919_v5, %v1914_v0  ;;  %v2433_v18 = vunpack.c.l.b16 %v2421_v31  ;;  %348 = vst [vmem:[#allocation2 + $0x30] sm:$0x7] %v347_v52  ;;  %v5125_v27 = vld [vmem:[%s5636_s3 + $0x70] sm:$0xff]  ;;  %v5139_v34 = vld [vmem:[%s5636_s3 + $0x68] sm:$0xff]  ;;  %v5167_v9 = vld [vmem:[%s5636_s3 + $0x58] sm:$0xff] }
 0x1d9   : > { %2454 = vrot.lane.b32.xlu1 %v2453_v58, %s4093_s16  ;;  %v1908_v14 = vsel %vm4898_vm9, %v1906_v48, %v1901_v63  ;;  %v1925_v17 = vunpack.c.l.b16 %v1921_v56  ;;  %2392 = vmatpush.bf16.msra.mxu0 %v4008_v7  ;;  %v5162_v60 = vld [vmem:[%s5636_s3 + $0x8] sm:$0xff]  ;;  %v355_v0 = vld [vmem:[#allocation2 + $0x3c] sm:$0x7]  ;;  %v352_v63 = vld [vmem:[#allocation2 + $0x38] sm:$0x7]  ;;  %v2137_v48 = vpop.permute.xlu0 %2136 }
 0x1da   : > { %1923 = vst.msk [vmem:[#allocation2 + $0x2c] sm:$0x3] %vm1728_vm14, %v1908_v14  ;;  %v2434_v19 = vpack.c.b16 %v2433_v18, %v2433_v18  ;;  %2508 = vmatpush.bf16.msra.mxu2 %v4008_v7  ;;  %2404 = vmatpush.bf16.msra.mxu1 %v5125_v27  ;;  %v356_v58 = vsel %vm4812_vm13, 0, %v355_v0  ;;  %v5178_v41 = vld [vmem:[%s5636_s3] sm:$0xff]  ;;  %v5183_v5 = vld [vmem:[%s5636_s3 + $0x50] sm:$0xff]  ;;  %v353_v31 = vsel %vm4812_vm13, 0, %v352_v63 }
 0x1db   : > { %v1926_v61 = vpack.c.b16 %v1925_v17, %v1925_v17  ;;  %2520 = vmatpush.bf16.msra.mxu3 %v5125_v27  ;;  %357 = vst [vmem:[#allocation2 + $0x3c] sm:$0x7] %v356_v58  ;;  %v5194_v56 = vld [vmem:[%s5636_s3 + $0x48] sm:$0xff]  ;;  %v5202_v17 = vld [vmem:[%s5636_s3 + $0x40] sm:$0xff]  ;;  %v2125_v58 = vld [vmem:[#allocation2 + $0x10] sm:$0x3] }
 0x1dc   : > { %v2438_v6 = vshll.u32 %v2434_v19, 16  ;;  %v2436_v47 = vshrl.u32 %v2434_v19, 16  ;;  %354 = vst [vmem:[#allocation2 + $0x38] sm:$0x7] %v353_v31  ;;  %v2161_v19 = vpop.permute.xlu2 %2160 }
 0x1dd   : > { %v1928_v59 = vshrl.u32 %v1926_v61, 16  ;;  %v1931_v10 = vshll.u32 %v1926_v61, 16  ;;  %2393 = vmatpush.bf16.msra.mxu0 %v5120_v11 }
 0x1de   : > { %v2440_v40 = vrot.slane %v2438_v6, 1  ;;  %2509 = vmatpush.bf16.msra.mxu2 %v5120_v11  ;;  %2405 = vmatpush.bf16.msra.mxu1 %v5139_v34 }
 0x1df   : > { %v1930_v16 = vrot.slane %v1928_v59, 7  ;;  %2521 = vmatpush.bf16.msra.mxu3 %v5139_v34 }
 0x1e0   : > { %v2441_v1 = vor.u32 %v2440_v40, %v2436_v47 }
 0x1e1   : > { %v1933_v15 = vor.u32 %v1931_v10, %v1930_v16  ;;  %v2424_v21 = vld [vmem:[#allocation2 + $0x2c] sm:$0x3]  ;;  %2394 = vmatpush.bf16.msra.mxu0 %v5134_v8  ;;  %v2116_v10 = vld [vmem:[#allocation2] sm:$0x3] }
 0x1e2   : > { %2442 = vrot.lane.b32.xlu0 %v2441_v1, %s4088_s11  ;;  %v2426_v3 = vld [vmem:[#allocation2 + $0x2c] sm:$0x7]  ;;  %v2462_v43 = vunpack.c.l.b16 %v2424_v21  ;;  %2510 = vmatpush.bf16.msra.mxu2 %v5134_v8 }
 0x1e3   : > { %v1937_v2 = vsel %vm4925_vm7, %v1933_v15, %v1936_v62  ;;  %v2479_v26 = vunpack.c.l.b16 %v2426_v3  ;;  %2406 = vmatpush.bf16.msra.mxu1 %v5153_v49  ;;  %2522 = vmatpush.bf16.msra.mxu3 %v5153_v49 }
 0x1e4   : > { %1938 = vst [vmem:[#allocation2 + $0x28] sm:$0x7] %v1937_v2  ;;  %v2463_v36 = vpack.c.b16 %v2462_v43, %v2462_v43  ;;  %v2261_v2 = vsel %vm586_vm1, %v2116_v10, %v2137_v48 }
 0x1e5   : > { %v2480_v24 = vpack.c.b16 %v2479_v26, %v2479_v26  ;;  %2395 = vmatpush.bf16.msra.mxu0 %v5148_v51 }
 0x1e6   : > { %2511 = vmatpush.bf16.msra.mxu2 %v5148_v51 }
 0x1e7   : > { %v2484_v50 = vshll.u32 %v2480_v24, 16  ;;  %v2482_v44 = vshrl.u32 %v2480_v24, 16  ;;  %2407 = vmatpush.bf16.msra.mxu1 %v5167_v9  ;;  %2523 = vmatpush.bf16.msra.mxu3 %v5167_v9 }
 0x1e9   : > { %v2486_v32 = vrot.slane %v2484_v50, 1  ;;  %2396 = vmatpush.bf16.msra.mxu0 %v5162_v60 }
 0x1ea   : > { %2464 = vrot.lane.b32.xlu0 %v2463_v36, %s4097_s20  ;;  %2512 = vmatpush.bf16.msra.mxu2 %v5162_v60 }
 0x1eb   : > { %v2423_v33 = vld [vmem:[#allocation2 + $0x28] sm:$0x3]  ;;  %v2487_v53 = vor.u32 %v2486_v32, %v2482_v44  ;;  %2408 = vmatpush.bf16.msra.mxu1 %v5183_v5  ;;  %2524 = vmatpush.bf16.msra.mxu3 %v5183_v5  ;;  %v2149_v18 = vpop.permute.xlu1 %2148 }
 0x1ec   : > { %v2425_v38 = vld [vmem:[#allocation2 + $0x28] sm:$0x7]  ;;  %v2457_v28 = vunpack.c.l.b16 %v2423_v33 }
 0x1ed   : > { %v2467_v13 = vunpack.c.l.b16 %v2425_v38  ;;  %2397 = vmatpush.bf16.msra.mxu0 %v5178_v41 }
 0x1ee   : > { %v2458_v20 = vpack.c.b16 %v2457_v28, %v2457_v28  ;;  %2513 = vmatpush.bf16.msra.mxu2 %v5178_v41 }
 0x1ef   : > { %v2468_v46 = vpack.c.b16 %v2467_v13, %v2467_v13  ;;  %2409 = vmatpush.bf16.msra.mxu1 %v5194_v56  ;;  %2525 = vmatpush.bf16.msra.mxu3 %v5194_v56  ;;  %v2263_v13 = vsel %vm592_vm3, %v2261_v2, %v2149_v18 }
 0x1f0   : > { %2459 = vrot.lane.b32.xlu2 %v2458_v20, %s4095_s18 }
 0x1f1   : > { %v2472_v23 = vshll.u32 %v2468_v46, 16  ;;  %v2470_v35 = vshrl.u32 %v2468_v46, 16  ;;  %2622 = vmatpush.bf16.msrb.mxu0 %v5093_v12  ;;  %v5218_v36 = vpop.permute.xlu2 %2211 }
 0x1f2   : > { %2740 = vmatpush.bf16.msrb.mxu2 %v5093_v12 }
 0x1f3   : > { %v2474_v45 = vrot.slane %v2472_v23, 1  ;;  %2410 = vmatpush.bf16.msra.mxu1 %v5202_v17  ;;  %2526 = vmatpush.bf16.msra.mxu3 %v5202_v17  ;;  %v2265_v23 = vsel %vm5689_vm11, %v2263_v13, %v2161_v19  ;;  %vm5697_vm11 = vmmov %vm5693_vm8 }
 0x1f5   : > { %v2475_v57 = vor.u32 %v2474_v45, %v2470_v35  ;;  %2623 = vmatpush.bf16.msrb.mxu0 %v4009_v25  ;;  %v358_v35 = vld [vmem:[#allocation2 + $0x40] sm:$0x7]  ;;  %v361_v45 = vld [vmem:[#allocation2 + $0x44] sm:$0x7] }
 0x1f6   : > { %2741 = vmatpush.bf16.msrb.mxu2 %v4009_v25  ;;  %v359_v44 = vsel %vm4812_vm13, 0, %v358_v35 }
 0x1f7   : > { %2476 = vrot.lane.b32.xlu1 %v2475_v57, %s4099_s22  ;;  %2635 = vmatpush.bf16.msrb.mxu1 %v5113_v39  ;;  %360 = vst [vmem:[#allocation2 + $0x40] sm:$0x7] %v359_v44 }
 0x1f8   : > { %2488 = vrot.lane.b32.xlu2 %v2487_v53, %s4101_s24  ;;  %2753 = vmatpush.bf16.msrb.mxu3 %v5113_v39  ;;  %v362_v53 = vsel %vm4812_vm13, 0, %v361_v45 }
 0x1f9   : > { %2624 = vmatpush.bf16.msrb.mxu0 %v4008_v7  ;;  %v5208_v59 = vpop.permute.xlu0 %2199  ;;  %363 = vst [vmem:[#allocation2 + $0x44] sm:$0x7] %v362_v53 }
 0x1fa   : > { %2742 = vmatpush.bf16.msrb.mxu2 %v4008_v7 }
 0x1fb   : > { %2636 = vmatpush.bf16.msrb.mxu1 %v5125_v27 }
 0x1fc   : > { %2754 = vmatpush.bf16.msrb.mxu3 %v5125_v27 }
 0x1fd   : > { %2625 = vmatpush.bf16.msrb.mxu0 %v5120_v11 }
 0x1fe   : > { %2743 = vmatpush.bf16.msrb.mxu2 %v5120_v11 }
 0x1ff   : > { %2637 = vmatpush.bf16.msrb.mxu1 %v5139_v34 }
 0x200   : > { %2755 = vmatpush.bf16.msrb.mxu3 %v5139_v34 }
 0x201   : > { %2626 = vmatpush.bf16.msrb.mxu0 %v5134_v8 }
 0x202   : > { %2744 = vmatpush.bf16.msrb.mxu2 %v5134_v8 }
 0x203   : > { %2638 = vmatpush.bf16.msrb.mxu1 %v5153_v49 }
 0x204   : > { %2756 = vmatpush.bf16.msrb.mxu3 %v5153_v49  ;;  %v2277_v49 = vsel %vm586_vm1, %v2125_v58, %v5208_v59 }
 0x205   : > { %2627 = vmatpush.bf16.msrb.mxu0 %v5148_v51 }
 0x206   : > { %2745 = vmatpush.bf16.msrb.mxu2 %v5148_v51 }
 0x207   : > { %2639 = vmatpush.bf16.msrb.mxu1 %v5167_v9 }
 0x208   : > { %2757 = vmatpush.bf16.msrb.mxu3 %v5167_v9 }
 0x209   : > { %2628 = vmatpush.bf16.msrb.mxu0 %v5162_v60 }
 0x20a   : > { %2746 = vmatpush.bf16.msrb.mxu2 %v5162_v60 }
 0x20b   : > { %2640 = vmatpush.bf16.msrb.mxu1 %v5183_v5 }
 0x20c   : > { %2758 = vmatpush.bf16.msrb.mxu3 %v5183_v5 }
 0x20d   : > { %2629 = vmatpush.bf16.msrb.mxu0 %v5178_v41 }
 0x20e   : > { %2747 = vmatpush.bf16.msrb.mxu2 %v5178_v41 }
 0x20f   : > { %v2183_v63 = vpop.permute.xlu2 %2182  ;;  %2641 = vmatpush.bf16.msrb.mxu1 %v5194_v56 }
 0x210   : > { %2759 = vmatpush.bf16.msrb.mxu3 %v5194_v56 }
 0x213   : > { %2642 = vmatpush.bf16.msrb.mxu1 %v5202_v17 }
 0x214   : > { %2760 = vmatpush.bf16.msrb.mxu3 %v5202_v17 }
 0x216   : > { %v2171_v28 = vpop.permute.xlu0 %2170 }
 0x217   : > { %v1399_v14 = vpop.f32.mrf.mxu1 }
 0x218   : > { %v1400_v61 = vadd.f32 %v4870_v55, %v1399_v14 }
 0x21a   : > { %vm1403_vm4 = vcmp.ge.f32.partialorder %v1400_v61, 0.0  ;;  %v1404_v6 = vmul.f32 0.01, %v1400_v61 }
 0x21b   : > { %v1541_v47 = vpop.f32.mrf.mxu2 }
 0x21c   : > { %v1405_v40 = vsel %vm1403_vm4, %v1400_v61, %v1404_v6  ;;  %v1542_v16 = vadd.f32 %v4870_v55, %v1541_v47  ;;  %vm5695_vm4 = vmmov %vm5690_vm15 }
 0x21d   : > { %v1939_v62 = vpack.c.bf16 %v1405_v40, %v1405_v40 }
 0x21e   : > { %vm1545_vm5 = vcmp.ge.f32.partialorder %v1542_v16, 0.0  ;;  %v1546_v1 = vmul.f32 0.01, %v1542_v16  ;;  %v2229_v59 = vpop.permute.xlu0 %2228 }
 0x21f   : > { %v1941_v15 = vunpack.c.l.b16 %v1939_v62  ;;  %v1401_v21 = vpop.f32.mrf.mxu1 }
 0x220   : > { %v1547_v3 = vsel %vm1545_vm5, %v1542_v16, %v1546_v1  ;;  %v2166_v43 = vpop.permute.xlu1 %2165  ;;  %v2279_v1 = vsel %vm592_vm3, %v2277_v49, %v5218_v36  ;;  %vm5696_vm5 = vmmov %vm5691_vm0 }
 0x221   : > { %v1942_v55 = vpack.c.b16 %v1941_v15, %v1941_v15  ;;  %v1987_v26 = vpack.c.bf16 %v1547_v3, %v1547_v3  ;;  %v2267_v31 = vsel %vm5690_vm15, %v2265_v23, %v2166_v43  ;;  %v1984_v3 = vld [vmem:[#allocation2 + $0x30] sm:$0x7]  ;;  %vm5698_vm15 = vmmov %vm5694_vm6 }
 0x222   : > { %v2269_v10 = vsel %vm5691_vm0, %v2267_v31, %v2171_v28 }
 0x223   : > { %v1944_v24 = vshll.u32 %v1942_v55, 16  ;;  %v1948_v33 = vrot.slane %v1942_v55, 1  ;;  %v1957_v38 = vshrl.u32 %v1942_v55, 16  ;;  %v1543_v20 = vpop.f32.mrf.mxu2  ;;  %v1989_v46 = vunpack.c.l.b16 %v1987_v26 }
 0x224   : > { %v1962_v52 = vrot.slane %v1942_v55, 2  ;;  %v2271_v55 = vsel %vm5693_vm8, %v2269_v10, %v2183_v63  ;;  %v364_v63 = vld [vmem:[#allocation2 + $0x48] sm:$0x7] }
 0x225   : > { %v1946_v50 = vrot.slane %v1944_v24, 1  ;;  %v1961_v12 = vrot.slane %v1957_v38, 1  ;;  %v1964_v30 = vsel %vm4888_vm10, %v1957_v38, %v1948_v33  ;;  %v1949_v42 = vrot.slane %v1944_v24, 2 }
 0x226   : > { %v1990_v22 = vpack.c.b16 %v1989_v46, %v1989_v46  ;;  %v2246_v45 = vpop.permute.xlu0 %2245 }
 0x227   : > { %v1951_v32 = vsel %vm4888_vm10, %v1939_v62, %v1946_v50  ;;  %v1967_v57 = vsel %vm1702_vm12, %v1964_v30, %v1961_v12  ;;  %v2234_v50 = vpop.permute.xlu2 %2233 }
 0x228   : > { %v1954_v25 = vsel %vm1702_vm12, %v1951_v32, %v1948_v33  ;;  %v1969_v7 = vsel %vm4898_vm9, %v1967_v57, %v1962_v52  ;;  %v1992_v39 = vshll.u32 %v1990_v22, 16  ;;  %v1996_v11 = vrot.slane %v1990_v22, 1  ;;  %v2224_v27 = vpop.permute.xlu1 %2223 }
 0x229   : > { %v1956_v8 = vsel %vm4898_vm9, %v1954_v25, %v1949_v42  ;;  %v1973_v34 = vunpack.c.l.b16 %v1969_v7  ;;  %v2005_v0 = vshrl.u32 %v1990_v22, 16  ;;  %v2010_v6 = vrot.slane %v1990_v22, 2  ;;  %v2032_v22 = vld [vmem:[#allocation2 + $0x38] sm:$0x7] }
 0x22a   : > { %1971 = vst.msk [vmem:[#allocation2 + $0x34] sm:$0x3] %vm1728_vm14, %v1956_v8  ;;  %v1994_v51 = vrot.slane %v1992_v39, 1  ;;  %v1997_v19 = vrot.slane %v1992_v39, 2  ;;  %v2281_v2 = vsel %vm5692_vm2, %v2279_v1, %v2224_v27  ;;  %v4079_v1 = vld [vmem:[%s5635_s2] ss:$0 sm:$0xff] }
 0x22b   : > { %v1974_v48 = vpack.c.b16 %v1973_v34, %v1973_v34  ;;  %v2009_v18 = vrot.slane %v2005_v0, 1  ;;  %v2012_v14 = vsel %vm4888_vm10, %v2005_v0, %v1996_v11  ;;  %v2283_v28 = vsel %vm5695_vm4, %v2281_v2, %v2229_v59 }
 0x22c   : > { %v1999_v61 = vsel %vm4888_vm10, %v1987_v26, %v1994_v51  ;;  %v2285_v52 = vsel %vm5696_vm5, %v2283_v28, %v2234_v50 }
 0x22d   : > { %v1976_v47 = vshrl.u32 %v1974_v48, 16  ;;  %v2002_v40 = vsel %vm1702_vm12, %v1999_v61, %v1996_v11  ;;  %v2015_v16 = vsel %vm1702_vm12, %v2012_v14, %v2009_v18  ;;  %v1979_v15 = vshll.u32 %v1974_v48, 16 }
 0x22e   : > { %v2004_v62 = vsel %vm4898_vm9, %v2002_v40, %v1997_v19  ;;  %v2017_v60 = vsel %vm4898_vm9, %v2015_v16, %v2010_v6  ;;  %v2287_v57 = vsel %vm5697_vm11, %v2285_v52, %v2246_v45  ;;  %v365_v14 = vsel %vm4812_vm13, 0, %v364_v63  ;;  %v367_v19 = vld [vmem:[#allocation2 + $0x4c] sm:$0x7] }
 0x22f   : > { %v1978_v9 = vrot.slane %v1976_v47, 7  ;;  %2019 = vst.msk [vmem:[#allocation2 + $0x3c] sm:$0x3] %vm1728_vm14, %v2004_v62  ;;  %v2021_v21 = vunpack.c.l.b16 %v2017_v60  ;;  %v368_v61 = vsel %vm4812_vm13, 0, %v367_v19 }
 0x230   : > { %v2195_v43 = vpop.permute.xlu1 %2194  ;;  %366 = vst [vmem:[#allocation2 + $0x48] sm:$0x7] %v365_v14 }
 0x231   : > { %v1981_v26 = vor.u32 %v1979_v15, %v1978_v9  ;;  %v2022_v36 = vpack.c.b16 %v2021_v21, %v2021_v21  ;;  %v2273_v24 = vsel %vm5694_vm6, %v2271_v55, %v2195_v43  ;;  %v2536_v33 = vld [vmem:[#allocation2 + $0x34] sm:$0x3]  ;;  %369 = vst [vmem:[#allocation2 + $0x4c] sm:$0x7] %v368_v61 }
 0x232   : > { %v2538_v38 = vld [vmem:[#allocation2 + $0x34] sm:$0x7]  ;;  %2398 = vmatmul.bf16.vlgmr.msra.gmra.mxu0 %v2273_v24  ;;  %v2544_v13 = vunpack.c.l.b16 %v2536_v33 }
 0x233   : > { %v2561_v20 = vunpack.c.l.b16 %v2538_v38  ;;  %v1985_v41 = vsel %vm4925_vm7, %v1981_v26, %v1984_v3  ;;  %v2024_v46 = vshrl.u32 %v2022_v36, 16  ;;  %v2027_v42 = vshll.u32 %v2022_v36, 16 }
 0x234   : > { %1986 = vst [vmem:[#allocation2 + $0x30] sm:$0x7] %v1985_v41  ;;  %v2545_v5 = vpack.c.b16 %v2544_v13, %v2544_v13 }
 0x235   : > { %v2562_v12 = vpack.c.b16 %v2561_v20, %v2561_v20  ;;  %v2026_v30 = vrot.slane %v2024_v46, 7 }
 0x236   : > { %2546 = vrot.lane.b32.xlu0 %v2545_v5, %s4092_s15  ;;  %v2542_v7 = vld [vmem:[#allocation2 + $0x3c] sm:$0x7] }
 0x237   : > { %v2566_v23 = vshll.u32 %v2562_v12, 16  ;;  %v2029_v35 = vor.u32 %v2027_v42, %v2026_v30  ;;  %v2564_v44 = vshrl.u32 %v2562_v12, 16  ;;  %v2595_v8 = vunpack.c.l.b16 %v2542_v7  ;;  %v2540_v59 = vld [vmem:[#allocation2 + $0x3c] sm:$0x3]  ;;  %v2431_v42 = vpop.permute.xlu2 %2430  ;;  %v2419_v7 = vld [vmem:[#allocation2 + $0x20] sm:$0x3] }
 0x238   : > { %v2258_v32 = vpop.permute.xlu1 %2257  ;;  %v2578_v60 = vunpack.c.l.b16 %v2540_v59  ;;  %v2656_v14 = vld [vmem:[#allocation2 + $0x48] sm:$0x3] }
 0x239   : > { %v2568_v53 = vrot.slane %v2566_v23, 1  ;;  %v2033_v56 = vsel %vm4925_vm7, %v2029_v35, %v2032_v22  ;;  %v2289_v25 = vsel %vm5698_vm15, %v2287_v57, %v2258_v32  ;;  %v2596_v58 = vpack.c.b16 %v2595_v8, %v2595_v8 }
 0x23a   : > { %2034 = vst [vmem:[#allocation2 + $0x38] sm:$0x7] %v2033_v56  ;;  %2411 = vmatmul.bf16.vlgmr.msra.gmra.mxu1 %v2289_v25  ;;  %2514 = vmatmul.bf16.vlgmr.msra.gmra.mxu2 %v2289_v25  ;;  %v2579_v36 = vpack.c.b16 %v2578_v60, %v2578_v60  ;;  %v2659_v25 = vld [vmem:[#allocation2 + $0x48] sm:$0x7]  ;;  %v2492_v8 = vsel %vm586_vm1, %v2419_v7, %v2431_v42  ;;  %v2691_v59 = vunpack.c.l.b16 %v2656_v14  ;;  %v406_v7 = vld [vmem:[#allocation3 + $0x16] sm:$0x3] }
 0x23b   : > { %v2569_v39 = vor.u32 %v2568_v53, %v2564_v44  ;;  %v2537_v11 = vld [vmem:[#allocation2 + $0x30] sm:$0x7]  ;;  %v2600_v16 = vshll.u32 %v2596_v58, 16  ;;  %v2598_v43 = vshrl.u32 %v2596_v58, 16  ;;  %v2701_v58 = vunpack.c.l.b16 %v2659_v25  ;;  %v403_v25 = vld [vmem:[#allocation3 + $0x14] sm:$0x3] }
 0x23c   : > { %v2549_v27 = vunpack.c.l.b16 %v2537_v11 }
 0x23d   : > { %2570 = vrot.lane.b32.xlu2 %v2569_v39, %s4093_s16  ;;  %v2602_v21 = vrot.slane %v2600_v16, 1 }
 0x23e   : > { %v2550_v34 = vpack.c.b16 %v2549_v27, %v2549_v27  ;;  %v2660_v27 = vld [vmem:[#allocation2 + $0x4c] sm:$0x7] }
 0x23f   : > { %v2603_v26 = vor.u32 %v2602_v21, %v2598_v43  ;;  %v2692_v43 = vpack.c.b16 %v2691_v59, %v2691_v59 }
 0x240   : > { %v2554_v0 = vshll.u32 %v2550_v34, 16  ;;  %v2552_v51 = vshrl.u32 %v2550_v34, 16  ;;  %v2080_v34 = vld [vmem:[#allocation2 + $0x40] sm:$0x7] }
 0x241   : > { %v2539_v17 = vld [vmem:[#allocation2 + $0x38] sm:$0x3] }
 0x242   : > { %v2541_v31 = vld [vmem:[#allocation2 + $0x38] sm:$0x7]  ;;  %v2573_v49 = vunpack.c.l.b16 %v2539_v17  ;;  %v2556_v48 = vrot.slane %v2554_v0, 1 }
 0x243   : > { %v2583_v18 = vunpack.c.l.b16 %v2541_v31 }
 0x244   : > { %v2574_v6 = vpack.c.b16 %v2573_v49, %v2573_v49  ;;  %v2557_v47 = vor.u32 %v2556_v48, %v2552_v51  ;;  %v2713_v48 = vunpack.c.l.b16 %v2660_v27 }
 0x245   : > { %v2584_v40 = vpack.c.b16 %v2583_v18, %v2583_v18 }
 0x246   : > { %2575 = vrot.lane.b32.xlu0 %v2574_v6, %s4095_s18  ;;  %2558 = vrot.lane.b32.xlu1 %v2557_v47, %s4088_s11  ;;  %v1683_v62 = vpop.f32.mrf.mxu3  ;;  %v2702_v47 = vpack.c.b16 %v2701_v58, %v2701_v58 }
 0x247   : > { %v2588_v10 = vshll.u32 %v2584_v40, 16  ;;  %v1684_v9 = vadd.f32 %v4079_v1, %v1683_v62  ;;  %v2586_v54 = vshrl.u32 %v2584_v40, 16 }
 0x249   : > { %v2590_v15 = vrot.slane %v2588_v10, 1  ;;  %vm1687_vm13 = vcmp.ge.f32.partialorder %v1684_v9, 0.0  ;;  %v1688_v2 = vmul.f32 0.01, %v1684_v9  ;;  %v2714_v10 = vpack.c.b16 %v2713_v48, %v2713_v48 }
 0x24a   : > { %v2460_v11 = vpop.permute.xlu2 %2459 }
 0x24b   : > { %v2591_v3 = vor.u32 %v2590_v15, %v2586_v54  ;;  %v1689_v55 = vsel %vm1687_vm13, %v1684_v9, %v1688_v2  ;;  %v2455_v0 = vpop.permute.xlu1 %2454  ;;  %v2706_v54 = vshll.u32 %v2702_v47, 16 }
 0x24c   : > { %v2035_v24 = vpack.c.bf16 %v1689_v55, %v1689_v55  ;;  %v2718_v55 = vshll.u32 %v2714_v10, 16 }
 0x24d   : > { %2592 = vrot.lane.b32.xlu2 %v2591_v3, %s4099_s22 }
 0x24e   : > { %2604 = vrot.lane.b32.xlu0 %v2603_v26, %s4101_s24  ;;  %2580 = vrot.lane.b32.xlu1 %v2579_v36, %s4097_s20  ;;  %v2037_v33 = vunpack.c.l.b16 %v2035_v24  ;;  %v1685_v38 = vpop.f32.mrf.mxu3  ;;  %v2704_v36 = vshrl.u32 %v2702_v47, 16 }
 0x250   : > { %v2038_v28 = vpack.c.b16 %v2037_v33, %v2037_v33 }
 0x252   : > { %v2040_v13 = vshll.u32 %v2038_v28, 16  ;;  %v2044_v20 = vrot.slane %v2038_v28, 1  ;;  %v2053_v41 = vshrl.u32 %v2038_v28, 16  ;;  %v2058_v46 = vrot.slane %v2038_v28, 2  ;;  %v2489_v15 = vpop.permute.xlu2 %2488 }
 0x253   : > { %v2716_v28 = vshrl.u32 %v2714_v10, 16 }
 0x254   : > { %v2042_v50 = vrot.slane %v2040_v13, 1  ;;  %v2045_v5 = vrot.slane %v2040_v13, 2  ;;  %v2057_v12 = vrot.slane %v2053_v41, 1  ;;  %v2060_v30 = vsel %vm4888_vm10, %v2053_v41, %v2044_v20  ;;  %v2443_v44 = vpop.permute.xlu0 %2442 }
 0x255   : > { %v2494_v29 = vsel %vm592_vm3, %v2492_v8, %v2443_v44  ;;  %v2720_v13 = vrot.slane %v2718_v55, 1  ;;  %v382_v44 = vld [vmem:[#allocation3 + $0x6] sm:$0x3] }
 0x256   : > { %v2047_v52 = vsel %vm4888_vm10, %v2035_v24, %v2042_v50  ;;  %v2063_v22 = vsel %vm1702_vm12, %v2060_v30, %v2057_v12  ;;  %v2708_v24 = vrot.slane %v2706_v54, 1  ;;  %v2658_v12 = vld [vmem:[#allocation2 + $0x4c] sm:$0x3] }
 0x257   : > { %v2050_v23 = vsel %vm1702_vm12, %v2047_v52, %v2044_v20  ;;  %v2065_v35 = vsel %vm4898_vm9, %v2063_v22, %v2058_v46  ;;  %vm5699_vm12 = vmmov %vm5692_vm2  ;;  %v2696_v42 = vunpack.c.l.b16 %v2658_v12  ;;  %vm370_vm2 = vcmask 254976  }
 0x258   : > { %v2052_v45 = vsel %vm4898_vm9, %v2050_v23, %v2045_v5  ;;  %v2069_v32 = vunpack.c.l.b16 %v2065_v35  ;;  %v2496_v19 = vsel %vm5699_vm12, %v2494_v29, %v2455_v0  ;;  %vm5700_vm9 = vmmov %vm5695_vm4  ;;  %v2709_v20 = vor.u32 %v2708_v24, %v2704_v36  ;;  %v376_v23 = vld [vmem:[#allocation3 + $0x2] sm:$0x3] }
 0x259   : > { %2067 = vst.msk [vmem:[#allocation2 + $0x44] sm:$0x3] %vm1728_vm14, %v2052_v45  ;;  %v2498_v62 = vsel %vm5700_vm9, %v2496_v19, %v2460_v11  ;;  %vm5701_vm14 = vmmov %vm5691_vm0  ;;  %v2721_v5 = vor.u32 %v2720_v13, %v2716_v28  ;;  %v2697_v52 = vpack.c.b16 %v2696_v42, %v2696_v42  ;;  %v373_v45 = vld [vmem:[#allocation3] sm:$0x3] }
 0x25a   : > { %v2070_v57 = vpack.c.b16 %v2069_v32, %v2069_v32  ;;  %vm5703_vm0 = vmmov %vm5694_vm6 }
 0x25b   : > { %vm5707_vm5 = vmmov %vm5699_vm12 }
 0x25c   : > { %v2072_v53 = vshrl.u32 %v2070_v57, 16  ;;  %v2075_v56 = vshll.u32 %v2070_v57, 16  ;;  %v2465_v40 = vpop.permute.xlu0 %2464  ;;  %v379_v57 = vld [vmem:[#allocation3 + $0x4] sm:$0x3]  ;;  %vm5708_vm11 = vmmov %vm5700_vm9  ;;  %vm2786_vm9 = vcmask 253952  }
 0x25d   : > { %v2500_v60 = vsel %vm5701_vm14, %v2498_v62, %v2465_v40  ;;  %vm5709_vm15 = vmmov %vm5701_vm14  ;;  %vm2797_vm14 = vsmask.f32 1282 }
 0x25e   : > { %v2074_v39 = vrot.slane %v2072_v53, 7  ;;  %vm5711_vm12 = vmmov %vm5703_vm0 }
 0x260   : > { %v2077_v63 = vor.u32 %v2075_v56, %v2074_v39  ;;  %v2652_v17 = vld [vmem:[#allocation2 + $0x44] sm:$0x3] }
 0x261   : > { %v2654_v51 = vld [vmem:[#allocation2 + $0x44] sm:$0x7]  ;;  %v2662_v31 = vunpack.c.l.b16 %v2652_v17 }
 0x262   : > { %v2679_v49 = vunpack.c.l.b16 %v2654_v51  ;;  %v2081_v18 = vsel %vm4925_vm7, %v2077_v63, %v2080_v34  ;;  %vm5702_vm7 = vmmov %vm5693_vm8  ;;  %vm5704_vm8 = vsmask.f32 1280 }
 0x263   : > { %2082 = vst [vmem:[#allocation2 + $0x40] sm:$0x7] %v2081_v18  ;;  %v2663_v61 = vpack.c.b16 %v2662_v31, %v2662_v31  ;;  %vm5328_vm6 = vmand %vm370_vm2, %vm5704_vm8  ;;  %v5348_v31 = vld [vmem:[%s5637_s4] ss:$0 sm:$0xff] }
 0x264   : > { %v2680_v6 = vpack.c.b16 %v2679_v49, %v2679_v49  ;;  %v377_v35 = vsel %vm5328_vm6, 0, %v376_v23  ;;  %v374_v32 = vsel %vm5328_vm6, 0, %v373_v45  ;;  %v380_v53 = vsel %vm5328_vm6, 0, %v379_v57  ;;  %vm5710_vm13 = vmmov %vm5702_vm7 }
 0x265   : > { %2664 = vrot.lane.b32.xlu1 %v2663_v61, %s4092_s15  ;;  %378 = vst [vmem:[#allocation3 + $0x2] sm:$0x3] %v377_v35  ;;  %v383_v56 = vsel %vm5328_vm6, 0, %v382_v44  ;;  %v404_v39 = vsel %vm5328_vm6, 0, %v403_v25  ;;  %v407_v11 = vsel %vm5328_vm6, 0, %v406_v7  ;;  %vm5716_vm8 = vmmov %vm5709_vm15 }
 0x266   : > { %v2684_v16 = vshll.u32 %v2680_v6, 16  ;;  %v2682_v37 = vshrl.u32 %v2680_v6, 16  ;;  %375 = vst [vmem:[#allocation3] sm:$0x3] %v374_v32  ;;  %v2535_v61 = vld [vmem:[#allocation2 + $0x30] sm:$0x3] }
 0x267   : > { %381 = vst [vmem:[#allocation3 + $0x4] sm:$0x3] %v380_v53  ;;  %v385_v53 = vld [vmem:[#allocation3 + $0x8] sm:$0x3] }
 0x268   : > { %v2686_v9 = vrot.slane %v2684_v16, 1  ;;  %384 = vst [vmem:[#allocation3 + $0x6] sm:$0x3] %v383_v56  ;;  %v388_v56 = vld [vmem:[#allocation3 + $0xa] sm:$0x3]  ;;  %v386_v7 = vsel %vm5328_vm6, 0, %v385_v53 }
 0x269   : > { %v2477_v1 = vpop.permute.xlu1 %2476  ;;  %405 = vst [vmem:[#allocation3 + $0x14] sm:$0x3] %v404_v39  ;;  %v389_v39 = vsel %vm5328_vm6, 0, %v388_v56 }
 0x26a   : > { %v2502_v21 = vsel %vm5702_vm7, %v2500_v60, %v2477_v1  ;;  %v2687_v2 = vor.u32 %v2686_v9, %v2682_v37  ;;  %v2653_v26 = vld [vmem:[#allocation2 + $0x40] sm:$0x7]  ;;  %408 = vst [vmem:[#allocation3 + $0x16] sm:$0x3] %v407_v11  ;;  %vm5368_vm7 = vmand %vm370_vm2, %vm2797_vm14 }
 0x26b   : > { %v2504_v3 = vsel %vm5703_vm0, %v2502_v21, %v2489_v15  ;;  %v2667_v33 = vunpack.c.l.b16 %v2653_v26  ;;  %387 = vst [vmem:[#allocation3 + $0x8] sm:$0x3] %v386_v7  ;;  %vm5714_vm0 = vmmov %vm5707_vm5 }
 0x26c   : > { %2527 = vmatmul.bf16.vlgmr.msra.gmra.mxu3 %v2504_v3  ;;  %2630 = vmatmul.bf16.vlgmr.msrb.gmra.mxu0 %v2504_v3  ;;  %v2959_v27 = vld [vmem:[#allocation3 + $0x2] sm:$0x1]  ;;  %390 = vst [vmem:[#allocation3 + $0xa] sm:$0x3] %v389_v39  ;;  %vm5715_vm2 = vmmov %vm5708_vm11 }
 0x26d   : > { %2688 = vrot.lane.b32.xlu0 %v2687_v2, %s4093_s16  ;;  %2693 = vrot.lane.b32.xlu1 %v2692_v43, %s4095_s18  ;;  %v2668_v38 = vpack.c.b16 %v2667_v33, %v2667_v33  ;;  %2975 = vst [vmem:[#allocation1] ss:$4 sm:$0xff] %v2959_v27  ;;  %v2960_v8 = vld [vmem:[#allocation3] sm:$0x3]  ;;  %v2961_v0 = vld [vmem:[#allocation3 + $0x2] sm:$0x3] }
 0x26e   : > { %v2799_v32 = vld [vmem:[#allocation3 + $0x4] sm:$0x3] }
 0x26f   : > { %v2670_v41 = vshrl.u32 %v2668_v38, 16  ;;  %v2672_v46 = vshll.u32 %v2668_v38, 16 }
 0x271   : > { %v2674_v50 = vrot.slane %v2672_v46, 1 }
 0x273   : > { %v2675_v30 = vor.u32 %v2674_v50, %v2670_v41 }
 0x274   : > { %v2976_v34 = vld.sshfl [vmem:[#allocation1] sm:$0xff pattern:$0x73625140] }
 0x275   : > { %2710 = vrot.lane.b32.xlu0 %v2709_v20, %s4099_s22  ;;  %2676 = vrot.lane.b32.xlu2 %v2675_v30, %s4088_s11  ;;  %2981 = vst [vmem:[#allocation1] ss:$4 sm:$0xff] %v2960_v8 }
 0x276   : > { %2722 = vrot.lane.b32.xlu1 %v2721_v5, %s4101_s24 }
 0x27c   : > { %v2982_v63 = vld.sshfl [vmem:[#allocation1] sm:$0xff pattern:$0x73625140] }
 0x27d   : > { %2698 = vrot.lane.b32.xlu2 %v2697_v52, %s4097_s20  ;;  %2992 = vst [vmem:[#allocation1] ss:$4 sm:$0xff] %v2961_v0  ;;  %v2983_v17 = vshrl.u32 %v2982_v63, 16  ;;  %v2985_v51 = vshll.u32 %v2982_v63, 16  ;;  %v2651_v0 = vld [vmem:[#allocation2 + $0x40] sm:$0x3] }
 0x27e   : > { %2978 = vrot.lane.b32.xlu1 %v2976_v34, %s4088_s11 }
 0x27f   : > { %v2987_v49 = vrot.slane %v2985_v51, 1 }
 0x281   : > { %v2988_v48 = vor.u32 %v2987_v49, %v2983_v17 }
 0x284   : > { %v2993_v10 = vld.sshfl [vmem:[#allocation1] sm:$0xff pattern:$0x73625140] }
 0x285   : > { %v2996_v1 = vshll.u32 %v2993_v10, 16  ;;  %v2994_v9 = vshrl.u32 %v2993_v10, 16 }
 0x286   : > { %2989 = vrot.lane.b32.xlu1 %v2988_v48, %s4095_s18 }
 0x287   : > { %v2998_v54 = vrot.slane %v2996_v1, 1 }
 0x289   : > { %v2999_v3 = vor.u32 %v2998_v54, %v2994_v9 }
 0x28b   : > { %3000 = vrot.lane.b32.xlu0 %v2999_v3, %s4099_s22 }
 0x297   : > { %v2571_v16 = vpop.permute.xlu2 %2570 }
 0x2a7   : > { %v2593_v24 = vpop.permute.xlu2 %2592 }
 0x2a8   : > { %v2547_v29 = vpop.permute.xlu0 %2546 }
 0x2a9   : > { %v2608_v59 = vsel %vm586_vm1, %v2535_v61, %v2547_v29 }
 0x2af   : > { %v2399_v58 = vpop.f32.mrf.mxu0 }
 0x2b0   : > { %v2400_v18 = vadd.f32 %v5348_v31, %v2399_v58 }
 0x2b7   : > { %v2401_v14 = vpop.f32.mrf.mxu0  ;;  %v2412_v19 = vpop.f32.mrf.mxu1 }
 0x2b8   : > { %v2576_v6 = vpop.permute.xlu0 %2575  ;;  %v2559_v47 = vpop.permute.xlu1 %2558  ;;  %v2413_v40 = vadd.f32 %v2412_v19, %v2400_v18 }
 0x2b9   : > { %v2610_v62 = vsel %vm592_vm3, %v2608_v59, %v2559_v47 }
 0x2ba   : > { %vm2416_vm4 = vcmp.ge.f32.partialorder %v2413_v40, 0.0  ;;  %v2417_v60 = vmul.f32 0.01, %v2413_v40  ;;  %v2612_v15 = vsel %vm5707_vm5, %v2610_v62, %v2571_v16 }
 0x2bb   : > { %v2614_v36 = vsel %vm5708_vm11, %v2612_v15, %v2576_v6  ;;  %vm5719_vm11 = vmmov %vm5715_vm2 }
 0x2bc   : > { %v2418_v37 = vsel %vm2416_vm4, %v2413_v40, %v2417_v60  ;;  %vm5718_vm4 = vmmov %vm5711_vm12 }
 0x2bd   : > { %v2769_v21 = vpack.c.bf16 %v2418_v37, %v2418_v37  ;;  %v5355_v2 = vpop.f32.mrf.mxu2 }
 0x2bf   : > { %v2771_v43 = vunpack.c.l.b16 %v2769_v21  ;;  %v2414_v55 = vpop.f32.mrf.mxu1 }
 0x2c0   : > { %v2581_v26 = vpop.permute.xlu1 %2580  ;;  %v2605_v28 = vpop.permute.xlu0 %2604 }
 0x2c1   : > { %v2772_v33 = vpack.c.b16 %v2771_v43, %v2771_v43  ;;  %v2616_v38 = vsel %vm5709_vm15, %v2614_v36, %v2581_v26 }
 0x2c2   : > { %v2618_v13 = vsel %vm5710_vm13, %v2616_v38, %v2593_v24 }
 0x2c3   : > { %v2774_v20 = vshll.u32 %v2772_v33, 16  ;;  %v2779_v41 = vshrl.u32 %v2772_v33, 16  ;;  %v2782_v46 = vrot.slane %v2772_v33, 1  ;;  %v2620_v50 = vsel %vm5711_vm12, %v2618_v13, %v2605_v28 }
 0x2c4   : > { %2643 = vmatmul.bf16.vlgmr.msrb.gmra.mxu1 %v2620_v50  ;;  %2748 = vmatmul.bf16.vlgmr.msrb.gmra.mxu2 %v2620_v50 }
 0x2c5   : > { %v2776_v5 = vrot.slane %v2774_v20, 1  ;;  %v2784_v12 = vsel %vm4888_vm10, %v2779_v41, %v2782_v46  ;;  %v2517_v30 = vpop.f32.mrf.mxu2 }
 0x2c6   : > { %v2789_v42 = vshrl.u32 %v2784_v12, 16  ;;  %v2792_v35 = vshll.u32 %v2784_v12, 16 }
 0x2c7   : > { %v2778_v52 = vsel %vm4888_vm10, %v2769_v21, %v2776_v5  ;;  %v2516_v21 = vadd.f32 %v5348_v31, %v5355_v2 }
 0x2c8   : > { %2787 = vst.msk [vmem:[#allocation3 + $0x6] sm:$0x1] %vm2786_vm9, %v2778_v52  ;;  %v2791_v23 = vrot.slane %v2789_v42, 7  ;;  %v2829_v42 = vld [vmem:[#allocation3 + $0x8] sm:$0x3] }
 0x2ca   : > { %v2794_v57 = vor.u32 %v2792_v35, %v2791_v23  ;;  %v391_v35 = vld [vmem:[#allocation3 + $0xc] sm:$0x3] }
 0x2cc   : > { %v2800_v44 = vsel %vm5368_vm7, %v2794_v57, %v2799_v32  ;;  %v394_v32 = vld [vmem:[#allocation3 + $0xe] sm:$0x3] }
 0x2cd   : > { %2801 = vst [vmem:[#allocation3 + $0x4] sm:$0x3] %v2800_v44  ;;  %v392_v44 = vsel %vm5328_vm6, 0, %v391_v35  ;;  %v395_v53 = vsel %vm5328_vm6, 0, %v394_v32 }
 0x2ce   : > { %393 = vst [vmem:[#allocation3 + $0xc] sm:$0x3] %v392_v44 }
 0x2cf   : > { %v2963_v25 = vld [vmem:[#allocation3 + $0x6] sm:$0x1]  ;;  %v2677_v34 = vpop.permute.xlu2 %2676  ;;  %396 = vst [vmem:[#allocation3 + $0xe] sm:$0x3] %v395_v53 }
 0x2d0   : > { %3003 = vst [vmem:[#allocation1] ss:$4 sm:$0xff] %v2963_v25  ;;  %v2965_v29 = vld [vmem:[#allocation3 + $0x6] sm:$0x3] }
 0x2d4   : > { %v2964_v11 = vld [vmem:[#allocation3 + $0x4] sm:$0x3] }
 0x2d7   : > { %v3004_v27 = vld.sshfl [vmem:[#allocation1] sm:$0xff pattern:$0x73625140]  ;;  %v2665_v8 = vpop.permute.xlu1 %2664  ;;  %v2699_v6 = vpop.permute.xlu2 %2698 }
 0x2d8   : > { %3009 = vst [vmem:[#allocation1] ss:$4 sm:$0xff] %v2964_v11  ;;  %3006 = vrot.lane.b32.xlu1 %v3004_v27, %s4088_s11  ;;  %v2726_v58 = vsel %vm586_vm1, %v2651_v0, %v2665_v8  ;;  %vm5717_vm1 = vmmov %vm5710_vm13 }
 0x2d9   : > { %v2728_v51 = vsel %vm592_vm3, %v2726_v58, %v2677_v34  ;;  %vm5720_vm15 = vmmov %vm5717_vm1 }
 0x2da   : > { %vm5722_vm12 = vmmov %vm5717_vm1 }
 0x2df   : > { %v2689_v63 = vpop.permute.xlu0 %2688  ;;  %v3010_v17 = vld.sshfl [vmem:[#allocation1] sm:$0xff pattern:$0x73625140]  ;;  %v2694_v48 = vpop.permute.xlu1 %2693 }
 0x2e0   : > { %3020 = vst [vmem:[#allocation1] ss:$4 sm:$0xff] %v2965_v29  ;;  %v2730_v49 = vsel %vm5714_vm0, %v2728_v51, %v2689_v63  ;;  %v3013_v18 = vshll.u32 %v3010_v17, 16  ;;  %v3011_v14 = vshrl.u32 %v3010_v17, 16  ;;  %v4026_v17 = vld [vmem:[%s5638_s5 + $0x38] sm:$0xff]  ;;  %vm5726_vm0 = vmmov %vm5717_vm1 }
 0x2e1   : > { %v2732_v61 = vsel %vm5715_vm2, %v2730_v49, %v2694_v48  ;;  %3313 = vmatpush.bf16.msra.mxu0 %v4026_v17  ;;  %v4034_v49 = vld [vmem:[%s5638_s5 + $0x78] sm:$0xff]  ;;  %v4025_v48 = vld [vmem:[%s5638_s5 + $0x30] sm:$0xff] }
 0x2e2   : > { %v3015_v19 = vrot.slane %v3013_v18, 1  ;;  %v2734_v40 = vsel %vm5716_vm8, %v2732_v61, %v2699_v6  ;;  %3326 = vmatpush.bf16.msra.mxu1 %v4034_v49  ;;  %v4033_v18 = vld [vmem:[%s5638_s5 + $0x70] sm:$0xff]  ;;  %v4023_v61 = vld [vmem:[%s5638_s5 + $0x20] sm:$0xff]  ;;  %vm5727_vm8 = vmmov %vm5726_vm0 }
 0x2e3   : > { %v4031_v6 = vld [vmem:[%s5638_s5 + $0x60] sm:$0xff] }
 0x2e4   : > { %v3016_v47 = vor.u32 %v3015_v19, %v3011_v14  ;;  %v4024_v14 = vld [vmem:[%s5638_s5 + $0x28] sm:$0xff] }
 0x2e5   : > { %3314 = vmatpush.bf16.msra.mxu0 %v4025_v48  ;;  %v4032_v19 = vld [vmem:[%s5638_s5 + $0x68] sm:$0xff] }
 0x2e6   : > { %3017 = vrot.lane.b32.xlu0 %v3016_v47, %s4095_s18  ;;  %3327 = vmatpush.bf16.msra.mxu1 %v4033_v18  ;;  %v4022_v47 = vld [vmem:[%s5638_s5 + $0x18] sm:$0xff] }
 0x2e7   : > { %v2711_v16 = vpop.permute.xlu0 %2710  ;;  %v3021_v59 = vld.sshfl [vmem:[#allocation1] sm:$0xff pattern:$0x73625140] }
 0x2e8   : > { %v2736_v10 = vsel %vm5717_vm1, %v2734_v40, %v2711_v16  ;;  %v2723_v62 = vpop.permute.xlu1 %2722  ;;  %v3024_v1 = vshll.u32 %v3021_v59, 16  ;;  %v3022_v9 = vshrl.u32 %v3021_v59, 16  ;;  %v4030_v16 = vld [vmem:[%s5638_s5 + $0x58] sm:$0xff]  ;;  %v4021_v59 = vld [vmem:[%s5638_s5 + $0x10] sm:$0xff] }
 0x2e9   : > { %v5386_v60 = vpop.f32.mrf.mxu0  ;;  %v2738_v37 = vsel %vm5718_vm4, %v2736_v10, %v2723_v62  ;;  %3315 = vmatpush.bf16.msra.mxu0 %v4024_v14  ;;  %v4029_v10 = vld [vmem:[%s5638_s5 + $0x50] sm:$0xff]  ;;  %v2957_v62 = vld [vmem:[#allocation3] sm:$0x1]  ;;  %vm5729_vm4 = vmmov %vm5726_vm0 }
 0x2ea   : > { %2761 = vmatmul.bf16.vlgmr.msrb.gmra.mxu3 %v2738_v37  ;;  %v3026_v54 = vrot.slane %v3024_v1, 1  ;;  %3328 = vmatpush.bf16.msra.mxu1 %v4032_v19  ;;  %v4020_v1 = vld [vmem:[%s5638_s5 + $0x8] sm:$0xff] }
 0x2ec   : > { %v3027_v15 = vor.u32 %v3026_v54, %v3022_v9  ;;  %v4028_v9 = vld [vmem:[%s5638_s5 + $0x48] sm:$0xff] }
 0x2ed   : > { %3316 = vmatpush.bf16.msra.mxu0 %v4023_v61 }
 0x2ee   : > { %3028 = vrot.lane.b32.xlu1 %v3027_v15, %s4099_s22  ;;  %3329 = vmatpush.bf16.msra.mxu1 %v4031_v6  ;;  %v4019_v15 = vld [vmem:[%s5638_s5] sm:$0xff] }
 0x2ef   : > { %v2528_v3 = vpop.f32.mrf.mxu3 }
 0x2f0   : > { %v2529_v43 = vadd.f32 %v2528_v3, %v2516_v21  ;;  %v2979_v40 = vpop.permute.xlu1 %2978 }
 0x2f1   : > { %v2633_v55 = vpop.f32.mrf.mxu0  ;;  %3317 = vmatpush.bf16.msra.mxu0 %v4022_v47  ;;  %v3088_v37 = vsel %vm592_vm3, %v2957_v62, %v2979_v40 }
 0x2f2   : > { %vm2532_vm5 = vcmp.ge.f32.partialorder %v2529_v43, 0.0  ;;  %v2533_v26 = vmul.f32 0.01, %v2529_v43  ;;  %3330 = vmatpush.bf16.msra.mxu1 %v4030_v16 }
 0x2f4   : > { %v2534_v36 = vsel %vm2532_vm5, %v2529_v43, %v2533_v26  ;;  %v4027_v43 = vld [vmem:[%s5638_s5 + $0x40] sm:$0xff]  ;;  %v2632_v26 = vadd.f32 %v5348_v31, %v5386_v60 }
 0x2f5   : > { %v2802_v24 = vpack.c.bf16 %v2534_v36, %v2534_v36  ;;  %3318 = vmatpush.bf16.msra.mxu0 %v4021_v59 }
 0x2f6   : > { %3331 = vmatpush.bf16.msra.mxu1 %v4029_v10 }
 0x2f7   : > { %v2804_v33 = vunpack.c.l.b16 %v2802_v24  ;;  %v2530_v38 = vpop.f32.mrf.mxu3 }
 0x2f8   : > { %v2990_v54 = vpop.permute.xlu1 %2989 }
 0x2f9   : > { %v2805_v28 = vpack.c.b16 %v2804_v33, %v2804_v33  ;;  %3319 = vmatpush.bf16.msra.mxu0 %v4020_v1  ;;  %v3090_v21 = vsel %vm5719_vm11, %v3088_v37, %v2990_v54  ;;  %vm5731_vm11 = vmmov %vm5726_vm0 }
 0x2fa   : > { %3332 = vmatpush.bf16.msra.mxu1 %v4028_v9 }
 0x2fb   : > { %v2807_v13 = vshll.u32 %v2805_v28, 16  ;;  %v2812_v20 = vshrl.u32 %v2805_v28, 16  ;;  %v2815_v41 = vrot.slane %v2805_v28, 1 }
 0x2fd   : > { %v2809_v46 = vrot.slane %v2807_v13, 1  ;;  %v2817_v50 = vsel %vm4888_vm10, %v2812_v20, %v2815_v41  ;;  %v3001_v3 = vpop.permute.xlu0 %3000  ;;  %3320 = vmatpush.bf16.msra.mxu0 %v4019_v15 }
 0x2fe   : > { %v2821_v2 = vshrl.u32 %v2817_v50, 16  ;;  %v2824_v30 = vshll.u32 %v2817_v50, 16  ;;  %v3092_v55 = vsel %vm5720_vm15, %v3090_v21, %v3001_v3  ;;  %3333 = vmatpush.bf16.msra.mxu1 %v4027_v43  ;;  %v400_v50 = vld [vmem:[#allocation3 + $0x12] sm:$0x3] }
 0x2ff   : > { %v2811_v5 = vsel %vm4888_vm10, %v2802_v24, %v2809_v46  ;;  %v397_v46 = vld [vmem:[#allocation3 + $0x10] sm:$0x3] }
 0x300   : > { %2819 = vst.msk [vmem:[#allocation3 + $0xa] sm:$0x1] %vm2786_vm9, %v2811_v5  ;;  %v2823_v12 = vrot.slane %v2821_v2, 7  ;;  %3321 = vmatmul.bf16.vlgmr.msra.gmra.mxu0 %v3092_v55  ;;  %v398_v2 = vsel %vm5328_vm6, 0, %v397_v46  ;;  %v401_v5 = vsel %vm5328_vm6, 0, %v400_v50  ;;  %vm5721_vm6 = vmmov %vm5715_vm2 }
 0x301   : > { %3514 = vmatpush.bf16.msrb.mxu0 %v4026_v17  ;;  %399 = vst [vmem:[#allocation3 + $0x10] sm:$0x3] %v398_v2 }
 0x302   : > { %v2826_v52 = vor.u32 %v2824_v30, %v2823_v12  ;;  %3527 = vmatpush.bf16.msrb.mxu1 %v4034_v49  ;;  %402 = vst [vmem:[#allocation3 + $0x12] sm:$0x3] %v401_v5 }
 0x304   : > { %v2830_v23 = vsel %vm5368_vm7, %v2826_v52, %v2829_v42 }
 0x305   : > { %2831 = vst [vmem:[#allocation3 + $0x8] sm:$0x3] %v2830_v23  ;;  %3515 = vmatpush.bf16.msrb.mxu0 %v4025_v48 }
 0x306   : > { %3528 = vmatpush.bf16.msrb.mxu1 %v4033_v18 }
 0x307   : > { %v5399_v57 = vld [vmem:[#allocation3 + $0xa] sm:$0x1] }
 0x308   : > { %3031 = vst [vmem:[#allocation1] ss:$4 sm:$0xff] %v5399_v57  ;;  %v5410_v7 = vld [vmem:[#allocation3 + $0xa] sm:$0x3] }
 0x309   : > { %3516 = vmatpush.bf16.msrb.mxu0 %v4024_v14 }
 0x30a   : > { %3529 = vmatpush.bf16.msrb.mxu1 %v4032_v19 }
 0x30c   : > { %v5406_v56 = vld [vmem:[#allocation3 + $0x8] sm:$0x3] }
 0x30d   : > { %3517 = vmatpush.bf16.msrb.mxu0 %v4023_v61  ;;  %v4038_v61 = vld [vmem:[%s5638_s5 + $0x98] sm:$0xff] }
 0x30e   : > { %3530 = vmatpush.bf16.msrb.mxu1 %v4031_v6  ;;  %v4037_v6 = vld [vmem:[%s5638_s5 + $0x90] sm:$0xff] }
 0x30f   : > { %v3032_v25 = vld.sshfl [vmem:[#allocation1] sm:$0xff pattern:$0x73625140] }
 0x310   : > { %3037 = vst [vmem:[#allocation1] ss:$4 sm:$0xff] %v5406_v56  ;;  %3034 = vrot.lane.b32.xlu2 %v3032_v25, %s4088_s11  ;;  %v2859_v25 = vld [vmem:[#allocation3 + $0xc] sm:$0x3] }
 0x311   : > { %3518 = vmatpush.bf16.msrb.mxu0 %v4022_v47 }
 0x312   : > { %3531 = vmatpush.bf16.msrb.mxu1 %v4030_v16 }
 0x315   : > { %3519 = vmatpush.bf16.msrb.mxu0 %v4021_v59  ;;  %v4036_v59 = vld [vmem:[%s5638_s5 + $0x88] sm:$0xff] }
 0x316   : > { %3532 = vmatpush.bf16.msrb.mxu1 %v4029_v10 }
 0x317   : > { %v3038_v39 = vld.sshfl [vmem:[#allocation1] sm:$0xff pattern:$0x73625140] }
 0x318   : > { %3048 = vst [vmem:[#allocation1] ss:$4 sm:$0xff] %v5410_v7  ;;  %v3041_v11 = vshll.u32 %v3038_v39, 16  ;;  %v3039_v27 = vshrl.u32 %v3038_v39, 16  ;;  %v4042_v39 = vld [vmem:[%s5638_s5 + $0xb8] sm:$0xff] }
 0x319   : > { %3339 = vmatpush.bf16.msra.mxu2 %v4042_v39  ;;  %3520 = vmatpush.bf16.msrb.mxu0 %v4020_v1 }
 0x31a   : > { %v3043_v8 = vrot.slane %v3041_v11, 1  ;;  %3533 = vmatpush.bf16.msrb.mxu1 %v4028_v9  ;;  %v4035_v9 = vld [vmem:[%s5638_s5 + $0x80] sm:$0xff] }
 0x31c   : > { %v3044_v34 = vor.u32 %v3043_v8, %v3039_v27  ;;  %v4041_v8 = vld [vmem:[%s5638_s5 + $0xb0] sm:$0xff] }
 0x31d   : > { %3340 = vmatpush.bf16.msra.mxu2 %v4041_v8  ;;  %3521 = vmatpush.bf16.msrb.mxu0 %v4019_v15 }
 0x31e   : > { %3045 = vrot.lane.b32.xlu0 %v3044_v34, %s4095_s18  ;;  %3534 = vmatpush.bf16.msrb.mxu1 %v4027_v43 }
 0x31f   : > { %v3049_v0 = vld.sshfl [vmem:[#allocation1] sm:$0xff pattern:$0x73625140] }
 0x320   : > { %v3052_v58 = vshll.u32 %v3049_v0, 16  ;;  %v3050_v63 = vshrl.u32 %v3049_v0, 16 }
 0x322   : > { %v3054_v29 = vrot.slane %v3052_v58, 1  ;;  %v4040_v58 = vld [vmem:[%s5638_s5 + $0xa8] sm:$0xff] }
 0x323   : > { %3341 = vmatpush.bf16.msra.mxu2 %v4040_v58 }
 0x324   : > { %v3055_v51 = vor.u32 %v3054_v29, %v3050_v63  ;;  %v2962_v29 = vld [vmem:[#allocation3 + $0x4] sm:$0x1] }
 0x326   : > { %3056 = vrot.lane.b32.xlu2 %v3055_v51, %s4099_s22  ;;  %v4039_v51 = vld [vmem:[%s5638_s5 + $0xa0] sm:$0xff] }
 0x327   : > { %3342 = vmatpush.bf16.msra.mxu2 %v4039_v51 }
 0x32b   : > { %3343 = vmatpush.bf16.msra.mxu2 %v4038_v61 }
 0x32f   : > { %3344 = vmatpush.bf16.msra.mxu2 %v4037_v6 }
 0x333   : > { %3345 = vmatpush.bf16.msra.mxu2 %v4036_v59 }
 0x337   : > { %3346 = vmatpush.bf16.msra.mxu2 %v4035_v9 }
 0x33b   : > { %3540 = vmatpush.bf16.msrb.mxu2 %v4042_v39  ;;  %v5535_v39 = vld [vmem:[#allocation3 + $0x8] sm:$0x1] }
 0x33f   : > { %3541 = vmatpush.bf16.msrb.mxu2 %v4041_v8 }
 0x341   : > { %v2644_v36 = vpop.f32.mrf.mxu1 }
 0x342   : > { %v2645_v24 = vadd.f32 %v2644_v36, %v2632_v26 }
 0x343   : > { %3542 = vmatpush.bf16.msrb.mxu2 %v4040_v58 }
 0x344   : > { %vm2648_vm13 = vcmp.ge.f32.partialorder %v2645_v24, 0.0  ;;  %v2649_v33 = vmul.f32 0.01, %v2645_v24 }
 0x346   : > { %v2650_v38 = vsel %vm2648_vm13, %v2645_v24, %v2649_v33  ;;  %vm5733_vm13 = vmmov %vm5726_vm0 }
 0x347   : > { %v2832_v28 = vpack.c.bf16 %v2650_v38, %v2650_v38  ;;  %v5468_v13 = vpop.f32.mrf.mxu2  ;;  %3543 = vmatpush.bf16.msrb.mxu2 %v4039_v51  ;;  %v4048_v51 = vld [vmem:[%s5638_s5 + $0xe8] sm:$0xff] }
 0x348   : > { %v2750_v10 = vadd.f32 %v5348_v31, %v5468_v13 }
 0x349   : > { %v2834_v20 = vunpack.c.l.b16 %v2832_v28  ;;  %v2646_v41 = vpop.f32.mrf.mxu1 }
 0x34a   : > { %v3007_v34 = vpop.permute.xlu1 %3006 }
 0x34b   : > { %v2835_v60 = vpack.c.b16 %v2834_v20, %v2834_v20  ;;  %v3096_v17 = vsel %vm592_vm3, %v2962_v29, %v3007_v34  ;;  %3544 = vmatpush.bf16.msrb.mxu2 %v4038_v61 }
 0x34d   : > { %v2837_v12 = vshll.u32 %v2835_v60, 16  ;;  %v2842_v30 = vshrl.u32 %v2835_v60, 16  ;;  %v2845_v42 = vrot.slane %v2835_v60, 1 }
 0x34f   : > { %v2839_v52 = vrot.slane %v2837_v12, 1  ;;  %v2847_v23 = vsel %vm4888_vm10, %v2842_v30, %v2845_v42  ;;  %v2751_v35 = vpop.f32.mrf.mxu2  ;;  %v2889_v30 = vld [vmem:[#allocation3 + $0x10] sm:$0x3]  ;;  %3545 = vmatpush.bf16.msrb.mxu2 %v4037_v6 }
 0x350   : > { %v2851_v32 = vshrl.u32 %v2847_v23, 16  ;;  %v2854_v53 = vshll.u32 %v2847_v23, 16 }
 0x351   : > { %v2841_v44 = vsel %vm4888_vm10, %v2832_v28, %v2839_v52 }
 0x352   : > { %2849 = vst.msk [vmem:[#allocation3 + $0xe] sm:$0x1] %vm2786_vm9, %v2841_v44  ;;  %v2853_v22 = vrot.slane %v2851_v32, 7 }
 0x353   : > { %3546 = vmatpush.bf16.msrb.mxu2 %v4036_v59  ;;  %v4045_v59 = vld [vmem:[%s5638_s5 + $0xd0] sm:$0xff] }
 0x354   : > { %v2856_v11 = vor.u32 %v2854_v53, %v2853_v22 }
 0x356   : > { %v2860_v27 = vsel %vm5368_vm7, %v2856_v11, %v2859_v25 }
 0x357   : > { %2861 = vst [vmem:[#allocation3 + $0xc] sm:$0x3] %v2860_v27  ;;  %3547 = vmatpush.bf16.msrb.mxu2 %v4035_v9 }
 0x358   : > { %v3018_v63 = vpop.permute.xlu0 %3017 }
 0x359   : > { %v5487_v0 = vld [vmem:[#allocation3 + $0xe] sm:$0x1]  ;;  %v3098_v49 = vsel %vm5721_vm6, %v3096_v17, %v3018_v63  ;;  %v4049_v17 = vld [vmem:[%s5638_s5 + $0xf0] sm:$0xff] }
 0x35a   : > { %3059 = vst [vmem:[#allocation1] ss:$4 sm:$0xff] %v5487_v0  ;;  %v5509_v47 = vld [vmem:[#allocation3 + $0xe] sm:$0x3] }
 0x35e   : > { %v5498_v18 = vld [vmem:[#allocation3 + $0xc] sm:$0x3] }
 0x360   : > { %v3029_v48 = vpop.permute.xlu1 %3028 }
 0x361   : > { %v3100_v14 = vsel %vm5722_vm12, %v3098_v49, %v3029_v48  ;;  %v3060_v19 = vld.sshfl [vmem:[#allocation1] sm:$0xff pattern:$0x73625140] }
 0x362   : > { %3062 = vrot.lane.b32.xlu0 %v3060_v19, %s4088_s11  ;;  %3065 = vst [vmem:[#allocation1] ss:$4 sm:$0xff] %v5498_v18  ;;  %3334 = vmatmul.bf16.vlgmr.msra.gmra.mxu1 %v3100_v14  ;;  %v4047_v14 = vld [vmem:[%s5638_s5 + $0xe0] sm:$0xff] }
 0x369   : > { %v3066_v40 = vld.sshfl [vmem:[#allocation1] sm:$0xff pattern:$0x73625140] }
 0x36a   : > { %v3069_v16 = vshll.u32 %v3066_v40, 16  ;;  %3076 = vst [vmem:[#allocation1] ss:$4 sm:$0xff] %v5509_v47  ;;  %v3067_v62 = vshrl.u32 %v3066_v40, 16  ;;  %v3035_v44 = vpop.permute.xlu2 %3034 }
 0x36c   : > { %v3071_v1 = vrot.slane %v3069_v16, 1 }
 0x36d   : > { %v2762_v37 = vpop.f32.mrf.mxu3 }
 0x36e   : > { %v2763_v54 = vadd.f32 %v2762_v37, %v2750_v10  ;;  %v3072_v15 = vor.u32 %v3071_v1, %v3067_v62  ;;  %v4044_v10 = vld [vmem:[%s5638_s5 + $0xc8] sm:$0xff] }
 0x370   : > { %vm2766_vm14 = vcmp.ge.f32.partialorder %v2763_v54, 0.0  ;;  %v2767_v21 = vmul.f32 0.01, %v2763_v54  ;;  %3073 = vrot.lane.b32.xlu2 %v3072_v15, %s4095_s18  ;;  %v4043_v15 = vld [vmem:[%s5638_s5 + $0xc0] sm:$0xff] }
 0x371   : > { %v3077_v3 = vld.sshfl [vmem:[#allocation1] sm:$0xff pattern:$0x73625140] }
 0x372   : > { %v2768_v43 = vsel %vm2766_vm14, %v2763_v54, %v2767_v21  ;;  %v3080_v55 = vshll.u32 %v3077_v3, 16  ;;  %3378 = vst [vmem:[#allocation1] ss:$4 sm:$0xff] %v5399_v57  ;;  %v3078_v26 = vshrl.u32 %v3077_v3, 16  ;;  %v3375_v3 = vld [vmem:[#allocation3 + $0x16] sm:$0x1] }
 0x373   : > { %v2862_v31 = vpack.c.bf16 %v2768_v43, %v2768_v43 }
 0x374   : > { %v3082_v36 = vrot.slane %v3080_v55, 1 }
 0x375   : > { %v2864_v24 = vunpack.c.l.b16 %v2862_v31  ;;  %v2764_v33 = vpop.f32.mrf.mxu3 }
 0x376   : > { %v3083_v38 = vor.u32 %v3082_v36, %v3078_v26 }
 0x377   : > { %v2865_v28 = vpack.c.b16 %v2864_v24, %v2864_v24  ;;  %v3376_v24 = vld [vmem:[#allocation3 + $0x14] sm:$0x3] }
 0x378   : > { %3084 = vrot.lane.b32.xlu2 %v3083_v38, %s4099_s22 }
 0x379   : > { %v2867_v13 = vshll.u32 %v2865_v28, 16  ;;  %v2872_v20 = vshrl.u32 %v2865_v28, 16  ;;  %v2875_v41 = vrot.slane %v2865_v28, 1  ;;  %v3379_v46 = vld.sshfl [vmem:[#allocation1] sm:$0xff pattern:$0x73625140] }
 0x37a   : > { %3381 = vrot.lane.b32.xlu1 %v3379_v46, %s4088_s11  ;;  %3383 = vst [vmem:[#allocation1] ss:$4 sm:$0xff] %v5406_v56 }
 0x37b   : > { %v2869_v57 = vrot.slane %v2867_v13, 1  ;;  %v2877_v50 = vsel %vm4888_vm10, %v2872_v20, %v2875_v41  ;;  %v3377_v41 = vld [vmem:[#allocation3 + $0x16] sm:$0x3] }
 0x37c   : > { %v2881_v60 = vshrl.u32 %v2877_v50, 16  ;;  %v2884_v12 = vshll.u32 %v2877_v50, 16 }
 0x37d   : > { %v2871_v2 = vsel %vm4888_vm10, %v2862_v31, %v2869_v57  ;;  %vm5723_vm10 = vmmov %vm5715_vm2  ;;  %v3322_v33 = vpop.f32.mrf.mxu0 }
 0x37e   : > { %2879 = vst.msk [vmem:[#allocation3 + $0x12] sm:$0x1] %vm2786_vm9, %v2871_v2  ;;  %v2883_v5 = vrot.slane %v2881_v60, 7  ;;  %vm5724_vm9 = vmmov %vm5717_vm1 }
 0x37f   : > { %vm5728_vm1 = vmmov %vm5715_vm2 }
 0x380   : > { %v2886_v42 = vor.u32 %v2884_v12, %v2883_v5  ;;  %v3057_v8 = vpop.permute.xlu2 %3056  ;;  %vm5730_vm5 = vmmov %vm5728_vm1 }
 0x381   : > { %v3384_v52 = vld.sshfl [vmem:[#allocation1] sm:$0xff pattern:$0x73625140]  ;;  %vm5732_vm15 = vmmov %vm5728_vm1 }
 0x382   : > { %v2890_v56 = vsel %vm5368_vm7, %v2886_v42, %v2889_v30  ;;  %v3387_v23 = vshll.u32 %v3384_v52, 16  ;;  %3393 = vst [vmem:[#allocation1] ss:$4 sm:$0xff] %v5410_v7  ;;  %v3385_v35 = vshrl.u32 %v3384_v52, 16  ;;  %v3104_v7 = vsel %vm592_vm3, %v5535_v39, %v3035_v44  ;;  %vm5725_vm7 = vmmov %vm5715_vm2 }
 0x383   : > { %2891 = vst [vmem:[#allocation3 + $0x10] sm:$0x3] %v2890_v56  ;;  %vm5734_vm6 = vmmov %vm5728_vm1 }
 0x384   : > { %v3389_v32 = vrot.slane %v3387_v23, 1  ;;  %v2970_v23 = vld [vmem:[#allocation3 + $0xc] sm:$0x1]  ;;  %vm5735_vm14 = vmmov %vm5728_vm1 }
 0x385   : > { %v3369_v49 = vld [vmem:[#allocation3 + $0x12] sm:$0x1]  ;;  %v3324_v46 = vpop.f32.mrf.mxu0 }
 0x386   : > { %v3390_v4 = vor.u32 %v3389_v32, %v3385_v35  ;;  %v3371_v62 = vld [vmem:[#allocation3 + $0x12] sm:$0x3] }
 0x388   : > { %3391 = vrot.lane.b32.xlu1 %v3390_v4, %s4095_s18 }
 0x389   : > { %v3394_v22 = vld.sshfl [vmem:[#allocation1] sm:$0xff pattern:$0x73625140] }
 0x38a   : > { %v3397_v53 = vshll.u32 %v3394_v22, 16  ;;  %3403 = vst [vmem:[#allocation1] ss:$4 sm:$0xff] %v5487_v0  ;;  %v3395_v25 = vshrl.u32 %v3394_v22, 16  ;;  %v4050_v0 = vld [vmem:[%s5638_s5 + $0xf8] sm:$0xff] }
 0x38b   : > { %3352 = vmatpush.bf16.msra.mxu3 %v4050_v0  ;;  %v3370_v40 = vld [vmem:[#allocation3 + $0x10] sm:$0x3] }
 0x38c   : > { %v3399_v45 = vrot.slane %v3397_v53, 1 }
 0x38e   : > { %v3400_v11 = vor.u32 %v3399_v45, %v3395_v25  ;;  %v5583_v45 = vld [vmem:[%s5639_s6] ss:$0 sm:$0xff] }
 0x38f   : > { %3353 = vmatpush.bf16.msra.mxu3 %v4049_v17 }
 0x390   : > { %v3046_v27 = vpop.permute.xlu0 %3045  ;;  %3401 = vrot.lane.b32.xlu0 %v3400_v11, %s4099_s22  ;;  %v3323_v11 = vadd.f32 %v5583_v45, %v3322_v33 }
 0x391   : > { %v3106_v34 = vsel %vm5723_vm10, %v3104_v7, %v3046_v27  ;;  %v3404_v58 = vld.sshfl [vmem:[#allocation1] sm:$0xff pattern:$0x73625140]  ;;  %vm3600_vm10 = vcmask 1024  }
 0x392   : > { %v3108_v63 = vsel %vm5724_vm9, %v3106_v34, %v3057_v8  ;;  %3408 = vst [vmem:[#allocation1] ss:$4 sm:$0xff] %v5498_v18  ;;  %3406 = vrot.lane.b32.xlu1 %v3404_v58, %s4088_s11 }
 0x393   : > { %3347 = vmatmul.bf16.vlgmr.msra.gmra.mxu2 %v3108_v63  ;;  %3354 = vmatpush.bf16.msra.mxu3 %v4048_v51 }
 0x397   : > { %3355 = vmatpush.bf16.msra.mxu3 %v4047_v14 }
 0x399   : > { %v3409_v29 = vld.sshfl [vmem:[#allocation1] sm:$0xff pattern:$0x73625140] }
 0x39a   : > { %3418 = vst [vmem:[#allocation1] ss:$4 sm:$0xff] %v5509_v47  ;;  %v4046_v47 = vld [vmem:[%s5638_s5 + $0xd8] sm:$0xff]  ;;  %v3412_v38 = vshll.u32 %v3409_v29, 16  ;;  %v3410_v20 = vshrl.u32 %v3409_v29, 16 }
 0x39b   : > { %3356 = vmatpush.bf16.msra.mxu3 %v4046_v47 }
 0x39c   : > { %v3414_v13 = vrot.slane %v3412_v38, 1  ;;  %v3570_v38 = vld [vmem:[%s5640_s7 + $0x8] sm:$0xff] }
 0x39e   : > { %v3415_v57 = vor.u32 %v3414_v13, %v3410_v20 }
 0x39f   : > { %3357 = vmatpush.bf16.msra.mxu3 %v4045_v59 }
 0x3a1   : > { %v3419_v48 = vld.sshfl [vmem:[#allocation1] sm:$0xff pattern:$0x73625140] }
 0x3a2   : > { %v3422_v18 = vshll.u32 %v3419_v48, 16  ;;  %3429 = vst [vmem:[#allocation1] ss:$4 sm:$0xff] %v3369_v49  ;;  %v3420_v19 = vshrl.u32 %v3419_v48, 16 }
 0x3a3   : > { %3358 = vmatpush.bf16.msra.mxu3 %v4044_v10 }
 0x3a4   : > { %v3424_v61 = vrot.slane %v3422_v18, 1 }
 0x3a6   : > { %v3425_v6 = vor.u32 %v3424_v61, %v3420_v19  ;;  %v3575_v19 = vld [vmem:[%s5640_s7 + $0x30] sm:$0xff] }
 0x3a7   : > { %3359 = vmatpush.bf16.msra.mxu3 %v4043_v15 }
 0x3a8   : > { %3426 = vrot.lane.b32.xlu1 %v3425_v6, %s4099_s22  ;;  %v3573_v6 = vld [vmem:[%s5640_s7 + $0x20] sm:$0xff] }
 0x3a9   : > { %v3430_v16 = vld.sshfl [vmem:[#allocation1] sm:$0xff pattern:$0x73625140] }
 0x3aa   : > { %3432 = vrot.lane.b32.xlu2 %v3430_v16, %s4088_s11  ;;  %3435 = vst [vmem:[#allocation1] ss:$4 sm:$0xff] %v3370_v40  ;;  %v3368_v40 = vld [vmem:[#allocation3 + $0x10] sm:$0x1] }
 0x3ab   : > { %3553 = vmatpush.bf16.msrb.mxu3 %v4050_v0 }
 0x3af   : > { %3554 = vmatpush.bf16.msrb.mxu3 %v4049_v17 }
 0x3b1   : > { %v3436_v1 = vld.sshfl [vmem:[#allocation1] sm:$0xff pattern:$0x73625140] }
 0x3b2   : > { %v3439_v37 = vshll.u32 %v3436_v1, 16  ;;  %3446 = vst [vmem:[#allocation1] ss:$4 sm:$0xff] %v3371_v62  ;;  %v3437_v9 = vshrl.u32 %v3436_v1, 16 }
 0x3b3   : > { %3555 = vmatpush.bf16.msrb.mxu3 %v4048_v51 }
 0x3b4   : > { %v3441_v54 = vrot.slane %v3439_v37, 1  ;;  %v3373_v37 = vld [vmem:[#allocation3 + $0x14] sm:$0x1] }
 0x3b6   : > { %v3442_v21 = vor.u32 %v3441_v54, %v3437_v9 }
 0x3b7   : > { %3556 = vmatpush.bf16.msrb.mxu3 %v4047_v14  ;;  %v3576_v14 = vld [vmem:[%s5640_s7 + $0x38] sm:$0xff] }
 0x3b8   : > { %3443 = vrot.lane.b32.xlu0 %v3442_v21, %s4095_s18  ;;  %3588 = vmatpush.msra.mxu0 %v3576_v14 }
 0x3b9   : > { %v3447_v43 = vld.sshfl [vmem:[#allocation1] sm:$0xff pattern:$0x73625140]  ;;  %3613 = vmatpush.msra.mxu1 %v3576_v14 }
 0x3ba   : > { %v3450_v55 = vshll.u32 %v3447_v43, 16  ;;  %3457 = vst [vmem:[#allocation1] ss:$4 sm:$0xff] %v3375_v3  ;;  %v3448_v31 = vshrl.u32 %v3447_v43, 16  ;;  %3589 = vmatpush.msra.mxu0 %v3575_v19 }
 0x3bb   : > { %3557 = vmatpush.bf16.msrb.mxu3 %v4046_v47  ;;  %3614 = vmatpush.msra.mxu1 %v3575_v19  ;;  %v3572_v47 = vld [vmem:[%s5640_s7 + $0x18] sm:$0xff] }
 0x3bc   : > { %v3452_v26 = vrot.slane %v3450_v55, 1 }
 0x3be   : > { %v3453_v36 = vor.u32 %v3452_v26, %v3448_v31 }
 0x3bf   : > { %3558 = vmatpush.bf16.msrb.mxu3 %v4045_v59 }
 0x3c0   : > { %3454 = vrot.lane.b32.xlu2 %v3453_v36, %s4099_s22 }
 0x3c1   : > { %v3458_v28 = vld.sshfl [vmem:[#allocation1] sm:$0xff pattern:$0x73625140] }
 0x3c2   : > { %3460 = vrot.lane.b32.xlu0 %v3458_v28, %s4088_s11  ;;  %3463 = vst [vmem:[#allocation1] ss:$4 sm:$0xff] %v3376_v24  ;;  %v3571_v24 = vld [vmem:[%s5640_s7 + $0x10] sm:$0xff]  ;;  %v3569_v28 = vld [vmem:[%s5640_s7] sm:$0xff] }
 0x3c3   : > { %3559 = vmatpush.bf16.msrb.mxu3 %v4044_v10 }
 0x3c7   : > { %3560 = vmatpush.bf16.msrb.mxu3 %v4043_v15 }
 0x3c9   : > { %v3464_v50 = vld.sshfl [vmem:[#allocation1] sm:$0xff pattern:$0x73625140] }
 0x3ca   : > { %3416 = vrot.lane.b32.xlu0 %v3415_v57, %s4095_s18  ;;  %v3465_v60 = vshrl.u32 %v3464_v50, 16  ;;  %v3467_v2 = vshll.u32 %v3464_v50, 16  ;;  %3474 = vst [vmem:[#allocation1] ss:$4 sm:$0xff] %v3377_v41  ;;  %v3074_v5 = vpop.permute.xlu2 %3073 }
 0x3cc   : > { %v3469_v12 = vrot.slane %v3467_v2, 1 }
 0x3ce   : > { %v3470_v30 = vor.u32 %v3469_v12, %v3465_v60 }
 0x3d0   : > { %3471 = vrot.lane.b32.xlu2 %v3470_v30, %s4095_s18  ;;  %s305_s18 = scalar_lea.vmem %s5641_s8, %s3993_s21 }
 0x3d1   : > { %v3475_v42 = vld.sshfl [vmem:[#allocation1] sm:$0xff pattern:$0x73625140] }
 0x3d2   : > { %v3476_v52 = vshrl.u32 %v3475_v42, 16  ;;  %v3478_v56 = vshll.u32 %v3475_v42, 16  ;;  %v3085_v44 = vpop.permute.xlu2 %3084 }
 0x3d4   : > { %v3063_v35 = vpop.permute.xlu0 %3062  ;;  %v3480_v32 = vrot.slane %v3478_v56, 1 }
 0x3d5   : > { %v3112_v4 = vsel %vm592_vm3, %v2970_v23, %v3063_v35 }
 0x3d6   : > { %v3114_v22 = vsel %vm5725_vm7, %v3112_v4, %v3074_v5  ;;  %v3481_v53 = vor.u32 %v3480_v32, %v3476_v52 }
 0x3d7   : > { %v3116_v25 = vsel %vm5726_vm0, %v3114_v22, %v3085_v44 }
 0x3d8   : > { %3360 = vmatmul.bf16.vlgmr.msra.gmra.mxu3 %v3116_v25  ;;  %3482 = vrot.lane.b32.xlu2 %v3481_v53, %s4099_s22 }
 0x3df   : > { %v3335_v7 = vpop.f32.mrf.mxu1 }
 0x3e0   : > { %v3336_v27 = vadd.f32 %v3335_v7, %v3323_v11 }
 0x3e7   : > { %v3337_v8 = vpop.f32.mrf.mxu1 }
 0x3ec   : > { %v3382_v34 = vpop.permute.xlu1 %3381 }
 0x3ed   : > { %v3485_v63 = vsel %vm592_vm3, %v5535_v39, %v3382_v34  ;;  %v3574_v39 = vld [vmem:[%s5640_s7 + $0x28] sm:$0xff] }
 0x3ee   : > { %3590 = vmatpush.msra.mxu0 %v3574_v39  ;;  %3615 = vmatpush.msra.mxu1 %v3574_v39 }
 0x3f0   : > { %3591 = vmatpush.msra.mxu0 %v3573_v6  ;;  %3616 = vmatpush.msra.mxu1 %v3573_v6 }
 0x3f2   : > { %3592 = vmatpush.msra.mxu0 %v3572_v47  ;;  %3617 = vmatpush.msra.mxu1 %v3572_v47 }
 0x3f4   : > { %3593 = vmatpush.msra.mxu0 %v3571_v24  ;;  %3618 = vmatpush.msra.mxu1 %v3571_v24 }
 0x3f6   : > { %3594 = vmatpush.msra.mxu0 %v3570_v38  ;;  %3619 = vmatpush.msra.mxu1 %v3570_v38 }
 0x3f8   : > { %3595 = vmatpush.msra.mxu0 %v3569_v28  ;;  %3620 = vmatpush.msra.mxu1 %v3569_v28 }
 0x3fa   : > { %v3392_v58 = vpop.permute.xlu1 %3391 }
 0x3fb   : > { %v3487_v0 = vsel %vm5715_vm2, %v3485_v63, %v3392_v58 }
 0x402   : > { %v3402_v29 = vpop.permute.xlu0 %3401 }
 0x403   : > { %v3489_v17 = vsel %vm5727_vm8, %v3487_v0, %v3402_v29 }
 0x404   : > { %3522 = vmatmul.bf16.vlgmr.msrb.gmra.mxu0 %v3489_v17  ;;  %v3433_v48 = vpop.permute.xlu2 %3432  ;;  %v3407_v15 = vpop.permute.xlu1 %3406 }
 0x405   : > { %v3500_v16 = vsel %vm592_vm3, %v3368_v40, %v3433_v48  ;;  %v3492_v55 = vsel %vm592_vm3, %v2970_v23, %v3407_v15 }
 0x416   : > { %v3348_v51 = vpop.f32.mrf.mxu2 }
 0x417   : > { %v3349_v49 = vadd.f32 %v3348_v51, %v3336_v27 }
 0x41a   : > { %v3455_v61 = vpop.permute.xlu2 %3454  ;;  %v3427_v26 = vpop.permute.xlu1 %3426 }
 0x41e   : > { %v3350_v18 = vpop.f32.mrf.mxu2 }
 0x42a   : > { %v3444_v59 = vpop.permute.xlu0 %3443  ;;  %v3472_v10 = vpop.permute.xlu2 %3471 }
 0x42b   : > { %v3502_v62 = vsel %vm5728_vm1, %v3500_v16, %v3444_v59 }
 0x42c   : > { %v3504_v1 = vsel %vm5729_vm4, %v3502_v62, %v3455_v61 }
 0x42d   : > { %3548 = vmatmul.bf16.vlgmr.msrb.gmra.mxu2 %v3504_v1 }
 0x432   : > { %v3483_v54 = vpop.permute.xlu2 %3482 }
 0x434   : > { %v3461_v9 = vpop.permute.xlu0 %3460 }
 0x435   : > { %v3508_v21 = vsel %vm592_vm3, %v3373_v37, %v3461_v9 }
 0x436   : > { %v3510_v3 = vsel %vm5730_vm5, %v3508_v21, %v3472_v10 }
 0x437   : > { %v3512_v43 = vsel %vm5731_vm11, %v3510_v3, %v3483_v54 }
 0x438   : > { %3561 = vmatmul.bf16.vlgmr.msrb.gmra.mxu3 %v3512_v43 }
 0x43c   : > { %v3417_v31 = vpop.permute.xlu0 %3416 }
 0x43d   : > { %v3494_v36 = vsel %vm5732_vm15, %v3492_v55, %v3417_v31 }
 0x43e   : > { %v3496_v33 = vsel %vm5733_vm13, %v3494_v36, %v3427_v26 }
 0x43f   : > { %3535 = vmatmul.bf16.vlgmr.msrb.gmra.mxu1 %v3496_v33 }
 0x45b   : > { %v3361_v13 = vpop.f32.mrf.mxu3 }
 0x45c   : > { %v3362_v20 = vadd.f32 %v3361_v13, %v3349_v49 }
 0x45e   : > { %vm3365_vm3 = vcmp.ge.f32.partialorder %v3362_v20, 0.0  ;;  %v3366_v41 = vmul.f32 0.01, %v3362_v20 }
 0x460   : > { %v3367_v46 = vsel %vm3365_vm3, %v3362_v20, %v3366_v41 }
 0x461   : > { %3988 = vmatmul.msk.f32.vlgmr.msra.gmra.mxu0 %vm5734_vm6, %v3367_v46 }
 0x463   : > { %v3363_v57 = vpop.f32.mrf.mxu3 }
 0x481   : > { %v3523_v50 = vpop.f32.mrf.mxu0 }
 0x482   : > { %v3524_v12 = vadd.f32 %v5583_v45, %v3523_v50 }
 0x489   : > { %v3525_v60 = vpop.f32.mrf.mxu0 }
 0x4b0   : > { %v3549_v2 = vpop.f32.mrf.mxu2 }
 0x4b8   : > { %v3551_v5 = vpop.f32.mrf.mxu2 }
 0x4bb   : > { %v3562_v30 = vpop.f32.mrf.mxu3 }
 0x4bc   : > { %v3536_v42 = vpop.f32.mrf.mxu1 }
 0x4bd   : > { %v3537_v52 = vadd.f32 %v3536_v42, %v3524_v12 }
 0x4bf   : > { %v3550_v56 = vadd.f32 %v3549_v2, %v3537_v52 }
 0x4c1   : > { %v3563_v23 = vadd.f32 %v3562_v30, %v3550_v56 }
 0x4c3   : > { %v3567_v35 = vmul.f32 0.01, %v3563_v23  ;;  %v3564_v32 = vpop.f32.mrf.mxu3  ;;  %vm3566_vm12 = vcmp.ge.f32.partialorder %v3563_v23, 0.0 }
 0x4c4   : > { %v3538_v4 = vpop.f32.mrf.mxu1 }
 0x4c5   : > { %v3568_v44 = vsel %vm3566_vm12, %v3563_v23, %v3567_v35 }
 0x4c6   : > { %3989 = vmatmul.msk.f32.vlgmr.msra.gmra.mxu1 %vm5735_vm14, %v3568_v44 }
 0x4de   : > { %v3597_v22 = vpop.f32.mrf.mxu0 }
 0x4df   : > { %3601 = vst.msk [vmem:[%s305_s18] sm:$0x3] %vm3600_vm10, %v3597_v22 }
 0x543   : > { %v3622_v53 = vpop.f32.mrf.mxu1 }
 0x544   : > { %3990 = vst.msk [vmem:[%s305_s18 + $0x2] sm:$0x3] %vm3600_vm10, %v3622_v53 }
 0x545 PF: > { %s18_s27 = sadd.s32 1, %s4086_s27  }
 0x546   : > { %p15_p4 = scmp.ge.s32.totalorder %s18_s27, 4  }
 0x548   :  { %17 = sbr.rel (!%p15_p4) target bundleno = 1 (0x1), region = 148 }

</bundles_post_ra>
